<compile_context>
chip_gen: v7x
topology: tpu7x:2x2x1
jax: 0.10.0
libtpu: 0.0.40
codegen_flags: <defaults>
</compile_context>

<pallas_src>
import functools
import math

import jax
import jax.numpy as jnp
from jax.experimental import pallas as pl
from jax.experimental.pallas import tpu as pltpu

_MIB = 1024 * 1024


# ----------------------------------------------------------------------------
# Kernel
# ----------------------------------------------------------------------------

def _layernorm(x, g, b, eps=1e-5):
    mu = jnp.mean(x, axis=-1, keepdims=True)
    xc = x - mu
    var = jnp.mean(xc * xc, axis=-1, keepdims=True)
    return xc * jax.lax.rsqrt(var + eps) * g + b


def _segmenter_kernel(skel_ref, lab_ref, add_ref, wsk_ref, wlab_ref,
                      wq_ref, wk_ref, wv_ref, wo_ref, w1_ref, w2_ref,
                      vec_ref, b1_ref, wc_ref, bc_ref,
                      out_ref, x_scr,
                      *, num_heads, batch_block, seq):
    f32 = jnp.float32
    bf16 = jnp.bfloat16
    layer = pl.program_id(1)
    rows = batch_block * seq
    emb = x_scr.shape[-1]
    dh = emb // num_heads
    scale = 1.0 / math.sqrt(dh)

    # Per-layer packed bias / LayerNorm vectors: one streamed (9, E) block
    # instead of nine separate per-step DMA descriptors.
    vec = vec_ref[...]
    bq, bk, bv, bo = vec[0:1, :], vec[1:2, :], vec[2:3, :], vec[3:4, :]
    b2 = vec[4:5, :]
    g1, bt1 = vec[5:6, :], vec[6:7, :]
    g2, bt2 = vec[7:8, :], vec[8:9, :]
    b1 = b1_ref[...]                                             # (1, F)

    # --- layer 0: fuse input embeddings into the VMEM-resident residual stream.
    #     skel/lab/add have a constant block index along the layer axis, so
    #     they are fetched once per batch block.
    @pl.when(layer == 0)
    def _():
        skel = skel_ref[...].reshape(rows, skel_ref.shape[-1])   # bf16
        lab = lab_ref[...].reshape(rows, lab_ref.shape[-1])      # bf16 (pre-scaled)
        x_scr[...] = (
            jnp.dot(skel, wsk_ref[...], preferred_element_type=f32)
            + jnp.dot(lab, wlab_ref[...], preferred_element_type=f32)
            + add_ref[...].reshape(rows, emb))                   # preseg+pos+biases

    x = x_scr[...]                                               # (rows, E) f32
    xb = x.astype(bf16)

    # Row-folded QKV projections: M = batch_block*seq rows hit the MXU at once.
    q = jnp.dot(xb, wq_ref[...], preferred_element_type=f32) + bq
    k = jnp.dot(xb, wk_ref[...], preferred_element_type=f32) + bk
    v = jnp.dot(xb, wv_ref[...], preferred_element_type=f32) + bv

    # Attention: per head, ONE batched bf16 matmul over every batch entry in
    # the block (no per-head k.T, no per-(batch,head) unrolled loop), a
    # batched softmax, and one batched bf16 context matmul.  Head contexts are
    # concatenated along lanes in registers -> single dense out-projection.
    q3 = q.reshape(batch_block, seq, emb).astype(bf16)
    k3 = k.reshape(batch_block, seq, emb).astype(bf16)
    v3 = v.reshape(batch_block, seq, emb).astype(bf16)

    ctx_heads = []
    for h in range(num_heads):
        cs = slice(h * dh, (h + 1) * dh)
        q_h, k_h, v_h = q3[:, :, cs], k3[:, :, cs], v3[:, :, cs]
        s = jnp.einsum("bqd,bkd->bqk", q_h, k_h,
                       preferred_element_type=f32) * scale       # (bb, T, T) f32
        s = s - jnp.max(s, axis=-1, keepdims=True)
        p = jnp.exp(s)
        p = p / jnp.sum(p, axis=-1, keepdims=True)               # exact softmax
        ctx_heads.append(jnp.einsum("bqk,bkd->bqd", p.astype(bf16), v_h,
                                    preferred_element_type=f32))
    ctx = jnp.concatenate(ctx_heads, axis=-1).reshape(rows, emb)  # (rows, E) f32

    attn = jnp.dot(ctx.astype(bf16), wo_ref[...],
                   preferred_element_type=f32) + bo

    # Post-norm residual blocks (nn.TransformerEncoderLayer, norm_first=False).
    h1 = _layernorm(x + attn, g1, bt1)

    f = jnp.dot(h1.astype(bf16), w1_ref[...], preferred_element_type=f32) + b1
    f = jnp.maximum(f, 0.0)                                      # ReLU (default)
    f = jnp.dot(f.astype(bf16), w2_ref[...], preferred_element_type=f32) + b2

    x_new = _layernorm(h1 + f, g2, bt2)
    x_scr[...] = x_new                                           # carry to next layer

    # Final layer: classifier, output padded to 128 lanes (lane-dense store).
    @pl.when(layer == pl.num_programs(1) - 1)
    def _():
        logits = jnp.dot(x_new.astype(bf16), wc_ref[...],
                         preferred_element_type=f32) + bc_ref[...]
        out_ref[...] = logits.reshape(batch_block, seq, logits.shape[-1])


# ----------------------------------------------------------------------------
# Generation-aware tuning helpers
# ----------------------------------------------------------------------------

def _tpu_generation_info():
    """Best-effort TPU generation query -> block-size / VMEM tuning knobs."""
    kind = ""
    try:
        kind = jax.devices()[0].device_kind.lower()
    except Exception:
        pass
    vmem_cap = None
    try:
        vmem_cap = pltpu.get_tpu_info().vmem_capacity_bytes
    except Exception:
        vmem_cap = None
    is_v7 = ("v7" in kind or "7x" in kind
             or (vmem_cap is not None and vmem_cap <= 80 * _MIB))
    is_v5 = (not is_v7) and ("v5" in kind)
    if is_v7:
        # 64 MiB physical VMEM per TensorCore, 2 TCs per chip.
        return dict(target_rows=256, vmem_limit=36 * _MIB, min_parallel=2)
    if is_v5:
        # 4x128^2 MXU: 128 rows already fills it; 128 MiB VMEM, 1 TC.
        return dict(target_rows=128, vmem_limit=64 * _MIB, min_parallel=1)
    # v6e (and default): 2x256^2 MXU, 128 MiB VMEM, 1 TC.
    return dict(target_rows=256, vmem_limit=64 * _MIB, min_parallel=1)


def _vmem_estimate(bb, seq, skel_dim, lab_dim, emb, ffn, c_pad, heads):
    """Rough per-step VMEM footprint (bytes) for batch block `bb`."""
    rows = bb * seq
    scratch = rows * emb * 4                                     # residual stream
    # Live value slabs: q/k/v/ctx/attn/h1, FFN intermediate, per-head scores.
    values = 6 * rows * emb * 4 + rows * ffn * 4 + bb * heads * seq * seq * 4
    # Streamed per-layer weights (double buffered, bf16) + packed vectors.
    weights = 2 * ((4 * emb * emb + 2 * emb * ffn) * 2 + (9 * emb + ffn) * 4)
    # Constant-index blocks (single buffered).
    consts = (skel_dim * emb + lab_dim * emb + emb * c_pad) * 2 + c_pad * 4
    # Row-block inputs / output (double buffered).
    io = 2 * rows * (2 * skel_dim + 2 * lab_dim + 4 * emb) + 2 * rows * c_pad * 4
    return scratch + values + weights + consts + io


def _round_up(x, m):
    return ((x + m - 1) // m) * m


def _choose_batch_block(batch, seq, skel_dim, lab_dim, emb, ffn, c_pad, heads,
                        info):
    # Keep rows = bb * seq a multiple of 8 sublanes.
    align = 8 // math.gcd(seq, 8)
    bb = max(align, (info["target_rows"] // max(seq, 1)) // align * align)
    bb = min(bb, _round_up(batch, align))
    # Cap bb so the per-step working set fits the scoped-VMEM budget
    # (guards the quadratic score term on 64 MiB v7x parts in particular).
    while bb > align and _vmem_estimate(bb, seq, skel_dim, lab_dim, emb, ffn,
                                        c_pad, heads) > info["vmem_limit"] // 2:
        bb = max(align, (bb // 2) // align * align)
    # v7x: keep the "parallel" batch axis extent >= 2 so both TCs get work.
    while bb > align and pl.cdiv(batch, bb) < info["min_parallel"]:
        bb = max(align, (bb // 2) // align * align)
    return bb


# ----------------------------------------------------------------------------
# Wrapper
# ----------------------------------------------------------------------------

def transformer_segmenter_forward(params, skel_feats, label_indices, label_probs,
                                  preseg, num_heads, num_classes):
    B, T, S = skel_feats.shape
    E = params["wq"].shape[-1]
    F = params["w1"].shape[-1]
    L = params["wlab_t"].shape[0]
    n_layers = params["wq"].shape[0]
    c_pad = params["wc_pad"].shape[-1]
    if T > params["pos_embedding"].shape[1]:
        raise ValueError("Input sequence length exceeds maximum position "
                         "embedding length.")
    assert E % num_heads == 0

    # Glue (cheap gather / elementwise, fused by XLA): embedding lookup,
    # prob scaling, and one precomputed additive term
    #   preseg*W_pre^T + b_pre + b_skel + b_label + pos_embedding.
    lab_scaled = (params["label_embedding"][label_indices]
                  * label_probs[..., None]).astype(jnp.bfloat16)
    add = (preseg[..., None].astype(jnp.float32) * params["wpre_row"]
           + params["bpre"] + params["bsk"] + params["blab"]
           + params["pos_embedding"][:, :T, :])
    add = jnp.broadcast_to(add, (B, T, E)).astype(jnp.float32)
    skel_b = skel_feats.astype(jnp.bfloat16)

    # Pack the ten per-layer (1,E) bias & LayerNorm vectors into ONE streamed
    # array (the F-wide FFN bias stays separate).
    layer_vecs = jnp.concatenate(
        [params["bq"], params["bk"], params["bv"], params["bo"], params["b2"],
         params["g1"], params["bt1"], params["g2"], params["bt2"]],
        axis=1).astype(jnp.float32)                              # (layers, 9, E)

    info = _tpu_generation_info()
    bb = _choose_batch_block(B, T, S, L, E, F, c_pad, num_heads, info)

    # Pad batch up to a multiple of bb (instead of shrinking bb toward 1).
    B_pad = _round_up(B, bb)
    if B_pad != B:
        pad = ((0, B_pad - B), (0, 0), (0, 0))
        skel_b = jnp.pad(skel_b, pad)
        lab_scaled = jnp.pad(lab_scaled, pad)
        add = jnp.pad(add, pad)

    rows = bb * T
    grid = (B_pad // bb, n_layers)   # (parallel batch blocks, sequential layers)

    kern = functools.partial(_segmenter_kernel, num_heads=num_heads,
                             batch_block=bb, seq=T)

    def run(single_buffer_consts):
        def rows_spec(feat):
            return pl.BlockSpec((bb, T, feat), lambda b, l: (b, 0, 0))

        def layer_spec(*dims):
            # Per-layer stacked weights, streamed along the layer grid axis.
            return pl.BlockSpec((None,) + dims,
                                lambda b, l: (l,) + (0,) * len(dims))

        def const_spec(*dims):
            # Constant block index -> fetched once; single-buffer to save VMEM.
            kw = {}
            if single_buffer_consts:
                kw["pipeline_mode"] = pl.Buffered(1)
            return pl.BlockSpec(dims, lambda b, l: (0,) * len(dims), **kw)

        return pl.pallas_call(
            kern,
            out_shape=jax.ShapeDtypeStruct((B_pad, T, c_pad), jnp.float32),
            grid=grid,
            in_specs=[
                rows_spec(S), rows_spec(L), rows_spec(E),
                const_spec(S, E), const_spec(L, E),
                layer_spec(E, E), layer_spec(E, E),          # wq, wk
                layer_spec(E, E), layer_spec(E, E),          # wv, wo
                layer_spec(E, F), layer_spec(F, E),          # ffn w1, w2
                layer_spec(9, E), layer_spec(1, F),          # packed vecs, b1
                const_spec(E, c_pad), const_spec(1, c_pad),  # classifier
            ],
            out_specs=pl.BlockSpec((bb, T, c_pad), lambda b, l: (b, 0, 0)),
            scratch_shapes=[pltpu.VMEM((rows, E), jnp.float32)],  # residual stream
            compiler_params=pltpu.CompilerParams(
                dimension_semantics=("parallel", "arbitrary"),
                vmem_limit_bytes=info["vmem_limit"]),
        )(skel_b, lab_scaled, add,
          params["wsk_t"], params["wlab_t"],
          params["wq"], params["wk"], params["wv"], params["wo"],
          params["w1"], params["w2"], layer_vecs, params["b1"],
          params["wc_pad"], params["bc_pad"])

    try:
        out = run(True)
    except Exception:
        # pipeline_mode=pl.Buffered(1) unsupported on this jax/Mosaic build:
        # fall back to default double-buffering (known-good path).
        out = run(False)

    return out[:B, :, :num_classes]


# ----------------------------------------------------------------------------
# Pure-JAX reference (identical math & bf16 matmul policy) for a sanity check
# ----------------------------------------------------------------------------

def reference_forward(params, skel_feats, label_indices, label_probs, preseg,
                      num_heads, num_classes):
    f32, bf16 = jnp.float32, jnp.bfloat16
    B, T, _ = skel_feats.shape
    E = params["wq"].shape[-1]
    H, dh = num_heads, E // num_heads

    lab = (params["label_embedding"][label_indices]
           * label_probs[..., None]).astype(bf16)
    add = (preseg[..., None].astype(f32) * params["wpre_row"] + params["bpre"]
           + params["bsk"] + params["blab"] + params["pos_embedding"][:, :T, :])
    x = (jnp.dot(skel_feats.astype(bf16), params["wsk_t"],
                 preferred_element_type=f32)
         + jnp.dot(lab, params["wlab_t"], preferred_element_type=f32) + add)

    def ln(v, g, b):
        mu = jnp.mean(v, -1, keepdims=True)
        var = jnp.mean((v - mu) ** 2, -1, keepdims=True)
        return (v - mu) * jax.lax.rsqrt(var + 1e-5) * g + b

    def proj(a, w, b):
        return jnp.einsum("bti,io->bto", a.astype(bf16), w,
                          preferred_element_type=f32) + b

    for li in range(params["wq"].shape[0]):
        q = proj(x, params["wq"][li], params["bq"][li])
        k = proj(x, params["wk"][li], params["bk"][li])
        v = proj(x, params["wv"][li], params["bv"][li])
        qh = q.reshape(B, T, H, dh).astype(bf16)
        kh = k.reshape(B, T, H, dh).astype(bf16)
        vh = v.reshape(B, T, H, dh).astype(bf16)
        s = jnp.einsum("bihd,bjhd->bhij", qh, kh,
                       preferred_element_type=f32) / math.sqrt(dh)
        p = jax.nn.softmax(s, axis=-1)
        ctx = jnp.einsum("bhij,bjhd->bihd", p.astype(bf16), vh,
                         preferred_element_type=f32).reshape(B, T, E)
        attn = proj(ctx, params["wo"][li], params["bo"][li])
        h1 = ln(x + attn, params["g1"][li], params["bt1"][li])
        f = jnp.maximum(proj(h1, params["w1"][li], params["b1"][li]), 0.0)
        f = proj(f, params["w2"][li], params["b2"][li])
        x = ln(h1 + f, params["g2"][li], params["bt2"][li])

    c = num_classes
    return proj(x, params["wc_pad"][:, :c], params["bc_pad"][:, :c])


# ----------------------------------------------------------------------------
# Deterministic parameter init (weights pre-transposed to (in, out); bf16)
# ----------------------------------------------------------------------------

def init_params(key, skeleton_dim, label_vocab_size, label_embed_dim, embed_dim,
                num_heads, num_layers, dim_feedforward=2048, num_classes=2):
    f32, bf16 = jnp.float32, jnp.bfloat16

    def nrm(k, shape, scale=0.05, dtype=f32):
        return (scale * jax.random.normal(k, shape)).astype(dtype)

    keys = iter(jax.random.split(key, 16 + 12 * num_layers))
    c_pad = max(128, ((num_classes + 127) // 128) * 128)
    wc = nrm(next(keys), (embed_dim, num_classes), dtype=bf16)
    bc = nrm(next(keys), (1, num_classes))

    params = {
        "wsk_t": nrm(next(keys), (skeleton_dim, embed_dim), dtype=bf16),
        "bsk": nrm(next(keys), (1, embed_dim)),
        "label_embedding": nrm(next(keys), (label_vocab_size, label_embed_dim), 1.0),
        "wlab_t": nrm(next(keys), (label_embed_dim, embed_dim), dtype=bf16),
        "blab": nrm(next(keys), (1, embed_dim)),
        "wpre_row": nrm(next(keys), (1, embed_dim)),      # Linear(1, E) weight^T
        "bpre": nrm(next(keys), (1, embed_dim)),
        "pos_embedding": nrm(next(keys), (1, 1024, embed_dim), 1.0),
        "wc_pad": jnp.zeros((embed_dim, c_pad), bf16).at[:, :num_classes].set(wc),
        "bc_pad": jnp.zeros((1, c_pad), f32).at[:, :num_classes].set(bc),
    }

    mats = [("wq", (embed_dim, embed_dim)), ("wk", (embed_dim, embed_dim)),
            ("wv", (embed_dim, embed_dim)), ("wo", (embed_dim, embed_dim)),
            ("w1", (embed_dim, dim_feedforward)), ("w2", (dim_feedforward, embed_dim))]
    biases = [("bq", embed_dim), ("bk", embed_dim), ("bv", embed_dim),
              ("bo", embed_dim), ("b1", dim_feedforward), ("b2", embed_dim)]
    stacks = {n: [] for n, _ in mats}
    stacks.update({n: [] for n, _ in biases})
    stacks.update({n: [] for n in ("g1", "bt1", "g2", "bt2")})
    for _ in range(num_layers):
        for n, shape in mats:
            stacks[n].append(nrm(next(keys), shape, dtype=bf16))
        for n, width in biases:
            stacks[n].append(nrm(next(keys), (1, width)))
        stacks["g1"].append(jnp.ones((1, embed_dim), f32))
        stacks["bt1"].append(jnp.zeros((1, embed_dim), f32))
        stacks["g2"].append(jnp.ones((1, embed_dim), f32))
        stacks["bt2"].append(jnp.zeros((1, embed_dim), f32))
    for n, vals in stacks.items():
        params[n] = jnp.stack(vals, axis=0)
    return params


# ----------------------------------------------------------------------------
# Main
# ----------------------------------------------------------------------------

if __name__ == "__main__":
    B, T = 2, 8
    skeleton_dim = 16
    label_vocab_size = 10
    label_embed_dim = 8
    embed_dim = 32
    num_heads = 4
    num_layers = 2
    num_classes = 2
    dim_feedforward = 2048   # nn.TransformerEncoderLayer default

    key = jax.random.PRNGKey(0)
    kp, k1, k2, k3, k4 = jax.random.split(key, 5)

    params = init_params(kp, skeleton_dim, label_vocab_size, label_embed_dim,
                         embed_dim, num_heads, num_layers,
                         dim_feedforward=dim_feedforward, num_classes=num_classes)

    skel_feats = jax.random.normal(k1, (B, T, skeleton_dim), jnp.float32)
    label_indices = jax.random.randint(k2, (B, T), 0, label_vocab_size, jnp.int32)
    label_probs = jax.random.uniform(k3, (B, T), jnp.float32)
    preseg = jax.random.randint(k4, (B, T), 0, 2, jnp.int32)   # .float() in forward

    logits = transformer_segmenter_forward(params, skel_feats, label_indices,
                                            label_probs, preseg, num_heads,
                                            num_classes)
    logits = jax.block_until_ready(logits)
    assert logits.shape == (B, T, num_classes)

    ref = reference_forward(params, skel_feats, label_indices, label_probs,
                            preseg, num_heads, num_classes)
    # bf16 matmul operands (f32 accumulation) everywhere in both paths.
    assert jnp.allclose(logits, ref, rtol=1e-2, atol=1e-2), "mismatch vs reference"

    print("KERNEL_OK")
</pallas_src>

<mosaic_0001>
module attributes {stable_mosaic.version = 11 : i64} {
  func.func @_segmenter_kernel(%arg0: i32, %arg1: i32, %arg2: memref<2x8x16xbf16, #tpu.memory_space<vmem>>, %arg3: memref<2x8x8xbf16, #tpu.memory_space<vmem>>, %arg4: memref<2x8x32xf32, #tpu.memory_space<vmem>>, %arg5: memref<16x32xbf16, #tpu.memory_space<vmem>>, %arg6: memref<8x32xbf16, #tpu.memory_space<vmem>>, %arg7: memref<1x32x32xbf16, #tpu.memory_space<vmem>>, %arg8: memref<1x32x32xbf16, #tpu.memory_space<vmem>>, %arg9: memref<1x32x32xbf16, #tpu.memory_space<vmem>>, %arg10: memref<1x32x32xbf16, #tpu.memory_space<vmem>>, %arg11: memref<1x32x2048xbf16, #tpu.memory_space<vmem>>, %arg12: memref<1x2048x32xbf16, #tpu.memory_space<vmem>>, %arg13: memref<1x9x32xf32, #tpu.memory_space<vmem>>, %arg14: memref<1x1x2048xf32, #tpu.memory_space<vmem>>, %arg15: memref<32x128xbf16, #tpu.memory_space<vmem>>, %arg16: memref<1x128xf32, #tpu.memory_space<vmem>>, %arg17: memref<2x8x128xf32, #tpu.memory_space<vmem>>, %arg18: memref<16x32xf32, #tpu.memory_space<vmem>>) attributes {dimension_semantics = [#tpu.dimension_semantics<parallel>, #tpu.dimension_semantics<arbitrary>], iteration_bounds = array<i64: 1, 2>, scalar_prefetch = 0 : i64, scratch_operands = 1 : i64, tpu.core_type = #tpu.core_type<tc>, window_params = [{transform_indices = @transform_0, window_bounds = array<i64: 2, 8, 16>}, {transform_indices = @transform_1, window_bounds = array<i64: 2, 8, 8>}, {transform_indices = @transform_2, window_bounds = array<i64: 2, 8, 32>}, {pipeline_mode = #tpu.pipeline_mode<synchronous>, transform_indices = @transform_3, window_bounds = array<i64: 16, 32>}, {pipeline_mode = #tpu.pipeline_mode<synchronous>, transform_indices = @transform_4, window_bounds = array<i64: 8, 32>}, {transform_indices = @transform_5, window_bounds = array<i64: 1, 32, 32>}, {transform_indices = @transform_6, window_bounds = array<i64: 1, 32, 32>}, {transform_indices = @transform_7, window_bounds = array<i64: 1, 32, 32>}, {transform_indices = @transform_8, window_bounds = array<i64: 1, 32, 32>}, {transform_indices = @transform_9, window_bounds = array<i64: 1, 32, 2048>}, {transform_indices = @transform_10, window_bounds = array<i64: 1, 2048, 32>}, {transform_indices = @transform_11, window_bounds = array<i64: 1, 9, 32>}, {transform_indices = @transform_12, window_bounds = array<i64: 1, 1, 2048>}, {pipeline_mode = #tpu.pipeline_mode<synchronous>, transform_indices = @transform_13, window_bounds = array<i64: 32, 128>}, {pipeline_mode = #tpu.pipeline_mode<synchronous>, transform_indices = @transform_14, window_bounds = array<i64: 1, 128>}, {transform_indices = @transform_15, window_bounds = array<i64: 2, 8, 128>}]} {
    %c0 = arith.constant 0 : index
    %c0_0 = arith.constant 0 : index
    %c0_1 = arith.constant 0 : index
    %0 = vector.load %arg13[%c0, %c0_0, %c0_1] : memref<1x9x32xf32, #tpu.memory_space<vmem>>, vector<1x9x32xf32>
    %1 = vector.shape_cast %0 : vector<1x9x32xf32> to vector<9x32xf32>
    %2 = vector.extract_strided_slice %1 {offsets = [0, 0], sizes = [1, 32], strides = [1, 1]} : vector<9x32xf32> to vector<1x32xf32>
    %3 = vector.extract_strided_slice %1 {offsets = [1, 0], sizes = [1, 32], strides = [1, 1]} : vector<9x32xf32> to vector<1x32xf32>
    %4 = vector.extract_strided_slice %1 {offsets = [2, 0], sizes = [1, 32], strides = [1, 1]} : vector<9x32xf32> to vector<1x32xf32>
    %5 = vector.extract_strided_slice %1 {offsets = [3, 0], sizes = [1, 32], strides = [1, 1]} : vector<9x32xf32> to vector<1x32xf32>
    %6 = vector.extract_strided_slice %1 {offsets = [4, 0], sizes = [1, 32], strides = [1, 1]} : vector<9x32xf32> to vector<1x32xf32>
    %7 = vector.extract_strided_slice %1 {offsets = [5, 0], sizes = [1, 32], strides = [1, 1]} : vector<9x32xf32> to vector<1x32xf32>
    %8 = vector.extract_strided_slice %1 {offsets = [6, 0], sizes = [1, 32], strides = [1, 1]} : vector<9x32xf32> to vector<1x32xf32>
    %9 = vector.extract_strided_slice %1 {offsets = [7, 0], sizes = [1, 32], strides = [1, 1]} : vector<9x32xf32> to vector<1x32xf32>
    %10 = vector.extract_strided_slice %1 {offsets = [8, 0], sizes = [1, 32], strides = [1, 1]} : vector<9x32xf32> to vector<1x32xf32>
    %c0_2 = arith.constant 0 : index
    %c0_3 = arith.constant 0 : index
    %c0_4 = arith.constant 0 : index
    %11 = vector.load %arg14[%c0_2, %c0_3, %c0_4] : memref<1x1x2048xf32, #tpu.memory_space<vmem>>, vector<1x1x2048xf32>
    %12 = vector.shape_cast %11 : vector<1x1x2048xf32> to vector<1x2048xf32>
    %c0_i32 = arith.constant 0 : i32
    %13 = arith.cmpi eq, %arg1, %c0_i32 : i32
    %14 = arith.extui %13 : i1 to i32
    %c0_i32_5 = arith.constant 0 : i32
    %15 = arith.cmpi ne, %14, %c0_i32_5 : i32
    scf.if %15 {
      %c0_65 = arith.constant 0 : index
      %c0_66 = arith.constant 0 : index
      %c0_67 = arith.constant 0 : index
      %175 = vector.load %arg2[%c0_65, %c0_66, %c0_67] : memref<2x8x16xbf16, #tpu.memory_space<vmem>>, vector<2x8x16xbf16>
      %176 = vector.shape_cast %175 : vector<2x8x16xbf16> to vector<16x16xbf16>
      %c0_68 = arith.constant 0 : index
      %c0_69 = arith.constant 0 : index
      %c0_70 = arith.constant 0 : index
      %177 = vector.load %arg3[%c0_68, %c0_69, %c0_70] : memref<2x8x8xbf16, #tpu.memory_space<vmem>>, vector<2x8x8xbf16>
      %178 = vector.shape_cast %177 : vector<2x8x8xbf16> to vector<16x8xbf16>
      %c0_71 = arith.constant 0 : index
      %c0_72 = arith.constant 0 : index
      %179 = vector.load %arg5[%c0_71, %c0_72] : memref<16x32xbf16, #tpu.memory_space<vmem>>, vector<16x32xbf16>
      %cst_73 = arith.constant dense<0.000000e+00> : vector<16x32xf32>
      %180 = tpu.matmul %176, %179, %cst_73 {dimension_numbers = #tpu.dot_dimension_numbers<[1], [0], [0], [1], [0, 0, 1, 1], [], []>} : vector<16x16xbf16>, vector<16x32xbf16>, vector<16x32xf32> -> vector<16x32xf32>
      %c0_74 = arith.constant 0 : index
      %c0_75 = arith.constant 0 : index
      %181 = vector.load %arg6[%c0_74, %c0_75] : memref<8x32xbf16, #tpu.memory_space<vmem>>, vector<8x32xbf16>
      %cst_76 = arith.constant dense<0.000000e+00> : vector<16x32xf32>
      %182 = tpu.matmul %178, %181, %cst_76 {dimension_numbers = #tpu.dot_dimension_numbers<[1], [0], [0], [1], [0, 0, 1, 1], [], []>} : vector<16x8xbf16>, vector<8x32xbf16>, vector<16x32xf32> -> vector<16x32xf32>
      %183 = arith.addf %180, %182 : vector<16x32xf32>
      %c0_77 = arith.constant 0 : index
      %c0_78 = arith.constant 0 : index
      %c0_79 = arith.constant 0 : index
      %184 = vector.load %arg4[%c0_77, %c0_78, %c0_79] : memref<2x8x32xf32, #tpu.memory_space<vmem>>, vector<2x8x32xf32>
      %185 = vector.shape_cast %184 : vector<2x8x32xf32> to vector<16x32xf32>
      %186 = arith.addf %183, %185 : vector<16x32xf32>
      %c0_80 = arith.constant 0 : index
      %c0_81 = arith.constant 0 : index
      %187 = vector.load %arg18[%c0_80, %c0_81] : memref<16x32xf32, #tpu.memory_space<vmem>>, vector<16x32xf32>
      tpu.vector_store %arg18[%c0_80, %c0_81], %186 {strides = array<i32>} : memref<16x32xf32, #tpu.memory_space<vmem>>, vector<16x32xf32>,
    } else {
    }
    %c0_6 = arith.constant 0 : index
    %c0_7 = arith.constant 0 : index
    %16 = vector.load %arg18[%c0_6, %c0_7] : memref<16x32xf32, #tpu.memory_space<vmem>>, vector<16x32xf32>
    %17 = arith.truncf %16 : vector<16x32xf32> to vector<16x32xbf16>
    %c0_8 = arith.constant 0 : index
    %c0_9 = arith.constant 0 : index
    %c0_10 = arith.constant 0 : index
    %18 = vector.load %arg7[%c0_8, %c0_9, %c0_10] : memref<1x32x32xbf16, #tpu.memory_space<vmem>>, vector<1x32x32xbf16>
    %19 = vector.shape_cast %18 : vector<1x32x32xbf16> to vector<32x32xbf16>
    %cst = arith.constant dense<0.000000e+00> : vector<16x32xf32>
    %20 = tpu.matmul %17, %19, %cst {dimension_numbers = #tpu.dot_dimension_numbers<[1], [0], [0], [1], [0, 0, 1, 1], [], []>} : vector<16x32xbf16>, vector<32x32xbf16>, vector<16x32xf32> -> vector<16x32xf32>
    %21 = vector.broadcast %2 : vector<1x32xf32> to vector<16x32xf32>
    %22 = arith.addf %20, %21 : vector<16x32xf32>
    %c0_11 = arith.constant 0 : index
    %c0_12 = arith.constant 0 : index
    %c0_13 = arith.constant 0 : index
    %23 = vector.load %arg8[%c0_11, %c0_12, %c0_13] : memref<1x32x32xbf16, #tpu.memory_space<vmem>>, vector<1x32x32xbf16>
    %24 = vector.shape_cast %23 : vector<1x32x32xbf16> to vector<32x32xbf16>
    %cst_14 = arith.constant dense<0.000000e+00> : vector<16x32xf32>
    %25 = tpu.matmul %17, %24, %cst_14 {dimension_numbers = #tpu.dot_dimension_numbers<[1], [0], [0], [1], [0, 0, 1, 1], [], []>} : vector<16x32xbf16>, vector<32x32xbf16>, vector<16x32xf32> -> vector<16x32xf32>
    %26 = vector.broadcast %3 : vector<1x32xf32> to vector<16x32xf32>
    %27 = arith.addf %25, %26 : vector<16x32xf32>
    %c0_15 = arith.constant 0 : index
    %c0_16 = arith.constant 0 : index
    %c0_17 = arith.constant 0 : index
    %28 = vector.load %arg9[%c0_15, %c0_16, %c0_17] : memref<1x32x32xbf16, #tpu.memory_space<vmem>>, vector<1x32x32xbf16>
    %29 = vector.shape_cast %28 : vector<1x32x32xbf16> to vector<32x32xbf16>
    %cst_18 = arith.constant dense<0.000000e+00> : vector<16x32xf32>
    %30 = tpu.matmul %17, %29, %cst_18 {dimension_numbers = #tpu.dot_dimension_numbers<[1], [0], [0], [1], [0, 0, 1, 1], [], []>} : vector<16x32xbf16>, vector<32x32xbf16>, vector<16x32xf32> -> vector<16x32xf32>
    %31 = vector.broadcast %4 : vector<1x32xf32> to vector<16x32xf32>
    %32 = arith.addf %30, %31 : vector<16x32xf32>
    %33 = vector.shape_cast %22 : vector<16x32xf32> to vector<2x8x32xf32>
    %34 = arith.truncf %33 : vector<2x8x32xf32> to vector<2x8x32xbf16>
    %35 = vector.shape_cast %27 : vector<16x32xf32> to vector<2x8x32xf32>
    %36 = arith.truncf %35 : vector<2x8x32xf32> to vector<2x8x32xbf16>
    %37 = vector.shape_cast %32 : vector<16x32xf32> to vector<2x8x32xf32>
    %38 = arith.truncf %37 : vector<2x8x32xf32> to vector<2x8x32xbf16>
    %39 = vector.extract_strided_slice %34 {offsets = [0, 0, 0], sizes = [2, 8, 8], strides = [1, 1, 1]} : vector<2x8x32xbf16> to vector<2x8x8xbf16>
    %40 = vector.extract_strided_slice %36 {offsets = [0, 0, 0], sizes = [2, 8, 8], strides = [1, 1, 1]} : vector<2x8x32xbf16> to vector<2x8x8xbf16>
    %41 = vector.extract_strided_slice %38 {offsets = [0, 0, 0], sizes = [2, 8, 8], strides = [1, 1, 1]} : vector<2x8x32xbf16> to vector<2x8x8xbf16>
    "tpu.trace_start"() <{level = 10 : i32, message = "bqd,bkd->bqk"}> : () -> ()
    %cst_19 = arith.constant dense<0.000000e+00> : vector<2x8x8xf32>
    %42 = tpu.matmul %39, %40, %cst_19 {dimension_numbers = #tpu.dot_dimension_numbers<[2], [2], [1], [1], [0, 0, 0, 1, 1, 1], [0], [0]>} : vector<2x8x8xbf16>, vector<2x8x8xbf16>, vector<2x8x8xf32> -> vector<2x8x8xf32>
    "tpu.trace_stop"() : () -> ()
    %cst_20 = arith.constant 0.353553385 : f32
    %43 = vector.broadcast %cst_20 : f32 to vector<2x8x8xf32>
    %44 = arith.mulf %42, %43 : vector<2x8x8xf32>
    %cst_21 = arith.constant dense<0xFF800000> : vector<2x8xf32>
    %45 = vector.multi_reduction <maximumf>, %44, %cst_21 [2] : vector<2x8x8xf32> to vector<2x8xf32>
    %46 = vector.shape_cast %45 : vector<2x8xf32> to vector<2x8x1xf32>
    %47 = vector.broadcast %46 : vector<2x8x1xf32> to vector<2x8x8xf32>
    %48 = arith.subf %44, %47 : vector<2x8x8xf32>
    %49 = math.exp %48 : vector<2x8x8xf32>
    %cst_22 = arith.constant dense<0.000000e+00> : vector<2x8xf32>
    %50 = vector.multi_reduction <add>, %49, %cst_22 [2] : vector<2x8x8xf32> to vector<2x8xf32>
    %51 = vector.shape_cast %50 : vector<2x8xf32> to vector<2x8x1xf32>
    %52 = vector.broadcast %51 : vector<2x8x1xf32> to vector<2x8x8xf32>
    %53 = arith.divf %49, %52 : vector<2x8x8xf32>
    %54 = arith.truncf %53 : vector<2x8x8xf32> to vector<2x8x8xbf16>
    "tpu.trace_start"() <{level = 10 : i32, message = "bqk,bkd->bqd"}> : () -> ()
    %cst_23 = arith.constant dense<0.000000e+00> : vector<2x8x8xf32>
    %55 = tpu.matmul %54, %41, %cst_23 {dimension_numbers = #tpu.dot_dimension_numbers<[2], [1], [1], [2], [0, 0, 0, 1, 1, 2], [0], [0]>} : vector<2x8x8xbf16>, vector<2x8x8xbf16>, vector<2x8x8xf32> -> vector<2x8x8xf32>
    "tpu.trace_stop"() : () -> ()
    %56 = vector.extract_strided_slice %34 {offsets = [0, 0, 8], sizes = [2, 8, 8], strides = [1, 1, 1]} : vector<2x8x32xbf16> to vector<2x8x8xbf16>
    %57 = vector.extract_strided_slice %36 {offsets = [0, 0, 8], sizes = [2, 8, 8], strides = [1, 1, 1]} : vector<2x8x32xbf16> to vector<2x8x8xbf16>
    %58 = vector.extract_strided_slice %38 {offsets = [0, 0, 8], sizes = [2, 8, 8], strides = [1, 1, 1]} : vector<2x8x32xbf16> to vector<2x8x8xbf16>
    "tpu.trace_start"() <{level = 10 : i32, message = "bqd,bkd->bqk"}> : () -> ()
    %cst_24 = arith.constant dense<0.000000e+00> : vector<2x8x8xf32>
    %59 = tpu.matmul %56, %57, %cst_24 {dimension_numbers = #tpu.dot_dimension_numbers<[2], [2], [1], [1], [0, 0, 0, 1, 1, 1], [0], [0]>} : vector<2x8x8xbf16>, vector<2x8x8xbf16>, vector<2x8x8xf32> -> vector<2x8x8xf32>
    "tpu.trace_stop"() : () -> ()
    %cst_25 = arith.constant 0.353553385 : f32
    %60 = vector.broadcast %cst_25 : f32 to vector<2x8x8xf32>
    %61 = arith.mulf %59, %60 : vector<2x8x8xf32>
    %cst_26 = arith.constant dense<0xFF800000> : vector<2x8xf32>
    %62 = vector.multi_reduction <maximumf>, %61, %cst_26 [2] : vector<2x8x8xf32> to vector<2x8xf32>
    %63 = vector.shape_cast %62 : vector<2x8xf32> to vector<2x8x1xf32>
    %64 = vector.broadcast %63 : vector<2x8x1xf32> to vector<2x8x8xf32>
    %65 = arith.subf %61, %64 : vector<2x8x8xf32>
    %66 = math.exp %65 : vector<2x8x8xf32>
    %cst_27 = arith.constant dense<0.000000e+00> : vector<2x8xf32>
    %67 = vector.multi_reduction <add>, %66, %cst_27 [2] : vector<2x8x8xf32> to vector<2x8xf32>
    %68 = vector.shape_cast %67 : vector<2x8xf32> to vector<2x8x1xf32>
    %69 = vector.broadcast %68 : vector<2x8x1xf32> to vector<2x8x8xf32>
    %70 = arith.divf %66, %69 : vector<2x8x8xf32>
    %71 = arith.truncf %70 : vector<2x8x8xf32> to vector<2x8x8xbf16>
    "tpu.trace_start"() <{level = 10 : i32, message = "bqk,bkd->bqd"}> : () -> ()
    %cst_28 = arith.constant dense<0.000000e+00> : vector<2x8x8xf32>
    %72 = tpu.matmul %71, %58, %cst_28 {dimension_numbers = #tpu.dot_dimension_numbers<[2], [1], [1], [2], [0, 0, 0, 1, 1, 2], [0], [0]>} : vector<2x8x8xbf16>, vector<2x8x8xbf16>, vector<2x8x8xf32> -> vector<2x8x8xf32>
    "tpu.trace_stop"() : () -> ()
    %73 = vector.extract_strided_slice %34 {offsets = [0, 0, 16], sizes = [2, 8, 8], strides = [1, 1, 1]} : vector<2x8x32xbf16> to vector<2x8x8xbf16>
    %74 = vector.extract_strided_slice %36 {offsets = [0, 0, 16], sizes = [2, 8, 8], strides = [1, 1, 1]} : vector<2x8x32xbf16> to vector<2x8x8xbf16>
    %75 = vector.extract_strided_slice %38 {offsets = [0, 0, 16], sizes = [2, 8, 8], strides = [1, 1, 1]} : vector<2x8x32xbf16> to vector<2x8x8xbf16>
    "tpu.trace_start"() <{level = 10 : i32, message = "bqd,bkd->bqk"}> : () -> ()
    %cst_29 = arith.constant dense<0.000000e+00> : vector<2x8x8xf32>
    %76 = tpu.matmul %73, %74, %cst_29 {dimension_numbers = #tpu.dot_dimension_numbers<[2], [2], [1], [1], [0, 0, 0, 1, 1, 1], [0], [0]>} : vector<2x8x8xbf16>, vector<2x8x8xbf16>, vector<2x8x8xf32> -> vector<2x8x8xf32>
    "tpu.trace_stop"() : () -> ()
    %cst_30 = arith.constant 0.353553385 : f32
    %77 = vector.broadcast %cst_30 : f32 to vector<2x8x8xf32>
    %78 = arith.mulf %76, %77 : vector<2x8x8xf32>
    %cst_31 = arith.constant dense<0xFF800000> : vector<2x8xf32>
    %79 = vector.multi_reduction <maximumf>, %78, %cst_31 [2] : vector<2x8x8xf32> to vector<2x8xf32>
    %80 = vector.shape_cast %79 : vector<2x8xf32> to vector<2x8x1xf32>
    %81 = vector.broadcast %80 : vector<2x8x1xf32> to vector<2x8x8xf32>
    %82 = arith.subf %78, %81 : vector<2x8x8xf32>
    %83 = math.exp %82 : vector<2x8x8xf32>
    %cst_32 = arith.constant dense<0.000000e+00> : vector<2x8xf32>
    %84 = vector.multi_reduction <add>, %83, %cst_32 [2] : vector<2x8x8xf32> to vector<2x8xf32>
    %85 = vector.shape_cast %84 : vector<2x8xf32> to vector<2x8x1xf32>
    %86 = vector.broadcast %85 : vector<2x8x1xf32> to vector<2x8x8xf32>
    %87 = arith.divf %83, %86 : vector<2x8x8xf32>
    %88 = arith.truncf %87 : vector<2x8x8xf32> to vector<2x8x8xbf16>
    "tpu.trace_start"() <{level = 10 : i32, message = "bqk,bkd->bqd"}> : () -> ()
    %cst_33 = arith.constant dense<0.000000e+00> : vector<2x8x8xf32>
    %89 = tpu.matmul %88, %75, %cst_33 {dimension_numbers = #tpu.dot_dimension_numbers<[2], [1], [1], [2], [0, 0, 0, 1, 1, 2], [0], [0]>} : vector<2x8x8xbf16>, vector<2x8x8xbf16>, vector<2x8x8xf32> -> vector<2x8x8xf32>
    "tpu.trace_stop"() : () -> ()
    %90 = vector.extract_strided_slice %34 {offsets = [0, 0, 24], sizes = [2, 8, 8], strides = [1, 1, 1]} : vector<2x8x32xbf16> to vector<2x8x8xbf16>
    %91 = vector.extract_strided_slice %36 {offsets = [0, 0, 24], sizes = [2, 8, 8], strides = [1, 1, 1]} : vector<2x8x32xbf16> to vector<2x8x8xbf16>
    %92 = vector.extract_strided_slice %38 {offsets = [0, 0, 24], sizes = [2, 8, 8], strides = [1, 1, 1]} : vector<2x8x32xbf16> to vector<2x8x8xbf16>
    "tpu.trace_start"() <{level = 10 : i32, message = "bqd,bkd->bqk"}> : () -> ()
    %cst_34 = arith.constant dense<0.000000e+00> : vector<2x8x8xf32>
    %93 = tpu.matmul %90, %91, %cst_34 {dimension_numbers = #tpu.dot_dimension_numbers<[2], [2], [1], [1], [0, 0, 0, 1, 1, 1], [0], [0]>} : vector<2x8x8xbf16>, vector<2x8x8xbf16>, vector<2x8x8xf32> -> vector<2x8x8xf32>
    "tpu.trace_stop"() : () -> ()
    %cst_35 = arith.constant 0.353553385 : f32
    %94 = vector.broadcast %cst_35 : f32 to vector<2x8x8xf32>
    %95 = arith.mulf %93, %94 : vector<2x8x8xf32>
    %cst_36 = arith.constant dense<0xFF800000> : vector<2x8xf32>
    %96 = vector.multi_reduction <maximumf>, %95, %cst_36 [2] : vector<2x8x8xf32> to vector<2x8xf32>
    %97 = vector.shape_cast %96 : vector<2x8xf32> to vector<2x8x1xf32>
    %98 = vector.broadcast %97 : vector<2x8x1xf32> to vector<2x8x8xf32>
    %99 = arith.subf %95, %98 : vector<2x8x8xf32>
    %100 = math.exp %99 : vector<2x8x8xf32>
    %cst_37 = arith.constant dense<0.000000e+00> : vector<2x8xf32>
    %101 = vector.multi_reduction <add>, %100, %cst_37 [2] : vector<2x8x8xf32> to vector<2x8xf32>
    %102 = vector.shape_cast %101 : vector<2x8xf32> to vector<2x8x1xf32>
    %103 = vector.broadcast %102 : vector<2x8x1xf32> to vector<2x8x8xf32>
    %104 = arith.divf %100, %103 : vector<2x8x8xf32>
    %105 = arith.truncf %104 : vector<2x8x8xf32> to vector<2x8x8xbf16>
    "tpu.trace_start"() <{level = 10 : i32, message = "bqk,bkd->bqd"}> : () -> ()
    %cst_38 = arith.constant dense<0.000000e+00> : vector<2x8x8xf32>
    %106 = tpu.matmul %105, %92, %cst_38 {dimension_numbers = #tpu.dot_dimension_numbers<[2], [1], [1], [2], [0, 0, 0, 1, 1, 2], [0], [0]>} : vector<2x8x8xbf16>, vector<2x8x8xbf16>, vector<2x8x8xf32> -> vector<2x8x8xf32>
    "tpu.trace_stop"() : () -> ()
    %107 = tpu.concatenate %55, %72, %89, %106 in 2 : vector<2x8x8xf32>, vector<2x8x8xf32>, vector<2x8x8xf32>, vector<2x8x8xf32> -> vector<2x8x32xf32>
    %108 = vector.shape_cast %107 : vector<2x8x32xf32> to vector<16x32xf32>
    %109 = arith.truncf %108 : vector<16x32xf32> to vector<16x32xbf16>
    %c0_39 = arith.constant 0 : index
    %c0_40 = arith.constant 0 : index
    %c0_41 = arith.constant 0 : index
    %110 = vector.load %arg10[%c0_39, %c0_40, %c0_41] : memref<1x32x32xbf16, #tpu.memory_space<vmem>>, vector<1x32x32xbf16>
    %111 = vector.shape_cast %110 : vector<1x32x32xbf16> to vector<32x32xbf16>
    %cst_42 = arith.constant dense<0.000000e+00> : vector<16x32xf32>
    %112 = tpu.matmul %109, %111, %cst_42 {dimension_numbers = #tpu.dot_dimension_numbers<[1], [0], [0], [1], [0, 0, 1, 1], [], []>} : vector<16x32xbf16>, vector<32x32xbf16>, vector<16x32xf32> -> vector<16x32xf32>
    %113 = vector.broadcast %5 : vector<1x32xf32> to vector<16x32xf32>
    %114 = arith.addf %112, %113 : vector<16x32xf32>
    %115 = arith.addf %16, %114 : vector<16x32xf32>
    %cst_43 = arith.constant dense<0.000000e+00> : vector<16xf32>
    %116 = vector.multi_reduction <add>, %115, %cst_43 [1] : vector<16x32xf32> to vector<16xf32>
    %117 = vector.shape_cast %116 : vector<16xf32> to vector<16x1xf32>
    %cst_44 = arith.constant 3.200000e+01 : f32
    %118 = vector.broadcast %cst_44 : f32 to vector<16x1xf32>
    %119 = arith.divf %117, %118 : vector<16x1xf32>
    %120 = vector.broadcast %119 : vector<16x1xf32> to vector<16x32xf32>
    %121 = arith.subf %115, %120 : vector<16x32xf32>
    %122 = arith.mulf %121, %121 : vector<16x32xf32>
    %cst_45 = arith.constant dense<0.000000e+00> : vector<16xf32>
    %123 = vector.multi_reduction <add>, %122, %cst_45 [1] : vector<16x32xf32> to vector<16xf32>
    %124 = vector.shape_cast %123 : vector<16xf32> to vector<16x1xf32>
    %cst_46 = arith.constant 3.200000e+01 : f32
    %125 = vector.broadcast %cst_46 : f32 to vector<16x1xf32>
    %126 = arith.divf %124, %125 : vector<16x1xf32>
    %cst_47 = arith.constant 9.99999974E-6 : f32
    %127 = vector.broadcast %cst_47 : f32 to vector<16x1xf32>
    %128 = arith.addf %126, %127 : vector<16x1xf32>
    %129 = math.rsqrt %128 : vector<16x1xf32>
    %130 = vector.broadcast %129 : vector<16x1xf32> to vector<16x32xf32>
    %131 = arith.mulf %121, %130 : vector<16x32xf32>
    %132 = vector.broadcast %7 : vector<1x32xf32> to vector<16x32xf32>
    %133 = arith.mulf %131, %132 : vector<16x32xf32>
    %134 = vector.broadcast %8 : vector<1x32xf32> to vector<16x32xf32>
    %135 = arith.addf %133, %134 : vector<16x32xf32>
    %136 = arith.truncf %135 : vector<16x32xf32> to vector<16x32xbf16>
    %c0_48 = arith.constant 0 : index
    %c0_49 = arith.constant 0 : index
    %c0_50 = arith.constant 0 : index
    %137 = vector.load %arg11[%c0_48, %c0_49, %c0_50] : memref<1x32x2048xbf16, #tpu.memory_space<vmem>>, vector<1x32x2048xbf16>
    %138 = vector.shape_cast %137 : vector<1x32x2048xbf16> to vector<32x2048xbf16>
    %cst_51 = arith.constant dense<0.000000e+00> : vector<16x2048xf32>
    %139 = tpu.matmul %136, %138, %cst_51 {dimension_numbers = #tpu.dot_dimension_numbers<[1], [0], [0], [1], [0, 0, 1, 1], [], []>} : vector<16x32xbf16>, vector<32x2048xbf16>, vector<16x2048xf32> -> vector<16x2048xf32>
    %140 = vector.broadcast %12 : vector<1x2048xf32> to vector<16x2048xf32>
    %141 = arith.addf %139, %140 : vector<16x2048xf32>
    %cst_52 = arith.constant 0.000000e+00 : f32
    %142 = vector.broadcast %cst_52 : f32 to vector<16x2048xf32>
    %143 = arith.maximumf %141, %142 : vector<16x2048xf32>
    %144 = arith.truncf %143 : vector<16x2048xf32> to vector<16x2048xbf16>
    %c0_53 = arith.constant 0 : index
    %c0_54 = arith.constant 0 : index
    %c0_55 = arith.constant 0 : index
    %145 = vector.load %arg12[%c0_53, %c0_54, %c0_55] : memref<1x2048x32xbf16, #tpu.memory_space<vmem>>, vector<1x2048x32xbf16>
    %146 = vector.shape_cast %145 : vector<1x2048x32xbf16> to vector<2048x32xbf16>
    %cst_56 = arith.constant dense<0.000000e+00> : vector<16x32xf32>
    %147 = tpu.matmul %144, %146, %cst_56 {dimension_numbers = #tpu.dot_dimension_numbers<[1], [0], [0], [1], [0, 0, 1, 1], [], []>} : vector<16x2048xbf16>, vector<2048x32xbf16>, vector<16x32xf32> -> vector<16x32xf32>
    %148 = vector.broadcast %6 : vector<1x32xf32> to vector<16x32xf32>
    %149 = arith.addf %147, %148 : vector<16x32xf32>
    %150 = arith.addf %135, %149 : vector<16x32xf32>
    %cst_57 = arith.constant dense<0.000000e+00> : vector<16xf32>
    %151 = vector.multi_reduction <add>, %150, %cst_57 [1] : vector<16x32xf32> to vector<16xf32>
    %152 = vector.shape_cast %151 : vector<16xf32> to vector<16x1xf32>
    %cst_58 = arith.constant 3.200000e+01 : f32
    %153 = vector.broadcast %cst_58 : f32 to vector<16x1xf32>
    %154 = arith.divf %152, %153 : vector<16x1xf32>
    %155 = vector.broadcast %154 : vector<16x1xf32> to vector<16x32xf32>
    %156 = arith.subf %150, %155 : vector<16x32xf32>
    %157 = arith.mulf %156, %156 : vector<16x32xf32>
    %cst_59 = arith.constant dense<0.000000e+00> : vector<16xf32>
    %158 = vector.multi_reduction <add>, %157, %cst_59 [1] : vector<16x32xf32> to vector<16xf32>
    %159 = vector.shape_cast %158 : vector<16xf32> to vector<16x1xf32>
    %cst_60 = arith.constant 3.200000e+01 : f32
    %160 = vector.broadcast %cst_60 : f32 to vector<16x1xf32>
    %161 = arith.divf %159, %160 : vector<16x1xf32>
    %cst_61 = arith.constant 9.99999974E-6 : f32
    %162 = vector.broadcast %cst_61 : f32 to vector<16x1xf32>
    %163 = arith.addf %161, %162 : vector<16x1xf32>
    %164 = math.rsqrt %163 : vector<16x1xf32>
    %165 = vector.broadcast %164 : vector<16x1xf32> to vector<16x32xf32>
    %166 = arith.mulf %156, %165 : vector<16x32xf32>
    %167 = vector.broadcast %9 : vector<1x32xf32> to vector<16x32xf32>
    %168 = arith.mulf %166, %167 : vector<16x32xf32>
    %169 = vector.broadcast %10 : vector<1x32xf32> to vector<16x32xf32>
    %170 = arith.addf %168, %169 : vector<16x32xf32>
    %c0_62 = arith.constant 0 : index
    %c0_63 = arith.constant 0 : index
    %171 = vector.load %arg18[%c0_62, %c0_63] : memref<16x32xf32, #tpu.memory_space<vmem>>, vector<16x32xf32>
    tpu.vector_store %arg18[%c0_62, %c0_63], %170 {strides = array<i32>} : memref<16x32xf32, #tpu.memory_space<vmem>>, vector<16x32xf32>,
    %c1_i32 = arith.constant 1 : i32
    %172 = arith.cmpi eq, %arg1, %c1_i32 : i32
    %173 = arith.extui %172 : i1 to i32
    %c0_i32_64 = arith.constant 0 : i32
    %174 = arith.cmpi ne, %173, %c0_i32_64 : i32
    scf.if %174 {
      %175 = arith.truncf %170 : vector<16x32xf32> to vector<16x32xbf16>
      %c0_65 = arith.constant 0 : index
      %c0_66 = arith.constant 0 : index
      %176 = vector.load %arg15[%c0_65, %c0_66] : memref<32x128xbf16, #tpu.memory_space<vmem>>, vector<32x128xbf16>
      %cst_67 = arith.constant dense<0.000000e+00> : vector<16x128xf32>
      %177 = tpu.matmul %175, %176, %cst_67 {dimension_numbers = #tpu.dot_dimension_numbers<[1], [0], [0], [1], [0, 0, 1, 1], [], []>} : vector<16x32xbf16>, vector<32x128xbf16>, vector<16x128xf32> -> vector<16x128xf32>
      %c0_68 = arith.constant 0 : index
      %c0_69 = arith.constant 0 : index
      %178 = vector.load %arg16[%c0_68, %c0_69] : memref<1x128xf32, #tpu.memory_space<vmem>>, vector<1x128xf32>
      %179 = vector.broadcast %178 : vector<1x128xf32> to vector<16x128xf32>
      %180 = arith.addf %177, %179 : vector<16x128xf32>
      %181 = vector.shape_cast %180 : vector<16x128xf32> to vector<2x8x128xf32>
      %c0_70 = arith.constant 0 : index
      %c0_71 = arith.constant 0 : index
      %c0_72 = arith.constant 0 : index
      %182 = vector.load %arg17[%c0_70, %c0_71, %c0_72] : memref<2x8x128xf32, #tpu.memory_space<vmem>>, vector<2x8x128xf32>
      tpu.vector_store %arg17[%c0_70, %c0_71, %c0_72], %181 {strides = array<i32>} : memref<2x8x128xf32, #tpu.memory_space<vmem>>, vector<2x8x128xf32>,
    } else {
    }
    return
  }
  func.func @transform_0(%arg0: i32, %arg1: i32) -> (i32, i32, i32) {
    %c0_i32 = arith.constant 0 : i32
    %c0_i32_0 = arith.constant 0 : i32
    %c0_i32_1 = arith.constant 0 : i32
    return %arg0, %c0_i32, %c0_i32_0 : i32, i32, i32
  }
  func.func @transform_1(%arg0: i32, %arg1: i32) -> (i32, i32, i32) {
    %c0_i32 = arith.constant 0 : i32
    %c0_i32_0 = arith.constant 0 : i32
    %c0_i32_1 = arith.constant 0 : i32
    return %arg0, %c0_i32, %c0_i32_0 : i32, i32, i32
  }
  func.func @transform_2(%arg0: i32, %arg1: i32) -> (i32, i32, i32) {
    %c0_i32 = arith.constant 0 : i32
    %c0_i32_0 = arith.constant 0 : i32
    %c0_i32_1 = arith.constant 0 : i32
    return %arg0, %c0_i32, %c0_i32_0 : i32, i32, i32
  }
  func.func @transform_3(%arg0: i32, %arg1: i32) -> (i32, i32) {
    %c0_i32 = arith.constant 0 : i32
    %c0_i32_0 = arith.constant 0 : i32
    %c0_i32_1 = arith.constant 0 : i32
    return %c0_i32, %c0_i32_0 : i32, i32
  }
  func.func @transform_4(%arg0: i32, %arg1: i32) -> (i32, i32) {
    %c0_i32 = arith.constant 0 : i32
    %c0_i32_0 = arith.constant 0 : i32
    %c0_i32_1 = arith.constant 0 : i32
    return %c0_i32, %c0_i32_0 : i32, i32
  }
  func.func @transform_5(%arg0: i32, %arg1: i32) -> (i32, i32, i32) {
    %c0_i32 = arith.constant 0 : i32
    %c0_i32_0 = arith.constant 0 : i32
    %c0_i32_1 = arith.constant 0 : i32
    return %arg1, %c0_i32, %c0_i32_0 : i32, i32, i32
  }
  func.func @transform_6(%arg0: i32, %arg1: i32) -> (i32, i32, i32) {
    %c0_i32 = arith.constant 0 : i32
    %c0_i32_0 = arith.constant 0 : i32
    %c0_i32_1 = arith.constant 0 : i32
    return %arg1, %c0_i32, %c0_i32_0 : i32, i32, i32
  }
  func.func @transform_7(%arg0: i32, %arg1: i32) -> (i32, i32, i32) {
    %c0_i32 = arith.constant 0 : i32
    %c0_i32_0 = arith.constant 0 : i32
    %c0_i32_1 = arith.constant 0 : i32
    return %arg1, %c0_i32, %c0_i32_0 : i32, i32, i32
  }
  func.func @transform_8(%arg0: i32, %arg1: i32) -> (i32, i32, i32) {
    %c0_i32 = arith.constant 0 : i32
    %c0_i32_0 = arith.constant 0 : i32
    %c0_i32_1 = arith.constant 0 : i32
    return %arg1, %c0_i32, %c0_i32_0 : i32, i32, i32
  }
  func.func @transform_9(%arg0: i32, %arg1: i32) -> (i32, i32, i32) {
    %c0_i32 = arith.constant 0 : i32
    %c0_i32_0 = arith.constant 0 : i32
    %c0_i32_1 = arith.constant 0 : i32
    return %arg1, %c0_i32, %c0_i32_0 : i32, i32, i32
  }
  func.func @transform_10(%arg0: i32, %arg1: i32) -> (i32, i32, i32) {
    %c0_i32 = arith.constant 0 : i32
    %c0_i32_0 = arith.constant 0 : i32
    %c0_i32_1 = arith.constant 0 : i32
    return %arg1, %c0_i32, %c0_i32_0 : i32, i32, i32
  }
  func.func @transform_11(%arg0: i32, %arg1: i32) -> (i32, i32, i32) {
    %c0_i32 = arith.constant 0 : i32
    %c0_i32_0 = arith.constant 0 : i32
    %c0_i32_1 = arith.constant 0 : i32
    return %arg1, %c0_i32, %c0_i32_0 : i32, i32, i32
  }
  func.func @transform_12(%arg0: i32, %arg1: i32) -> (i32, i32, i32) {
    %c0_i32 = arith.constant 0 : i32
    %c0_i32_0 = arith.constant 0 : i32
    %c0_i32_1 = arith.constant 0 : i32
    return %arg1, %c0_i32, %c0_i32_0 : i32, i32, i32
  }
  func.func @transform_13(%arg0: i32, %arg1: i32) -> (i32, i32) {
    %c0_i32 = arith.constant 0 : i32
    %c0_i32_0 = arith.constant 0 : i32
    %c0_i32_1 = arith.constant 0 : i32
    return %c0_i32, %c0_i32_0 : i32, i32
  }
  func.func @transform_14(%arg0: i32, %arg1: i32) -> (i32, i32) {
    %c0_i32 = arith.constant 0 : i32
    %c0_i32_0 = arith.constant 0 : i32
    %c0_i32_1 = arith.constant 0 : i32
    return %c0_i32, %c0_i32_0 : i32, i32
  }
  func.func @transform_15(%arg0: i32, %arg1: i32) -> (i32, i32, i32) {
    %c0_i32 = arith.constant 0 : i32
    %c0_i32_0 = arith.constant 0 : i32
    %c0_i32_1 = arith.constant 0 : i32
    return %arg0, %c0_i32, %c0_i32_0 : i32, i32, i32
  }
}

module attributes {stable_mosaic.version = 11 : i64} {
  func.func @_segmenter_kernel(%arg0: i32, %arg1: i32, %arg2: memref<2x8x16xbf16, #tpu.memory_space<vmem>>, %arg3: memref<2x8x8xbf16, #tpu.memory_space<vmem>>, %arg4: memref<2x8x32xf32, #tpu.memory_space<vmem>>, %arg5: memref<16x32xbf16, #tpu.memory_space<vmem>>, %arg6: memref<8x32xbf16, #tpu.memory_space<vmem>>, %arg7: memref<1x32x32xbf16, #tpu.memory_space<vmem>>, %arg8: memref<1x32x32xbf16, #tpu.memory_space<vmem>>, %arg9: memref<1x32x32xbf16, #tpu.memory_space<vmem>>, %arg10: memref<1x32x32xbf16, #tpu.memory_space<vmem>>, %arg11: memref<1x32x2048xbf16, #tpu.memory_space<vmem>>, %arg12: memref<1x2048x32xbf16, #tpu.memory_space<vmem>>, %arg13: memref<1x9x32xf32, #tpu.memory_space<vmem>>, %arg14: memref<1x1x2048xf32, #tpu.memory_space<vmem>>, %arg15: memref<32x128xbf16, #tpu.memory_space<vmem>>, %arg16: memref<1x128xf32, #tpu.memory_space<vmem>>, %arg17: memref<2x8x128xf32, #tpu.memory_space<vmem>>, %arg18: memref<16x32xf32, #tpu.memory_space<vmem>>) attributes {dimension_semantics = [#tpu.dimension_semantics<parallel>, #tpu.dimension_semantics<arbitrary>], iteration_bounds = array<i64: 1, 2>, scalar_prefetch = 0 : i64, scratch_operands = 1 : i64, tpu.core_type = #tpu.core_type<tc>, window_params = [{transform_indices = @transform_0, window_bounds = array<i64: 2, 8, 16>}, {transform_indices = @transform_1, window_bounds = array<i64: 2, 8, 8>}, {transform_indices = @transform_2, window_bounds = array<i64: 2, 8, 32>}, {pipeline_mode = #tpu.pipeline_mode<synchronous>, transform_indices = @transform_3, window_bounds = array<i64: 16, 32>}, {pipeline_mode = #tpu.pipeline_mode<synchronous>, transform_indices = @transform_4, window_bounds = array<i64: 8, 32>}, {transform_indices = @transform_5, window_bounds = array<i64: 1, 32, 32>}, {transform_indices = @transform_6, window_bounds = array<i64: 1, 32, 32>}, {transform_indices = @transform_7, window_bounds = array<i64: 1, 32, 32>}, {transform_indices = @transform_8, window_bounds = array<i64: 1, 32, 32>}, {transform_indices = @transform_9, window_bounds = array<i64: 1, 32, 2048>}, {transform_indices = @transform_10, window_bounds = array<i64: 1, 2048, 32>}, {transform_indices = @transform_11, window_bounds = array<i64: 1, 9, 32>}, {transform_indices = @transform_12, window_bounds = array<i64: 1, 1, 2048>}, {pipeline_mode = #tpu.pipeline_mode<synchronous>, transform_indices = @transform_13, window_bounds = array<i64: 32, 128>}, {pipeline_mode = #tpu.pipeline_mode<synchronous>, transform_indices = @transform_14, window_bounds = array<i64: 1, 128>}, {transform_indices = @transform_15, window_bounds = array<i64: 2, 8, 128>}]} {
    %c0 = arith.constant 0 : index
    %c0_0 = arith.constant 0 : index
    %c0_1 = arith.constant 0 : index
    %0 = vector.load %arg13[%c0, %c0_0, %c0_1] : memref<1x9x32xf32, #tpu.memory_space<vmem>>, vector<1x9x32xf32>
    %1 = vector.shape_cast %0 : vector<1x9x32xf32> to vector<9x32xf32>
    %2 = vector.extract_strided_slice %1 {offsets = [0, 0], sizes = [1, 32], strides = [1, 1]} : vector<9x32xf32> to vector<1x32xf32>
    %3 = vector.extract_strided_slice %1 {offsets = [1, 0], sizes = [1, 32], strides = [1, 1]} : vector<9x32xf32> to vector<1x32xf32>
    %4 = vector.extract_strided_slice %1 {offsets = [2, 0], sizes = [1, 32], strides = [1, 1]} : vector<9x32xf32> to vector<1x32xf32>
    %5 = vector.extract_strided_slice %1 {offsets = [3, 0], sizes = [1, 32], strides = [1, 1]} : vector<9x32xf32> to vector<1x32xf32>
    %6 = vector.extract_strided_slice %1 {offsets = [4, 0], sizes = [1, 32], strides = [1, 1]} : vector<9x32xf32> to vector<1x32xf32>
    %7 = vector.extract_strided_slice %1 {offsets = [5, 0], sizes = [1, 32], strides = [1, 1]} : vector<9x32xf32> to vector<1x32xf32>
    %8 = vector.extract_strided_slice %1 {offsets = [6, 0], sizes = [1, 32], strides = [1, 1]} : vector<9x32xf32> to vector<1x32xf32>
    %9 = vector.extract_strided_slice %1 {offsets = [7, 0], sizes = [1, 32], strides = [1, 1]} : vector<9x32xf32> to vector<1x32xf32>
    %10 = vector.extract_strided_slice %1 {offsets = [8, 0], sizes = [1, 32], strides = [1, 1]} : vector<9x32xf32> to vector<1x32xf32>
    %c0_2 = arith.constant 0 : index
    %c0_3 = arith.constant 0 : index
    %c0_4 = arith.constant 0 : index
    %11 = vector.load %arg14[%c0_2, %c0_3, %c0_4] : memref<1x1x2048xf32, #tpu.memory_space<vmem>>, vector<1x1x2048xf32>
    %12 = vector.shape_cast %11 : vector<1x1x2048xf32> to vector<1x2048xf32>
    %c0_i32 = arith.constant 0 : i32
    %13 = arith.cmpi eq, %arg1, %c0_i32 : i32
    %14 = arith.extui %13 : i1 to i32
    %c0_i32_5 = arith.constant 0 : i32
    %15 = arith.cmpi ne, %14, %c0_i32_5 : i32
    scf.if %15 {
      %c0_65 = arith.constant 0 : index
      %c0_66 = arith.constant 0 : index
      %c0_67 = arith.constant 0 : index
      %175 = vector.load %arg2[%c0_65, %c0_66, %c0_67] : memref<2x8x16xbf16, #tpu.memory_space<vmem>>, vector<2x8x16xbf16>
      %176 = vector.shape_cast %175 : vector<2x8x16xbf16> to vector<16x16xbf16>
      %c0_68 = arith.constant 0 : index
      %c0_69 = arith.constant 0 : index
      %c0_70 = arith.constant 0 : index
      %177 = vector.load %arg3[%c0_68, %c0_69, %c0_70] : memref<2x8x8xbf16, #tpu.memory_space<vmem>>, vector<2x8x8xbf16>
      %178 = vector.shape_cast %177 : vector<2x8x8xbf16> to vector<16x8xbf16>
      %c0_71 = arith.constant 0 : index
      %c0_72 = arith.constant 0 : index
      %179 = vector.load %arg5[%c0_71, %c0_72] : memref<16x32xbf16, #tpu.memory_space<vmem>>, vector<16x32xbf16>
      %cst_73 = arith.constant dense<0.000000e+00> : vector<16x32xf32>
      %180 = tpu.matmul %176, %179, %cst_73 {dimension_numbers = #tpu.dot_dimension_numbers<[1], [0], [0], [1], [0, 0, 1, 1], [], []>} : vector<16x16xbf16>, vector<16x32xbf16>, vector<16x32xf32> -> vector<16x32xf32>
      %c0_74 = arith.constant 0 : index
      %c0_75 = arith.constant 0 : index
      %181 = vector.load %arg6[%c0_74, %c0_75] : memref<8x32xbf16, #tpu.memory_space<vmem>>, vector<8x32xbf16>
      %cst_76 = arith.constant dense<0.000000e+00> : vector<16x32xf32>
      %182 = tpu.matmul %178, %181, %cst_76 {dimension_numbers = #tpu.dot_dimension_numbers<[1], [0], [0], [1], [0, 0, 1, 1], [], []>} : vector<16x8xbf16>, vector<8x32xbf16>, vector<16x32xf32> -> vector<16x32xf32>
      %183 = arith.addf %180, %182 : vector<16x32xf32>
      %c0_77 = arith.constant 0 : index
      %c0_78 = arith.constant 0 : index
      %c0_79 = arith.constant 0 : index
      %184 = vector.load %arg4[%c0_77, %c0_78, %c0_79] : memref<2x8x32xf32, #tpu.memory_space<vmem>>, vector<2x8x32xf32>
      %185 = vector.shape_cast %184 : vector<2x8x32xf32> to vector<16x32xf32>
      %186 = arith.addf %183, %185 : vector<16x32xf32>
      %c0_80 = arith.constant 0 : index
      %c0_81 = arith.constant 0 : index
      %187 = vector.load %arg18[%c0_80, %c0_81] : memref<16x32xf32, #tpu.memory_space<vmem>>, vector<16x32xf32>
      tpu.vector_store %arg18[%c0_80, %c0_81], %186 {strides = array<i32>} : memref<16x32xf32, #tpu.memory_space<vmem>>, vector<16x32xf32>,
    } else {
    }
    %c0_6 = arith.constant 0 : index
    %c0_7 = arith.constant 0 : index
    %16 = vector.load %arg18[%c0_6, %c0_7] : memref<16x32xf32, #tpu.memory_space<vmem>>, vector<16x32xf32>
    %17 = arith.truncf %16 : vector<16x32xf32> to vector<16x32xbf16>
    %c0_8 = arith.constant 0 : index
    %c0_9 = arith.constant 0 : index
    %c0_10 = arith.constant 0 : index
    %18 = vector.load %arg7[%c0_8, %c0_9, %c0_10] : memref<1x32x32xbf16, #tpu.memory_space<vmem>>, vector<1x32x32xbf16>
    %19 = vector.shape_cast %18 : vector<1x32x32xbf16> to vector<32x32xbf16>
    %cst = arith.constant dense<0.000000e+00> : vector<16x32xf32>
    %20 = tpu.matmul %17, %19, %cst {dimension_numbers = #tpu.dot_dimension_numbers<[1], [0], [0], [1], [0, 0, 1, 1], [], []>} : vector<16x32xbf16>, vector<32x32xbf16>, vector<16x32xf32> -> vector<16x32xf32>
    %21 = vector.broadcast %2 : vector<1x32xf32> to vector<16x32xf32>
    %22 = arith.addf %20, %21 : vector<16x32xf32>
    %c0_11 = arith.constant 0 : index
    %c0_12 = arith.constant 0 : index
    %c0_13 = arith.constant 0 : index
    %23 = vector.load %arg8[%c0_11, %c0_12, %c0_13] : memref<1x32x32xbf16, #tpu.memory_space<vmem>>, vector<1x32x32xbf16>
    %24 = vector.shape_cast %23 : vector<1x32x32xbf16> to vector<32x32xbf16>
    %cst_14 = arith.constant dense<0.000000e+00> : vector<16x32xf32>
    %25 = tpu.matmul %17, %24, %cst_14 {dimension_numbers = #tpu.dot_dimension_numbers<[1], [0], [0], [1], [0, 0, 1, 1], [], []>} : vector<16x32xbf16>, vector<32x32xbf16>, vector<16x32xf32> -> vector<16x32xf32>
    %26 = vector.broadcast %3 : vector<1x32xf32> to vector<16x32xf32>
    %27 = arith.addf %25, %26 : vector<16x32xf32>
    %c0_15 = arith.constant 0 : index
    %c0_16 = arith.constant 0 : index
    %c0_17 = arith.constant 0 : index
    %28 = vector.load %arg9[%c0_15, %c0_16, %c0_17] : memref<1x32x32xbf16, #tpu.memory_space<vmem>>, vector<1x32x32xbf16>
    %29 = vector.shape_cast %28 : vector<1x32x32xbf16> to vector<32x32xbf16>
    %cst_18 = arith.constant dense<0.000000e+00> : vector<16x32xf32>
    %30 = tpu.matmul %17, %29, %cst_18 {dimension_numbers = #tpu.dot_dimension_numbers<[1], [0], [0], [1], [0, 0, 1, 1], [], []>} : vector<16x32xbf16>, vector<32x32xbf16>, vector<16x32xf32> -> vector<16x32xf32>
    %31 = vector.broadcast %4 : vector<1x32xf32> to vector<16x32xf32>
    %32 = arith.addf %30, %31 : vector<16x32xf32>
    %33 = vector.shape_cast %22 : vector<16x32xf32> to vector<2x8x32xf32>
    %34 = arith.truncf %33 : vector<2x8x32xf32> to vector<2x8x32xbf16>
    %35 = vector.shape_cast %27 : vector<16x32xf32> to vector<2x8x32xf32>
    %36 = arith.truncf %35 : vector<2x8x32xf32> to vector<2x8x32xbf16>
    %37 = vector.shape_cast %32 : vector<16x32xf32> to vector<2x8x32xf32>
    %38 = arith.truncf %37 : vector<2x8x32xf32> to vector<2x8x32xbf16>
    %39 = vector.extract_strided_slice %34 {offsets = [0, 0, 0], sizes = [2, 8, 8], strides = [1, 1, 1]} : vector<2x8x32xbf16> to vector<2x8x8xbf16>
    %40 = vector.extract_strided_slice %36 {offsets = [0, 0, 0], sizes = [2, 8, 8], strides = [1, 1, 1]} : vector<2x8x32xbf16> to vector<2x8x8xbf16>
    %41 = vector.extract_strided_slice %38 {offsets = [0, 0, 0], sizes = [2, 8, 8], strides = [1, 1, 1]} : vector<2x8x32xbf16> to vector<2x8x8xbf16>
    "tpu.trace_start"() <{level = 10 : i32, message = "bqd,bkd->bqk"}> : () -> ()
    %cst_19 = arith.constant dense<0.000000e+00> : vector<2x8x8xf32>
    %42 = tpu.matmul %39, %40, %cst_19 {dimension_numbers = #tpu.dot_dimension_numbers<[2], [2], [1], [1], [0, 0, 0, 1, 1, 1], [0], [0]>} : vector<2x8x8xbf16>, vector<2x8x8xbf16>, vector<2x8x8xf32> -> vector<2x8x8xf32>
    "tpu.trace_stop"() : () -> ()
    %cst_20 = arith.constant 0.353553385 : f32
    %43 = vector.broadcast %cst_20 : f32 to vector<2x8x8xf32>
    %44 = arith.mulf %42, %43 : vector<2x8x8xf32>
    %cst_21 = arith.constant dense<0xFF800000> : vector<2x8xf32>
    %45 = vector.multi_reduction <maximumf>, %44, %cst_21 [2] : vector<2x8x8xf32> to vector<2x8xf32>
    %46 = vector.shape_cast %45 : vector<2x8xf32> to vector<2x8x1xf32>
    %47 = vector.broadcast %46 : vector<2x8x1xf32> to vector<2x8x8xf32>
    %48 = arith.subf %44, %47 : vector<2x8x8xf32>
    %49 = math.exp %48 : vector<2x8x8xf32>
    %cst_22 = arith.constant dense<0.000000e+00> : vector<2x8xf32>
    %50 = vector.multi_reduction <add>, %49, %cst_22 [2] : vector<2x8x8xf32> to vector<2x8xf32>
    %51 = vector.shape_cast %50 : vector<2x8xf32> to vector<2x8x1xf32>
    %52 = vector.broadcast %51 : vector<2x8x1xf32> to vector<2x8x8xf32>
    %53 = arith.divf %49, %52 : vector<2x8x8xf32>
    %54 = arith.truncf %53 : vector<2x8x8xf32> to vector<2x8x8xbf16>
    "tpu.trace_start"() <{level = 10 : i32, message = "bqk,bkd->bqd"}> : () -> ()
    %cst_23 = arith.constant dense<0.000000e+00> : vector<2x8x8xf32>
    %55 = tpu.matmul %54, %41, %cst_23 {dimension_numbers = #tpu.dot_dimension_numbers<[2], [1], [1], [2], [0, 0, 0, 1, 1, 2], [0], [0]>} : vector<2x8x8xbf16>, vector<2x8x8xbf16>, vector<2x8x8xf32> -> vector<2x8x8xf32>
    "tpu.trace_stop"() : () -> ()
    %56 = vector.extract_strided_slice %34 {offsets = [0, 0, 8], sizes = [2, 8, 8], strides = [1, 1, 1]} : vector<2x8x32xbf16> to vector<2x8x8xbf16>
    %57 = vector.extract_strided_slice %36 {offsets = [0, 0, 8], sizes = [2, 8, 8], strides = [1, 1, 1]} : vector<2x8x32xbf16> to vector<2x8x8xbf16>
    %58 = vector.extract_strided_slice %38 {offsets = [0, 0, 8], sizes = [2, 8, 8], strides = [1, 1, 1]} : vector<2x8x32xbf16> to vector<2x8x8xbf16>
    "tpu.trace_start"() <{level = 10 : i32, message = "bqd,bkd->bqk"}> : () -> ()
    %cst_24 = arith.constant dense<0.000000e+00> : vector<2x8x8xf32>
    %59 = tpu.matmul %56, %57, %cst_24 {dimension_numbers = #tpu.dot_dimension_numbers<[2], [2], [1], [1], [0, 0, 0, 1, 1, 1], [0], [0]>} : vector<2x8x8xbf16>, vector<2x8x8xbf16>, vector<2x8x8xf32> -> vector<2x8x8xf32>
    "tpu.trace_stop"() : () -> ()
    %cst_25 = arith.constant 0.353553385 : f32
    %60 = vector.broadcast %cst_25 : f32 to vector<2x8x8xf32>
    %61 = arith.mulf %59, %60 : vector<2x8x8xf32>
    %cst_26 = arith.constant dense<0xFF800000> : vector<2x8xf32>
    %62 = vector.multi_reduction <maximumf>, %61, %cst_26 [2] : vector<2x8x8xf32> to vector<2x8xf32>
    %63 = vector.shape_cast %62 : vector<2x8xf32> to vector<2x8x1xf32>
    %64 = vector.broadcast %63 : vector<2x8x1xf32> to vector<2x8x8xf32>
    %65 = arith.subf %61, %64 : vector<2x8x8xf32>
    %66 = math.exp %65 : vector<2x8x8xf32>
    %cst_27 = arith.constant dense<0.000000e+00> : vector<2x8xf32>
    %67 = vector.multi_reduction <add>, %66, %cst_27 [2] : vector<2x8x8xf32> to vector<2x8xf32>
    %68 = vector.shape_cast %67 : vector<2x8xf32> to vector<2x8x1xf32>
    %69 = vector.broadcast %68 : vector<2x8x1xf32> to vector<2x8x8xf32>
    %70 = arith.divf %66, %69 : vector<2x8x8xf32>
    %71 = arith.truncf %70 : vector<2x8x8xf32> to vector<2x8x8xbf16>
    "tpu.trace_start"() <{level = 10 : i32, message = "bqk,bkd->bqd"}> : () -> ()
    %cst_28 = arith.constant dense<0.000000e+00> : vector<2x8x8xf32>
    %72 = tpu.matmul %71, %58, %cst_28 {dimension_numbers = #tpu.dot_dimension_numbers<[2], [1], [1], [2], [0, 0, 0, 1, 1, 2], [0], [0]>} : vector<2x8x8xbf16>, vector<2x8x8xbf16>, vector<2x8x8xf32> -> vector<2x8x8xf32>
    "tpu.trace_stop"() : () -> ()
    %73 = vector.extract_strided_slice %34 {offsets = [0, 0, 16], sizes = [2, 8, 8], strides = [1, 1, 1]} : vector<2x8x32xbf16> to vector<2x8x8xbf16>
    %74 = vector.extract_strided_slice %36 {offsets = [0, 0, 16], sizes = [2, 8, 8], strides = [1, 1, 1]} : vector<2x8x32xbf16> to vector<2x8x8xbf16>
    %75 = vector.extract_strided_slice %38 {offsets = [0, 0, 16], sizes = [2, 8, 8], strides = [1, 1, 1]} : vector<2x8x32xbf16> to vector<2x8x8xbf16>
    "tpu.trace_start"() <{level = 10 : i32, message = "bqd,bkd->bqk"}> : () -> ()
    %cst_29 = arith.constant dense<0.000000e+00> : vector<2x8x8xf32>
    %76 = tpu.matmul %73, %74, %cst_29 {dimension_numbers = #tpu.dot_dimension_numbers<[2], [2], [1], [1], [0, 0, 0, 1, 1, 1], [0], [0]>} : vector<2x8x8xbf16>, vector<2x8x8xbf16>, vector<2x8x8xf32> -> vector<2x8x8xf32>
    "tpu.trace_stop"() : () -> ()
    %cst_30 = arith.constant 0.353553385 : f32
    %77 = vector.broadcast %cst_30 : f32 to vector<2x8x8xf32>
    %78 = arith.mulf %76, %77 : vector<2x8x8xf32>
    %cst_31 = arith.constant dense<0xFF800000> : vector<2x8xf32>
    %79 = vector.multi_reduction <maximumf>, %78, %cst_31 [2] : vector<2x8x8xf32> to vector<2x8xf32>
    %80 = vector.shape_cast %79 : vector<2x8xf32> to vector<2x8x1xf32>
    %81 = vector.broadcast %80 : vector<2x8x1xf32> to vector<2x8x8xf32>
    %82 = arith.subf %78, %81 : vector<2x8x8xf32>
    %83 = math.exp %82 : vector<2x8x8xf32>
    %cst_32 = arith.constant dense<0.000000e+00> : vector<2x8xf32>
    %84 = vector.multi_reduction <add>, %83, %cst_32 [2] : vector<2x8x8xf32> to vector<2x8xf32>
    %85 = vector.shape_cast %84 : vector<2x8xf32> to vector<2x8x1xf32>
    %86 = vector.broadcast %85 : vector<2x8x1xf32> to vector<2x8x8xf32>
    %87 = arith.divf %83, %86 : vector<2x8x8xf32>
    %88 = arith.truncf %87 : vector<2x8x8xf32> to vector<2x8x8xbf16>
    "tpu.trace_start"() <{level = 10 : i32, message = "bqk,bkd->bqd"}> : () -> ()
    %cst_33 = arith.constant dense<0.000000e+00> : vector<2x8x8xf32>
    %89 = tpu.matmul %88, %75, %cst_33 {dimension_numbers = #tpu.dot_dimension_numbers<[2], [1], [1], [2], [0, 0, 0, 1, 1, 2], [0], [0]>} : vector<2x8x8xbf16>, vector<2x8x8xbf16>, vector<2x8x8xf32> -> vector<2x8x8xf32>
    "tpu.trace_stop"() : () -> ()
    %90 = vector.extract_strided_slice %34 {offsets = [0, 0, 24], sizes = [2, 8, 8], strides = [1, 1, 1]} : vector<2x8x32xbf16> to vector<2x8x8xbf16>
    %91 = vector.extract_strided_slice %36 {offsets = [0, 0, 24], sizes = [2, 8, 8], strides = [1, 1, 1]} : vector<2x8x32xbf16> to vector<2x8x8xbf16>
    %92 = vector.extract_strided_slice %38 {offsets = [0, 0, 24], sizes = [2, 8, 8], strides = [1, 1, 1]} : vector<2x8x32xbf16> to vector<2x8x8xbf16>
    "tpu.trace_start"() <{level = 10 : i32, message = "bqd,bkd->bqk"}> : () -> ()
    %cst_34 = arith.constant dense<0.000000e+00> : vector<2x8x8xf32>
    %93 = tpu.matmul %90, %91, %cst_34 {dimension_numbers = #tpu.dot_dimension_numbers<[2], [2], [1], [1], [0, 0, 0, 1, 1, 1], [0], [0]>} : vector<2x8x8xbf16>, vector<2x8x8xbf16>, vector<2x8x8xf32> -> vector<2x8x8xf32>
    "tpu.trace_stop"() : () -> ()
    %cst_35 = arith.constant 0.353553385 : f32
    %94 = vector.broadcast %cst_35 : f32 to vector<2x8x8xf32>
    %95 = arith.mulf %93, %94 : vector<2x8x8xf32>
    %cst_36 = arith.constant dense<0xFF800000> : vector<2x8xf32>
    %96 = vector.multi_reduction <maximumf>, %95, %cst_36 [2] : vector<2x8x8xf32> to vector<2x8xf32>
    %97 = vector.shape_cast %96 : vector<2x8xf32> to vector<2x8x1xf32>
    %98 = vector.broadcast %97 : vector<2x8x1xf32> to vector<2x8x8xf32>
    %99 = arith.subf %95, %98 : vector<2x8x8xf32>
    %100 = math.exp %99 : vector<2x8x8xf32>
    %cst_37 = arith.constant dense<0.000000e+00> : vector<2x8xf32>
    %101 = vector.multi_reduction <add>, %100, %cst_37 [2] : vector<2x8x8xf32> to vector<2x8xf32>
    %102 = vector.shape_cast %101 : vector<2x8xf32> to vector<2x8x1xf32>
    %103 = vector.broadcast %102 : vector<2x8x1xf32> to vector<2x8x8xf32>
    %104 = arith.divf %100, %103 : vector<2x8x8xf32>
    %105 = arith.truncf %104 : vector<2x8x8xf32> to vector<2x8x8xbf16>
    "tpu.trace_start"() <{level = 10 : i32, message = "bqk,bkd->bqd"}> : () -> ()
    %cst_38 = arith.constant dense<0.000000e+00> : vector<2x8x8xf32>
    %106 = tpu.matmul %105, %92, %cst_38 {dimension_numbers = #tpu.dot_dimension_numbers<[2], [1], [1], [2], [0, 0, 0, 1, 1, 2], [0], [0]>} : vector<2x8x8xbf16>, vector<2x8x8xbf16>, vector<2x8x8xf32> -> vector<2x8x8xf32>
    "tpu.trace_stop"() : () -> ()
    %107 = tpu.concatenate %55, %72, %89, %106 in 2 : vector<2x8x8xf32>, vector<2x8x8xf32>, vector<2x8x8xf32>, vector<2x8x8xf32> -> vector<2x8x32xf32>
    %108 = vector.shape_cast %107 : vector<2x8x32xf32> to vector<16x32xf32>
    %109 = arith.truncf %108 : vector<16x32xf32> to vector<16x32xbf16>
    %c0_39 = arith.constant 0 : index
    %c0_40 = arith.constant 0 : index
    %c0_41 = arith.constant 0 : index
    %110 = vector.load %arg10[%c0_39, %c0_40, %c0_41] : memref<1x32x32xbf16, #tpu.memory_space<vmem>>, vector<1x32x32xbf16>
    %111 = vector.shape_cast %110 : vector<1x32x32xbf16> to vector<32x32xbf16>
    %cst_42 = arith.constant dense<0.000000e+00> : vector<16x32xf32>
    %112 = tpu.matmul %109, %111, %cst_42 {dimension_numbers = #tpu.dot_dimension_numbers<[1], [0], [0], [1], [0, 0, 1, 1], [], []>} : vector<16x32xbf16>, vector<32x32xbf16>, vector<16x32xf32> -> vector<16x32xf32>
    %113 = vector.broadcast %5 : vector<1x32xf32> to vector<16x32xf32>
    %114 = arith.addf %112, %113 : vector<16x32xf32>
    %115 = arith.addf %16, %114 : vector<16x32xf32>
    %cst_43 = arith.constant dense<0.000000e+00> : vector<16xf32>
    %116 = vector.multi_reduction <add>, %115, %cst_43 [1] : vector<16x32xf32> to vector<16xf32>
    %117 = vector.shape_cast %116 : vector<16xf32> to vector<16x1xf32>
    %cst_44 = arith.constant 3.200000e+01 : f32
    %118 = vector.broadcast %cst_44 : f32 to vector<16x1xf32>
    %119 = arith.divf %117, %118 : vector<16x1xf32>
    %120 = vector.broadcast %119 : vector<16x1xf32> to vector<16x32xf32>
    %121 = arith.subf %115, %120 : vector<16x32xf32>
    %122 = arith.mulf %121, %121 : vector<16x32xf32>
    %cst_45 = arith.constant dense<0.000000e+00> : vector<16xf32>
    %123 = vector.multi_reduction <add>, %122, %cst_45 [1] : vector<16x32xf32> to vector<16xf32>
    %124 = vector.shape_cast %123 : vector<16xf32> to vector<16x1xf32>
    %cst_46 = arith.constant 3.200000e+01 : f32
    %125 = vector.broadcast %cst_46 : f32 to vector<16x1xf32>
    %126 = arith.divf %124, %125 : vector<16x1xf32>
    %cst_47 = arith.constant 9.99999974E-6 : f32
    %127 = vector.broadcast %cst_47 : f32 to vector<16x1xf32>
    %128 = arith.addf %126, %127 : vector<16x1xf32>
    %129 = math.rsqrt %128 : vector<16x1xf32>
    %130 = vector.broadcast %129 : vector<16x1xf32> to vector<16x32xf32>
    %131 = arith.mulf %121, %130 : vector<16x32xf32>
    %132 = vector.broadcast %7 : vector<1x32xf32> to vector<16x32xf32>
    %133 = arith.mulf %131, %132 : vector<16x32xf32>
    %134 = vector.broadcast %8 : vector<1x32xf32> to vector<16x32xf32>
    %135 = arith.addf %133, %134 : vector<16x32xf32>
    %136 = arith.truncf %135 : vector<16x32xf32> to vector<16x32xbf16>
    %c0_48 = arith.constant 0 : index
    %c0_49 = arith.constant 0 : index
    %c0_50 = arith.constant 0 : index
    %137 = vector.load %arg11[%c0_48, %c0_49, %c0_50] : memref<1x32x2048xbf16, #tpu.memory_space<vmem>>, vector<1x32x2048xbf16>
    %138 = vector.shape_cast %137 : vector<1x32x2048xbf16> to vector<32x2048xbf16>
    %cst_51 = arith.constant dense<0.000000e+00> : vector<16x2048xf32>
    %139 = tpu.matmul %136, %138, %cst_51 {dimension_numbers = #tpu.dot_dimension_numbers<[1], [0], [0], [1], [0, 0, 1, 1], [], []>} : vector<16x32xbf16>, vector<32x2048xbf16>, vector<16x2048xf32> -> vector<16x2048xf32>
    %140 = vector.broadcast %12 : vector<1x2048xf32> to vector<16x2048xf32>
    %141 = arith.addf %139, %140 : vector<16x2048xf32>
    %cst_52 = arith.constant 0.000000e+00 : f32
    %142 = vector.broadcast %cst_52 : f32 to vector<16x2048xf32>
    %143 = arith.maximumf %141, %142 : vector<16x2048xf32>
    %144 = arith.truncf %143 : vector<16x2048xf32> to vector<16x2048xbf16>
    %c0_53 = arith.constant 0 : index
    %c0_54 = arith.constant 0 : index
    %c0_55 = arith.constant 0 : index
    %145 = vector.load %arg12[%c0_53, %c0_54, %c0_55] : memref<1x2048x32xbf16, #tpu.memory_space<vmem>>, vector<1x2048x32xbf16>
    %146 = vector.shape_cast %145 : vector<1x2048x32xbf16> to vector<2048x32xbf16>
    %cst_56 = arith.constant dense<0.000000e+00> : vector<16x32xf32>
    %147 = tpu.matmul %144, %146, %cst_56 {dimension_numbers = #tpu.dot_dimension_numbers<[1], [0], [0], [1], [0, 0, 1, 1], [], []>} : vector<16x2048xbf16>, vector<2048x32xbf16>, vector<16x32xf32> -> vector<16x32xf32>
    %148 = vector.broadcast %6 : vector<1x32xf32> to vector<16x32xf32>
    %149 = arith.addf %147, %148 : vector<16x32xf32>
    %150 = arith.addf %135, %149 : vector<16x32xf32>
    %cst_57 = arith.constant dense<0.000000e+00> : vector<16xf32>
    %151 = vector.multi_reduction <add>, %150, %cst_57 [1] : vector<16x32xf32> to vector<16xf32>
    %152 = vector.shape_cast %151 : vector<16xf32> to vector<16x1xf32>
    %cst_58 = arith.constant 3.200000e+01 : f32
    %153 = vector.broadcast %cst_58 : f32 to vector<16x1xf32>
    %154 = arith.divf %152, %153 : vector<16x1xf32>
    %155 = vector.broadcast %154 : vector<16x1xf32> to vector<16x32xf32>
    %156 = arith.subf %150, %155 : vector<16x32xf32>
    %157 = arith.mulf %156, %156 : vector<16x32xf32>
    %cst_59 = arith.constant dense<0.000000e+00> : vector<16xf32>
    %158 = vector.multi_reduction <add>, %157, %cst_59 [1] : vector<16x32xf32> to vector<16xf32>
    %159 = vector.shape_cast %158 : vector<16xf32> to vector<16x1xf32>
    %cst_60 = arith.constant 3.200000e+01 : f32
    %160 = vector.broadcast %cst_60 : f32 to vector<16x1xf32>
    %161 = arith.divf %159, %160 : vector<16x1xf32>
    %cst_61 = arith.constant 9.99999974E-6 : f32
    %162 = vector.broadcast %cst_61 : f32 to vector<16x1xf32>
    %163 = arith.addf %161, %162 : vector<16x1xf32>
    %164 = math.rsqrt %163 : vector<16x1xf32>
    %165 = vector.broadcast %164 : vector<16x1xf32> to vector<16x32xf32>
    %166 = arith.mulf %156, %165 : vector<16x32xf32>
    %167 = vector.broadcast %9 : vector<1x32xf32> to vector<16x32xf32>
    %168 = arith.mulf %166, %167 : vector<16x32xf32>
    %169 = vector.broadcast %10 : vector<1x32xf32> to vector<16x32xf32>
    %170 = arith.addf %168, %169 : vector<16x32xf32>
    %c0_62 = arith.constant 0 : index
    %c0_63 = arith.constant 0 : index
    %171 = vector.load %arg18[%c0_62, %c0_63] : memref<16x32xf32, #tpu.memory_space<vmem>>, vector<16x32xf32>
    tpu.vector_store %arg18[%c0_62, %c0_63], %170 {strides = array<i32>} : memref<16x32xf32, #tpu.memory_space<vmem>>, vector<16x32xf32>,
    %c1_i32 = arith.constant 1 : i32
    %172 = arith.cmpi eq, %arg1, %c1_i32 : i32
    %173 = arith.extui %172 : i1 to i32
    %c0_i32_64 = arith.constant 0 : i32
    %174 = arith.cmpi ne, %173, %c0_i32_64 : i32
    scf.if %174 {
      %175 = arith.truncf %170 : vector<16x32xf32> to vector<16x32xbf16>
      %c0_65 = arith.constant 0 : index
      %c0_66 = arith.constant 0 : index
      %176 = vector.load %arg15[%c0_65, %c0_66] : memref<32x128xbf16, #tpu.memory_space<vmem>>, vector<32x128xbf16>
      %cst_67 = arith.constant dense<0.000000e+00> : vector<16x128xf32>
      %177 = tpu.matmul %175, %176, %cst_67 {dimension_numbers = #tpu.dot_dimension_numbers<[1], [0], [0], [1], [0, 0, 1, 1], [], []>} : vector<16x32xbf16>, vector<32x128xbf16>, vector<16x128xf32> -> vector<16x128xf32>
      %c0_68 = arith.constant 0 : index
      %c0_69 = arith.constant 0 : index
      %178 = vector.load %arg16[%c0_68, %c0_69] : memref<1x128xf32, #tpu.memory_space<vmem>>, vector<1x128xf32>
      %179 = vector.broadcast %178 : vector<1x128xf32> to vector<16x128xf32>
      %180 = arith.addf %177, %179 : vector<16x128xf32>
      %181 = vector.shape_cast %180 : vector<16x128xf32> to vector<2x8x128xf32>
      %c0_70 = arith.constant 0 : index
      %c0_71 = arith.constant 0 : index
      %c0_72 = arith.constant 0 : index
      %182 = vector.load %arg17[%c0_70, %c0_71, %c0_72] : memref<2x8x128xf32, #tpu.memory_space<vmem>>, vector<2x8x128xf32>
      tpu.vector_store %arg17[%c0_70, %c0_71, %c0_72], %181 {strides = array<i32>} : memref<2x8x128xf32, #tpu.memory_space<vmem>>, vector<2x8x128xf32>,
    } else {
    }
    return
  }
  func.func @transform_0(%arg0: i32, %arg1: i32) -> (i32, i32, i32) {
    %c0_i32 = arith.constant 0 : i32
    %c0_i32_0 = arith.constant 0 : i32
    %c0_i32_1 = arith.constant 0 : i32
    return %arg0, %c0_i32, %c0_i32_0 : i32, i32, i32
  }
  func.func @transform_1(%arg0: i32, %arg1: i32) -> (i32, i32, i32) {
    %c0_i32 = arith.constant 0 : i32
    %c0_i32_0 = arith.constant 0 : i32
    %c0_i32_1 = arith.constant 0 : i32
    return %arg0, %c0_i32, %c0_i32_0 : i32, i32, i32
  }
  func.func @transform_2(%arg0: i32, %arg1: i32) -> (i32, i32, i32) {
    %c0_i32 = arith.constant 0 : i32
    %c0_i32_0 = arith.constant 0 : i32
    %c0_i32_1 = arith.constant 0 : i32
    return %arg0, %c0_i32, %c0_i32_0 : i32, i32, i32
  }
  func.func @transform_3(%arg0: i32, %arg1: i32) -> (i32, i32) {
    %c0_i32 = arith.constant 0 : i32
    %c0_i32_0 = arith.constant 0 : i32
    %c0_i32_1 = arith.constant 0 : i32
    return %c0_i32, %c0_i32_0 : i32, i32
  }
  func.func @transform_4(%arg0: i32, %arg1: i32) -> (i32, i32) {
    %c0_i32 = arith.constant 0 : i32
    %c0_i32_0 = arith.constant 0 : i32
    %c0_i32_1 = arith.constant 0 : i32
    return %c0_i32, %c0_i32_0 : i32, i32
  }
  func.func @transform_5(%arg0: i32, %arg1: i32) -> (i32, i32, i32) {
    %c0_i32 = arith.constant 0 : i32
    %c0_i32_0 = arith.constant 0 : i32
    %c0_i32_1 = arith.constant 0 : i32
    return %arg1, %c0_i32, %c0_i32_0 : i32, i32, i32
  }
  func.func @transform_6(%arg0: i32, %arg1: i32) -> (i32, i32, i32) {
    %c0_i32 = arith.constant 0 : i32
    %c0_i32_0 = arith.constant 0 : i32
    %c0_i32_1 = arith.constant 0 : i32
    return %arg1, %c0_i32, %c0_i32_0 : i32, i32, i32
  }
  func.func @transform_7(%arg0: i32, %arg1: i32) -> (i32, i32, i32) {
    %c0_i32 = arith.constant 0 : i32
    %c0_i32_0 = arith.constant 0 : i32
    %c0_i32_1 = arith.constant 0 : i32
    return %arg1, %c0_i32, %c0_i32_0 : i32, i32, i32
  }
  func.func @transform_8(%arg0: i32, %arg1: i32) -> (i32, i32, i32) {
    %c0_i32 = arith.constant 0 : i32
    %c0_i32_0 = arith.constant 0 : i32
    %c0_i32_1 = arith.constant 0 : i32
    return %arg1, %c0_i32, %c0_i32_0 : i32, i32, i32
  }
  func.func @transform_9(%arg0: i32, %arg1: i32) -> (i32, i32, i32) {
    %c0_i32 = arith.constant 0 : i32
    %c0_i32_0 = arith.constant 0 : i32
    %c0_i32_1 = arith.constant 0 : i32
    return %arg1, %c0_i32, %c0_i32_0 : i32, i32, i32
  }
  func.func @transform_10(%arg0: i32, %arg1: i32) -> (i32, i32, i32) {
    %c0_i32 = arith.constant 0 : i32
    %c0_i32_0 = arith.constant 0 : i32
    %c0_i32_1 = arith.constant 0 : i32
    return %arg1, %c0_i32, %c0_i32_0 : i32, i32, i32
  }
  func.func @transform_11(%arg0: i32, %arg1: i32) -> (i32, i32, i32) {
    %c0_i32 = arith.constant 0 : i32
    %c0_i32_0 = arith.constant 0 : i32
    %c0_i32_1 = arith.constant 0 : i32
    return %arg1, %c0_i32, %c0_i32_0 : i32, i32, i32
  }
  func.func @transform_12(%arg0: i32, %arg1: i32) -> (i32, i32, i32) {
    %c0_i32 = arith.constant 0 : i32
    %c0_i32_0 = arith.constant 0 : i32
    %c0_i32_1 = arith.constant 0 : i32
    return %arg1, %c0_i32, %c0_i32_0 : i32, i32, i32
  }
  func.func @transform_13(%arg0: i32, %arg1: i32) -> (i32, i32) {
    %c0_i32 = arith.constant 0 : i32
    %c0_i32_0 = arith.constant 0 : i32
    %c0_i32_1 = arith.constant 0 : i32
    return %c0_i32, %c0_i32_0 : i32, i32
  }
  func.func @transform_14(%arg0: i32, %arg1: i32) -> (i32, i32) {
    %c0_i32 = arith.constant 0 : i32
    %c0_i32_0 = arith.constant 0 : i32
    %c0_i32_1 = arith.constant 0 : i32
    return %c0_i32, %c0_i32_0 : i32, i32
  }
  func.func @transform_15(%arg0: i32, %arg1: i32) -> (i32, i32, i32) {
    %c0_i32 = arith.constant 0 : i32
    %c0_i32_0 = arith.constant 0 : i32
    %c0_i32_1 = arith.constant 0 : i32
    return %arg0, %c0_i32, %c0_i32_0 : i32, i32, i32
  }
}

</mosaic_0001>

<bundles_post_ra>
// kernel: tpu_custom_call.1
= control target key start
LH: loop header
LB: loop body
LE: loop exit
PB: predicated region body
PF: predicated region fallthrough
CT: control target
= control target key end

     0   :  { %s7548_s0 = inlined_call_operand.hbm [shape: bf16[2,8,16], index: 0, kind: input, shape index: {}]   ;;  %s7549_s1 = inlined_call_operand.hbm [shape: bf16[2,8,8], index: 1, kind: input, shape index: {}]   ;;  %s7550_s2 = inlined_call_operand.hbm [shape: f32[2,8,32], index: 2, kind: input, shape index: {}]   ;;  %s7551_s3 = inlined_call_operand.hbm [shape: bf16[16,32], index: 3, kind: input, shape index: {}]   ;;  %s7552_s4 = inlined_call_operand.hbm [shape: bf16[8,32], index: 4, kind: input, shape index: {}]   ;;  %s7553_s5 = inlined_call_operand.hbm [shape: bf16[2,32,32], index: 5, kind: input, shape index: {}]   ;;  %s7554_s6 = inlined_call_operand.hbm [shape: bf16[2,32,32], index: 6, kind: input, shape index: {}]   ;;  %s7555_s7 = inlined_call_operand.hbm [shape: bf16[2,32,32], index: 7, kind: input, shape index: {}]   ;;  %s7556_s8 = inlined_call_operand.hbm [shape: bf16[2,32,32], index: 8, kind: input, shape index: {}]   ;;  %s7557_s9 = inlined_call_operand.hbm [shape: bf16[2,32,2048], index: 9, kind: input, shape index: {}]   ;;  %s7558_s10 = inlined_call_operand.hbm [shape: bf16[2,2048,32], index: 10, kind: input, shape index: {}]   ;;  %s7559_s11 = inlined_call_operand.hbm [shape: f32[2,9,32], index: 11, kind: input, shape index: {}]   ;;  %s7560_s12 = inlined_call_operand.hbm [shape: f32[2,1,2048], index: 12, kind: input, shape index: {}]   ;;  %s7561_s13 = inlined_call_operand.hbm [shape: bf16[32,128], index: 13, kind: input, shape index: {}]   ;;  %s7562_s14 = inlined_call_operand.hbm [shape: f32[1,128], index: 14, kind: input, shape index: {}]   ;;  %s7563_s15 = inlined_call_operand.hbm [shape: f32[2,8,128], index: 15, kind: output, shape index: {}]  }
   0x1   :  { %7597 = sst [smem:[#allocation45_spill]] %s7548_s0 }
   0x2   :  { %7598 = sst [smem:[#allocation46_spill]] %s7549_s1 }
   0x3   :  { %7599 = sst [smem:[#allocation47_spill]] %s7551_s3 }
   0x4   :  { %7600 = sst [smem:[#allocation48_spill]] %s7552_s4 }
   0x5   :  { %7601 = sst [smem:[#allocation49_spill]] %s7553_s5 }
   0x6   :  { %7602 = sst [smem:[#allocation50_spill]] %s7554_s6 }
   0x7   :  { %7603 = sst [smem:[#allocation51_spill]] %s7555_s7 }
   0x8   :  { %7604 = sst [smem:[#allocation52_spill]] %s7556_s8 }
   0x9   :  { %7605 = sst [smem:[#allocation53_spill]] %s7557_s9 }
   0xa   :  { %7606 = sst [smem:[#allocation54_spill]] %s7558_s10 }
   0xb   :  { %7607 = sst [smem:[#allocation55_spill]] %s7560_s12 }
   0xc   :  { %7608 = sst [smem:[#allocation56_spill]] %s7561_s13 }
   0xd   :  { %7609 = sst [smem:[#allocation57_spill]] %s7562_s14 }
   0xe   :  { %7610 = sst [smem:[#allocation58_spill]] %s7563_s15 }
   0xf   :  { %20 = vsyncpa [#allocation4], 0 }
  0x10   :  { %21 = vsyncpa [#allocation7], 0 }
  0x11   :  { %22 = vsyncpa [#allocation10], 0 }
  0x12   :  { %23 = vsyncpa [#allocation13], 0 }
  0x13   :  { %25 = vsyncpa [#allocation13 + $0x1], 0 }
  0x14   :  { %26 = vsyncpa [#allocation16], 0 }
  0x15   :  { %28 = vsyncpa [#allocation16 + $0x1], 0 }
  0x16   :  { %29 = vsyncpa [#allocation19], 0 }
  0x17   :  { %31 = vsyncpa [#allocation19 + $0x1], 0 }
  0x18   :  { %32 = vsyncpa [#allocation22], 0 }
  0x19   :  { %34 = vsyncpa [#allocation22 + $0x1], 0 }
  0x1a   :  { %35 = vsyncpa [#allocation25], 0 }
  0x1b   :  { %36 = vsyncpa [#allocation5], 0  ;;  %s6391_s18 = smov 0   ;;  %s6393_s19 = smov 0  }
  0x1c   :  { %s6395_s20 = smov 0   ;;  %s6397_s21 = smov 0  }
  0x1d   :  { %s6399_s22 = smov 0   ;;  %s6401_s23 = smov 0  }
  0x1e LB: > { %7611 = sst [smem:[#allocation37_spill]] %s6258_s19  ;;  %s6422_s24 = sadd.s32 4294967295, %s6274_s23   ;;  %s6274_s23 = sphi %s6401_s23, %s42_s23   ;;  %s6270_s22 = sphi %s6399_s22, %s7674_s22   ;;  %s6266_s21 = sphi %s6397_s21, %s7673_s21   ;;  %s6262_s20 = sphi %s6395_s20, %s7671_s20   ;;  %s6258_s19 = sphi %s6393_s19, %s7670_s19   ;;  %s6254_s18 = sphi %s6391_s18, %s7669_s18  }
  0x1f   : > { %7612 = sst [smem:[#allocation38_spill]] %s6262_s20  ;;  %p4701_p0 = scmp.ge.s32.totalorder %s6274_s23, 1 }
  0x20   : > { %7613 = sst [smem:[#allocation39_spill]] %s6266_s21  ;;  %p7577_p1 = scmp.eq.s32.totalorder %s6422_s24, 0 }
  0x21   : > { %7614 = sst [smem:[#allocation40_spill]] %s6274_s23  ;;  %p455_p2 = scmp.lt.s32.totalorder %s6274_s23, 3 }
  0x22   : > { %s6276_s26 = smov [#allocation6]   ;;  %s6277_s28 = smov [#allocation9]  }
  0x23   : > { %p6427_p3 = pnand %p4701_p0, %p455_p2  ;;  %s486_s27 = sshll.u32 %s6276_s26, 4  ;;  %s6431_s27 = int_to_ptr.vmem [resolvable:$true] %s486_s27 }
  0x24   : > { %s515_s29 = sshll.u32 %s6277_s28, 4  ;;  %s6278_s16 = smov [#allocation24]   ;;  %s6441_s29 = int_to_ptr.vmem [resolvable:$true] %s515_s29 }
  0x25   : > { %s7615_s25 = scalar_select %p6427_p3, 1, 0 }
  0x26   : > { %p5393_p4 = pneg %p6427_p3  ;;  %s539_s17 = sshll.u32 %s6278_s16, 4  ;;  %s6443_s17 = int_to_ptr.vmem [resolvable:$true] %s539_s17 }
  0x27   : > { %7616 = sst [smem:[#allocation41_spill]] %s7615_s25  ;;  %s7618_s1 = sld [smem:[#allocation46_spill]] }
  0x28   : > { %p6437_p5 = pnand %p5393_p4, %p7577_p1 }
  0x2a   : > { %s7617_s30 = scalar_select %p6437_p5, 1, 0 }
  0x2b   : > { %p6453_p7 = pneg %p6437_p5 }
  0x2d   : > { %s5730_s21 = scalar_lea.hbm %s7618_s1, 128 }
  0x2e   : > { %p5731_p6 = scmp.ne.s32.totalorder %s7618_s1, %s5730_s21  ;;  %p5737_p10 = scmp.lt.u32.totalorder %s5730_s21, %s7618_s1 }
  0x2f   : > { %s7619_s28 = scalar_select %p6453_p7, 1, 0 }
  0x30   : > { %p5733_p8 = pnand %p6453_p7, %p5731_p6 }
  0x32   : > { %p5734_p9 = pneg %p5733_p8 }
  0x34   : > { %p5739_p11 = pnand %p5737_p10, %p5734_p9 }
  0x36   : > { %5742 = shalt.err (!%p5739_p11)
}
  0x37   : > { %s5743_s12 = scalar_lea.vmem %s6431_s27, 128  ;;  %p5751_p2 = scmp.lt.s32.totalorder %s6431_s27, %s6431_s27 }
  0x38   : > { %p5744_p12 = scmp.ne.s32.totalorder %s6431_s27, %s5743_s12  ;;  %p5752_p4 = scmp.lt.s32.totalorder %s5743_s12, %s5743_s12 }
  0x3a   : > { %p5746_p13 = pnand %p5744_p12, %p6453_p7  ;;  %p5753_p6 = por %p5752_p4, %p5751_p2 }
  0x3c   : > { %p5747_p0 = pneg %p5746_p13 }
  0x3e   : > { %p5754_p8 = pnand %p5753_p6, %p5747_p0 }
  0x40   : > { %5757 = shalt.err (!%p5754_p8)
}
  0x41   : > { %s7572_s15 = smov 64   ;;  %s7574_s10 = smov 4  }
  0x42   : > { %5399 = dma.hbm_to_vmem [thread:$0]  (!%p6437_p5), %s7618_s1, 128, %s6431_s27, [#allocation7], %s7572_s15, %s7572_s15, %s7574_s10  }
  0x43   : > { %s7620_s3 = sld [smem:[#allocation47_spill]] }
  0x49   : > { %s5758_s12 = scalar_lea.hbm %s7620_s3, 128 }
  0x4a   : > { %p5759_p9 = scmp.ne.s32.totalorder %s7620_s3, %s5758_s12  ;;  %p5765_p12 = scmp.lt.u32.totalorder %s5758_s12, %s7620_s3 }
  0x4c   : > { %p5761_p10 = pnand %p5759_p9, %p6453_p7 }
  0x4e   : > { %p5762_p11 = pneg %p5761_p10 }
  0x50   : > { %p5767_p13 = pnand %p5765_p12, %p5762_p11 }
  0x52   : > { %5770 = shalt.err (!%p5767_p13)
}
  0x53   : > { %s5771_s27 = scalar_lea.vmem %s6441_s29, 128  ;;  %p5779_p6 = scmp.lt.s32.totalorder %s6441_s29, %s6441_s29 }
  0x54   : > { %p5772_p0 = scmp.ne.s32.totalorder %s6441_s29, %s5771_s27  ;;  %p5780_p8 = scmp.lt.s32.totalorder %s5771_s27, %s5771_s27 }
  0x56   : > { %p5774_p2 = pnand %p5772_p0, %p6453_p7  ;;  %p5781_p9 = por %p5780_p8, %p5779_p6 }
  0x58   : > { %p5775_p4 = pneg %p5774_p2 }
  0x5a   : > { %p5782_p10 = pnand %p5781_p9, %p5775_p4 }
  0x5c   : > { %5785 = shalt.err (!%p5782_p10)
}
  0x5d   : > { %5405 = dma.hbm_to_vmem [thread:$0]  (!%p6437_p5), %s7620_s3, 128, %s6441_s29, [#allocation10], %s7572_s15, %s7572_s15, %s7574_s10  }
  0x5e   : > { %s7621_s13 = sld [smem:[#allocation56_spill]] }
  0x64   : > { %s5786_s21 = scalar_lea.hbm %s7621_s13, 256 }
  0x65   : > { %p5787_p11 = scmp.ne.s32.totalorder %s7621_s13, %s5786_s21  ;;  %p5793_p0 = scmp.lt.u32.totalorder %s5786_s21, %s7621_s13 }
  0x67   : > { %p5789_p12 = pnand %p5787_p11, %p6453_p7 }
  0x69   : > { %p5790_p13 = pneg %p5789_p12 }
  0x6b   : > { %p5795_p2 = pnand %p5793_p0, %p5790_p13 }
  0x6d   : > { %5798 = shalt.err (!%p5795_p2)
}
  0x6e   : > { %s5799_s29 = scalar_lea.vmem %s6443_s17, 256  ;;  %p5807_p9 = scmp.lt.s32.totalorder %s6443_s17, %s6443_s17 }
  0x6f   : > { %p5800_p4 = scmp.ne.s32.totalorder %s6443_s17, %s5799_s29  ;;  %p5808_p10 = scmp.lt.s32.totalorder %s5799_s29, %s5799_s29 }
  0x71   : > { %p5802_p6 = pnand %p5800_p4, %p6453_p7  ;;  %p5809_p11 = por %p5808_p10, %p5807_p9 }
  0x73   : > { %p5803_p8 = pneg %p5802_p6 }
  0x75   : > { %p5810_p12 = pnand %p5809_p11, %p5803_p8 }
  0x77   : > { %5813 = shalt.err (!%p5810_p12)
}
  0x78   : > { %5411 = dma.hbm_to_vmem [thread:$0]  (!%p6437_p5), %s7621_s13, 256, %s6443_s17, [#allocation25], %s7572_s15, %s7572_s15, %s7574_s10  }
  0x79   : > { %s51_s6 = sadd.s32 1, %s6270_s22  ;;  %s181_s8 = sadd.s32 1, %s6262_s20 }
  0x7a   : > { %p52_p13 = scmp.ge.s32.totalorder %s51_s6, 2  ;;  %p188_p0 = scmp.ne.s32.totalorder %s6262_s20, %s6258_s19 }
  0x7b   : > { %p189_p2 = scmp.eq.s32.totalorder %s6274_s23, 0  ;;  %p194_p6 = scmp.ne.s32.totalorder %s6258_s19, %s6254_s18 }
  0x7c   : > { %s7676_s6 = smov (%p52_p13, %s51_s6), 0  ;;  %p5447_p8 = scmp.lt.s32.totalorder %s6274_s23, 2 }
  0x7d   : > { %7622 = sst [smem:[#allocation42_spill]] %s7676_s6  ;;  %p6536_p4 = por %p189_p2, %p188_p0 }
  0x7e   : > { %s178_s21 = ssub.s32 %s6270_s22, %s7676_s6  ;;  %p6547_p10 = por %p7577_p1, %p194_p6 }
  0x7f   : > { %p179_p9 = scmp.eq.s32.totalorder %s178_s21, 0  ;;  %s6552_s25 = sand.u32 1, %s6274_s23  }
  0x80   : > { %s7624_s17 = scalar_select %p6547_p10, 1, 0 }
  0x81   : > { %s6555_s26 = sand.u32 1, %s6262_s20   ;;  %s6564_s18 = sshll.u32 %s6270_s22, 8 }
  0x82   : > { %7625 = sst [smem:[#allocation43_spill]] %s7624_s17  ;;  %s6561_s12 = sshll.u32 %s6555_s26, 4 }
  0x83   : > { %s6558_s16 = scalar_select %p179_p9, %s6262_s20, %s181_s8  }
  0x84   : > { %s7627_s5 = sld [smem:[#allocation49_spill]]  ;;  %s568_s21 = scalar_lea.vmem [#allocation12], %s6561_s12 }
  0x85   : > { %7626 = sst [smem:[#allocation44_spill]] %s6558_s16  ;;  %s575_s15 = sshll.u32 %s568_s21, 4  ;;  %s6573_s15 = int_to_ptr.vmem [resolvable:$true] %s575_s15 }
  0x86   : > { %p6577_p11 = pnand %p5447_p8, %p6536_p4  ;;  %s7629_s7 = sld [smem:[#allocation51_spill]] }
  0x88   : > { %s7628_s8 = scalar_select %p6577_p11, 1, 0 }
  0x89   : > { %p6592_p13 = pneg %p6577_p11 }
  0x8a   : > { %s6570_s4 = scalar_lea.hbm %s7627_s5, %s6564_s18  ;;  %s5819_s6 = scalar_lea.hbm %s7627_s5, 512 }
  0x8b   : > { %s5814_s3 = scalar_lea.hbm %s6570_s4, 256  ;;  %p5820_p4 = scmp.lt.u32.totalorder %s6570_s4, %s7627_s5 }
  0x8c   : > { %s6585_s29 = scalar_lea.hbm %s7629_s7, %s6564_s18  ;;  %p5815_p12 = scmp.ne.s32.totalorder %s6570_s4, %s5814_s3 }
  0x8d   : > { %s7630_s13 = scalar_select %p6592_p13, 1, 0 }
  0x8e   : > { %p5817_p0 = pnand %p6592_p13, %p5815_p12  ;;  %p5821_p6 = scmp.lt.u32.totalorder %s5819_s6, %s5814_s3 }
  0x8f   : > { %p5823_p9 = scmp.lt.u32.totalorder %s5814_s3, %s6570_s4 }
  0x90   : > { %p5818_p2 = pneg %p5817_p0  ;;  %p5822_p8 = por %p5821_p6, %p5820_p4 }
  0x92   : > { %p5824_p1 = por %p5823_p9, %p5822_p8 }
  0x94   : > { %p5825_p10 = pnand %p5824_p1, %p5818_p2 }
  0x96   : > { %5828 = shalt.err (!%p5825_p10)
}
  0x97   : > { %s5829_s27 = scalar_lea.vmem %s6573_s15, 256  ;;  %s6281_s14 = smov [#allocation12]  }
  0x98   : > { %p5830_p12 = scmp.ne.s32.totalorder %s6573_s15, %s5829_s27  ;;  %s5834_s21 = sshll.u32 %s6281_s14, 4  ;;  %s5835_s21 = int_to_ptr.vmem [resolvable:$false] %s5834_s21 }
  0x99   : > { %s5836_s1 = scalar_lea.vmem %s5835_s21, 512  ;;  %p5837_p5 = scmp.lt.s32.totalorder %s6573_s15, %s5835_s21 }
  0x9a   : > { %p5832_p0 = pnand %p5830_p12, %p6592_p13  ;;  %p5838_p7 = scmp.lt.s32.totalorder %s5836_s1, %s5829_s27 }
  0x9c   : > { %p5833_p3 = pneg %p5832_p0  ;;  %p5839_p4 = por %p5838_p7, %p5837_p5 }
  0x9e   : > { %p5840_p6 = pnand %p5839_p4, %p5833_p3 }
  0xa0   : > { %5843 = shalt.err (!%p5840_p6)
}
  0xa1   : > { %s7631_s3 = smov 4   ;;  %s7632_s6 = smov 64  }
  0xa2   : > { %s7633_s10 = scalar_lea.sflag [#allocation13], %s6552_s25  ;;  %s610_s27 = scalar_lea.vmem [#allocation15], %s6561_s12 }
  0xa3   : > { %5418 = dma.hbm_to_vmem [thread:$0]  (!%p6577_p11), %s6570_s4, 256, %s6573_s15, %s7633_s10, %s7632_s6, %s7632_s6, %s7631_s3  }
  0xa4   : > { %s617_s14 = sshll.u32 %s610_s27, 4  ;;  %s4722_s21 = sshll.u32 %s6555_s26, 8  ;;  %s6621_s14 = int_to_ptr.vmem [resolvable:$true] %s617_s14 }
  0xa5   : > { %s7590_s1 = scalar_lea.sflag [#allocation16], %s6552_s25  ;;  %s5844_s5 = scalar_lea.hbm %s6585_s29, 256 }
  0xa6   : > { %p5845_p1 = scmp.ne.s32.totalorder %s6585_s29, %s5844_s5  ;;  %s5849_s23 = scalar_lea.hbm %s7629_s7, 512 }
  0xa7   : > { %p5850_p7 = scmp.lt.u32.totalorder %s6585_s29, %s7629_s7  ;;  %p5851_p10 = scmp.lt.u32.totalorder %s5849_s23, %s5844_s5 }
  0xa8   : > { %p5847_p3 = pnand %p5845_p1, %p6592_p13  ;;  %p5853_p8 = scmp.lt.u32.totalorder %s5844_s5, %s6585_s29 }
  0xa9   : > { %p5852_p2 = por %p5851_p10, %p5850_p7 }
  0xaa   : > { %p5848_p5 = pneg %p5847_p3 }
  0xab   : > { %p5854_p9 = por %p5853_p8, %p5852_p2 }
  0xad   : > { %p5855_p12 = pnand %p5854_p9, %p5848_p5 }
  0xaf   : > { %5858 = shalt.err (!%p5855_p12)
}
  0xb0   : > { %s5859_s15 = scalar_lea.vmem %s6621_s14, 256  ;;  %s6282_s20 = smov [#allocation15]  }
  0xb1   : > { %p5860_p0 = scmp.ne.s32.totalorder %s6621_s14, %s5859_s15  ;;  %s5864_s16 = sshll.u32 %s6282_s20, 4  ;;  %s5865_s16 = int_to_ptr.vmem [resolvable:$false] %s5864_s16 }
  0xb2   : > { %s5866_s19 = scalar_lea.vmem %s5865_s16, 512  ;;  %p5867_p1 = scmp.lt.s32.totalorder %s6621_s14, %s5865_s16 }
  0xb3   : > { %p5862_p4 = pnand %p5860_p0, %p6592_p13  ;;  %p5868_p3 = scmp.lt.s32.totalorder %s5866_s19, %s5859_s15 }
  0xb5   : > { %p5863_p6 = pneg %p5862_p4  ;;  %p5869_p7 = por %p5868_p3, %p5867_p1 }
  0xb7   : > { %p5870_p10 = pnand %p5869_p7, %p5863_p6 }
  0xb9   : > { %5873 = shalt.err (!%p5870_p10)
}
  0xba   : > { %5424 = dma.hbm_to_vmem [thread:$0]  (!%p6577_p11), %s6585_s29, 256, %s6621_s14, %s7590_s1, %s7632_s6, %s7632_s6, %s7631_s3  }
  0xbb   : > { %s4966_s5 = sshll.u32 %s6270_s22, 12  ;;  %s7634_s9 = sld [smem:[#allocation53_spill]] }
  0xbc   : > { %s652_s10 = scalar_lea.vmem [#allocation18], %s4722_s21  ;;  %s7589_s15 = scalar_lea.sflag [#allocation19], %s6552_s25 }
  0xbd   : > { %s659_s27 = sshll.u32 %s652_s10, 4  ;;  %s6659_s27 = int_to_ptr.vmem [resolvable:$true] %s659_s27 }
  0xc1   : > { %s6655_s4 = scalar_lea.hbm %s7634_s9, %s4966_s5  ;;  %s5879_s16 = scalar_lea.hbm %s7634_s9, 8192 }
  0xc2   : > { %s5874_s20 = scalar_lea.hbm %s6655_s4, 4096  ;;  %p5880_p9 = scmp.lt.u32.totalorder %s6655_s4, %s7634_s9 }
  0xc3   : > { %p5875_p5 = scmp.ne.s32.totalorder %s6655_s4, %s5874_s20  ;;  %p5881_p12 = scmp.lt.u32.totalorder %s5879_s16, %s5874_s20 }
  0xc4   : > { %p5883_p4 = scmp.lt.u32.totalorder %s5874_s20, %s6655_s4 }
  0xc5   : > { %p5877_p2 = pnand %p5875_p5, %p6592_p13  ;;  %p5882_p0 = por %p5881_p12, %p5880_p9 }
  0xc7   : > { %p5878_p8 = pneg %p5877_p2  ;;  %p5884_p6 = por %p5883_p4, %p5882_p0 }
  0xc9   : > { %p5885_p1 = pnand %p5884_p6, %p5878_p8 }
  0xcb   : > { %5888 = shalt.err (!%p5885_p1)
}
  0xcc   : > { %s5889_s21 = scalar_lea.vmem %s6659_s27, 4096  ;;  %s6283_s23 = smov [#allocation18]  }
  0xcd   : > { %p5890_p3 = scmp.ne.s32.totalorder %s6659_s27, %s5889_s21  ;;  %s5894_s17 = sshll.u32 %s6283_s23, 4  ;;  %s5895_s17 = int_to_ptr.vmem [resolvable:$false] %s5894_s17 }
  0xce   : > { %s5896_s10 = scalar_lea.vmem %s5895_s17, 8192  ;;  %p5897_p5 = scmp.lt.s32.totalorder %s6659_s27, %s5895_s17 }
  0xcf   : > { %p5892_p7 = pnand %p5890_p3, %p6592_p13  ;;  %p5898_p2 = scmp.lt.s32.totalorder %s5896_s10, %s5889_s21 }
  0xd1   : > { %p5893_p10 = pneg %p5892_p7  ;;  %p5899_p9 = por %p5898_p2, %p5897_p5 }
  0xd3   : > { %p5900_p12 = pnand %p5899_p9, %p5893_p10 }
  0xd5   : > { %5903 = shalt.err (!%p5900_p12)
}
  0xd6   : > { %s6284_s20 = smov 1024   ;;  %s6690_s16 = scalar_lea.hbm %s7559_s11, %s6564_s18 }
  0xd7   : > { %5430 = dma.hbm_to_vmem [thread:$0]  (!%p6577_p11), %s6655_s4, 4096, %s6659_s27, %s7589_s15, %s6284_s20, %s6284_s20, %s7632_s6  }
  0xd8   : > { %s694_s19 = scalar_lea.vmem [#allocation21], %s6561_s12  ;;  %s7595_s21 = scalar_lea.sflag [#allocation22], %s6552_s25 }
  0xd9   : > { %s701_s5 = sshll.u32 %s694_s19, 4  ;;  %s5904_s23 = scalar_lea.hbm %s6690_s16, 256  ;;  %s6693_s5 = int_to_ptr.vmem [resolvable:$true] %s701_s5 }
  0xda   : > { %p5905_p8 = scmp.ne.s32.totalorder %s6690_s16, %s5904_s23  ;;  %s5909_s17 = scalar_lea.hbm %s7559_s11, 512 }
  0xdb   : > { %p5910_p6 = scmp.lt.u32.totalorder %s6690_s16, %s7559_s11  ;;  %p5911_p1 = scmp.lt.u32.totalorder %s5909_s17, %s5904_s23 }
  0xdc   : > { %p5907_p0 = pnand %p5905_p8, %p6592_p13  ;;  %p5913_p7 = scmp.lt.u32.totalorder %s5904_s23, %s6690_s16 }
  0xdd   : > { %p5912_p3 = por %p5911_p1, %p5910_p6 }
  0xde   : > { %p5908_p4 = pneg %p5907_p0 }
  0xdf   : > { %p5914_p10 = por %p5913_p7, %p5912_p3 }
  0xe1   : > { %p5915_p5 = pnand %p5914_p10, %p5908_p4 }
  0xe3   : > { %5918 = shalt.err (!%p5915_p5)
}
  0xe4   : > { %s5919_s29 = scalar_lea.vmem %s6693_s5, 256  ;;  %s6285_s14 = smov [#allocation21]  }
  0xe5   : > { %p5920_p2 = scmp.ne.s32.totalorder %s6693_s5, %s5919_s29  ;;  %s5924_s19 = sshll.u32 %s6285_s14, 4  ;;  %s5925_s19 = int_to_ptr.vmem [resolvable:$false] %s5924_s19 }
  0xe6   : > { %s5926_s4 = scalar_lea.vmem %s5925_s19, 512  ;;  %p5927_p8 = scmp.lt.s32.totalorder %s6693_s5, %s5925_s19 }
  0xe7   : > { %p5922_p9 = pnand %p5920_p2, %p6592_p13  ;;  %p5928_p0 = scmp.lt.s32.totalorder %s5926_s4, %s5919_s29 }
  0xe9   : > { %p5923_p12 = pneg %p5922_p9  ;;  %p5929_p6 = por %p5928_p0, %p5927_p8 }
  0xeb   : > { %p5930_p1 = pnand %p5929_p6, %p5923_p12 }
  0xed   : > { %5933 = shalt.err (!%p5930_p1)
}
  0xee   : > { %s6286_s23 = smov 128   ;;  %s6287_s27 = smov 8  }
  0xef   : > { %5436 = dma.hbm_to_vmem [thread:$0]  (!%p6577_p11), %s6690_s16, 256, %s6693_s5, %s7595_s21, %s6286_s23, %s6286_s23, %s6287_s27  }
  0xf0   : > { %s6288_s17 = smov [#allocation3]   ;;  %s6289_s20 = smov [#allocation8]  }
  0xf1   : > { %s470_s10 = sshll.u32 %s6288_s17, 4  ;;  %s502_s29 = sshll.u32 %s6289_s20, 4  ;;  %s471_s10 = int_to_ptr.vmem [resolvable:$true] %s470_s10  ;;  %s503_s29 = int_to_ptr.vmem [resolvable:$true] %s502_s29 }
  0xf2   : > { %s7635_s0 = sld [smem:[#allocation45_spill]]  ;;  %p7636_p3 = scmp.ne.s32.totalorder %s7619_s28, 0 }
  0xf8   : > { %s5934_s4 = scalar_lea.hbm %s7635_s0, 128 }
  0xf9   : > { %p5935_p4 = scmp.ne.s32.totalorder %s7635_s0, %s5934_s4  ;;  %p5941_p5 = scmp.lt.u32.totalorder %s5934_s4, %s7635_s0 }
  0xfb   : > { %p5937_p7 = pnand %p5935_p4, %p7636_p3 }
  0xfd   : > { %p5938_p10 = pneg %p5937_p7 }
  0xff   : > { %p5943_p2 = pnand %p5941_p5, %p5938_p10 }
 0x101   : > { %5946 = shalt.err (!%p5943_p2)
}
 0x102   : > { %s5947_s16 = scalar_lea.vmem %s471_s10, 128  ;;  %p5955_p0 = scmp.lt.s32.totalorder %s471_s10, %s471_s10 }
 0x103   : > { %p5948_p9 = scmp.ne.s32.totalorder %s471_s10, %s5947_s16  ;;  %p5956_p6 = scmp.lt.s32.totalorder %s5947_s16, %s5947_s16 }
 0x105   : > { %p5950_p12 = pnand %p5948_p9, %p7636_p3  ;;  %p5957_p1 = por %p5956_p6, %p5955_p0 }
 0x107   : > { %p5951_p8 = pneg %p5950_p12 }
 0x109   : > { %p5958_p11 = pnand %p5957_p1, %p5951_p8 }
 0x10b   : > { %5961 = shalt.err (!%p5958_p11)
}
 0x10c   : > { %p7637_p4 = scmp.ne.s32.totalorder %s7617_s30, 0  ;;  %s5962_s5 = scalar_lea.hbm %s7550_s2, 256 }
 0x10d   : > { %p5963_p7 = scmp.ne.s32.totalorder %s7550_s2, %s5962_s5  ;;  %p5969_p5 = scmp.lt.u32.totalorder %s5962_s5, %s7550_s2 }
 0x10e   : > { %5396 = dma.hbm_to_vmem [thread:$0]  (!%p7637_p4), %s7635_s0, 128, %s471_s10, [#allocation4], %s7632_s6, %s7632_s6, %s7631_s3  }
 0x10f   : > { %p5965_p11 = pnand %p5963_p7, %p7636_p3 }
 0x111   : > { %p5966_p10 = pneg %p5965_p11 }
 0x113   : > { %p5971_p2 = pnand %p5969_p5, %p5966_p10 }
 0x115   : > { %5974 = shalt.err (!%p5971_p2)
}
 0x116   : > { %s5975_s4 = scalar_lea.vmem %s503_s29, 256  ;;  %p5983_p0 = scmp.lt.s32.totalorder %s503_s29, %s503_s29 }
 0x117   : > { %p5976_p9 = scmp.ne.s32.totalorder %s503_s29, %s5975_s4  ;;  %p5984_p6 = scmp.lt.s32.totalorder %s5975_s4, %s5975_s4 }
 0x119   : > { %p5978_p12 = pnand %p5976_p9, %p7636_p3  ;;  %p5985_p1 = por %p5984_p6, %p5983_p0 }
 0x11b   : > { %p5979_p8 = pneg %p5978_p12 }
 0x11d   : > { %p5986_p13 = pnand %p5985_p1, %p5979_p8 }
 0x11f   : > { %5989 = shalt.err (!%p5986_p13)
}
 0x120   : > { %5402 = dma.hbm_to_vmem [thread:$0]  (!%p7637_p4), %s7550_s2, 256, %s503_s29, [#allocation7], %s6286_s23, %s6286_s23, %s6287_s27  }
 0x121   : > { %s6290_s7 = smov [#allocation11]   ;;  %s6291_s1 = smov [#allocation26]  }
 0x122   : > { %s529_s9 = sshll.u32 %s6290_s7, 4  ;;  %s553_s15 = sshll.u32 %s6291_s1, 4  ;;  %s530_s9 = int_to_ptr.vmem [resolvable:$true] %s529_s9  ;;  %s554_s15 = int_to_ptr.vmem [resolvable:$true] %s553_s15 }
 0x123   : > { %s7638_s20 = sld [smem:[#allocation48_spill]] }
 0x129   : > { %s7639_s14 = smov %s7638_s20  ;;  %s5990_s19 = scalar_lea.hbm %s7638_s20, 64 }
 0x12a   : > { %p5991_p13 = scmp.ne.s32.totalorder %s7639_s14, %s5990_s19  ;;  %p5997_p10 = scmp.lt.u32.totalorder %s5990_s19, %s7639_s14 }
 0x12c   : > { %p5993_p7 = pnand %p5991_p13, %p7636_p3 }
 0x12e   : > { %p5994_p11 = pneg %p5993_p7 }
 0x130   : > { %p5999_p5 = pnand %p5997_p10, %p5994_p11 }
 0x132   : > { %6002 = shalt.err (!%p5999_p5)
}
 0x133   : > { %s6003_s23 = scalar_lea.vmem %s530_s9, 64  ;;  %p6011_p8 = scmp.lt.s32.totalorder %s530_s9, %s530_s9 }
 0x134   : > { %p6004_p2 = scmp.ne.s32.totalorder %s530_s9, %s6003_s23  ;;  %p6012_p0 = scmp.lt.s32.totalorder %s6003_s23, %s6003_s23 }
 0x136   : > { %p6006_p9 = pnand %p6004_p2, %p7636_p3  ;;  %p6013_p6 = por %p6012_p0, %p6011_p8 }
 0x138   : > { %p6007_p12 = pneg %p6006_p9 }
 0x13a   : > { %p6014_p1 = pnand %p6013_p6, %p6007_p12 }
 0x13c   : > { %6017 = shalt.err (!%p6014_p1)
}
 0x13d   : > { %5408 = dma.hbm_to_vmem [thread:$0]  (!%p7637_p4), %s7639_s14, 64, %s530_s9, [#allocation10]  }
 0x13e   : > { %s7640_s16 = sld [smem:[#allocation57_spill]] }
 0x144   : > { %s6018_s7 = scalar_lea.hbm %s7640_s16, 16 }
 0x145   : > { %p6019_p13 = scmp.ne.s32.totalorder %s7640_s16, %s6018_s7  ;;  %p6025_p10 = scmp.lt.u32.totalorder %s6018_s7, %s7640_s16 }
 0x147   : > { %p6021_p7 = pnand %p6019_p13, %p7636_p3 }
 0x149   : > { %p6022_p11 = pneg %p6021_p7 }
 0x14b   : > { %p6027_p5 = pnand %p6025_p10, %p6022_p11 }
 0x14d   : > { %6030 = shalt.err (!%p6027_p5)
}
 0x14e   : > { %s6031_s19 = scalar_lea.vmem %s554_s15, 16  ;;  %s6038_s9 = scalar_lea.vmem %s554_s15, 32 }
 0x14f   : > { %p6032_p2 = scmp.ne.s32.totalorder %s554_s15, %s6031_s19  ;;  %p6039_p8 = scmp.lt.s32.totalorder %s554_s15, %s554_s15 }
 0x150   : > { %p6040_p0 = scmp.lt.s32.totalorder %s6038_s9, %s6031_s19 }
 0x151   : > { %p6034_p9 = pnand %p6032_p2, %p7636_p3 }
 0x152   : > { %p6041_p6 = por %p6040_p0, %p6039_p8 }
 0x153   : > { %p6035_p12 = pneg %p6034_p9 }
 0x155   : > { %p6042_p1 = pnand %p6041_p6, %p6035_p12 }
 0x157   : > { %6045 = shalt.err (!%p6042_p1)
}
 0x158   : > { %5414 = dma.hbm_to_vmem [thread:$0]  (!%p7637_p4), %s7640_s16, 16, %s554_s15, [#allocation25]  }
 0x159   : > { %s7641_s28 = sld [smem:[#allocation50_spill]]  ;;  %s589_s0 = scalar_lea.vmem [#allocation14], %s6561_s12 }
 0x15a   : > { %s596_s29 = sshll.u32 %s589_s0, 4  ;;  %p7642_p13 = scmp.ne.s32.totalorder %s7630_s13, 0  ;;  %s6807_s29 = int_to_ptr.vmem [resolvable:$true] %s596_s29 }
 0x15f   : > { %s6804_s27 = scalar_lea.hbm %s7641_s28, %s6564_s18  ;;  %s6051_s1 = scalar_lea.hbm %s7641_s28, 512 }
 0x160   : > { %s6046_s30 = scalar_lea.hbm %s6804_s27, 256  ;;  %p6052_p4 = scmp.lt.u32.totalorder %s6804_s27, %s7641_s28 }
 0x161   : > { %p6047_p3 = scmp.ne.s32.totalorder %s6804_s27, %s6046_s30  ;;  %p6053_p10 = scmp.lt.u32.totalorder %s6051_s1, %s6046_s30 }
 0x162   : > { %p6055_p2 = scmp.lt.u32.totalorder %s6046_s30, %s6804_s27 }
 0x163   : > { %p6049_p7 = pnand %p6047_p3, %p7642_p13  ;;  %p6054_p5 = por %p6053_p10, %p6052_p4 }
 0x165   : > { %p6050_p11 = pneg %p6049_p7  ;;  %p6056_p9 = por %p6055_p2, %p6054_p5 }
 0x167   : > { %p6057_p12 = pnand %p6056_p9, %p6050_p11 }
 0x169   : > { %6060 = shalt.err (!%p6057_p12)
}
 0x16a   : > { %s6061_s20 = scalar_lea.vmem %s6807_s29, 256  ;;  %s6292_s19 = smov [#allocation14]  }
 0x16b   : > { %p6062_p8 = scmp.ne.s32.totalorder %s6807_s29, %s6061_s20  ;;  %s6066_s9 = sshll.u32 %s6292_s19, 4  ;;  %s6067_s9 = int_to_ptr.vmem [resolvable:$false] %s6066_s9 }
 0x16c   : > { %s6068_s4 = scalar_lea.vmem %s6067_s9, 512  ;;  %p6069_p1 = scmp.lt.s32.totalorder %s6807_s29, %s6067_s9 }
 0x16d   : > { %p6064_p0 = pnand %p6062_p8, %p7642_p13  ;;  %p6070_p3 = scmp.lt.s32.totalorder %s6068_s4, %s6061_s20 }
 0x16f   : > { %p6065_p6 = pneg %p6064_p0  ;;  %p6071_p7 = por %p6070_p3, %p6069_p1 }
 0x171   : > { %p6072_p4 = pnand %p6071_p7, %p6065_p6 }
 0x173   : > { %6075 = shalt.err (!%p6072_p4)
}
 0x174   : > { %p7643_p11 = scmp.ne.s32.totalorder %s7628_s8, 0  ;;  %s7644_s10 = scalar_lea.sflag [#allocation13], %s6552_s25 }
 0x175   : > { %s7645_s0 = sld [smem:[#allocation52_spill]]  ;;  %s631_s7 = scalar_lea.vmem [#allocation17], %s6561_s12 }
 0x176   : > { %5421 = dma.hbm_to_vmem [thread:$0]  (!%p7643_p11), %s6804_s27, 256, %s6807_s29, %s7644_s10, %s7632_s6, %s7632_s6, %s7631_s3  }
 0x177   : > { %s638_s15 = sshll.u32 %s631_s7, 4  ;;  %s4725_s1 = sshll.u32 %s6555_s26, 10  ;;  %s6842_s15 = int_to_ptr.vmem [resolvable:$true] %s638_s15 }
 0x17b   : > { %s6839_s30 = scalar_lea.hbm %s7645_s0, %s6564_s18  ;;  %s6081_s17 = scalar_lea.hbm %s7645_s0, 512 }
 0x17c   : > { %s6076_s5 = scalar_lea.hbm %s6839_s30, 256  ;;  %p6082_p9 = scmp.lt.u32.totalorder %s6839_s30, %s7645_s0 }
 0x17d   : > { %p6077_p10 = scmp.ne.s32.totalorder %s6839_s30, %s6076_s5  ;;  %p6083_p12 = scmp.lt.u32.totalorder %s6081_s17, %s6076_s5 }
 0x17e   : > { %p6085_p0 = scmp.lt.u32.totalorder %s6076_s5, %s6839_s30 }
 0x17f   : > { %p6079_p5 = pnand %p6077_p10, %p7642_p13  ;;  %p6084_p8 = por %p6083_p12, %p6082_p9 }
 0x181   : > { %p6080_p2 = pneg %p6079_p5  ;;  %p6086_p6 = por %p6085_p0, %p6084_p8 }
 0x183   : > { %p6087_p1 = pnand %p6086_p6, %p6080_p2 }
 0x185   : > { %6090 = shalt.err (!%p6087_p1)
}
 0x186   : > { %s6091_s9 = scalar_lea.vmem %s6842_s15, 256  ;;  %s6293_s4 = smov [#allocation17]  }
 0x187   : > { %p6092_p3 = scmp.ne.s32.totalorder %s6842_s15, %s6091_s9  ;;  %s6096_s10 = sshll.u32 %s6293_s4, 4  ;;  %s6097_s10 = int_to_ptr.vmem [resolvable:$false] %s6096_s10 }
 0x188   : > { %s6098_s23 = scalar_lea.vmem %s6097_s10, 512  ;;  %p6099_p10 = scmp.lt.s32.totalorder %s6842_s15, %s6097_s10 }
 0x189   : > { %p6094_p7 = pnand %p6092_p3, %p7642_p13  ;;  %p6100_p5 = scmp.lt.s32.totalorder %s6098_s23, %s6091_s9 }
 0x18b   : > { %p6095_p4 = pneg %p6094_p7  ;;  %p6101_p9 = por %p6100_p5, %p6099_p10 }
 0x18d   : > { %p6102_p12 = pnand %p6101_p9, %p6095_p4 }
 0x18f   : > { %6105 = shalt.err (!%p6102_p12)
}
 0x190   : > { %s7646_s21 = scalar_lea.sflag [#allocation16], %s6552_s25  ;;  %s4967_s7 = sshll.u32 %s6270_s22, 14 }
 0x191   : > { %5427 = dma.hbm_to_vmem [thread:$0]  (!%p7643_p11), %s6839_s30, 256, %s6842_s15, %s7646_s21, %s7632_s6, %s7632_s6, %s7631_s3  }
 0x192   : > { %s7647_s29 = sld [smem:[#allocation54_spill]]  ;;  %s673_s20 = scalar_lea.vmem [#allocation20], %s4725_s1 }
 0x193   : > { %s680_s19 = sshll.u32 %s673_s20, 4  ;;  %s6879_s19 = int_to_ptr.vmem [resolvable:$true] %s680_s19 }
 0x198   : > { %s6875_s17 = scalar_lea.hbm %s7647_s29, %s4967_s7  ;;  %s6111_s4 = scalar_lea.hbm %s7647_s29, 32768 }
 0x199   : > { %s6106_s9 = scalar_lea.hbm %s6875_s17, 16384  ;;  %p6112_p6 = scmp.lt.u32.totalorder %s6875_s17, %s7647_s29 }
 0x19a   : > { %p6107_p2 = scmp.ne.s32.totalorder %s6875_s17, %s6106_s9  ;;  %p6113_p1 = scmp.lt.u32.totalorder %s6111_s4, %s6106_s9 }
 0x19b   : > { %p6115_p7 = scmp.lt.u32.totalorder %s6106_s9, %s6875_s17 }
 0x19c   : > { %p6109_p8 = pnand %p6107_p2, %p7642_p13  ;;  %p6114_p3 = por %p6113_p1, %p6112_p6 }
 0x19e   : > { %p6110_p0 = pneg %p6109_p8  ;;  %p6116_p4 = por %p6115_p7, %p6114_p3 }
 0x1a0   : > { %p6117_p10 = pnand %p6116_p4, %p6110_p0 }
 0x1a2   : > { %6120 = shalt.err (!%p6117_p10)
}
 0x1a3   : > { %s6121_s26 = scalar_lea.vmem %s6879_s19, 16384  ;;  %s6294_s1 = smov [#allocation20]  }
 0x1a4   : > { %p6122_p5 = scmp.ne.s32.totalorder %s6879_s19, %s6121_s26  ;;  %s6126_s21 = sshll.u32 %s6294_s1, 4  ;;  %s6127_s21 = int_to_ptr.vmem [resolvable:$false] %s6126_s21 }
 0x1a5   : > { %s6128_s7 = scalar_lea.vmem %s6127_s21, 32768  ;;  %p6129_p2 = scmp.lt.s32.totalorder %s6879_s19, %s6127_s21 }
 0x1a6   : > { %p6124_p9 = pnand %p6122_p5, %p7642_p13  ;;  %p6130_p8 = scmp.lt.s32.totalorder %s6128_s7, %s6121_s26 }
 0x1a8   : > { %p6125_p12 = pneg %p6124_p9  ;;  %p6131_p6 = por %p6130_p8, %p6129_p2 }
 0x1aa   : > { %p6132_p1 = pnand %p6131_p6, %p6125_p12 }
 0x1ac   : > { %6135 = shalt.err (!%p6132_p1)
}
 0x1ad   : > { %s7648_s5 = scalar_lea.sflag [#allocation19], %s6552_s25  ;;  %s7649_s9 = sld [smem:[#allocation55_spill]] }
 0x1ae   : > { %5433 = dma.hbm_to_vmem [thread:$0]  (!%p7643_p11), %s6875_s17, 16384, %s6879_s19, %s7648_s5, %s7632_s6, %s7632_s6, %s7631_s3  }
 0x1af   : > { %s715_s15 = scalar_lea.vmem [#allocation23], %s6561_s12 }
 0x1b0   : > { %s723_s4 = sshll.u32 %s715_s15, 4  ;;  %s724_s4 = int_to_ptr.vmem [resolvable:$true] %s723_s4 }
 0x1b3   : > { %s6911_s30 = scalar_lea.hbm %s7649_s9, %s6564_s18  ;;  %s6141_s3 = scalar_lea.hbm %s7649_s9, 512 }
 0x1b4   : > { %s6136_s10 = scalar_lea.hbm %s6911_s30, 256  ;;  %p6142_p4 = scmp.lt.u32.totalorder %s6911_s30, %s7649_s9 }
 0x1b5   : > { %p6137_p0 = scmp.ne.s32.totalorder %s6911_s30, %s6136_s10  ;;  %p6143_p10 = scmp.lt.u32.totalorder %s6141_s3, %s6136_s10 }
 0x1b6   : > { %p6145_p9 = scmp.lt.u32.totalorder %s6136_s10, %s6911_s30 }
 0x1b7   : > { %p6139_p3 = pnand %p6137_p0, %p7642_p13  ;;  %p6144_p5 = por %p6143_p10, %p6142_p4 }
 0x1b9   : > { %p6140_p7 = pneg %p6139_p3  ;;  %p6146_p12 = por %p6145_p9, %p6144_p5 }
 0x1bb   : > { %p6147_p2 = pnand %p6146_p12, %p6140_p7 }
 0x1bd   : > { %6150 = shalt.err (!%p6147_p2)
}
 0x1be   : > { %s6151_s12 = scalar_lea.vmem %s724_s4, 256  ;;  %s6295_s18 = smov [#allocation23]  }
 0x1bf   : > { %p6152_p8 = scmp.ne.s32.totalorder %s724_s4, %s6151_s12  ;;  %s6156_s19 = sshll.u32 %s6295_s18, 4  ;;  %s6157_s19 = int_to_ptr.vmem [resolvable:$false] %s6156_s19 }
 0x1c0   : > { %s6158_s1 = scalar_lea.vmem %s6157_s19, 512  ;;  %p6159_p0 = scmp.lt.s32.totalorder %s724_s4, %s6157_s19 }
 0x1c1   : > { %p6154_p6 = pnand %p6152_p8, %p7642_p13  ;;  %p6160_p3 = scmp.lt.s32.totalorder %s6158_s1, %s6151_s12 }
 0x1c3   : > { %p6155_p1 = pneg %p6154_p6  ;;  %p6161_p11 = por %p6160_p3, %p6159_p0 }
 0x1c5   : > { %p6162_p4 = pnand %p6161_p11, %p6155_p1 }
 0x1c7   : > { %6165 = shalt.err (!%p6162_p4)
}
 0x1c8   : > { %p7650_p10 = scmp.ne.s32.totalorder %s7628_s8, 0  ;;  %s7651_s21 = scalar_lea.sflag [#allocation22], %s6552_s25 }
 0x1c9   : > { %s7652_s7 = sld [smem:[#allocation41_spill]] }
 0x1ca   : > { %5439 = dma.hbm_to_vmem [thread:$0]  (!%p7650_p10), %s6911_s30, 256, %s724_s4, %s7651_s21  }
 0x1cf   : > { %p7653_p7 = scmp.ne.s32.totalorder %s7652_s7, 0 }
 0x1d0   : > { %p7654_p13 = scmp.eq.s32.totalorder (!%p7653_p7), %s6422_s24, 0 }
 0x1d1   : > { %732 = sbr.rel (%p7653_p7) target bundleno = 5093 (0x13e5), region = 80 }
 0x1d8   : > { %6217 = dma.done.wait (%p7654_p13), [#allocation4], 128   ;;  %p7655_p5 = pmov %p7654_p13 }
 0x1da   : > { %6219 = vsyncadd (%p7655_p5), [#allocation4], 4294967168  ;;  %p7656_p9 = pmov %p7655_p5 }
 0x1db   : > { %p7657_p11 = pmov %p7655_p5 }
 0x1dc   : > { %6221 = dma.done.wait (%p7656_p9), [#allocation7], 384  }
 0x1dd   : > { %6223 = vsyncadd (%p7657_p11), [#allocation7], 4294966912  ;;  %p7658_p12 = pmov %p7655_p5 }
 0x1de   : > { %p7659_p2 = pmov %p7655_p5 }
 0x1df   : > { %6225 = dma.done.wait (%p7658_p12), [#allocation10], 192  }
 0x1e0   : > { %6227 = vsyncadd (%p7659_p2), [#allocation10], 4294967104  ;;  %s7660_s13 = sld [smem:[#allocation37_spill]]  ;;  %s7661_s25 = sld [smem:[#allocation43_spill]] }
 0x1e1   : > { %s754_s8 = sand.u32 1, %s6422_s24  }
 0x1e2   : > { %s755_s20 = scalar_lea.sflag [#allocation13], %s754_s8 }
 0x1e6   : > { %s756_s5 = sand.u32 1, %s7660_s13   ;;  %p7662_p8 = scmp.ne.s32.totalorder %s7661_s25, 0 }
 0x1e7   : > { %s6949_s27 = sshll.u32 %s756_s5, 4 }
 0x1e8   : > { %s758_s30 = scalar_lea.vmem [#allocation12], %s6949_s27 }
 0x1e9   : > { %6229 = dma.done.wait (%p7662_p8), %s755_s20, 512  }
 0x1ea   : > { %6231 = vsyncadd (%p7662_p8), %s755_s20, 4294966784  ;;  %s767_s15 = scalar_lea.vmem [#allocation14], %s6949_s27  ;;  %s773_s4 = scalar_lea.sflag [#allocation16], %s754_s8 }
 0x1eb   : > { %s776_s10 = scalar_lea.vmem [#allocation15], %s6949_s27 }
 0x1ec   : > { %6233 = dma.done.wait (%p7662_p8), %s773_s4, 512  }
 0x1ed   : > { %6235 = vsyncadd (%p7662_p8), %s773_s4, 4294966784  ;;  %s4744_s23 = sshll.u32 %s756_s5, 8  ;;  %s785_s26 = scalar_lea.vmem [#allocation17], %s6949_s27 }
 0x1ee   : > { %s791_s3 = scalar_lea.sflag [#allocation19], %s754_s8  ;;  %s6963_s6 = scalar_lea.vmem [#allocation18], %s4744_s23 }
 0x1ef   : > { %6237 = dma.done.wait (%p7662_p8), %s791_s3, 20480  }
 0x1f0   : > { %6239 = vsyncadd (%p7662_p8), %s791_s3, 4294946816  ;;  %s4745_s17 = sshll.u32 %s756_s5, 10  ;;  %s809_s18 = scalar_lea.sflag [#allocation22], %s754_s8 }
 0x1f1   : > { %s6969_s12 = scalar_lea.vmem [#allocation20], %s4745_s17  ;;  %s812_s19 = scalar_lea.vmem [#allocation21], %s6949_s27 }
 0x1f2   : > { %6241 = dma.done.wait (%p7662_p8), %s809_s18, 512  }
 0x1f3   : > { %6243 = vsyncadd (%p7662_p8), %s809_s18, 4294966784  ;;  %s821_s1 = scalar_lea.vmem [#allocation23], %s6949_s27  ;;  %p7663_p6 = pmov %p7659_p2 }
 0x1f4   : > { %p7664_p1 = pmov %p7659_p2 }
 0x1f5   : > { %6245 = dma.done.wait (%p7663_p6), [#allocation25], 272  }
 0x1f6   : > { %6247 = vsyncadd (%p7664_p1), [#allocation25], 4294967024  ;;  %v6981_v0 = vld [vmem:[%s812_s19] sm:$0xff]  ;;  %v6983_v1 = vld [vmem:[%s812_s19 + $0x8] ss:$0 sm:$0xff]  ;;  %s7665_s21 = sld [smem:[#allocation39_spill]] }
 0x1f7   : > { %v6985_v2 = vld [vmem:[%s821_s1] sm:$0xff]  ;;  %v6987_v3 = vld [vmem:[%s821_s1 + $0x8] sm:$0xff] }
 0x1fc   : > { %p4750_p0 = scmp.ne.s32.totalorder %s7665_s21, 0 }
 0x1fd   : > { %v925_v4 = vld [vmem:[#allocation11] sm:$0xf] (!%p4750_p0)  ;;  %vm935_vm0 = vcmask (!%p4750_p0), 1043456   ;;  %v6296_v5 = vmov (!%p4750_p0), 0.0   ;;  %v5532_v7 = vld [vmem:[#allocation9] sm:$0xff] (!%p4750_p0)   ;;  %vm6297_vm1 = vmmov (!%p4750_p0), 0  }
 0x1fe   : > { %918 = sbr.rel (%p4750_p0) target bundleno = 734 (0x2de), region = 144  ;;  %5197 = vmatprep.subr.bf16.mxu0 (!%p4750_p0), %v6296_v5  ;;  %v937_v6 = vsel (!%p4750_p0), %vm935_vm0, %v925_v4, 0  ;;  %5203 = vmatprep.subr.bf16.mxu1 (!%p4750_p0), %v6296_v5  ;;  %v5533_v8 = vld [vmem:[#allocation6] sm:$0xff] (!%p4750_p0)   ;;  %vm931_vm2 = vcmask (!%p4750_p0), 64512   ;;  %v5534_v9 = vld [vmem:[#allocation3] sm:$0xff] (!%p4750_p0)   ;;  %vm991_vm3 = vcmask (!%p4750_p0), 130048  }
 0x1ff   : > { %5198 = vmatpush3.bf16.msra.mxu0 (!%p4750_p0), %v937_v6  ;;  %5199 = vmatprep.mubr.msk.bf16.mxu0 (!%p4750_p0), %vm6297_vm1, %v6296_v5  ;;  %v1036_v13 = vld [vmem:[#allocation8] sm:$0xff] (!%p4750_p0)  ;;  %vm1040_vm4 = vcmask (!%p4750_p0), 261120   ;;  %v1037_v19 = vld [vmem:[#allocation8 + $0x8] sm:$0xff] (!%p4750_p0) }
 0x200   : > { %5204 = vmatpush3.bf16.msra.mxu1 (!%p4750_p0), %v5532_v7  ;;  %5205 = vmatprep.mubr.msk.bf16.mxu1 (!%p4750_p0), %vm6297_vm1, %v6296_v5 }
 0x202   : > { %5200 = vmatmul.mubr.msk.bf16.vlgmr.msra.gmra.mrb[0].mxu0 (!%p4750_p0), %vm931_vm2, %v5533_v8 }
 0x203   : > { %5206 = vmatmul.mubr.msk.bf16.vlgmr.msra.gmra.mrb[0].mxu1 (!%p4750_p0), %vm991_vm3, %v5534_v9 }
 0x2d5   : > { %v973_v10 = vpop.f32.mrb[0].mxu0 }
 0x2d6   : > { %v5201_v11 = vpop.f32.mrb[1].mxu0  ;;  %v1029_v12 = vpop.f32.mrb[0].mxu1 }
 0x2d7   : > { %v1030_v14 = vadd.f32 %v1029_v12, %v973_v10  ;;  %v976_v15 = vpop.f32.mrb[2].mxu0  ;;  %v5207_v16 = vpop.f32.mrb[1].mxu1 }
 0x2d8   : > { %v5202_v17 = vpop.f32.mrb[3].mxu0  ;;  %v1032_v18 = vpop.f32.mrb[2].mxu1 }
 0x2d9   : > { %v1038_v20 = vadd.f32 %v1036_v13, %v1030_v14  ;;  %v1033_v21 = vadd.f32 %v1032_v18, %v976_v15  ;;  %v5208_v22 = vpop.f32.mrb[3].mxu1 }
 0x2db   : > { %1041 = vst.msk [vmem:[#allocation2] sm:$0xff] %vm1040_vm4, %v1038_v20  ;;  %v1039_v23 = vadd.f32 %v1037_v19, %v1033_v21 }
 0x2dd   : > { %1042 = vst.msk [vmem:[#allocation2 + $0x8] sm:$0xff] %vm1040_vm4, %v1039_v23 }
 0x2de PF: > { %v5550_v24 = vld [vmem:[%s767_s15] sm:$0xff]   ;;  %v6298_v25 = vmov 0.0   ;;  %v5551_v26 = vld [vmem:[%s767_s15 + $0x8] sm:$0xff]   ;;  %vm6299_vm5 = vmmov 0   ;;  %vm1066_vm6 = vcmask 261120   ;;  %v1050_v34 = vlaneseq  ;;  %s6300_s7 = smov 120  }
 0x2df   : > { %5217 = vmatprep.subr.bf16.mxu1 %v6298_v25  ;;  %5209 = vmatprep.subr.bf16.mxu0 %v6298_v25  ;;  %v5552_v27 = vld [vmem:[%s758_s30] sm:$0xff]   ;;  %v5553_v30 = vld [vmem:[%s758_s30 + $0x8] sm:$0xff]   ;;  %vm1239_vm7 = vcmask 64512   ;;  %vm1361_vm8 = vcmask 1043456   ;;  %s6301_s13 = smov 112   ;;  %s6302_s25 = smov 104  }
 0x2e0   : > { %5218 = vmatpush3.bf16.msra.mxu1 %v5550_v24  ;;  %5221 = vmatprep.mubr.msk.bf16.mxu1 %vm6299_vm5, %v6298_v25  ;;  %v5554_v32 = vld [vmem:[%s776_s10] sm:$0xff]   ;;  %v5555_v33 = vld [vmem:[%s776_s10 + $0x8] sm:$0xff]   ;;  %v7023_v35 = vshrl.u32 %v1050_v34, 7  ;;  %s6303_s8 = smov 8   ;;  %s6304_s5 = smov 16   ;;  %vm2149_vm9 = vcmask 130048  }
 0x2e1   : > { %5219 = vmatprep.subr.bf16.mxu1 %v6298_v25  ;;  %5213 = vmatprep.mubr.msk.bf16.mxu0 %vm6299_vm5, %v6298_v25  ;;  %s6305_s20 = smov 24   ;;  %vm2152_vm10 = vcmask 195584   ;;  %s7666_s27 = sld [smem:[#allocation39_spill]] }
 0x2e2   : > { %v1043_v28 = vld [vmem:[#allocation2] sm:$0xff]  ;;  %5210 = vmatpush3.bf16.msra.mxu0 %v5552_v27  ;;  %v7026_v36 = vsub.s32 1, %v7023_v35  ;;  %v7031_v38 = vsub.s32 0, %v7023_v35  ;;  %v7060_v62 = vsub.s32 2, %v7023_v35 }
 0x2e3   : > { %5211 = vmatprep.subr.bf16.mxu0 %v6298_v25 }
 0x2e4   : > { %v1044_v29 = vld [vmem:[#allocation2 + $0x8] sm:$0xff]  ;;  %5220 = vmatpush3.bf16.msra.mxu1 %v5551_v26  ;;  %v1118_v37 = vrot.slane %v6981_v0, %v7026_v36  ;;  %v1053_v42 = vrot.slane %v6981_v0, %v7031_v38  ;;  %v1179_v63 = vrot.slane %v6981_v0, %v7060_v62 }
 0x2e5   : > { %v1045_v31 = vpack.c.bf16 %v1044_v29, %v1043_v28  ;;  %5233 = vmatprep.subr.bf16.mxu1 %v6298_v25 }
 0x2e6   : > { %5212 = vmatpush3.bf16.msra.mxu0 %v5553_v30 }
 0x2e7   : > { %5222 = vmatmul.mubr.msk.bf16.vlgmr.msra.gmra.mrb[0].mxu1 %vm1066_vm6, %v1045_v31  ;;  %5225 = vmatprep.subr.bf16.mxu0 %v6298_v25  ;;  %p4953_p3 = scmp.ne.s32.totalorder %s7666_s27, 1 }
 0x2e8   : > { %5235 = vmatprep.mubr.msk.bf16.mxu1 %vm6299_vm5, %v6298_v25  ;;  %vm6308_vm11 = vmmov (!%p4953_p3), 0  }
 0x2e9   : > { %5214 = vmatmul.mubr.msk.bf16.vlgmr.msra.gmra.mrb[0].mxu0 %vm1066_vm6, %v1045_v31 }
 0x2ea   : > { %5226 = vmatpush3.bf16.msra.mxu0 %v5554_v32  ;;  %5229 = vmatprep.mubr.msk.bf16.mxu0 %vm6299_vm5, %v6298_v25 }
 0x2eb   : > { %5227 = vmatprep.subr.bf16.mxu0 %v6298_v25 }
 0x2ee   : > { %5228 = vmatpush3.bf16.msra.mxu0 %v5555_v33 }
 0x2ef   : > { %5239 = vmatprep.subr.bf16.mxu0 %v6298_v25 }
 0x2f1   : > { %5230 = vmatmul.mubr.msk.bf16.vlgmr.msra.gmra.mrb[4].mxu0 %vm1066_vm6, %v1045_v31 }
 0x2f2   : > { %5241 = vmatprep.mubr.msk.bf16.mxu0 %vm6299_vm5, %v6298_v25 }
 0x3ba   : > { %v1165_v39 = vpop.f32.mrb[0].mxu1 }
 0x3bb   : > { %v1166_v40 = vadd.f32 %v1165_v39, %v1118_v37  ;;  %v5223_v41 = vpop.f32.mrb[1].mxu1 }
 0x3bc   : > { %v1168_v43 = vpop.f32.mrb[2].mxu1  ;;  %v1104_v44 = vpop.f32.mrb[0].mxu0 }
 0x3bd   : > { %v7035_v45 = vpack.c.bf16 %v1166_v40, %v1166_v40  ;;  %v1169_v46 = vadd.f32 %v1168_v43, %v1118_v37  ;;  %v5224_v47 = vpop.f32.mrb[3].mxu1  ;;  %v5215_v48 = vpop.f32.mrb[1].mxu0  ;;  %v1105_v51 = vadd.f32 %v1104_v44, %v1053_v42 }
 0x3be   : > { %v1107_v49 = vpop.f32.mrb[2].mxu0 }
 0x3bf   : > { %v7037_v50 = vpack.c.bf16 %v1169_v46, %v1169_v46  ;;  %v1244_v52 = vsel %vm1239_vm7, %v7035_v45, 0  ;;  %v5216_v53 = vpop.f32.mrb[3].mxu0  ;;  %v7046_v55 = vpack.c.bf16 %v1105_v51, %v1105_v51  ;;  %v1108_v56 = vadd.f32 %v1107_v49, %v1053_v42 }
 0x3c0   : > { %5234 = vmatpush3.bf16.xpose.msra.mxu1 %v1244_v52 }
 0x3c1   : > { %1507 = vrot.lane.b32.xlu1 %v7037_v50, %s6300_s7  ;;  %v1290_v54 = vsel %vm1239_vm7, %v7037_v50, 0  ;;  %5245 = vmatprep.subr.bf16.mxu1 %v6298_v25  ;;  %v7049_v60 = vpack.c.bf16 %v1108_v56, %v1108_v56 }
 0x3c2   : > { %5240 = vmatpush3.bf16.xpose.msra.mxu0 %v1290_v54 }
 0x3c3   : > { %5251 = vmatprep.subr.bf16.mxu0 %v6298_v25 }
 0x3c4   : > { %v1226_v57 = vpop.f32.mrb[4].mxu0 }
 0x3c5   : > { %v5231_v58 = vpop.f32.mrb[5].mxu0  ;;  %v1227_v4 = vadd.f32 %v1226_v57, %v1179_v63 }
 0x3c6   : > { %v1229_v59 = vpop.f32.mrb[6].mxu0 }
 0x3c7   : > { %5236 = vmatmul.mubr.msk.bf16.vlgmr.msra.gmra.mrb[4].mxu1 %vm1239_vm7, %v7046_v55  ;;  %v5232_v61 = vpop.f32.mrb[7].mxu0  ;;  %v1230_v5 = vadd.f32 %v1229_v59, %v1179_v63  ;;  %v7064_v6 = vpack.c.bf16 %v1227_v4, %v1227_v4 }
 0x3c8   : > { %5247 = vmatprep.mubr.msk.bf16.mxu1 %vm6299_vm5, %v6298_v25 }
 0x3c9   : > { %5242 = vmatmul.mubr.msk.bf16.vlgmr.msra.gmra.mrb[8].mxu0 %vm1239_vm7, %v7049_v60  ;;  %v7066_v7 = vpack.c.bf16 %v1230_v5, %v1230_v5  ;;  %v1363_v8 = vsel %vm1361_vm8, %v7064_v6, 0 }
 0x3ca   : > { %5253 = vmatprep.mubr.msk.bf16.mxu0 %vm6299_vm5, %v6298_v25  ;;  %5246 = vmatpush3.bf16.msra.mxu1 %v1363_v8 }
 0x3cb   : > { %v1409_v9 = vsel %vm1361_vm8, %v7066_v7, 0  ;;  %5257 = vmatprep.subr.bf16.mxu1 %v6298_v25 }
 0x3cc   : > { %5252 = vmatpush3.bf16.msra.mxu0 %v1409_v9 }
 0x3cd   : > { %5263 = vmatprep.subr.bf16.mxu0 %v6298_v25 }
 0x433   : > { %v1508_v33 = vpop.permute.xlu1 %1507 }
 0x434   : > { %v1513_v48 = vsel %vm1239_vm7, %v1508_v33, 0 }
 0x49a   : > { %v1280_v10 = vpop.f32.mrb[4].mxu1 }
 0x49b   : > { %v1332_v11 = vmul.f32 0.35355338, %v1280_v10  ;;  %v5237_v12 = vpop.f32.mrb[5].mxu1 }
 0x49c   : > { %v1283_v13 = vpop.f32.mrb[6].mxu1  ;;  %v1326_v14 = vpop.f32.mrb[8].mxu0 }
 0x49d   : > { %v1333_v15 = vmul.f32 0.35355338, %v1326_v14  ;;  %v5238_v16 = vpop.f32.mrb[7].mxu1  ;;  %v5243_v17 = vpop.f32.mrb[9].mxu0  ;;  %v1334_v18 = vsel %vm1239_vm7, %v1332_v11, -inf }
 0x49e   : > { %1335 = vmax.xlane.f32.xlu0 %v1334_v18  ;;  %v1329_v19 = vpop.f32.mrb[10].mxu0 }
 0x49f   : > { %v5244_v20 = vpop.f32.mrb[11].mxu0  ;;  %v1337_v21 = vsel %vm1239_vm7, %v1333_v15, -inf }
 0x4a2   : > { %1338 = vmax.xlane.f32.xlu0 %v1337_v21 }
 0x4b8   : > { %1455 = vrot.lane.b32.xlu0 %v7035_v45, %s6300_s7 }
 0x52b   : > { %v1336_v22 = vpop.xlane.xlu0 %1335 }
 0x52c   : > { %v1340_v23 = vsub.f32 %v1332_v11, %v1336_v22 }
 0x52e   : > { %v1342_v24 = vmul.f32 1.442695, %v1340_v23 }
 0x52f   : > { %v1339_v26 = vpop.xlane.xlu0 %1338 }
 0x530   : > { %5686 = vpow2.f32 %v1342_v24  ;;  %v1341_v27 = vsub.f32 %v1333_v15, %v1339_v26 }
 0x532   : > { %v1344_v28 = vmul.f32 1.442695, %v1341_v27 }
 0x533   : > { %v1456_v41 = vpop.permute.xlu0 %1455 }
 0x534   : > { %5688 = vpow2.f32 %v1344_v28  ;;  %v1461_v44 = vsel %vm1239_vm7, %v1456_v41, 0 }
 0x53a   : > { %v5687_v29 = vpop.eup %5686 }
 0x53b   : > { %v1346_v30 = vsel %vm1239_vm7, %v5687_v29, 0.0 }
 0x53c   : > { %1347 = vadd.xlane.f32.xlu1 %v1346_v30 }
 0x53e   : > { %v5689_v31 = vpop.eup %5688 }
 0x53f   : > { %v1349_v32 = vsel %vm1239_vm7, %v5689_v31, 0.0 }
 0x540   : > { %1350 = vadd.xlane.f32.xlu1 %v1349_v32 }
 0x551   : > { %1452 = vrot.lane.b32.xlu1 %v7046_v55, %s6300_s7 }
 0x555   : > { %1504 = vrot.lane.b32.xlu1 %v7049_v60, %s6300_s7 }
 0x5c9   : > { %v1348_v34 = vpop.xlane.xlu1 %1347 }
 0x5ca   : > { %5690 = vrcp.f32 %v1348_v34 }
 0x5cd   : > { %v1351_v37 = vpop.xlane.xlu1 %1350 }
 0x5ce   : > { %5692 = vrcp.f32 %v1351_v37 }
 0x5d1   : > { %v1453_v49 = vpop.permute.xlu1 %1452 }
 0x5d4   : > { %v5691_v39 = vpop.eup %5690 }
 0x5d5   : > { %v1353_v40 = vmul.f32 %v5691_v39, %v5687_v29  ;;  %v1505_v51 = vpop.permute.xlu1 %1504 }
 0x5d7   : > { %v1356_v42 = vpack.c.bf16 %v1353_v40, %v1353_v40 }
 0x5d8   : > { %v5693_v43 = vpop.eup %5692 }
 0x5d9   : > { %v1355_v46 = vmul.f32 %v5693_v43, %v5689_v31  ;;  %5248 = vmatmul.mubr.msk.bf16.vlgmr.msra.gmra.mrb[8].mxu1 %vm1239_vm7, %v1356_v42 }
 0x5da   : > { %5258 = vmatpush3.bf16.xpose.msra.mxu1 %v1461_v44  ;;  %5259 = vmatprep.mubr.msk.bf16.mxu1 %vm6299_vm5, %v6298_v25 }
 0x5db   : > { %v1357_v47 = vpack.c.bf16 %v1355_v46, %v1355_v46  ;;  %5269 = vmatprep.subr.bf16.mxu1 %v6298_v25 }
 0x5dd   : > { %5254 = vmatmul.mubr.msk.bf16.vlgmr.msra.gmra.mrb[12].mxu0 %vm1239_vm7, %v1357_v47 }
 0x5de   : > { %5264 = vmatpush3.bf16.xpose.msra.mxu0 %v1513_v48  ;;  %5265 = vmatprep.mubr.msk.bf16.mxu0 %vm6299_vm5, %v6298_v25 }
 0x5df   : > { %5275 = vmatprep.subr.bf16.mxu0 %v6298_v25 }
 0x5e1   : > { %5260 = vmatmul.mubr.msk.bf16.vlgmr.msra.gmra.mrb[12].mxu1 %vm1239_vm7, %v1453_v49 }
 0x5e2   : > { %5271 = vmatprep.mubr.msk.bf16.mxu1 %vm6299_vm5, %v6298_v25 }
 0x5e5   : > { %5266 = vmatmul.mubr.msk.bf16.vlgmr.msra.gmra.mrb[16].mxu0 %vm1239_vm7, %v1505_v51 }
 0x5e6   : > { %5277 = vmatprep.mubr.msk.bf16.mxu0 %vm6299_vm5, %v6298_v25 }
 0x6ac   : > { %v7100_v52 = vpop.f32.mrb[8].mxu1 }
 0x6ad   : > { %v5249_v53 = vpop.f32.mrb[9].mxu1 }
 0x6ae   : > { %v1402_v54 = vpop.f32.mrb[10].mxu1 }
 0x6af   : > { %v5250_v56 = vpop.f32.mrb[11].mxu1 }
 0x6b0   : > { %v7102_v57 = vpop.f32.mrb[12].mxu0 }
 0x6b1   : > { %v5255_v58 = vpop.f32.mrb[13].mxu0 }
 0x6b2   : > { %v1448_v59 = vpop.f32.mrb[14].mxu0 }
 0x6b3   : > { %v5256_v61 = vpop.f32.mrb[15].mxu0 }
 0x6b4   : > { %v1497_v63 = vpop.f32.mrb[12].mxu1 }
 0x6b5   : > { %v1555_v4 = vmul.f32 0.35355338, %v1497_v63  ;;  %v5261_v5 = vpop.f32.mrb[13].mxu1 }
 0x6b6   : > { %v1500_v8 = vpop.f32.mrb[14].mxu1 }
 0x6b7   : > { %v5262_v9 = vpop.f32.mrb[15].mxu1  ;;  %v1557_v10 = vsel %vm1239_vm7, %v1555_v4, -inf }
 0x6b8   : > { %1558 = vmax.xlane.f32.xlu0 %v1557_v10  ;;  %v1549_v11 = vpop.f32.mrb[16].mxu0 }
 0x6b9   : > { %v1556_v12 = vmul.f32 0.35355338, %v1549_v11  ;;  %v5267_v13 = vpop.f32.mrb[17].mxu0 }
 0x6ba   : > { %v1552_v14 = vpop.f32.mrb[18].mxu0 }
 0x6bb   : > { %v5268_v15 = vpop.f32.mrb[19].mxu0  ;;  %v1560_v16 = vsel %vm1239_vm7, %v1556_v12, -inf }
 0x6bc   : > { %1561 = vmax.xlane.f32.xlu1 %v1560_v16 }
 0x6cd   : > { %1631 = vrot.lane.b32.xlu1 %v7066_v7, %s6300_s7 }
 0x6d1   : > { %1681 = vrot.lane.b32.xlu1 %v7035_v45, %s6301_s13 }
 0x6d5   : > { %1731 = vrot.lane.b32.xlu1 %v7037_v50, %s6301_s13 }
 0x6d9   : > { %1729 = vrot.lane.b32.xlu1 %v7049_v60, %s6301_s13 }
 0x745   : > { %v1559_v17 = vpop.xlane.xlu0 %1558 }
 0x746   : > { %v1563_v18 = vsub.f32 %v1555_v4, %v1559_v17 }
 0x748   : > { %v1565_v19 = vmul.f32 1.442695, %v1563_v18 }
 0x749   : > { %v1562_v20 = vpop.xlane.xlu1 %1561 }
 0x74a   : > { %5694 = vpow2.f32 %v1565_v19  ;;  %v1564_v21 = vsub.f32 %v1556_v12, %v1562_v20 }
 0x74c   : > { %v1567_v22 = vmul.f32 1.442695, %v1564_v21 }
 0x74d   : > { %v1632_v23 = vpop.permute.xlu1 %1631 }
 0x74e   : > { %5696 = vpow2.f32 %v1567_v22  ;;  %v1637_v24 = vsel %vm1361_vm8, %v1632_v23, 0 }
 0x74f   : > { %5276 = vmatpush3.bf16.msra.mxu0 %v1637_v24 }
 0x750   : > { %5287 = vmatprep.subr.bf16.mxu0 %v6298_v25 }
 0x751   : > { %v1682_v37 = vpop.permute.xlu1 %1681 }
 0x752   : > { %v1687_v44 = vsel %vm1239_vm7, %v1682_v37, 0 }
 0x754   : > { %v5695_v26 = vpop.eup %5694 }
 0x755   : > { %v1569_v27 = vsel %vm1239_vm7, %v5695_v26, 0.0  ;;  %v1732_v43 = vpop.permute.xlu1 %1731 }
 0x756   : > { %1570 = vadd.xlane.f32.xlu0 %v1569_v27  ;;  %v1737_v47 = vsel %vm1239_vm7, %v1732_v43, 0 }
 0x758   : > { %v5697_v28 = vpop.eup %5696 }
 0x759   : > { %v1572_v29 = vsel %vm1239_vm7, %v5697_v28, 0.0  ;;  %v1730_v49 = vpop.permute.xlu1 %1729 }
 0x75a   : > { %1573 = vadd.xlane.f32.xlu0 %v1572_v29 }
 0x770   : > { %1582 = vrot.lane.b32.xlu0 %v7064_v6, %s6300_s7 }
 0x774   : > { %1679 = vrot.lane.b32.xlu0 %v7046_v55, %s6301_s13 }
 0x7e3   : > { %v1571_v30 = vpop.xlane.xlu0 %1570 }
 0x7e4   : > { %5698 = vrcp.f32 %v1571_v30 }
 0x7e7   : > { %v1574_v31 = vpop.xlane.xlu0 %1573 }
 0x7e8   : > { %5700 = vrcp.f32 %v1574_v31 }
 0x7eb   : > { %v1583_v32 = vpop.permute.xlu0 %1582 }
 0x7ec   : > { %v1588_v33 = vsel %vm1361_vm8, %v1583_v32, 0 }
 0x7ed   : > { %5270 = vmatpush3.bf16.msra.mxu1 %v1588_v33 }
 0x7ee   : > { %v5699_v34 = vpop.eup %5698  ;;  %5281 = vmatprep.subr.bf16.mxu1 %v6298_v25 }
 0x7ef   : > { %v1576_v39 = vmul.f32 %v5699_v34, %v5695_v26  ;;  %v1680_v48 = vpop.permute.xlu0 %1679 }
 0x7f1   : > { %v1579_v40 = vpack.c.bf16 %v1576_v39, %v1576_v39 }
 0x7f2   : > { %v5701_v41 = vpop.eup %5700 }
 0x7f3   : > { %v1578_v42 = vmul.f32 %v5701_v41, %v5697_v28  ;;  %5272 = vmatmul.mubr.msk.bf16.vlgmr.msra.gmra.mrb[16].mxu1 %vm1239_vm7, %v1579_v40 }
 0x7f4   : > { %5283 = vmatprep.mubr.msk.bf16.mxu1 %vm6299_vm5, %v6298_v25 }
 0x7f5   : > { %v1580_v46 = vpack.c.bf16 %v1578_v42, %v1578_v42 }
 0x7f6   : > { %5282 = vmatpush3.bf16.xpose.msra.mxu1 %v1687_v44 }
 0x7f7   : > { %5278 = vmatmul.mubr.msk.bf16.vlgmr.msra.gmra.mrb[20].mxu0 %vm1239_vm7, %v1580_v46  ;;  %5293 = vmatprep.subr.bf16.mxu1 %v6298_v25 }
 0x7f8   : > { %5288 = vmatpush3.bf16.xpose.msra.mxu0 %v1737_v47  ;;  %5289 = vmatprep.mubr.msk.bf16.mxu0 %vm6299_vm5, %v6298_v25 }
 0x7f9   : > { %5299 = vmatprep.subr.bf16.mxu0 %v6298_v25 }
 0x7fd   : > { %5284 = vmatmul.mubr.msk.bf16.vlgmr.msra.gmra.mrb[20].mxu1 %vm1239_vm7, %v1680_v48 }
 0x7fe   : > { %5295 = vmatprep.mubr.msk.bf16.mxu1 %vm6299_vm5, %v6298_v25 }
 0x7ff   : > { %5290 = vmatmul.mubr.msk.bf16.vlgmr.msra.gmra.mrb[24].mxu0 %vm1239_vm7, %v1730_v49 }
 0x800   : > { %5301 = vmatprep.mubr.msk.bf16.mxu0 %vm6299_vm5, %v6298_v25 }
 0x8c6   : > { %v7140_v51 = vpop.f32.mrb[16].mxu1 }
 0x8c7   : > { %v5273_v53 = vpop.f32.mrb[17].mxu1 }
 0x8c8   : > { %v1627_v54 = vpop.f32.mrb[18].mxu1 }
 0x8c9   : > { %v5274_v56 = vpop.f32.mrb[19].mxu1 }
 0x8ca   : > { %v7142_v58 = vpop.f32.mrb[20].mxu0 }
 0x8cb   : > { %v5535_v59 = vpack.i.bf16 %v7142_v58, %v7140_v51  ;;  %v5279_v61 = vpop.f32.mrb[21].mxu0 }
 0x8cc   : > { %v1676_v63 = vpop.f32.mrb[22].mxu0 }
 0x8cd   : > { %v5280_v4 = vpop.f32.mrb[23].mxu0 }
 0x8d0   : > { %v1723_v5 = vpop.f32.mrb[20].mxu1 }
 0x8d1   : > { %v1779_v8 = vmul.f32 0.35355338, %v1723_v5  ;;  %v5285_v9 = vpop.f32.mrb[21].mxu1 }
 0x8d2   : > { %v1726_v10 = vpop.f32.mrb[22].mxu1  ;;  %v1773_v11 = vpop.f32.mrb[24].mxu0 }
 0x8d3   : > { %v1780_v12 = vmul.f32 0.35355338, %v1773_v11  ;;  %v5286_v13 = vpop.f32.mrb[23].mxu1  ;;  %v5291_v14 = vpop.f32.mrb[25].mxu0  ;;  %v1781_v15 = vsel %vm1239_vm7, %v1779_v8, -inf }
 0x8d4   : > { %1782 = vmax.xlane.f32.xlu0 %v1781_v15  ;;  %v1776_v16 = vpop.f32.mrb[26].mxu0 }
 0x8d5   : > { %v5292_v17 = vpop.f32.mrb[27].mxu0  ;;  %v1784_v18 = vsel %vm1239_vm7, %v1780_v12, -inf }
 0x8d6   : > { %1785 = vmax.xlane.f32.xlu1 %v1784_v18 }
 0x8e7   : > { %1853 = vrot.lane.b32.xlu1 %v7066_v7, %s6301_s13 }
 0x8eb   : > { %1903 = vrot.lane.b32.xlu1 %v7035_v45, %s6302_s25 }
 0x8ef   : > { %1953 = vrot.lane.b32.xlu1 %v7037_v50, %s6302_s25 }
 0x8f3   : > { %1951 = vrot.lane.b32.xlu1 %v7049_v60, %s6302_s25 }
 0x961   : > { %v1783_v19 = vpop.xlane.xlu0 %1782 }
 0x962   : > { %v1787_v20 = vsub.f32 %v1779_v8, %v1783_v19 }
 0x963   : > { %v1786_v21 = vpop.xlane.xlu1 %1785 }
 0x964   : > { %v1789_v22 = vmul.f32 1.442695, %v1787_v20  ;;  %v1788_v23 = vsub.f32 %v1780_v12, %v1786_v21 }
 0x966   : > { %5702 = vpow2.f32 %v1789_v22  ;;  %v1791_v24 = vmul.f32 1.442695, %v1788_v23 }
 0x967   : > { %v1854_v26 = vpop.permute.xlu1 %1853 }
 0x968   : > { %5704 = vpow2.f32 %v1791_v24  ;;  %v1859_v27 = vsel %vm1361_vm8, %v1854_v26, 0 }
 0x969   : > { %5300 = vmatpush3.bf16.msra.mxu0 %v1859_v27 }
 0x96a   : > { %5311 = vmatprep.subr.bf16.mxu0 %v6298_v25 }
 0x96b   : > { %v1904_v34 = vpop.permute.xlu1 %1903 }
 0x96f   : > { %v1954_v42 = vpop.permute.xlu1 %1953 }
 0x970   : > { %v5703_v45 = vpop.eup %5702  ;;  %v1959_v44 = vsel %vm1239_vm7, %v1954_v42, 0 }
 0x971   : > { %v1793_v50 = vsel %vm1239_vm7, %v5703_v45, 0.0 }
 0x972   : > { %v5705_v28 = vpop.eup %5704  ;;  %1794 = vadd.xlane.f32.xlu0 %v1793_v50 }
 0x973   : > { %v1796_v60 = vsel %vm1239_vm7, %v5705_v28, 0.0  ;;  %v1952_v47 = vpop.permute.xlu1 %1951 }
 0x976   : > { %1797 = vadd.xlane.f32.xlu0 %v1796_v60 }
 0x98c   : > { %1805 = vrot.lane.b32.xlu0 %v7064_v6, %s6301_s13 }
 0x990   : > { %1901 = vrot.lane.b32.xlu0 %v7046_v55, %s6302_s25  ;;  %v1909_v55 = vsel %vm1239_vm7, %v1904_v34, 0 }
 0x9ff   : > { %v1795_v29 = vpop.xlane.xlu0 %1794 }
 0xa00   : > { %5706 = vrcp.f32 %v1795_v29 }
 0xa03   : > { %v1798_v30 = vpop.xlane.xlu0 %1797 }
 0xa04   : > { %5708 = vrcp.f32 %v1798_v30 }
 0xa07   : > { %v1806_v31 = vpop.permute.xlu0 %1805 }
 0xa08   : > { %v1811_v32 = vsel %vm1361_vm8, %v1806_v31, 0 }
 0xa09   : > { %5294 = vmatpush3.bf16.msra.mxu1 %v1811_v32 }
 0xa0a   : > { %v5707_v33 = vpop.eup %5706  ;;  %5305 = vmatprep.subr.bf16.mxu1 %v6298_v25 }
 0xa0b   : > { %v1800_v37 = vmul.f32 %v5707_v33, %v5703_v45  ;;  %v1902_v46 = vpop.permute.xlu0 %1901 }
 0xa0d   : > { %v1803_v39 = vpack.c.bf16 %v1800_v37, %v1800_v37  ;;  %v5556_v37 = vld [vmem:[%s785_s26] sm:$0xff]  }
 0xa0e   : > { %v5709_v40 = vpop.eup %5708 }
 0xa0f   : > { %v1802_v41 = vmul.f32 %v5709_v40, %v5705_v28  ;;  %5296 = vmatmul.mubr.msk.bf16.vlgmr.msra.gmra.mrb[24].mxu1 %vm1239_vm7, %v1803_v39  ;;  %v5557_v39 = vld [vmem:[%s785_s26 + $0x8] sm:$0xff]  }
 0xa10   : > { %5307 = vmatprep.mubr.msk.bf16.mxu1 %vm6299_vm5, %v6298_v25 }
 0xa11   : > { %v1804_v43 = vpack.c.bf16 %v1802_v41, %v1802_v41 }
 0xa12   : > { %5306 = vmatpush3.bf16.xpose.msra.mxu1 %v1909_v55 }
 0xa13   : > { %5302 = vmatmul.mubr.msk.bf16.vlgmr.msra.gmra.mrb[28].mxu0 %vm1239_vm7, %v1804_v43  ;;  %5317 = vmatprep.subr.bf16.mxu1 %v6298_v25 }
 0xa14   : > { %5312 = vmatpush3.bf16.xpose.msra.mxu0 %v1959_v44  ;;  %5313 = vmatprep.mubr.msk.bf16.mxu0 %vm6299_vm5, %v6298_v25 }
 0xa15   : > { %5323 = vmatprep.subr.bf16.mxu0 %v6298_v25 }
 0xa19   : > { %5308 = vmatmul.mubr.msk.bf16.vlgmr.msra.gmra.mrb[28].mxu1 %vm1239_vm7, %v1902_v46 }
 0xa1a   : > { %5319 = vmatprep.mubr.msk.bf16.mxu1 %vm6299_vm5, %v6298_v25 }
 0xa1b   : > { %5314 = vmatmul.mubr.msk.bf16.vlgmr.msra.gmra.mrb[32].mxu0 %vm1239_vm7, %v1952_v47 }
 0xa1c   : > { %5325 = vmatprep.mubr.msk.bf16.mxu0 %vm6299_vm5, %v6298_v25 }
 0xae2   : > { %v1847_v48 = vpop.f32.mrb[24].mxu1 }
 0xae3   : > { %v5297_v49 = vpop.f32.mrb[25].mxu1 }
 0xae4   : > { %v1850_v53 = vpop.f32.mrb[26].mxu1 }
 0xae5   : > { %v5298_v54 = vpop.f32.mrb[27].mxu1 }
 0xae6   : > { %v1895_v56 = vpop.f32.mrb[28].mxu0 }
 0xae7   : > { %v5540_v61 = vpack.i.bf16 %v1895_v56, %v1847_v48  ;;  %v5303_v63 = vpop.f32.mrb[29].mxu0 }
 0xae8   : > { %v1898_v4 = vpop.f32.mrb[30].mxu0 }
 0xae9   : > { %v5304_v5 = vpop.f32.mrb[31].mxu0 }
 0xaec   : > { %v1945_v8 = vpop.f32.mrb[28].mxu1 }
 0xaed   : > { %v2001_v9 = vmul.f32 0.35355338, %v1945_v8  ;;  %v5309_v10 = vpop.f32.mrb[29].mxu1 }
 0xaee   : > { %v1948_v11 = vpop.f32.mrb[30].mxu1  ;;  %v1995_v12 = vpop.f32.mrb[32].mxu0 }
 0xaef   : > { %v2002_v13 = vmul.f32 0.35355338, %v1995_v12  ;;  %v5310_v14 = vpop.f32.mrb[31].mxu1  ;;  %v5315_v15 = vpop.f32.mrb[33].mxu0  ;;  %v2003_v16 = vsel %vm1239_vm7, %v2001_v9, -inf }
 0xaf0   : > { %2004 = vmax.xlane.f32.xlu0 %v2003_v16  ;;  %v1998_v17 = vpop.f32.mrb[34].mxu0  ;;  %v7212_v15 = vsub.s32 3, %v7023_v35 }
 0xaf1   : > { %v5316_v18 = vpop.f32.mrb[35].mxu0  ;;  %v2006_v19 = vsel %vm1239_vm7, %v2002_v13, -inf }
 0xaf2   : > { %2007 = vmax.xlane.f32.xlu1 %v2006_v19  ;;  %v2163_v16 = vrot.slane %v6981_v0, %v7212_v15 }
 0xb03   : > { %2075 = vrot.lane.b32.xlu1 %v7066_v7, %s6302_s25 }
 0xb07   : > { %5536 = vrot.lane.b32.xlu1 %v5535_v59, %s6303_s8 }
 0xb0b   : > { %5541 = vrot.lane.b32.xlu1 %v5540_v61, %s6304_s5 }
 0xb7d   : > { %v2005_v20 = vpop.xlane.xlu0 %2004 }
 0xb7e   : > { %v2009_v21 = vsub.f32 %v2001_v9, %v2005_v20 }
 0xb7f   : > { %v2008_v22 = vpop.xlane.xlu1 %2007 }
 0xb80   : > { %v2011_v23 = vmul.f32 1.442695, %v2009_v21  ;;  %v2010_v24 = vsub.f32 %v2002_v13, %v2008_v22  ;;  %v5726_v21 = vld [vmem:[#allocation2] sm:$0xff] }
 0xb82   : > { %5710 = vpow2.f32 %v2011_v23  ;;  %v2013_v26 = vmul.f32 1.442695, %v2010_v24  ;;  %v5727_v24 = vld [vmem:[#allocation2 + $0x8] sm:$0xff] }
 0xb83   : > { %v2076_v27 = vpop.permute.xlu1 %2075 }
 0xb84   : > { %5712 = vpow2.f32 %v2013_v26  ;;  %v2081_v45 = vsel %vm1361_vm8, %v2076_v27, 0 }
 0xb85   : > { %5324 = vmatpush3.bf16.msra.mxu0 %v2081_v45 }
 0xb87   : > { %v5537_v49 = vpop.permute.xlu1 %5536 }
 0xb88   : > { %v5539_v54 = vunpack.i.h.bf16 %v5537_v49  ;;  %v5538_v56 = vunpack.i.l.bf16 %v5537_v49  ;;  %v2264_v49 = vld [vmem:[%s6963_s6 + $0x10] sm:$0xff] }
 0xb8a   : > { %v2148_v4 = vsel %vm1239_vm7, %v7102_v57, %v5539_v54  ;;  %v2147_v5 = vsel %vm1239_vm7, %v7100_v52, %v5538_v56  ;;  %v2265_v54 = vld [vmem:[%s6963_s6 + $0x18] sm:$0xff]  ;;  %v6306_v56 = vmov 0  }
 0xb8b   : > { %v5542_v53 = vpop.permute.xlu1 %5541 }
 0xb8c   : > { %v5711_v7 = vpop.eup %5710  ;;  %v5544_v61 = vunpack.i.h.bf16 %v5542_v53 }
 0xb8d   : > { %v2015_v50 = vsel %vm1239_vm7, %v5711_v7, 0.0 }
 0xb8e   : > { %v5713_v28 = vpop.eup %5712  ;;  %2016 = vadd.xlane.f32.xlu0 %v2015_v50  ;;  %v2151_v11 = vsel %vm2149_vm9, %v2148_v4, %v5544_v61 }
 0xb8f   : > { %v2018_v51 = vsel %vm1239_vm7, %v5713_v28, 0.0 }
 0xb92   : > { %2019 = vadd.xlane.f32.xlu0 %v2018_v51 }
 0xba8   : > { %2027 = vrot.lane.b32.xlu0 %v7064_v6, %s6302_s25 }
 0xc1b   : > { %v2017_v58 = vpop.xlane.xlu0 %2016 }
 0xc1c   : > { %5714 = vrcp.f32 %v2017_v58 }
 0xc1f   : > { %v2020_v59 = vpop.xlane.xlu0 %2019 }
 0xc20   : > { %5716 = vrcp.f32 %v2020_v59 }
 0xc23   : > { %v2028_v60 = vpop.permute.xlu0 %2027 }
 0xc24   : > { %v2033_v29 = vsel %vm1361_vm8, %v2028_v60, 0 }
 0xc25   : > { %5318 = vmatpush3.bf16.msra.mxu1 %v2033_v29 }
 0xc26   : > { %v5715_v30 = vpop.eup %5714  ;;  %5329 = vmatprep.subr.bf16.mxu1 %v6298_v25 }
 0xc27   : > { %v2022_v31 = vmul.f32 %v5715_v30, %v5711_v7 }
 0xc29   : > { %v2025_v32 = vpack.c.bf16 %v2022_v31, %v2022_v31  ;;  %v2262_v31 = vld [vmem:[%s6963_s6] sm:$0xff] }
 0xc2a   : > { %v5717_v33 = vpop.eup %5716 }
 0xc2b   : > { %v2024_v34 = vmul.f32 %v5717_v33, %v5713_v28  ;;  %5320 = vmatmul.mubr.msk.bf16.vlgmr.msra.gmra.mrb[32].mxu1 %vm1239_vm7, %v2025_v32  ;;  %v2270_v32 = vld [vmem:[%s6963_s6 + $0x40] sm:$0xff]  ;;  %v2263_v33 = vld [vmem:[%s6963_s6 + $0x8] sm:$0xff] }
 0xc2c   : > { %5333 = vmatprep.mubr.msk.bf16.mxu1 %vm6299_vm5, %v6298_v25  ;;  %5330 = vmatpush3.bf16.msra.mxu1 %v5556_v37  ;;  %v4784_v37 = vcombine.low %v2262_v31, %v2270_v32 }
 0xc2d   : > { %v2026_v6 = vpack.c.bf16 %v2024_v34, %v2024_v34  ;;  %5331 = vmatprep.subr.bf16.mxu1 %v6298_v25  ;;  %v5543_v25 = vunpack.i.l.bf16 %v5542_v53  ;;  %v4785_v34 = vcombine.high %v2262_v31, %v2270_v32  ;;  %v2272_v53 = vld [vmem:[%s6963_s6 + $0x50] sm:$0xff] }
 0xc2e   : > { %v4789_v61 = vcombine.high %v2264_v49, %v2272_v53 }
 0xc2f   : > { %5326 = vmatmul.mubr.msk.bf16.vlgmr.msra.gmra.mrb[36].mxu0 %vm1239_vm7, %v2026_v6  ;;  %v2150_v10 = vsel %vm2149_vm9, %v2147_v5, %v5543_v25  ;;  %v2271_v6 = vld [vmem:[%s6963_s6 + $0x48] sm:$0xff]  ;;  %2539 = vmatprep.subr.bf16.mxu0 %v4785_v34  ;;  %v2273_v25 = vld [vmem:[%s6963_s6 + $0x58] sm:$0xff]  ;;  %v2282_v34 = vld [vmem:[%s6963_s6 + $0xa0] sm:$0xff] }
 0xc30   : > { %5332 = vmatpush3.bf16.msra.mxu1 %v5557_v39  ;;  %v4786_v39 = vcombine.low %v2263_v33, %v2271_v6  ;;  %2540 = vmatpush1.bf16.msra.mxu0 %v4784_v37  ;;  %v4790_v4 = vcombine.low %v2265_v54, %v2273_v25  ;;  %v4791_v5 = vcombine.high %v2265_v54, %v2273_v25  ;;  %v2283_v37 = vld [vmem:[%s6963_s6 + $0xa8] sm:$0xff]  ;;  %v2292_v25 = vld [vmem:[%s6963_s6 + $0xf0] sm:$0xff] }
 0xc31   : > { %2571 = vmatprep.mubr.bf16.mxu0 %v6306_v56 }
 0xcfe   : > { %v2069_v40 = vpop.f32.mrb[32].mxu1 }
 0xcff   : > { %v5321_v41 = vpop.f32.mrb[33].mxu1 }
 0xd00   : > { %v2072_v42 = vpop.f32.mrb[34].mxu1  ;;  %v2278_v41 = vld [vmem:[%s6963_s6 + $0x80] sm:$0xff] }
 0xd01   : > { %v5322_v55 = vpop.f32.mrb[35].mxu1  ;;  %v2286_v42 = vld [vmem:[%s6963_s6 + $0xc0] sm:$0xff] }
 0xd02   : > { %v2117_v43 = vpop.f32.mrb[36].mxu0  ;;  %v2279_v55 = vld [vmem:[%s6963_s6 + $0x88] sm:$0xff] }
 0xd03   : > { %v5545_v44 = vpack.i.bf16 %v2117_v43, %v2069_v40  ;;  %v5327_v46 = vpop.f32.mrb[37].mxu0  ;;  %v4787_v40 = vcombine.high %v2263_v33, %v2271_v6  ;;  %v4801_v43 = vcombine.high %v2278_v41, %v2286_v42  ;;  %v2290_v6 = vld [vmem:[%s6963_s6 + $0xe0] sm:$0xff] }
 0xd04   : > { %v2120_v47 = vpop.f32.mrb[38].mxu0  ;;  %v4800_v46 = vcombine.low %v2278_v41, %v2286_v42  ;;  %v4809_v42 = vcombine.high %v2282_v34, %v2290_v6 }
 0xd05   : > { %5546 = vrot.lane.b32.xlu0 %v5545_v44, %s6305_s20  ;;  %v5328_v48 = vpop.f32.mrb[39].mxu0  ;;  %2582 = vmatprep.subr.bf16.mxu1 %v4787_v40  ;;  %v2287_v44 = vld [vmem:[%s6963_s6 + $0xc8] sm:$0xff] }
 0xd06   : > { %v4802_v47 = vcombine.low %v2279_v55, %v2287_v44  ;;  %v4803_v48 = vcombine.high %v2279_v55, %v2287_v44  ;;  %2541 = vmatprep.subr.bf16.mxu0 %v4801_v43  ;;  %v2268_v43 = vld [vmem:[%s6963_s6 + $0x30] sm:$0xff] }
 0xd07   : > { %2542 = vmatpush1.bf16.msra.mxu0 %v4800_v46  ;;  %v2276_v44 = vld [vmem:[%s6963_s6 + $0x70] sm:$0xff]  ;;  %v2269_v46 = vld [vmem:[%s6963_s6 + $0x38] sm:$0xff] }
 0xd08   : > { %2625 = vmatprep.subr.bf16.mxu0 %v4789_v61  ;;  %v2284_v61 = vld [vmem:[%s6963_s6 + $0xb0] sm:$0xff] }
 0xd77   : > { %v5547_v63 = vpop.permute.xlu0 %5546 }
 0xd78   : > { %v5549_v8 = vunpack.i.h.bf16 %v5547_v63  ;;  %v5548_v9 = vunpack.i.l.bf16 %v5547_v63  ;;  %v4788_v63 = vcombine.low %v2264_v49, %v2272_v53  ;;  %v4797_v53 = vcombine.high %v2268_v43, %v2276_v44 }
 0xd7a   : > { %v2154_v12 = vsel %vm2152_vm10, %v2151_v11, %v5549_v8  ;;  %v2153_v13 = vsel %vm2152_vm10, %v2150_v10, %v5548_v9 }
 0xd7b   : > { %v2155_v14 = vpack.c.bf16 %v2154_v12, %v2153_v13 }
 0xd7d   : > { %5334 = vmatmul.mubr.msk.bf16.vlgmr.msra.gmra.mrb[36].mxu1 %vm1066_vm6, %v2155_v14  ;;  %v7235_v14 = vsub.s32 5, %v7023_v35 }
 0xd7e   : > { %2583 = vmatpush1.bf16.msra.mxu1 %v4786_v39  ;;  %2614 = vmatprep.mubr.bf16.mxu1 %v6306_v56  ;;  %v2291_v39 = vld [vmem:[%s6963_s6 + $0xe8] sm:$0xff] }
 0xd7f   : > { %2584 = vmatprep.subr.bf16.mxu1 %v4803_v48  ;;  %v4811_v55 = vcombine.high %v2283_v37, %v2291_v39  ;;  %v4808_v48 = vcombine.low %v2282_v34, %v2290_v6  ;;  %v4810_v49 = vcombine.low %v2283_v37, %v2291_v39  ;;  %v5583_v34 = vld [vmem:[%s6969_s12 + $0xf0] sm:$0xff]   ;;  %v5586_v39 = vld [vmem:[%s6969_s12 + $0x78] sm:$0xff]  }
 0xd80   : > { %v5584_v6 = vld [vmem:[%s6969_s12 + $0x30] sm:$0xff]  }
 0xd81   : > { %v5585_v37 = vld [vmem:[%s6969_s12 + $0xb0] sm:$0xff]  }
 0xd82   : > { %2585 = vmatpush1.bf16.msra.mxu1 %v4802_v47  ;;  %v2277_v47 = vld [vmem:[%s6963_s6 + $0x78] sm:$0xff] }
 0xd83   : > { %2668 = vmatprep.subr.bf16.mxu1 %v4791_v5  ;;  %v4799_v54 = vcombine.high %v2269_v46, %v2277_v47  ;;  %v4796_v5 = vcombine.low %v2268_v43, %v2276_v44  ;;  %v5591_v43 = vld [vmem:[%s6969_s12 + $0x1c0] sm:$0xff]   ;;  %v2299_v44 = vrot.slane %v6985_v2, %v7031_v38 }
 0xe50   : > { %v2213_v17 = vpop.f32.mrb[36].mxu1 }
 0xe51   : > { %v2214_v57 = vadd.f32 %v2213_v17, %v2163_v16  ;;  %v5335_v18 = vpop.f32.mrb[37].mxu1  ;;  %v2252_v17 = vrot.slane %v6981_v0, %v7235_v14 }
 0xe52   : > { %v2216_v19 = vpop.f32.mrb[38].mxu1 }
 0xe53   : > { %v2217_v52 = vadd.f32 %v2216_v19, %v2163_v16  ;;  %v5336_v20 = vpop.f32.mrb[39].mxu1  ;;  %v2220_v22 = vadd.f32 %v5726_v21, %v2214_v57  ;;  %v7240_v57 = vsub.s32 6, %v7023_v35 }
 0xe55   : > { %v2222_v23 = vsel %vm1066_vm6, %v2220_v22, 0.0  ;;  %v2221_v26 = vadd.f32 %v5727_v24, %v2217_v52  ;;  %v2258_v52 = vrot.slane %v6981_v0, %v7240_v57  ;;  %v2288_v24 = vld [vmem:[%s6963_s6 + $0xd0] sm:$0xff] }
 0xe56   : > { %2223 = vadd.xlane.f32.xlu1 %v2222_v23  ;;  %v2280_v23 = vld [vmem:[%s6963_s6 + $0x90] sm:$0xff] }
 0xe57   : > { %v2225_v27 = vsel %vm1066_vm6, %v2221_v26, 0.0 }
 0xe58   : > { %2226 = vadd.xlane.f32.xlu0 %v2225_v27  ;;  %v2289_v27 = vld [vmem:[%s6963_s6 + $0xd8] sm:$0xff] }
 0xee3   : > { %v2224_v45 = vpop.xlane.xlu1 %2223 }
 0xee4   : > { %v2229_v7 = vmul.f32 0.03125, %v2224_v45 }
 0xee5   : > { %v2227_v50 = vpop.xlane.xlu0 %2226 }
 0xee6   : > { %v2231_v28 = vsub.f32 %v2220_v22, %v2229_v7  ;;  %v2230_v51 = vmul.f32 0.03125, %v2227_v50 }
 0xee8   : > { %v2232_v58 = vsub.f32 %v2221_v26, %v2230_v51  ;;  %v2233_v59 = vmul.f32 %v2231_v28, %v2231_v28  ;;  %v2281_v26 = vld [vmem:[%s6963_s6 + $0x98] sm:$0xff] }
 0xee9   : > { %v4807_v51 = vcombine.high %v2281_v26, %v2289_v27  ;;  %v4806_v31 = vcombine.low %v2281_v26, %v2289_v27  ;;  %v5570_v26 = vld [vmem:[%s6969_s12 + $0x58] sm:$0xff]  }
 0xeea   : > { %v2235_v60 = vsel %vm1066_vm6, %v2233_v59, 0.0  ;;  %v2234_v29 = vmul.f32 %v2232_v58, %v2232_v58  ;;  %v2266_v59 = vld [vmem:[%s6963_s6 + $0x20] sm:$0xff]  ;;  %v5571_v27 = vld [vmem:[%s6969_s12 + $0xd8] sm:$0xff]  }
 0xeeb   : > { %2236 = vadd.xlane.f32.xlu0 %v2235_v60  ;;  %v2274_v60 = vld [vmem:[%s6963_s6 + $0x60] sm:$0xff] }
 0xeec   : > { %v2238_v30 = vsel %vm1066_vm6, %v2234_v29, 0.0  ;;  %v2275_v29 = vld [vmem:[%s6963_s6 + $0x68] sm:$0xff]  ;;  %v4793_v32 = vcombine.high %v2266_v59, %v2274_v60  ;;  %v4792_v40 = vcombine.low %v2266_v59, %v2274_v60  ;;  %v5575_v59 = vld [vmem:[%s6969_s12 + $0xe0] sm:$0xff]  }
 0xeed   : > { %v5576_v60 = vld [vmem:[%s6969_s12 + $0x20] sm:$0xff]  }
 0xeef   : > { %2239 = vadd.xlane.f32.xlu0 %v2238_v30  ;;  %v4804_v30 = vcombine.low %v2280_v23, %v2288_v24 }
 0xf78   : > { %v2237_v8 = vpop.xlane.xlu0 %2236 }
 0xf79   : > { %v2241_v9 = vmul.f32 0.03125, %v2237_v8  ;;  %v4798_v8 = vcombine.low %v2269_v46, %v2277_v47  ;;  %v2307_v46 = vrot.slane %v6985_v2, %v7060_v62  ;;  %v2303_v47 = vrot.slane %v6985_v2, %v7026_v36 }
 0xf7b   : > { %v2243_v10 = vadd.f32 1e-05, %v2241_v9  ;;  %v4813_v9 = vcombine.high %v2284_v61, %v2292_v25 }
 0xf7c   : > { %v2240_v11 = vpop.xlane.xlu0 %2239 }
 0xf7d   : > { %5718 = vrsqrt.f32 %v2243_v10  ;;  %v2242_v12 = vmul.f32 0.03125, %v2240_v11  ;;  %v4812_v11 = vcombine.low %v2284_v61, %v2292_v25  ;;  %v7340_v61 = vsub.s32 7, %v7023_v35 }
 0xf7f   : > { %v2244_v13 = vadd.f32 1e-05, %v2242_v12 }
 0xf81   : > { %5720 = vrsqrt.f32 %v2244_v13  ;;  %v5558_v13 = vld [vmem:[%s6969_s12 + $0x40] sm:$0xff]  }
 0xf87   : > { %v5719_v16 = vpop.eup %5718 }
 0xf88   : > { %v2247_v18 = vmul.f32 %v5719_v16, %v2231_v28  ;;  %v4805_v28 = vcombine.high %v2280_v23, %v2288_v24  ;;  %v5559_v16 = vld [vmem:[%s6969_s12 + $0xc0] sm:$0xff]   ;;  %v5568_v23 = vld [vmem:[%s6969_s12 + $0x10] sm:$0xff]  }
 0xf89   : > { %v5569_v24 = vld [vmem:[%s6969_s12 + $0x90] sm:$0xff]  }
 0xf8a   : > { %v2253_v20 = vmul.f32 %v2252_v17, %v2247_v18  ;;  %v5561_v18 = vld [vmem:[%s6969_s12 + $0x80] sm:$0xff]  }
 0xf8b   : > { %v5721_v19 = vpop.eup %5720 }
 0xf8c   : > { %v2248_v21 = vmul.f32 %v5721_v19, %v2232_v58  ;;  %v7248_v45 = vadd.f32 %v2258_v52, %v2253_v20  ;;  %v2267_v58 = vld [vmem:[%s6963_s6 + $0x28] sm:$0xff] }
 0xf8d   : > { %v4795_v33 = vcombine.high %v2267_v58, %v2275_v29  ;;  %v4794_v41 = vcombine.low %v2267_v58, %v2275_v29  ;;  %v5562_v19 = vld [vmem:[%s6969_s12 + $0x48] sm:$0xff]   ;;  %v5577_v58 = vld [vmem:[%s6969_s12 + $0xa0] sm:$0xff]  }
 0xf8e   : > { %v2254_v22 = vmul.f32 %v2252_v17, %v2248_v21  ;;  %v5560_v17 = vld [vmem:[%s6969_s12] sm:$0xff]   ;;  %v5565_v20 = vld [vmem:[%s6969_s12 + $0x88] sm:$0xff]   ;;  %v5566_v21 = vld [vmem:[%s6969_s12 + $0x50] sm:$0xff]  }
 0xf8f   : > { %v5578_v29 = vld [vmem:[%s6969_s12 + $0x68] sm:$0xff]  }
 0xf90   : > { %v7250_v7 = vadd.f32 %v2258_v52, %v2254_v22  ;;  %v5563_v52 = vld [vmem:[%s6969_s12 + $0xc8] sm:$0xff]   ;;  %v5567_v22 = vld [vmem:[%s6969_s12 + $0xd0] sm:$0xff]  }
 0xf92   : > { %v7254_v50 = vpack.c.bf16 %v7250_v7, %v7248_v45 }
 0xf94   : > { %4816 = vmatmul.mubr.msk.bf16.vlgmr.msra.gmra.mrb[40].mxu0 %vm1066_vm6, %v7254_v50  ;;  %4817 = vmatmul.mubr.msk.bf16.vlgmr.msra.gmra.mrb[40].mxu1 %vm1066_vm6, %v7254_v50 }
 0xf95   : > { %2626 = vmatpush1.bf16.msra.mxu0 %v4788_v63  ;;  %2669 = vmatpush1.bf16.msra.mxu1 %v4790_v4  ;;  %v2285_v63 = vld [vmem:[%s6963_s6 + $0xb8] sm:$0xff] }
 0xf96   : > { %2627 = vmatprep.subr.bf16.mxu0 %v4805_v28  ;;  %2670 = vmatprep.subr.bf16.mxu1 %v4807_v51  ;;  %v2293_v4 = vld [vmem:[%s6963_s6 + $0xf8] sm:$0xff]  ;;  %v5574_v51 = vld [vmem:[%s6969_s12 + $0x60] sm:$0xff]  }
 0xf97   : > { %2657 = vmatprep.mubr.bf16.mxu0 %v6306_v56  ;;  %2700 = vmatprep.mubr.bf16.mxu1 %v6306_v56  ;;  %v4815_v10 = vcombine.high %v2285_v63, %v2293_v4  ;;  %v4814_v12 = vcombine.low %v2285_v63, %v2293_v4  ;;  %v5573_v28 = vld [vmem:[%s6969_s12 + $0x98] sm:$0xff]  }
 0xf99   : > { %2628 = vmatpush1.bf16.msra.mxu0 %v4804_v30  ;;  %2671 = vmatpush1.bf16.msra.mxu1 %v4806_v31  ;;  %v5579_v30 = vld [vmem:[%s6969_s12 + $0xe8] sm:$0xff]  }
 0xf9a   : > { %2711 = vmatprep.subr.bf16.mxu0 %v4793_v32  ;;  %2754 = vmatprep.subr.bf16.mxu1 %v4795_v33  ;;  %v5580_v31 = vld [vmem:[%s6969_s12 + $0x28] sm:$0xff]   ;;  %v5582_v33 = vld [vmem:[%s6969_s12 + $0x70] sm:$0xff]  }
 0xf9b   : > { %v5581_v32 = vld [vmem:[%s6969_s12 + $0xa8] sm:$0xff]  }
 0xf9c   : > { %4818 = vmatmul.mubr.msk.bf16.vlgmr.msra.gmra.mrb[44].mxu0 %vm1066_vm6, %v7254_v50  ;;  %4819 = vmatmul.mubr.msk.bf16.vlgmr.msra.gmra.mrb[44].mxu1 %vm1066_vm6, %v7254_v50 }
 0xf9d   : > { %2712 = vmatpush1.bf16.msra.mxu0 %v4792_v40  ;;  %2755 = vmatpush1.bf16.msra.mxu1 %v4794_v41  ;;  %v5587_v40 = vld [vmem:[%s6969_s12 + $0xf8] sm:$0xff]  }
 0xf9e   : > { %2713 = vmatprep.subr.bf16.mxu0 %v4809_v42  ;;  %2756 = vmatprep.subr.bf16.mxu1 %v4811_v55  ;;  %v5588_v41 = vld [vmem:[%s6969_s12 + $0x38] sm:$0xff]   ;;  %v5590_v55 = vld [vmem:[%s6969_s12 + $0x140] sm:$0xff]  }
 0xf9f   : > { %2743 = vmatprep.mubr.bf16.mxu0 %v6306_v56  ;;  %2786 = vmatprep.mubr.bf16.mxu1 %v6306_v56  ;;  %v5589_v42 = vld [vmem:[%s6969_s12 + $0xb8] sm:$0xff]  }
 0xfa1   : > { %2714 = vmatpush1.bf16.msra.mxu0 %v4808_v48  ;;  %2757 = vmatpush1.bf16.msra.mxu1 %v4810_v49  ;;  %v2311_v48 = vrot.slane %v6985_v2, %v7212_v15  ;;  %v7337_v49 = vsub.s32 4, %v7023_v35 }
 0xfa2   : > { %2797 = vmatprep.subr.bf16.mxu0 %v4797_v53  ;;  %2840 = vmatprep.subr.bf16.mxu1 %v4799_v54 }
 0xfa4   : > { %4820 = vmatmul.mubr.msk.bf16.vlgmr.msra.gmra.mrb[48].mxu0 %vm1066_vm6, %v7254_v50  ;;  %4821 = vmatmul.mubr.msk.bf16.vlgmr.msra.gmra.mrb[48].mxu1 %vm1066_vm6, %v7254_v50 }
 0xfa5   : > { %2798 = vmatpush1.bf16.msra.mxu0 %v4796_v5  ;;  %2841 = vmatpush1.bf16.msra.mxu1 %v4798_v8 }
 0xfa6   : > { %2799 = vmatprep.subr.bf16.mxu0 %v4813_v9  ;;  %2842 = vmatprep.subr.bf16.mxu1 %v4815_v10 }
 0xfa7   : > { %2829 = vmatprep.mubr.bf16.mxu0 %v6306_v56  ;;  %2872 = vmatprep.mubr.bf16.mxu1 %v6306_v56  ;;  %v5564_v56 = vld [vmem:[%s6969_s12 + $0x8] sm:$0xff]  }
 0xfa9   : > { %2800 = vmatpush1.bf16.msra.mxu0 %v4812_v11  ;;  %2843 = vmatpush1.bf16.msra.mxu1 %v4814_v12 }
 0xfaa   : > { %5018 = vmatprep.subr.bf16.mxu0 %v5558_v13  ;;  %5040 = vmatprep.subr.bf16.mxu1 %v5559_v16 }
 0xfac   : > { %4822 = vmatmul.mubr.msk.bf16.vlgmr.msra.gmra.mrb[52].mxu0 %vm1066_vm6, %v7254_v50  ;;  %4823 = vmatmul.mubr.msk.bf16.vlgmr.msra.gmra.mrb[52].mxu1 %vm1066_vm6, %v7254_v50  ;;  %v5572_v50 = vld [vmem:[%s6969_s12 + $0x18] sm:$0xff]  }
 0xfad   : > { %5019 = vmatpush3.bf16.msra.mxu0 %v5560_v17  ;;  %5041 = vmatpush3.bf16.msra.mxu1 %v5561_v18  ;;  %v2315_v18 = vrot.slane %v6985_v2, %v7337_v49 }
 0xfae   : > { %5020 = vmatprep.subr.bf16.mxu0 %v5562_v19  ;;  %5042 = vmatprep.subr.bf16.mxu1 %v5563_v52  ;;  %v2323_v19 = vrot.slane %v6985_v2, %v7240_v57 }
 0xfb1   : > { %5021 = vmatpush3.bf16.msra.mxu0 %v5564_v56  ;;  %5043 = vmatpush3.bf16.msra.mxu1 %v5565_v20  ;;  %v2319_v56 = vrot.slane %v6985_v2, %v7235_v14  ;;  %v2327_v20 = vrot.slane %v6985_v2, %v7340_v61 }
 0xfb2   : > { %5022 = vmatprep.subr.bf16.mxu0 %v5566_v21  ;;  %5044 = vmatprep.subr.bf16.mxu1 %v5567_v22 }
 0xfb5   : > { %5023 = vmatpush3.bf16.msra.mxu0 %v5568_v23  ;;  %5045 = vmatpush3.bf16.msra.mxu1 %v5569_v24 }
 0xfb6   : > { %5024 = vmatprep.subr.bf16.mxu0 %v5570_v26  ;;  %5046 = vmatprep.subr.bf16.mxu1 %v5571_v27 }
 0xfb9   : > { %5025 = vmatpush3.bf16.msra.mxu0 %v5572_v50  ;;  %5047 = vmatpush3.bf16.msra.mxu1 %v5573_v28 }
 0xfba   : > { %5026 = vmatprep.subr.bf16.mxu0 %v5574_v51  ;;  %5048 = vmatprep.subr.bf16.mxu1 %v5575_v59 }
 0xfbd   : > { %5027 = vmatpush3.bf16.msra.mxu0 %v5576_v60  ;;  %5049 = vmatpush3.bf16.msra.mxu1 %v5577_v58 }
 0xfbe   : > { %5028 = vmatprep.subr.bf16.mxu0 %v5578_v29  ;;  %5050 = vmatprep.subr.bf16.mxu1 %v5579_v30 }
 0xfc1   : > { %5029 = vmatpush3.bf16.msra.mxu0 %v5580_v31  ;;  %5051 = vmatpush3.bf16.msra.mxu1 %v5581_v32  ;;  %v5592_v31 = vld [vmem:[%s6969_s12 + $0x100] sm:$0xff]  }
 0xfc2   : > { %5030 = vmatprep.subr.bf16.mxu0 %v5582_v33  ;;  %5052 = vmatprep.subr.bf16.mxu1 %v5583_v34  ;;  %v5593_v32 = vld [vmem:[%s6969_s12 + $0x180] sm:$0xff]  }
 0xfc5   : > { %5031 = vmatpush3.bf16.msra.mxu0 %v5584_v6  ;;  %5053 = vmatpush3.bf16.msra.mxu1 %v5585_v37  ;;  %v5594_v37 = vld [vmem:[%s6969_s12 + $0x148] sm:$0xff]  }
 0xfc6   : > { %5032 = vmatprep.subr.bf16.mxu0 %v5586_v39  ;;  %5054 = vmatprep.subr.bf16.mxu1 %v5587_v40  ;;  %v5595_v39 = vld [vmem:[%s6969_s12 + $0x1c8] sm:$0xff]   ;;  %v2331_v40 = vrot.slane %v6987_v3, %v7031_v38  ;;  %v2335_v38 = vrot.slane %v6987_v3, %v7026_v36 }
 0xfc9   : > { %5033 = vmatpush3.bf16.msra.mxu0 %v5588_v41  ;;  %5055 = vmatpush3.bf16.msra.mxu1 %v5589_v42 }
 0xfca   : > { %5062 = vmatprep.subr.bf16.mxu0 %v5590_v55  ;;  %5084 = vmatprep.subr.bf16.mxu1 %v5591_v43 }
0x1067   : > { %v2573_v53 = vpop.f32.mrb[40].mxu0  ;;  %v2616_v54 = vpop.f32.mrb[40].mxu1 }
0x1068   : > { %v2574_v25 = vadd.f32 %v2573_v53, %v2299_v44  ;;  %v2617_v63 = vadd.f32 %v2616_v54, %v2307_v46  ;;  %v2575_v4 = vpop.f32.mrb[41].mxu0  ;;  %v2618_v5 = vpop.f32.mrb[41].mxu1 }
0x1069   : > { %v2576_v8 = vadd.f32 %v2575_v4, %v2303_v47  ;;  %v2619_v9 = vadd.f32 %v2618_v5, %v2311_v48  ;;  %v2577_v10 = vpop.f32.mrb[42].mxu0  ;;  %v2620_v11 = vpop.f32.mrb[42].mxu1  ;;  %v5597_v4 = vld [vmem:[%s6969_s12 + $0x188] sm:$0xff]  }
0x106a   : > { %v2578_v12 = vadd.f32 %v2577_v10, %v2299_v44  ;;  %v2621_v13 = vadd.f32 %v2620_v11, %v2307_v46  ;;  %v2579_v16 = vpop.f32.mrb[43].mxu0  ;;  %v2622_v17 = vpop.f32.mrb[43].mxu1  ;;  %v2883_v21 = vmax.f32 %v2574_v25, 0.0  ;;  %v2885_v22 = vmax.f32 %v2617_v63, 0.0  ;;  %v5596_v63 = vld [vmem:[%s6969_s12 + $0x108] sm:$0xff]   ;;  %v5598_v11 = vld [vmem:[%s6969_s12 + $0x150] sm:$0xff]  }
0x106b   : > { %v2580_v35 = vadd.f32 %v2579_v16, %v2303_v47  ;;  %v2623_v52 = vadd.f32 %v2622_v17, %v2311_v48  ;;  %v2884_v26 = vmax.f32 %v2576_v8, 0.0  ;;  %v2886_v27 = vmax.f32 %v2619_v9, 0.0 }
0x106c   : > { %v2899_v23 = vmax.f32 %v2578_v12, 0.0  ;;  %v2901_v24 = vmax.f32 %v2621_v13, 0.0  ;;  %v2339_v44 = vrot.slane %v6987_v3, %v7060_v62  ;;  %v2343_v62 = vrot.slane %v6987_v3, %v7212_v15  ;;  %v5599_v12 = vld [vmem:[%s6969_s12 + $0x1d0] sm:$0xff]  }
0x106d   : > { %v2900_v50 = vmax.f32 %v2580_v35, 0.0  ;;  %v2902_v28 = vmax.f32 %v2623_v52, 0.0 }
0x106e   : > { %v2915_v51 = vpack.c.bf16 %v2899_v23, %v2883_v21  ;;  %v2917_v59 = vpack.c.bf16 %v2901_v24, %v2885_v22  ;;  %v5601_v21 = vld [vmem:[%s6969_s12 + $0x190] sm:$0xff]  }
0x106f   : > { %v2916_v60 = vpack.c.bf16 %v2900_v50, %v2884_v26  ;;  %v2918_v58 = vpack.c.bf16 %v2902_v28, %v2886_v27  ;;  %v2659_v29 = vpop.f32.mrb[44].mxu0  ;;  %v2702_v30 = vpop.f32.mrb[44].mxu1  ;;  %v5602_v27 = vld [vmem:[%s6969_s12 + $0x158] sm:$0xff]  }
0x1070   : > { %v2660_v2 = vadd.f32 %v2659_v29, %v2315_v18  ;;  %v2703_v33 = vadd.f32 %v2702_v30, %v2323_v19  ;;  %v2661_v34 = vpop.f32.mrb[45].mxu0  ;;  %v2704_v6 = vpop.f32.mrb[45].mxu1  ;;  %v5603_v50 = vld [vmem:[%s6969_s12 + $0x1d8] sm:$0xff]  }
0x1071   : > { %v2662_v41 = vadd.f32 %v2661_v34, %v2319_v56  ;;  %v2705_v42 = vadd.f32 %v2704_v6, %v2327_v20  ;;  %v2663_v55 = vpop.f32.mrb[46].mxu0  ;;  %v2706_v43 = vpop.f32.mrb[46].mxu1  ;;  %3991 = vmatprep.mubr.bf16.mxu0 %v2916_v60  ;;  %4032 = vmatprep.mubr.bf16.mxu1 %v2918_v58  ;;  %v2347_v58 = vrot.slane %v6987_v3, %v7337_v49 }
0x1072   : > { %v2664_v46 = vadd.f32 %v2663_v55, %v2315_v18  ;;  %v2707_v47 = vadd.f32 %v2706_v43, %v2323_v19  ;;  %v2665_v48 = vpop.f32.mrb[47].mxu0  ;;  %v2708_v53 = vpop.f32.mrb[47].mxu1  ;;  %3992 = vmatmul.mubr.bf16.vlgmr.msra.gmra.mrb[56].mxu0 %v2915_v51  ;;  %4033 = vmatmul.mubr.bf16.vlgmr.msra.gmra.mrb[56].mxu1 %v2917_v59  ;;  %v2887_v5 = vmax.f32 %v2660_v2, 0.0  ;;  %v2889_v8 = vmax.f32 %v2703_v33, 0.0 }
0x1073   : > { %v2666_v54 = vadd.f32 %v2665_v48, %v2319_v56  ;;  %v2709_v25 = vadd.f32 %v2708_v53, %v2327_v20  ;;  %5063 = vmatpush3.bf16.msra.mxu0 %v5592_v31  ;;  %5085 = vmatpush3.bf16.msra.mxu1 %v5593_v32  ;;  %v2888_v36 = vmax.f32 %v2662_v41, 0.0  ;;  %v2890_v13 = vmax.f32 %v2705_v42, 0.0  ;;  %v5600_v20 = vld [vmem:[%s6969_s12 + $0x110] sm:$0xff]  }
0x1074   : > { %v2903_v9 = vmax.f32 %v2664_v46, 0.0  ;;  %v2905_v10 = vmax.f32 %v2707_v47, 0.0  ;;  %5064 = vmatprep.subr.bf16.mxu0 %v5594_v37  ;;  %5086 = vmatprep.subr.bf16.mxu1 %v5595_v39  ;;  %v2355_v2 = vrot.slane %v6987_v3, %v7240_v57  ;;  %v2351_v33 = vrot.slane %v6987_v3, %v7235_v14  ;;  %v5604_v37 = vld [vmem:[%s6969_s12 + $0x118] sm:$0xff]   ;;  %v5606_v57 = vld [vmem:[%s6969_s12 + $0x160] sm:$0xff]  }
0x1075   : > { %v2904_v16 = vmax.f32 %v2666_v54, 0.0  ;;  %v2906_v17 = vmax.f32 %v2709_v25, 0.0  ;;  %v5605_v39 = vld [vmem:[%s6969_s12 + $0x198] sm:$0xff]  }
0x1076   : > { %v7366_v18 = vpack.c.bf16 %v2903_v9, %v2887_v5  ;;  %v7368_v19 = vpack.c.bf16 %v2905_v10, %v2889_v8 }
0x1077   : > { %v2920_v15 = vpack.c.bf16 %v2904_v16, %v2888_v36  ;;  %v2922_v35 = vpack.c.bf16 %v2906_v17, %v2890_v13  ;;  %5065 = vmatpush3.bf16.msra.mxu0 %v5596_v63  ;;  %5087 = vmatpush3.bf16.msra.mxu1 %v5597_v4  ;;  %v2745_v52 = vpop.f32.mrb[48].mxu0  ;;  %v2788_v56 = vpop.f32.mrb[48].mxu1  ;;  %v5608_v4 = vld [vmem:[%s6969_s12 + $0x120] sm:$0xff]  }
0x1078   : > { %v2746_v22 = vadd.f32 %v2745_v52, %v2331_v40  ;;  %v2789_v23 = vadd.f32 %v2788_v56, %v2339_v44  ;;  %v2747_v24 = vpop.f32.mrb[49].mxu0  ;;  %v2790_v26 = vpop.f32.mrb[49].mxu1  ;;  %5066 = vmatprep.subr.bf16.mxu0 %v5598_v11  ;;  %5088 = vmatprep.subr.bf16.mxu1 %v5599_v12  ;;  %v5610_v11 = vld [vmem:[%s6969_s12 + $0x168] sm:$0xff]  }
0x1079   : > { %v2748_v28 = vadd.f32 %v2747_v24, %v2335_v38  ;;  %v2791_v51 = vadd.f32 %v2790_v26, %v2343_v62  ;;  %v2749_v59 = vpop.f32.mrb[50].mxu0  ;;  %v2792_v60 = vpop.f32.mrb[50].mxu1  ;;  %4073 = vmatprep.mubr.bf16.mxu0 %v2920_v15  ;;  %4114 = vmatprep.mubr.bf16.mxu1 %v2922_v35  ;;  %v5611_v12 = vld [vmem:[%s6969_s12 + $0x1e8] sm:$0xff]  }
0x107a   : > { %v2750_v29 = vadd.f32 %v2749_v59, %v2331_v40  ;;  %v2793_v30 = vadd.f32 %v2792_v60, %v2339_v44  ;;  %v2751_v31 = vpop.f32.mrb[51].mxu0  ;;  %v2794_v32 = vpop.f32.mrb[51].mxu1  ;;  %v2359_v40 = vrot.slane %v6987_v3, %v7340_v61  ;;  %v2891_v41 = vmax.f32 %v2746_v22, 0.0  ;;  %v5607_v44 = vld [vmem:[%s6969_s12 + $0x1e0] sm:$0xff]   ;;  %v5612_v22 = vld [vmem:[%s6969_s12 + $0x128] sm:$0xff]  }
0x107b   : > { %v2752_v34 = vadd.f32 %v2751_v31, %v2335_v38  ;;  %v2795_v6 = vadd.f32 %v2794_v32, %v2343_v62  ;;  %5067 = vmatpush3.bf16.msra.mxu0 %v5600_v20  ;;  %5089 = vmatpush3.bf16.msra.mxu1 %v5601_v21  ;;  %v2893_v42 = vmax.f32 %v2789_v23, 0.0  ;;  %v2892_v14 = vmax.f32 %v2748_v28, 0.0  ;;  %v5609_v62 = vld [vmem:[%s6969_s12 + $0x1a0] sm:$0xff]   ;;  %v5613_v23 = vld [vmem:[%s6969_s12 + $0x1a8] sm:$0xff]   ;;  %v5614_v28 = vld [vmem:[%s6969_s12 + $0x170] sm:$0xff]  }
0x107c   : > { %v2907_v55 = vmax.f32 %v2750_v29, 0.0  ;;  %v2909_v43 = vmax.f32 %v2793_v30, 0.0  ;;  %5068 = vmatprep.subr.bf16.mxu0 %v5602_v27  ;;  %5090 = vmatprep.subr.bf16.mxu1 %v5603_v50  ;;  %v2894_v46 = vmax.f32 %v2791_v51, 0.0  ;;  %v5615_v51 = vld [vmem:[%s6969_s12 + $0x1f0] sm:$0xff]  }
0x107d   : > { %v2908_v47 = vmax.f32 %v2752_v34, 0.0  ;;  %v2910_v48 = vmax.f32 %v2795_v6, 0.0  ;;  %v5617_v34 = vld [vmem:[%s6969_s12 + $0x1b0] sm:$0xff]   ;;  %v5618_v6 = vld [vmem:[%s6969_s12 + $0x178] sm:$0xff]  }
0x107e   : > { %v7386_v53 = vpack.c.bf16 %v2907_v55, %v2891_v41  ;;  %v7388_v38 = vpack.c.bf16 %v2909_v43, %v2893_v42  ;;  %v5622_v41 = vld [vmem:[%s6969_s12 + $0x240] sm:$0xff]  }
0x107f   : > { %v7390_v3 = vpack.c.bf16 %v2908_v47, %v2892_v14  ;;  %v7392_v54 = vpack.c.bf16 %v2910_v48, %v2894_v46  ;;  %5069 = vmatpush3.bf16.msra.mxu0 %v5604_v37  ;;  %5091 = vmatpush3.bf16.msra.mxu1 %v5605_v39  ;;  %v2831_v25 = vpop.f32.mrb[52].mxu0  ;;  %v2874_v63 = vpop.f32.mrb[52].mxu1  ;;  %v5619_v37 = vld [vmem:[%s6969_s12 + $0x1f8] sm:$0xff]   ;;  %v5623_v42 = vld [vmem:[%s6969_s12 + $0x2c0] sm:$0xff]   ;;  %v5628_v14 = vld [vmem:[%s6969_s12 + $0x208] sm:$0xff]  }
0x1080   : > { %v2832_v5 = vadd.f32 %v2831_v25, %v2347_v58  ;;  %v2875_v8 = vadd.f32 %v2874_v63, %v2355_v2  ;;  %v2833_v9 = vpop.f32.mrb[53].mxu0  ;;  %v2876_v10 = vpop.f32.mrb[53].mxu1  ;;  %5070 = vmatprep.subr.bf16.mxu0 %v5606_v57  ;;  %5092 = vmatprep.subr.bf16.mxu1 %v5607_v44  ;;  %v5620_v39 = vld [vmem:[%s6969_s12 + $0x138] sm:$0xff]   ;;  %v5624_v55 = vld [vmem:[%s6969_s12 + $0x200] sm:$0xff]   ;;  %v5626_v57 = vld [vmem:[%s6969_s12 + $0x248] sm:$0xff]  }
0x1081   : > { %v2834_v36 = vadd.f32 %v2833_v9, %v2351_v33  ;;  %v2877_v13 = vadd.f32 %v2876_v10, %v2359_v40  ;;  %v2835_v16 = vpop.f32.mrb[54].mxu0  ;;  %v2878_v17 = vpop.f32.mrb[54].mxu1  ;;  %v5625_v43 = vld [vmem:[%s6969_s12 + $0x280] sm:$0xff]   ;;  %v5627_v44 = vld [vmem:[%s6969_s12 + $0x2c8] sm:$0xff]   ;;  %v5630_v47 = vld [vmem:[%s6969_s12 + $0x250] sm:$0xff]  }
0x1082   : > { %v2836_v15 = vadd.f32 %v2835_v16, %v2347_v58  ;;  %v2879_v35 = vadd.f32 %v2878_v17, %v2355_v2  ;;  %v2837_v52 = vpop.f32.mrb[55].mxu0  ;;  %v2880_v56 = vpop.f32.mrb[55].mxu1  ;;  %v2895_v24 = vmax.f32 %v2832_v5, 0.0  ;;  %v2897_v26 = vmax.f32 %v2875_v8, 0.0  ;;  %v5629_v46 = vld [vmem:[%s6969_s12 + $0x288] sm:$0xff]   ;;  %v5633_v48 = vld [vmem:[%s6969_s12 + $0x290] sm:$0xff]  }
0x1083   : > { %v2838_v20 = vadd.f32 %v2837_v52, %v2351_v33  ;;  %v2881_v21 = vadd.f32 %v2880_v56, %v2359_v40  ;;  %5071 = vmatpush3.bf16.msra.mxu0 %v5608_v4  ;;  %5093 = vmatpush3.bf16.msra.mxu1 %v5609_v62  ;;  %v2896_v59 = vmax.f32 %v2834_v36, 0.0  ;;  %v2898_v60 = vmax.f32 %v2877_v13, 0.0  ;;  %v5616_v33 = vld [vmem:[%s6969_s12 + $0x130] sm:$0xff]   ;;  %v5621_v40 = vld [vmem:[%s6969_s12 + $0x1b8] sm:$0xff]   ;;  %v5638_v4 = vld [vmem:[%s6969_s12 + $0x260] sm:$0xff]  }
0x1084   : > { %v2911_v27 = vmax.f32 %v2836_v15, 0.0  ;;  %v2913_v50 = vmax.f32 %v2879_v35, 0.0  ;;  %5072 = vmatprep.subr.bf16.mxu0 %v5610_v11  ;;  %5094 = vmatprep.subr.bf16.mxu1 %v5611_v12  ;;  %v5635_v25 = vld [vmem:[%s6969_s12 + $0x2d8] sm:$0xff]   ;;  %v5639_v62 = vld [vmem:[%s6969_s12 + $0x2e0] sm:$0xff]   ;;  %v5642_v9 = vld [vmem:[%s6969_s12 + $0x268] sm:$0xff]  }
0x1085   : > { %v2912_v58 = vmax.f32 %v2838_v20, 0.0  ;;  %v2914_v29 = vmax.f32 %v2881_v21, 0.0  ;;  %v5637_v63 = vld [vmem:[%s6969_s12 + $0x298] sm:$0xff]   ;;  %v5640_v5 = vld [vmem:[%s6969_s12 + $0x220] sm:$0xff]   ;;  %v5643_v10 = vld [vmem:[%s6969_s12 + $0x2e8] sm:$0xff]  }
0x1086   : > { %v7402_v30 = vpack.c.bf16 %v2911_v27, %v2895_v24  ;;  %v7404_v31 = vpack.c.bf16 %v2913_v50, %v2897_v26  ;;  %v5641_v8 = vld [vmem:[%s6969_s12 + $0x2a0] sm:$0xff]   ;;  %v5644_v11 = vld [vmem:[%s6969_s12 + $0x228] sm:$0xff]   ;;  %v5646_v36 = vld [vmem:[%s6969_s12 + $0x270] sm:$0xff]  }
0x1087   : > { %v7406_v32 = vpack.c.bf16 %v2912_v58, %v2896_v59  ;;  %v7408_v2 = vpack.c.bf16 %v2914_v29, %v2898_v60  ;;  %5073 = vmatpush3.bf16.msra.mxu0 %v5612_v22  ;;  %5095 = vmatpush3.bf16.msra.mxu1 %v5613_v23  ;;  %v5645_v12 = vld [vmem:[%s6969_s12 + $0x2a8] sm:$0xff]   ;;  %v5647_v13 = vld [vmem:[%s6969_s12 + $0x2f0] sm:$0xff]   ;;  %v5650_v15 = vld [vmem:[%s6969_s12 + $0x278] sm:$0xff]  }
0x1088   : > { %5074 = vmatprep.subr.bf16.mxu0 %v5614_v28  ;;  %5096 = vmatprep.subr.bf16.mxu1 %v5615_v51  ;;  %v5648_v16 = vld [vmem:[%s6969_s12 + $0x230] sm:$0xff]   ;;  %v5651_v35 = vld [vmem:[%s6969_s12 + $0x2f8] sm:$0xff]   ;;  %v5654_v20 = vld [vmem:[%s6969_s12 + $0x340] sm:$0xff]  }
0x1089   : > { %v5649_v17 = vld [vmem:[%s6969_s12 + $0x2b0] sm:$0xff]   ;;  %v5652_v52 = vld [vmem:[%s6969_s12 + $0x238] sm:$0xff]   ;;  %v5655_v21 = vld [vmem:[%s6969_s12 + $0x3c0] sm:$0xff]  }
0x108a   : > { %v5653_v56 = vld [vmem:[%s6969_s12 + $0x2b8] sm:$0xff]   ;;  %v5656_v22 = vld [vmem:[%s6969_s12 + $0x300] sm:$0xff]   ;;  %v5658_v24 = vld [vmem:[%s6969_s12 + $0x348] sm:$0xff]  }
0x108b   : > { %5075 = vmatpush3.bf16.msra.mxu0 %v5616_v33  ;;  %5097 = vmatpush3.bf16.msra.mxu1 %v5617_v34  ;;  %v5657_v23 = vld [vmem:[%s6969_s12 + $0x380] sm:$0xff]   ;;  %v5659_v26 = vld [vmem:[%s6969_s12 + $0x3c8] sm:$0xff]   ;;  %v5662_v28 = vld [vmem:[%s6969_s12 + $0x350] sm:$0xff]  }
0x108c   : > { %5076 = vmatprep.subr.bf16.mxu0 %v5618_v6  ;;  %5098 = vmatprep.subr.bf16.mxu1 %v5619_v37  ;;  %v5660_v27 = vld [vmem:[%s6969_s12 + $0x308] sm:$0xff]   ;;  %v5665_v51 = vld [vmem:[%s6969_s12 + $0x390] sm:$0xff]   ;;  %v5666_v59 = vld [vmem:[%s6969_s12 + $0x358] sm:$0xff]  }
0x108d   : > { %v5661_v50 = vld [vmem:[%s6969_s12 + $0x388] sm:$0xff]   ;;  %v5667_v60 = vld [vmem:[%s6969_s12 + $0x3d8] sm:$0xff]   ;;  %v5672_v33 = vld [vmem:[%s6969_s12 + $0x320] sm:$0xff]  }
0x108e   : > { %v5668_v58 = vld [vmem:[%s6969_s12 + $0x318] sm:$0xff]   ;;  %v5673_v34 = vld [vmem:[%s6969_s12 + $0x3a0] sm:$0xff]   ;;  %v5674_v6 = vld [vmem:[%s6969_s12 + $0x368] sm:$0xff]  }
0x108f   : > { %5077 = vmatpush3.bf16.msra.mxu0 %v5620_v39  ;;  %5099 = vmatpush3.bf16.msra.mxu1 %v5621_v40  ;;  %v5669_v29 = vld [vmem:[%s6969_s12 + $0x398] sm:$0xff]   ;;  %v5675_v37 = vld [vmem:[%s6969_s12 + $0x3e8] sm:$0xff]  }
0x1090   : > { %5106 = vmatprep.subr.bf16.mxu0 %v5622_v41  ;;  %5128 = vmatprep.subr.bf16.mxu1 %v5623_v42  ;;  %v5676_v39 = vld [vmem:[%s6969_s12 + $0x328] sm:$0xff]   ;;  %v5678_v41 = vld [vmem:[%s6969_s12 + $0x370] sm:$0xff]  }
0x1091   : > { %v5677_v40 = vld [vmem:[%s6969_s12 + $0x3a8] sm:$0xff]   ;;  %v5679_v42 = vld [vmem:[%s6969_s12 + $0x3f0] sm:$0xff]  }
0x1092   : > { %4074 = vmatmul.mubr.bf16.vlgmr.msra.gmra.mrb[60].mxu0 %v7366_v18  ;;  %4115 = vmatmul.mubr.bf16.vlgmr.msra.gmra.mrb[60].mxu1 %v7368_v19  ;;  %v5631_v18 = vld [vmem:[%s6969_s12 + $0x2d0] sm:$0xff]  }
0x1093   : > { %5107 = vmatpush3.bf16.msra.mxu0 %v5624_v55  ;;  %4155 = vmatprep.mubr.bf16.mxu0 %v7390_v3  ;;  %v5632_v19 = vld [vmem:[%s6969_s12 + $0x210] sm:$0xff]   ;;  %v5634_v3 = vld [vmem:[%s6969_s12 + $0x258] sm:$0xff]  }
0x1094   : > { %5129 = vmatpush3.bf16.msra.mxu1 %v5625_v43  ;;  %4196 = vmatprep.mubr.bf16.mxu1 %v7392_v54  ;;  %v5636_v54 = vld [vmem:[%s6969_s12 + $0x218] sm:$0xff]   ;;  %v5680_v55 = vld [vmem:[%s6969_s12 + $0x330] sm:$0xff]  }
0x1095   : > { %5108 = vmatprep.subr.bf16.mxu0 %v5626_v57  ;;  %5130 = vmatprep.subr.bf16.mxu1 %v5627_v44  ;;  %v5681_v43 = vld [vmem:[%s6969_s12 + $0x3b0] sm:$0xff]   ;;  %v5682_v57 = vld [vmem:[%s6969_s12 + $0x378] sm:$0xff]  }
0x1096   : > { %v5683_v44 = vld [vmem:[%s6969_s12 + $0x3f8] sm:$0xff]  }
0x1097   : > { %5109 = vmatpush3.bf16.msra.mxu0 %v5628_v14  ;;  %v5684_v14 = vld [vmem:[%s6969_s12 + $0x338] sm:$0xff]  }
0x1098   : > { %5131 = vmatpush3.bf16.msra.mxu1 %v5629_v46  ;;  %5110 = vmatprep.subr.bf16.mxu0 %v5630_v47  ;;  %v5685_v46 = vld [vmem:[%s6969_s12 + $0x3b8] sm:$0xff]  }
0x1099   : > { %5132 = vmatprep.subr.bf16.mxu1 %v5631_v18 }
0x109b   : > { %5111 = vmatpush3.bf16.msra.mxu0 %v5632_v19  ;;  %v3190_v19 = vrot.slane %v6981_v0, %v7337_v49 }
0x109c   : > { %5133 = vmatpush3.bf16.msra.mxu1 %v5633_v48  ;;  %5112 = vmatprep.subr.bf16.mxu0 %v5634_v3 }
0x109d   : > { %5134 = vmatprep.subr.bf16.mxu1 %v5635_v25 }
0x109f   : > { %5113 = vmatpush3.bf16.msra.mxu0 %v5636_v54 }
0x10a0   : > { %5135 = vmatpush3.bf16.msra.mxu1 %v5637_v63  ;;  %5114 = vmatprep.subr.bf16.mxu0 %v5638_v4 }
0x10a1   : > { %5136 = vmatprep.subr.bf16.mxu1 %v5639_v62 }
0x10a3   : > { %5115 = vmatpush3.bf16.msra.mxu0 %v5640_v5 }
0x10a4   : > { %5137 = vmatpush3.bf16.msra.mxu1 %v5641_v8  ;;  %5116 = vmatprep.subr.bf16.mxu0 %v5642_v9 }
0x10a5   : > { %5138 = vmatprep.subr.bf16.mxu1 %v5643_v10 }
0x10a7   : > { %5117 = vmatpush3.bf16.msra.mxu0 %v5644_v11 }
0x10a8   : > { %5139 = vmatpush3.bf16.msra.mxu1 %v5645_v12  ;;  %5118 = vmatprep.subr.bf16.mxu0 %v5646_v36 }
0x10a9   : > { %5140 = vmatprep.subr.bf16.mxu1 %v5647_v13 }
0x10ab   : > { %5119 = vmatpush3.bf16.msra.mxu0 %v5648_v16 }
0x10ac   : > { %5141 = vmatpush3.bf16.msra.mxu1 %v5649_v17  ;;  %5120 = vmatprep.subr.bf16.mxu0 %v5650_v15 }
0x10ad   : > { %5142 = vmatprep.subr.bf16.mxu1 %v5651_v35 }
0x10af   : > { %5121 = vmatpush3.bf16.msra.mxu0 %v5652_v52 }
0x10b0   : > { %5143 = vmatpush3.bf16.msra.mxu1 %v5653_v56  ;;  %5150 = vmatprep.subr.bf16.mxu0 %v5654_v20 }
0x10b1   : > { %5172 = vmatprep.subr.bf16.mxu1 %v5655_v21 }
0x10b2   : > { %4156 = vmatmul.mubr.bf16.vlgmr.msra.gmra.mrb[64].mxu0 %v7386_v53  ;;  %v5663_v53 = vld [vmem:[%s6969_s12 + $0x3d0] sm:$0xff]  }
0x10b3   : > { %4197 = vmatmul.mubr.bf16.vlgmr.msra.gmra.mrb[64].mxu1 %v7388_v38  ;;  %5151 = vmatpush3.bf16.msra.mxu0 %v5656_v22  ;;  %v5664_v38 = vld [vmem:[%s6969_s12 + $0x310] sm:$0xff]  }
0x10b4   : > { %4237 = vmatprep.mubr.bf16.mxu0 %v7406_v32  ;;  %5173 = vmatpush3.bf16.msra.mxu1 %v5657_v23  ;;  %v5670_v32 = vld [vmem:[%s6969_s12 + $0x360] sm:$0xff]  }
0x10b5   : > { %4278 = vmatprep.mubr.bf16.mxu1 %v7408_v2  ;;  %5152 = vmatprep.subr.bf16.mxu0 %v5658_v24  ;;  %v5671_v2 = vld [vmem:[%s6969_s12 + $0x3e0] sm:$0xff]  }
0x10b6   : > { %5174 = vmatprep.subr.bf16.mxu1 %v5659_v26 }
0x10b7   : > { %5153 = vmatpush3.bf16.msra.mxu0 %v5660_v27 }
0x10b8   : > { %5175 = vmatpush3.bf16.msra.mxu1 %v5661_v50  ;;  %5154 = vmatprep.subr.bf16.mxu0 %v5662_v28 }
0x10b9   : > { %5176 = vmatprep.subr.bf16.mxu1 %v5663_v53 }
0x10bb   : > { %5155 = vmatpush3.bf16.msra.mxu0 %v5664_v38 }
0x10bc   : > { %5177 = vmatpush3.bf16.msra.mxu1 %v5665_v51  ;;  %5156 = vmatprep.subr.bf16.mxu0 %v5666_v59 }
0x10bd   : > { %5178 = vmatprep.subr.bf16.mxu1 %v5667_v60 }
0x10bf   : > { %5157 = vmatpush3.bf16.msra.mxu0 %v5668_v58 }
0x10c0   : > { %5179 = vmatpush3.bf16.msra.mxu1 %v5669_v29  ;;  %5158 = vmatprep.subr.bf16.mxu0 %v5670_v32 }
0x10c1   : > { %5180 = vmatprep.subr.bf16.mxu1 %v5671_v2 }
0x10c3   : > { %5159 = vmatpush3.bf16.msra.mxu0 %v5672_v33 }
0x10c4   : > { %5181 = vmatpush3.bf16.msra.mxu1 %v5673_v34  ;;  %5160 = vmatprep.subr.bf16.mxu0 %v5674_v6 }
0x10c5   : > { %5182 = vmatprep.subr.bf16.mxu1 %v5675_v37 }
0x10c7   : > { %5161 = vmatpush3.bf16.msra.mxu0 %v5676_v39 }
0x10c8   : > { %5183 = vmatpush3.bf16.msra.mxu1 %v5677_v40  ;;  %5162 = vmatprep.subr.bf16.mxu0 %v5678_v41 }
0x10c9   : > { %5184 = vmatprep.subr.bf16.mxu1 %v5679_v42 }
0x10cb   : > { %5163 = vmatpush3.bf16.msra.mxu0 %v5680_v55 }
0x10cc   : > { %5185 = vmatpush3.bf16.msra.mxu1 %v5681_v43  ;;  %5164 = vmatprep.subr.bf16.mxu0 %v5682_v57 }
0x10cd   : > { %5186 = vmatprep.subr.bf16.mxu1 %v5683_v44 }
0x10cf   : > { %5165 = vmatpush3.bf16.msra.mxu0 %v5684_v14 }
0x10d0   : > { %5187 = vmatpush3.bf16.msra.mxu1 %v5685_v46 }
0x10d2   : > { %4238 = vmatmul.mubr.bf16.vlgmr.msra.gmra.mrb[68].mxu0 %v7402_v30 }
0x10d3   : > { %4279 = vmatmul.mubr.bf16.vlgmr.msra.gmra.mrb[68].mxu1 %v7404_v31 }
0x1145   : > { %v5034_v47 = vpop.f32.mrb[56].mxu0  ;;  %v5056_v18 = vpop.f32.mrb[56].mxu1 }
0x1146   : > { %v5035_v48 = vpop.f32.mrb[57].mxu0  ;;  %v5057_v3 = vpop.f32.mrb[57].mxu1 }
0x1147   : > { %v5036_v25 = vadd.f32 %v5035_v48, %v5034_v47  ;;  %v5058_v54 = vadd.f32 %v5057_v3, %v5056_v18  ;;  %v5037_v63 = vpop.f32.mrb[58].mxu0  ;;  %v5059_v4 = vpop.f32.mrb[58].mxu1 }
0x1148   : > { %v5038_v62 = vpop.f32.mrb[59].mxu0  ;;  %v5060_v5 = vpop.f32.mrb[59].mxu1 }
0x1149   : > { %v3994_v8 = vadd.f32 %v5036_v25, %v3190_v19  ;;  %v5039_v9 = vadd.f32 %v5038_v62, %v5037_v63  ;;  %v5061_v10 = vadd.f32 %v5060_v5, %v5059_v4 }
0x114b   : > { %v4035_v11 = vadd.f32 %v5058_v54, %v3994_v8  ;;  %v3997_v30 = vadd.f32 %v5039_v9, %v3190_v19 }
0x114d   : > { %v4038_v12 = vadd.f32 %v5061_v10, %v3997_v30 }
0x1165   : > { %v5078_v31 = vpop.f32.mrb[60].mxu0  ;;  %v5100_v36 = vpop.f32.mrb[60].mxu1 }
0x1166   : > { %v5079_v13 = vpop.f32.mrb[61].mxu0  ;;  %v5101_v16 = vpop.f32.mrb[61].mxu1 }
0x1167   : > { %v5080_v17 = vadd.f32 %v5079_v13, %v5078_v31  ;;  %v5102_v49 = vadd.f32 %v5101_v16, %v5100_v36  ;;  %v5081_v15 = vpop.f32.mrb[62].mxu0  ;;  %v5103_v35 = vpop.f32.mrb[62].mxu1 }
0x1168   : > { %v5082_v52 = vpop.f32.mrb[63].mxu0  ;;  %v5104_v56 = vpop.f32.mrb[63].mxu1 }
0x1169   : > { %v4076_v20 = vadd.f32 %v5080_v17, %v4035_v11  ;;  %v5083_v21 = vadd.f32 %v5082_v52, %v5081_v15  ;;  %v5105_v22 = vadd.f32 %v5104_v56, %v5103_v35  ;;  %v4318_v35 = vrot.slane %v6981_v0, %v7340_v61  ;;  %v5729_v0 = vld [vmem:[#allocation24 + $0x8] sm:$0xff] (!%p4953_p3)  }
0x116b   : > { %v4117_v23 = vadd.f32 %v5102_v49, %v4076_v20  ;;  %v4079_v24 = vadd.f32 %v5083_v21, %v4038_v12 }
0x116d   : > { %v4120_v26 = vadd.f32 %v5105_v22, %v4079_v24 }
0x1185   : > { %v5122_v27 = vpop.f32.mrb[64].mxu0 }
0x1186   : > { %v5144_v50 = vpop.f32.mrb[64].mxu1  ;;  %v5123_v28 = vpop.f32.mrb[65].mxu0 }
0x1187   : > { %v5124_v53 = vadd.f32 %v5123_v28, %v5122_v27  ;;  %v5145_v38 = vpop.f32.mrb[65].mxu1  ;;  %v5125_v51 = vpop.f32.mrb[66].mxu0  ;;  %v5728_v27 = vld [vmem:[#allocation24] sm:$0xff] (!%p4953_p3)   ;;  %v4954_v28 = vld [vmem:[#allocation26] ss:$0 sm:$0xff] (!%p4953_p3) }
0x1188   : > { %v5146_v59 = vadd.f32 %v5145_v38, %v5144_v50  ;;  %v5147_v60 = vpop.f32.mrb[66].mxu1  ;;  %v5126_v58 = vpop.f32.mrb[67].mxu0  ;;  %v6307_v50 = vmov (!%p4953_p3), 0.0  }
0x1189   : > { %v4158_v29 = vadd.f32 %v5124_v53, %v4117_v23  ;;  %v5127_v32 = vadd.f32 %v5126_v58, %v5125_v51  ;;  %v5148_v2 = vpop.f32.mrb[67].mxu1  ;;  %5337 = vmatprep.subr.bf16.mxu0 (!%p4953_p3), %v6307_v50  ;;  %5341 = vmatprep.mubr.msk.bf16.mxu0 (!%p4953_p3), %vm6308_vm11, %v6307_v50 }
0x118a   : > { %v5149_v33 = vadd.f32 %v5148_v2, %v5147_v60  ;;  %5338 = vmatpush3.bf16.msra.mxu0 (!%p4953_p3), %v5728_v27 }
0x118b   : > { %v4199_v34 = vadd.f32 %v5146_v59, %v4158_v29  ;;  %v4161_v6 = vadd.f32 %v5127_v32, %v4120_v26  ;;  %5339 = vmatprep.subr.bf16.mxu0 (!%p4953_p3), %v6307_v50 }
0x118d   : > { %v4202_v37 = vadd.f32 %v5149_v33, %v4161_v6 }
0x118e   : > { %5340 = vmatpush3.bf16.msra.mxu0 (!%p4953_p3), %v5729_v0 }
0x11a5   : > { %v5166_v39 = vpop.f32.mrb[68].mxu0 }
0x11a6   : > { %v5188_v40 = vpop.f32.mrb[68].mxu1  ;;  %v5167_v41 = vpop.f32.mrb[69].mxu0 }
0x11a7   : > { %v5168_v42 = vadd.f32 %v5167_v41, %v5166_v39  ;;  %v5189_v55 = vpop.f32.mrb[69].mxu1  ;;  %v5169_v43 = vpop.f32.mrb[70].mxu0 }
0x11a8   : > { %v5190_v57 = vadd.f32 %v5189_v55, %v5188_v40  ;;  %v5191_v44 = vpop.f32.mrb[70].mxu1  ;;  %v5170_v14 = vpop.f32.mrb[71].mxu0 }
0x11a9   : > { %v4240_v46 = vadd.f32 %v5168_v42, %v4199_v34  ;;  %v5171_v47 = vadd.f32 %v5170_v14, %v5169_v43  ;;  %v5192_v18 = vpop.f32.mrb[71].mxu1 }
0x11aa   : > { %v5193_v19 = vadd.f32 %v5192_v18, %v5191_v44 }
0x11ab   : > { %v4281_v48 = vadd.f32 %v5190_v57, %v4240_v46  ;;  %v4243_v3 = vadd.f32 %v5171_v47, %v4202_v37 }
0x11ad   : > { %v4284_v25 = vadd.f32 %v5193_v19, %v4243_v3  ;;  %v4287_v54 = vadd.f32 %v4281_v48, %v7248_v45 }
0x11af   : > { %v4289_v63 = vsel %vm1066_vm6, %v4287_v54, 0.0  ;;  %v4288_v4 = vadd.f32 %v4284_v25, %v7250_v7 }
0x11b0   : > { %4290 = vadd.xlane.f32.xlu1 %v4289_v63 }
0x11b1   : > { %v4292_v62 = vsel %vm1066_vm6, %v4288_v4, 0.0 }
0x11b2   : > { %4293 = vadd.xlane.f32.xlu0 %v4292_v62 }
0x123d   : > { %v4291_v5 = vpop.xlane.xlu1 %4290 }
0x123e   : > { %v4295_v8 = vmul.f32 0.03125, %v4291_v5 }
0x123f   : > { %v4294_v9 = vpop.xlane.xlu0 %4293 }
0x1240   : > { %v4297_v10 = vsub.f32 %v4287_v54, %v4295_v8  ;;  %v4296_v11 = vmul.f32 0.03125, %v4294_v9 }
0x1242   : > { %v4298_v30 = vsub.f32 %v4288_v4, %v4296_v11  ;;  %v4299_v12 = vmul.f32 %v4297_v10, %v4297_v10 }
0x1244   : > { %v4301_v31 = vsel %vm1066_vm6, %v4299_v12, 0.0  ;;  %v4300_v36 = vmul.f32 %v4298_v30, %v4298_v30 }
0x1245   : > { %4302 = vadd.xlane.f32.xlu1 %v4301_v31 }
0x1246   : > { %v4304_v45 = vsel %vm1066_vm6, %v4300_v36, 0.0 }
0x1247   : > { %4305 = vadd.xlane.f32.xlu0 %v4304_v45 }
0x12d2   : > { %v4303_v13 = vpop.xlane.xlu1 %4302 }
0x12d3   : > { %v4307_v7 = vmul.f32 0.03125, %v4303_v13 }
0x12d4   : > { %v4306_v16 = vpop.xlane.xlu0 %4305 }
0x12d5   : > { %v4309_v17 = vadd.f32 1e-05, %v4307_v7  ;;  %v4308_v49 = vmul.f32 0.03125, %v4306_v16 }
0x12d7   : > { %5722 = vrsqrt.f32 %v4309_v17  ;;  %v4310_v15 = vadd.f32 1e-05, %v4308_v49 }
0x12d9   : > { %5724 = vrsqrt.f32 %v4310_v15 }
0x12e1   : > { %v5723_v52 = vpop.eup %5722 }
0x12e2   : > { %v4313_v56 = vmul.f32 %v5723_v52, %v4297_v10 }
0x12e3   : > { %v5725_v20 = vpop.eup %5724 }
0x12e4   : > { %v4319_v21 = vmul.f32 %v4318_v35, %v4313_v56  ;;  %v4314_v22 = vmul.f32 %v5725_v20, %v4298_v30  ;;  %4332 = sbr.rel (%p4953_p3) target bundleno = 5061 (0x13c5), region = 148 }
0x12e6   : > { %v4325_v23 = vadd.f32 %v6983_v1, %v4319_v21  ;;  %v4320_v24 = vmul.f32 %v4318_v35, %v4314_v22 }
0x12e8   : > { %4327 = vst.msk [vmem:[#allocation2] sm:$0xff] %vm1066_vm6, %v4325_v23  ;;  %v4326_v26 = vadd.f32 %v6983_v1, %v4320_v24 }
0x12ea   : > { %4328 = vst.msk [vmem:[#allocation2 + $0x8] sm:$0xff] %vm1066_vm6, %v4326_v26  ;;  %v4333_v61 = vpack.c.bf16 (!%p4953_p3), %v4326_v26, %v4325_v23 }
0x12ec   : > { %5342 = vmatmul.mubr.msk.bf16.vlgmr.msra.gmra.mrb[0].mxu0 %vm1066_vm6, %v4333_v61 }
0x13bf   : > { %v4394_v53 = vpop.f32.mrb[0].mxu0 }
0x13c0   : > { %v4395_v1 = vadd.f32 %v4954_v28, %v4394_v53  ;;  %v5343_v38 = vpop.f32.mrb[1].mxu0 }
0x13c1   : > { %v4397_v51 = vpop.f32.mrb[2].mxu0 }
0x13c2   : > { %4401 = vst [vmem:[#allocation27] sm:$0xff] %v4395_v1  ;;  %v4398_v59 = vadd.f32 %v4954_v28, %v4397_v51  ;;  %v5344_v60 = vpop.f32.mrb[3].mxu0 }
0x13c4   : > { %4402 = vst [vmem:[#allocation27 + $0x8] sm:$0xff] %v4398_v59 }
0x13c5 PF: > { %p5455_p4 = scmp.eq.s32.totalorder %s6422_s24, 1  ;;  %s6309_s30 = smov [#allocation27]  }
0x13c6   : > { %s4412_s15 = sshll.u32 %s6309_s30, 4  ;;  %s4413_s15 = int_to_ptr.vmem [resolvable:$true] %s4412_s15 }
0x13c7   : > { %s6166_s4 = scalar_lea.vmem %s4413_s15, 256  ;;  %p6173_p5 = scmp.lt.s32.totalorder %s4413_s15, %s4413_s15 }
0x13c8   : > { %p6167_p10 = scmp.ne.s32.totalorder %s4413_s15, %s6166_s4  ;;  %p6174_p9 = scmp.lt.s32.totalorder %s6166_s4, %s6166_s4 }
0x13ca   : > { %p6168_p7 = pnand %p6167_p10, %p5455_p4  ;;  %p6175_p11 = por %p6174_p9, %p6173_p5 }
0x13cc   : > { %p6169_p13 = pneg %p6168_p7 }
0x13ce   : > { %p6176_p12 = pnand %p6175_p11, %p6169_p13 }
0x13d0   : > { %6179 = shalt.err (!%p6176_p12)
}
0x13d1   : > { %s7667_s26 = sld [smem:[#allocation58_spill]] }
0x13d7   : > { %s6180_s3 = scalar_lea.hbm %s7667_s26, 256 }
0x13d8   : > { %p6181_p2 = scmp.ne.s32.totalorder %s7667_s26, %s6180_s3  ;;  %p6186_p1 = scmp.lt.u32.totalorder %s6180_s3, %s7667_s26 }
0x13da   : > { %p6182_p8 = pnand %p6181_p2, %p5455_p4 }
0x13dc   : > { %p6183_p6 = pneg %p6182_p8 }
0x13de   : > { %p6188_p0 = pnand %p6186_p1, %p6183_p6 }
0x13e0   : > { %6191 = shalt.err (!%p6188_p0)
}
0x13e1   : > { %s6310_s19 = smov 128  }
0x13e2   : > { %5390 = dma.vmem_to_hbm [thread:$0]  (%p5455_p4), %s4413_s15, 256, %s7667_s26, [#allocation5], %s6310_s19, %s6310_s19, %s6303_s8  }
0x13e3   : > { %6249 = dma.done.wait (%p5455_p4), [#allocation5], 256  }
0x13e4   : > { %6251 = vsyncadd (%p5455_p4), [#allocation5], 4294967040 }
0x13e5 PF: > { %s7668_s7 = sld [smem:[#allocation40_spill]]  ;;  %s7669_s18 = sld [smem:[#allocation37_spill]] }
0x13e6   : > { %s7670_s19 = sld [smem:[#allocation38_spill]]  ;;  %s7671_s20 = sld [smem:[#allocation44_spill]] }
0x13e7   : > { %s7672_s13 = sld [smem:[#allocation42_spill]]  ;;  %s7673_s21 = smov %s6270_s22 }
0x13eb   : > { %s42_s23 = sadd.s32 1, %s7668_s7  }
0x13ec   : > { %p39_p3 = scmp.ge.s32.totalorder %s42_s23, 4  }
0x13ed   : > { %s7674_s22 = smov %s7672_s13 }
0x13ee   :  { %41 = sbr.rel (!%p39_p3) target bundleno = 30 (0x1e), region = 241 }
0x13f5   :  { %4428 = vsyncpa [#allocation4], 1 }
0x13f6   :  { %4430 = vsyncpa [#allocation4 + $0x1], 1 }
0x13f7   :  { %4431 = vsyncpa [#allocation7], 1 }
0x13f8   :  { %4432 = vsyncpa [#allocation10], 1 }
0x13f9   :  { %4433 = vsyncpa [#allocation13], 1 }
0x13fa   :  { %4435 = vsyncpa [#allocation13 + $0x1], 1 }
0x13fb   :  { %4436 = vsyncpa [#allocation16], 1 }
0x13fc   :  { %4438 = vsyncpa [#allocation16 + $0x1], 1 }
0x13fd   :  { %4439 = vsyncpa [#allocation19], 1 }
0x13fe   :  { %4441 = vsyncpa [#allocation19 + $0x1], 1 }
0x13ff   :  { %4442 = vsyncpa [#allocation22], 1 }
0x1400   :  { %4444 = vsyncpa [#allocation22 + $0x1], 1 }
0x1401   :  { %4445 = vsyncpa [#allocation25], 1 }
0x1402   :  { %4446 = vsyncpa [#allocation5], 1 }
0x1403   :  { %4448 = vsyncpa [#allocation5 + $0x1], 1 }

// kernel: tpu_custom_call.1
= control target key start
LH: loop header
LB: loop body
LE: loop exit
PB: predicated region body
PF: predicated region fallthrough
CT: control target
= control target key end

     0   :  { %s7548_s0 = inlined_call_operand.hbm [shape: bf16[2,8,16], index: 0, kind: input, shape index: {}]   ;;  %s7549_s1 = inlined_call_operand.hbm [shape: bf16[2,8,8], index: 1, kind: input, shape index: {}]   ;;  %s7550_s2 = inlined_call_operand.hbm [shape: f32[2,8,32], index: 2, kind: input, shape index: {}]   ;;  %s7551_s3 = inlined_call_operand.hbm [shape: bf16[16,32], index: 3, kind: input, shape index: {}]   ;;  %s7552_s4 = inlined_call_operand.hbm [shape: bf16[8,32], index: 4, kind: input, shape index: {}]   ;;  %s7553_s5 = inlined_call_operand.hbm [shape: bf16[2,32,32], index: 5, kind: input, shape index: {}]   ;;  %s7554_s6 = inlined_call_operand.hbm [shape: bf16[2,32,32], index: 6, kind: input, shape index: {}]   ;;  %s7555_s7 = inlined_call_operand.hbm [shape: bf16[2,32,32], index: 7, kind: input, shape index: {}]   ;;  %s7556_s8 = inlined_call_operand.hbm [shape: bf16[2,32,32], index: 8, kind: input, shape index: {}]   ;;  %s7557_s9 = inlined_call_operand.hbm [shape: bf16[2,32,2048], index: 9, kind: input, shape index: {}]   ;;  %s7558_s10 = inlined_call_operand.hbm [shape: bf16[2,2048,32], index: 10, kind: input, shape index: {}]   ;;  %s7559_s11 = inlined_call_operand.hbm [shape: f32[2,9,32], index: 11, kind: input, shape index: {}]   ;;  %s7560_s12 = inlined_call_operand.hbm [shape: f32[2,1,2048], index: 12, kind: input, shape index: {}]   ;;  %s7561_s13 = inlined_call_operand.hbm [shape: bf16[32,128], index: 13, kind: input, shape index: {}]   ;;  %s7562_s14 = inlined_call_operand.hbm [shape: f32[1,128], index: 14, kind: input, shape index: {}]   ;;  %s7563_s15 = inlined_call_operand.hbm [shape: f32[2,8,128], index: 15, kind: output, shape index: {}]  }
   0x1   :  { %7597 = sst [smem:[#allocation45_spill]] %s7548_s0 }
   0x2   :  { %7598 = sst [smem:[#allocation46_spill]] %s7549_s1 }
   0x3   :  { %7599 = sst [smem:[#allocation47_spill]] %s7551_s3 }
   0x4   :  { %7600 = sst [smem:[#allocation48_spill]] %s7552_s4 }
   0x5   :  { %7601 = sst [smem:[#allocation49_spill]] %s7553_s5 }
   0x6   :  { %7602 = sst [smem:[#allocation50_spill]] %s7554_s6 }
   0x7   :  { %7603 = sst [smem:[#allocation51_spill]] %s7555_s7 }
   0x8   :  { %7604 = sst [smem:[#allocation52_spill]] %s7556_s8 }
   0x9   :  { %7605 = sst [smem:[#allocation53_spill]] %s7557_s9 }
   0xa   :  { %7606 = sst [smem:[#allocation54_spill]] %s7558_s10 }
   0xb   :  { %7607 = sst [smem:[#allocation55_spill]] %s7560_s12 }
   0xc   :  { %7608 = sst [smem:[#allocation56_spill]] %s7561_s13 }
   0xd   :  { %7609 = sst [smem:[#allocation57_spill]] %s7562_s14 }
   0xe   :  { %7610 = sst [smem:[#allocation58_spill]] %s7563_s15 }
   0xf   :  { %20 = vsyncpa [#allocation4], 0 }
  0x10   :  { %21 = vsyncpa [#allocation7], 0 }
  0x11   :  { %22 = vsyncpa [#allocation10], 0 }
  0x12   :  { %23 = vsyncpa [#allocation13], 0 }
  0x13   :  { %25 = vsyncpa [#allocation13 + $0x1], 0 }
  0x14   :  { %26 = vsyncpa [#allocation16], 0 }
  0x15   :  { %28 = vsyncpa [#allocation16 + $0x1], 0 }
  0x16   :  { %29 = vsyncpa [#allocation19], 0 }
  0x17   :  { %31 = vsyncpa [#allocation19 + $0x1], 0 }
  0x18   :  { %32 = vsyncpa [#allocation22], 0 }
  0x19   :  { %34 = vsyncpa [#allocation22 + $0x1], 0 }
  0x1a   :  { %35 = vsyncpa [#allocation25], 0 }
  0x1b   :  { %36 = vsyncpa [#allocation5], 0  ;;  %s6391_s18 = smov 0   ;;  %s6393_s19 = smov 0  }
  0x1c   :  { %s6395_s20 = smov 0   ;;  %s6397_s21 = smov 0  }
  0x1d   :  { %s6399_s22 = smov 0   ;;  %s6401_s23 = smov 0  }
  0x1e LB: > { %7611 = sst [smem:[#allocation37_spill]] %s6258_s19  ;;  %s6422_s24 = sadd.s32 4294967295, %s6274_s23   ;;  %s6274_s23 = sphi %s6401_s23, %s42_s23   ;;  %s6270_s22 = sphi %s6399_s22, %s7674_s22   ;;  %s6266_s21 = sphi %s6397_s21, %s7673_s21   ;;  %s6262_s20 = sphi %s6395_s20, %s7671_s20   ;;  %s6258_s19 = sphi %s6393_s19, %s7670_s19   ;;  %s6254_s18 = sphi %s6391_s18, %s7669_s18  }
  0x1f   : > { %7612 = sst [smem:[#allocation38_spill]] %s6262_s20  ;;  %p4701_p0 = scmp.ge.s32.totalorder %s6274_s23, 1 }
  0x20   : > { %7613 = sst [smem:[#allocation39_spill]] %s6266_s21  ;;  %p7577_p1 = scmp.eq.s32.totalorder %s6422_s24, 0 }
  0x21   : > { %7614 = sst [smem:[#allocation40_spill]] %s6274_s23  ;;  %p455_p2 = scmp.lt.s32.totalorder %s6274_s23, 3 }
  0x22   : > { %s6276_s26 = smov [#allocation6]   ;;  %s6277_s28 = smov [#allocation9]  }
  0x23   : > { %p6427_p3 = pnand %p4701_p0, %p455_p2  ;;  %s486_s27 = sshll.u32 %s6276_s26, 4  ;;  %s6431_s27 = int_to_ptr.vmem [resolvable:$true] %s486_s27 }
  0x24   : > { %s515_s29 = sshll.u32 %s6277_s28, 4  ;;  %s6278_s16 = smov [#allocation24]   ;;  %s6441_s29 = int_to_ptr.vmem [resolvable:$true] %s515_s29 }
  0x25   : > { %s7615_s25 = scalar_select %p6427_p3, 1, 0 }
  0x26   : > { %p5393_p4 = pneg %p6427_p3  ;;  %s539_s17 = sshll.u32 %s6278_s16, 4  ;;  %s6443_s17 = int_to_ptr.vmem [resolvable:$true] %s539_s17 }
  0x27   : > { %7616 = sst [smem:[#allocation41_spill]] %s7615_s25  ;;  %s7618_s1 = sld [smem:[#allocation46_spill]] }
  0x28   : > { %p6437_p5 = pnand %p5393_p4, %p7577_p1 }
  0x2a   : > { %s7617_s30 = scalar_select %p6437_p5, 1, 0 }
  0x2b   : > { %p6453_p7 = pneg %p6437_p5 }
  0x2d   : > { %s5730_s21 = scalar_lea.hbm %s7618_s1, 128 }
  0x2e   : > { %p5731_p6 = scmp.ne.s32.totalorder %s7618_s1, %s5730_s21  ;;  %p5737_p10 = scmp.lt.u32.totalorder %s5730_s21, %s7618_s1 }
  0x2f   : > { %s7619_s28 = scalar_select %p6453_p7, 1, 0 }
  0x30   : > { %p5733_p8 = pnand %p6453_p7, %p5731_p6 }
  0x32   : > { %p5734_p9 = pneg %p5733_p8 }
  0x34   : > { %p5739_p11 = pnand %p5737_p10, %p5734_p9 }
  0x36   : > { %5742 = shalt.err (!%p5739_p11)
}
  0x37   : > { %s5743_s12 = scalar_lea.vmem %s6431_s27, 128  ;;  %p5751_p2 = scmp.lt.s32.totalorder %s6431_s27, %s6431_s27 }
  0x38   : > { %p5744_p12 = scmp.ne.s32.totalorder %s6431_s27, %s5743_s12  ;;  %p5752_p4 = scmp.lt.s32.totalorder %s5743_s12, %s5743_s12 }
  0x3a   : > { %p5746_p13 = pnand %p5744_p12, %p6453_p7  ;;  %p5753_p6 = por %p5752_p4, %p5751_p2 }
  0x3c   : > { %p5747_p0 = pneg %p5746_p13 }
  0x3e   : > { %p5754_p8 = pnand %p5753_p6, %p5747_p0 }
  0x40   : > { %5757 = shalt.err (!%p5754_p8)
}
  0x41   : > { %s7572_s15 = smov 64   ;;  %s7574_s10 = smov 4  }
  0x42   : > { %5399 = dma.hbm_to_vmem [thread:$0]  (!%p6437_p5), %s7618_s1, 128, %s6431_s27, [#allocation7], %s7572_s15, %s7572_s15, %s7574_s10  }
  0x43   : > { %s7620_s3 = sld [smem:[#allocation47_spill]] }
  0x49   : > { %s5758_s12 = scalar_lea.hbm %s7620_s3, 128 }
  0x4a   : > { %p5759_p9 = scmp.ne.s32.totalorder %s7620_s3, %s5758_s12  ;;  %p5765_p12 = scmp.lt.u32.totalorder %s5758_s12, %s7620_s3 }
  0x4c   : > { %p5761_p10 = pnand %p5759_p9, %p6453_p7 }
  0x4e   : > { %p5762_p11 = pneg %p5761_p10 }
  0x50   : > { %p5767_p13 = pnand %p5765_p12, %p5762_p11 }
  0x52   : > { %5770 = shalt.err (!%p5767_p13)
}
  0x53   : > { %s5771_s27 = scalar_lea.vmem %s6441_s29, 128  ;;  %p5779_p6 = scmp.lt.s32.totalorder %s6441_s29, %s6441_s29 }
  0x54   : > { %p5772_p0 = scmp.ne.s32.totalorder %s6441_s29, %s5771_s27  ;;  %p5780_p8 = scmp.lt.s32.totalorder %s5771_s27, %s5771_s27 }
  0x56   : > { %p5774_p2 = pnand %p5772_p0, %p6453_p7  ;;  %p5781_p9 = por %p5780_p8, %p5779_p6 }
  0x58   : > { %p5775_p4 = pneg %p5774_p2 }
  0x5a   : > { %p5782_p10 = pnand %p5781_p9, %p5775_p4 }
  0x5c   : > { %5785 = shalt.err (!%p5782_p10)
}
  0x5d   : > { %5405 = dma.hbm_to_vmem [thread:$0]  (!%p6437_p5), %s7620_s3, 128, %s6441_s29, [#allocation10], %s7572_s15, %s7572_s15, %s7574_s10  }
  0x5e   : > { %s7621_s13 = sld [smem:[#allocation56_spill]] }
  0x64   : > { %s5786_s21 = scalar_lea.hbm %s7621_s13, 256 }
  0x65   : > { %p5787_p11 = scmp.ne.s32.totalorder %s7621_s13, %s5786_s21  ;;  %p5793_p0 = scmp.lt.u32.totalorder %s5786_s21, %s7621_s13 }
  0x67   : > { %p5789_p12 = pnand %p5787_p11, %p6453_p7 }
  0x69   : > { %p5790_p13 = pneg %p5789_p12 }
  0x6b   : > { %p5795_p2 = pnand %p5793_p0, %p5790_p13 }
  0x6d   : > { %5798 = shalt.err (!%p5795_p2)
}
  0x6e   : > { %s5799_s29 = scalar_lea.vmem %s6443_s17, 256  ;;  %p5807_p9 = scmp.lt.s32.totalorder %s6443_s17, %s6443_s17 }
  0x6f   : > { %p5800_p4 = scmp.ne.s32.totalorder %s6443_s17, %s5799_s29  ;;  %p5808_p10 = scmp.lt.s32.totalorder %s5799_s29, %s5799_s29 }
  0x71   : > { %p5802_p6 = pnand %p5800_p4, %p6453_p7  ;;  %p5809_p11 = por %p5808_p10, %p5807_p9 }
  0x73   : > { %p5803_p8 = pneg %p5802_p6 }
  0x75   : > { %p5810_p12 = pnand %p5809_p11, %p5803_p8 }
  0x77   : > { %5813 = shalt.err (!%p5810_p12)
}
  0x78   : > { %5411 = dma.hbm_to_vmem [thread:$0]  (!%p6437_p5), %s7621_s13, 256, %s6443_s17, [#allocation25], %s7572_s15, %s7572_s15, %s7574_s10  }
  0x79   : > { %s51_s6 = sadd.s32 1, %s6270_s22  ;;  %s181_s8 = sadd.s32 1, %s6262_s20 }
  0x7a   : > { %p52_p13 = scmp.ge.s32.totalorder %s51_s6, 2  ;;  %p188_p0 = scmp.ne.s32.totalorder %s6262_s20, %s6258_s19 }
  0x7b   : > { %p189_p2 = scmp.eq.s32.totalorder %s6274_s23, 0  ;;  %p194_p6 = scmp.ne.s32.totalorder %s6258_s19, %s6254_s18 }
  0x7c   : > { %s7676_s6 = smov (%p52_p13, %s51_s6), 0  ;;  %p5447_p8 = scmp.lt.s32.totalorder %s6274_s23, 2 }
  0x7d   : > { %7622 = sst [smem:[#allocation42_spill]] %s7676_s6  ;;  %p6536_p4 = por %p189_p2, %p188_p0 }
  0x7e   : > { %s178_s21 = ssub.s32 %s6270_s22, %s7676_s6  ;;  %p6547_p10 = por %p7577_p1, %p194_p6 }
  0x7f   : > { %p179_p9 = scmp.eq.s32.totalorder %s178_s21, 0  ;;  %s6552_s25 = sand.u32 1, %s6274_s23  }
  0x80   : > { %s7624_s17 = scalar_select %p6547_p10, 1, 0 }
  0x81   : > { %s6555_s26 = sand.u32 1, %s6262_s20   ;;  %s6564_s18 = sshll.u32 %s6270_s22, 8 }
  0x82   : > { %7625 = sst [smem:[#allocation43_spill]] %s7624_s17  ;;  %s6561_s12 = sshll.u32 %s6555_s26, 4 }
  0x83   : > { %s6558_s16 = scalar_select %p179_p9, %s6262_s20, %s181_s8  }
  0x84   : > { %s7627_s5 = sld [smem:[#allocation49_spill]]  ;;  %s568_s21 = scalar_lea.vmem [#allocation12], %s6561_s12 }
  0x85   : > { %7626 = sst [smem:[#allocation44_spill]] %s6558_s16  ;;  %s575_s15 = sshll.u32 %s568_s21, 4  ;;  %s6573_s15 = int_to_ptr.vmem [resolvable:$true] %s575_s15 }
  0x86   : > { %p6577_p11 = pnand %p5447_p8, %p6536_p4  ;;  %s7629_s7 = sld [smem:[#allocation51_spill]] }
  0x88   : > { %s7628_s8 = scalar_select %p6577_p11, 1, 0 }
  0x89   : > { %p6592_p13 = pneg %p6577_p11 }
  0x8a   : > { %s6570_s4 = scalar_lea.hbm %s7627_s5, %s6564_s18  ;;  %s5819_s6 = scalar_lea.hbm %s7627_s5, 512 }
  0x8b   : > { %s5814_s3 = scalar_lea.hbm %s6570_s4, 256  ;;  %p5820_p4 = scmp.lt.u32.totalorder %s6570_s4, %s7627_s5 }
  0x8c   : > { %s6585_s29 = scalar_lea.hbm %s7629_s7, %s6564_s18  ;;  %p5815_p12 = scmp.ne.s32.totalorder %s6570_s4, %s5814_s3 }
  0x8d   : > { %s7630_s13 = scalar_select %p6592_p13, 1, 0 }
  0x8e   : > { %p5817_p0 = pnand %p6592_p13, %p5815_p12  ;;  %p5821_p6 = scmp.lt.u32.totalorder %s5819_s6, %s5814_s3 }
  0x8f   : > { %p5823_p9 = scmp.lt.u32.totalorder %s5814_s3, %s6570_s4 }
  0x90   : > { %p5818_p2 = pneg %p5817_p0  ;;  %p5822_p8 = por %p5821_p6, %p5820_p4 }
  0x92   : > { %p5824_p1 = por %p5823_p9, %p5822_p8 }
  0x94   : > { %p5825_p10 = pnand %p5824_p1, %p5818_p2 }
  0x96   : > { %5828 = shalt.err (!%p5825_p10)
}
  0x97   : > { %s5829_s27 = scalar_lea.vmem %s6573_s15, 256  ;;  %s6281_s14 = smov [#allocation12]  }
  0x98   : > { %p5830_p12 = scmp.ne.s32.totalorder %s6573_s15, %s5829_s27  ;;  %s5834_s21 = sshll.u32 %s6281_s14, 4  ;;  %s5835_s21 = int_to_ptr.vmem [resolvable:$false] %s5834_s21 }
  0x99   : > { %s5836_s1 = scalar_lea.vmem %s5835_s21, 512  ;;  %p5837_p5 = scmp.lt.s32.totalorder %s6573_s15, %s5835_s21 }
  0x9a   : > { %p5832_p0 = pnand %p5830_p12, %p6592_p13  ;;  %p5838_p7 = scmp.lt.s32.totalorder %s5836_s1, %s5829_s27 }
  0x9c   : > { %p5833_p3 = pneg %p5832_p0  ;;  %p5839_p4 = por %p5838_p7, %p5837_p5 }
  0x9e   : > { %p5840_p6 = pnand %p5839_p4, %p5833_p3 }
  0xa0   : > { %5843 = shalt.err (!%p5840_p6)
}
  0xa1   : > { %s7631_s3 = smov 4   ;;  %s7632_s6 = smov 64  }
  0xa2   : > { %s7633_s10 = scalar_lea.sflag [#allocation13], %s6552_s25  ;;  %s610_s27 = scalar_lea.vmem [#allocation15], %s6561_s12 }
  0xa3   : > { %5418 = dma.hbm_to_vmem [thread:$0]  (!%p6577_p11), %s6570_s4, 256, %s6573_s15, %s7633_s10, %s7632_s6, %s7632_s6, %s7631_s3  }
  0xa4   : > { %s617_s14 = sshll.u32 %s610_s27, 4  ;;  %s4722_s21 = sshll.u32 %s6555_s26, 8  ;;  %s6621_s14 = int_to_ptr.vmem [resolvable:$true] %s617_s14 }
  0xa5   : > { %s7590_s1 = scalar_lea.sflag [#allocation16], %s6552_s25  ;;  %s5844_s5 = scalar_lea.hbm %s6585_s29, 256 }
  0xa6   : > { %p5845_p1 = scmp.ne.s32.totalorder %s6585_s29, %s5844_s5  ;;  %s5849_s23 = scalar_lea.hbm %s7629_s7, 512 }
  0xa7   : > { %p5850_p7 = scmp.lt.u32.totalorder %s6585_s29, %s7629_s7  ;;  %p5851_p10 = scmp.lt.u32.totalorder %s5849_s23, %s5844_s5 }
  0xa8   : > { %p5847_p3 = pnand %p5845_p1, %p6592_p13  ;;  %p5853_p8 = scmp.lt.u32.totalorder %s5844_s5, %s6585_s29 }
  0xa9   : > { %p5852_p2 = por %p5851_p10, %p5850_p7 }
  0xaa   : > { %p5848_p5 = pneg %p5847_p3 }
  0xab   : > { %p5854_p9 = por %p5853_p8, %p5852_p2 }
  0xad   : > { %p5855_p12 = pnand %p5854_p9, %p5848_p5 }
  0xaf   : > { %5858 = shalt.err (!%p5855_p12)
}
  0xb0   : > { %s5859_s15 = scalar_lea.vmem %s6621_s14, 256  ;;  %s6282_s20 = smov [#allocation15]  }
  0xb1   : > { %p5860_p0 = scmp.ne.s32.totalorder %s6621_s14, %s5859_s15  ;;  %s5864_s16 = sshll.u32 %s6282_s20, 4  ;;  %s5865_s16 = int_to_ptr.vmem [resolvable:$false] %s5864_s16 }
  0xb2   : > { %s5866_s19 = scalar_lea.vmem %s5865_s16, 512  ;;  %p5867_p1 = scmp.lt.s32.totalorder %s6621_s14, %s5865_s16 }
  0xb3   : > { %p5862_p4 = pnand %p5860_p0, %p6592_p13  ;;  %p5868_p3 = scmp.lt.s32.totalorder %s5866_s19, %s5859_s15 }
  0xb5   : > { %p5863_p6 = pneg %p5862_p4  ;;  %p5869_p7 = por %p5868_p3, %p5867_p1 }
  0xb7   : > { %p5870_p10 = pnand %p5869_p7, %p5863_p6 }
  0xb9   : > { %5873 = shalt.err (!%p5870_p10)
}
  0xba   : > { %5424 = dma.hbm_to_vmem [thread:$0]  (!%p6577_p11), %s6585_s29, 256, %s6621_s14, %s7590_s1, %s7632_s6, %s7632_s6, %s7631_s3  }
  0xbb   : > { %s4966_s5 = sshll.u32 %s6270_s22, 12  ;;  %s7634_s9 = sld [smem:[#allocation53_spill]] }
  0xbc   : > { %s652_s10 = scalar_lea.vmem [#allocation18], %s4722_s21  ;;  %s7589_s15 = scalar_lea.sflag [#allocation19], %s6552_s25 }
  0xbd   : > { %s659_s27 = sshll.u32 %s652_s10, 4  ;;  %s6659_s27 = int_to_ptr.vmem [resolvable:$true] %s659_s27 }
  0xc1   : > { %s6655_s4 = scalar_lea.hbm %s7634_s9, %s4966_s5  ;;  %s5879_s16 = scalar_lea.hbm %s7634_s9, 8192 }
  0xc2   : > { %s5874_s20 = scalar_lea.hbm %s6655_s4, 4096  ;;  %p5880_p9 = scmp.lt.u32.totalorder %s6655_s4, %s7634_s9 }
  0xc3   : > { %p5875_p5 = scmp.ne.s32.totalorder %s6655_s4, %s5874_s20  ;;  %p5881_p12 = scmp.lt.u32.totalorder %s5879_s16, %s5874_s20 }
  0xc4   : > { %p5883_p4 = scmp.lt.u32.totalorder %s5874_s20, %s6655_s4 }
  0xc5   : > { %p5877_p2 = pnand %p5875_p5, %p6592_p13  ;;  %p5882_p0 = por %p5881_p12, %p5880_p9 }
  0xc7   : > { %p5878_p8 = pneg %p5877_p2  ;;  %p5884_p6 = por %p5883_p4, %p5882_p0 }
  0xc9   : > { %p5885_p1 = pnand %p5884_p6, %p5878_p8 }
  0xcb   : > { %5888 = shalt.err (!%p5885_p1)
}
  0xcc   : > { %s5889_s21 = scalar_lea.vmem %s6659_s27, 4096  ;;  %s6283_s23 = smov [#allocation18]  }
  0xcd   : > { %p5890_p3 = scmp.ne.s32.totalorder %s6659_s27, %s5889_s21  ;;  %s5894_s17 = sshll.u32 %s6283_s23, 4  ;;  %s5895_s17 = int_to_ptr.vmem [resolvable:$false] %s5894_s17 }
  0xce   : > { %s5896_s10 = scalar_lea.vmem %s5895_s17, 8192  ;;  %p5897_p5 = scmp.lt.s32.totalorder %s6659_s27, %s5895_s17 }
  0xcf   : > { %p5892_p7 = pnand %p5890_p3, %p6592_p13  ;;  %p5898_p2 = scmp.lt.s32.totalorder %s5896_s10, %s5889_s21 }
  0xd1   : > { %p5893_p10 = pneg %p5892_p7  ;;  %p5899_p9 = por %p5898_p2, %p5897_p5 }
  0xd3   : > { %p5900_p12 = pnand %p5899_p9, %p5893_p10 }
  0xd5   : > { %5903 = shalt.err (!%p5900_p12)
}
  0xd6   : > { %s6284_s20 = smov 1024   ;;  %s6690_s16 = scalar_lea.hbm %s7559_s11, %s6564_s18 }
  0xd7   : > { %5430 = dma.hbm_to_vmem [thread:$0]  (!%p6577_p11), %s6655_s4, 4096, %s6659_s27, %s7589_s15, %s6284_s20, %s6284_s20, %s7632_s6  }
  0xd8   : > { %s694_s19 = scalar_lea.vmem [#allocation21], %s6561_s12  ;;  %s7595_s21 = scalar_lea.sflag [#allocation22], %s6552_s25 }
  0xd9   : > { %s701_s5 = sshll.u32 %s694_s19, 4  ;;  %s5904_s23 = scalar_lea.hbm %s6690_s16, 256  ;;  %s6693_s5 = int_to_ptr.vmem [resolvable:$true] %s701_s5 }
  0xda   : > { %p5905_p8 = scmp.ne.s32.totalorder %s6690_s16, %s5904_s23  ;;  %s5909_s17 = scalar_lea.hbm %s7559_s11, 512 }
  0xdb   : > { %p5910_p6 = scmp.lt.u32.totalorder %s6690_s16, %s7559_s11  ;;  %p5911_p1 = scmp.lt.u32.totalorder %s5909_s17, %s5904_s23 }
  0xdc   : > { %p5907_p0 = pnand %p5905_p8, %p6592_p13  ;;  %p5913_p7 = scmp.lt.u32.totalorder %s5904_s23, %s6690_s16 }
  0xdd   : > { %p5912_p3 = por %p5911_p1, %p5910_p6 }
  0xde   : > { %p5908_p4 = pneg %p5907_p0 }
  0xdf   : > { %p5914_p10 = por %p5913_p7, %p5912_p3 }
  0xe1   : > { %p5915_p5 = pnand %p5914_p10, %p5908_p4 }
  0xe3   : > { %5918 = shalt.err (!%p5915_p5)
}
  0xe4   : > { %s5919_s29 = scalar_lea.vmem %s6693_s5, 256  ;;  %s6285_s14 = smov [#allocation21]  }
  0xe5   : > { %p5920_p2 = scmp.ne.s32.totalorder %s6693_s5, %s5919_s29  ;;  %s5924_s19 = sshll.u32 %s6285_s14, 4  ;;  %s5925_s19 = int_to_ptr.vmem [resolvable:$false] %s5924_s19 }
  0xe6   : > { %s5926_s4 = scalar_lea.vmem %s5925_s19, 512  ;;  %p5927_p8 = scmp.lt.s32.totalorder %s6693_s5, %s5925_s19 }
  0xe7   : > { %p5922_p9 = pnand %p5920_p2, %p6592_p13  ;;  %p5928_p0 = scmp.lt.s32.totalorder %s5926_s4, %s5919_s29 }
  0xe9   : > { %p5923_p12 = pneg %p5922_p9  ;;  %p5929_p6 = por %p5928_p0, %p5927_p8 }
  0xeb   : > { %p5930_p1 = pnand %p5929_p6, %p5923_p12 }
  0xed   : > { %5933 = shalt.err (!%p5930_p1)
}
  0xee   : > { %s6286_s23 = smov 128   ;;  %s6287_s27 = smov 8  }
  0xef   : > { %5436 = dma.hbm_to_vmem [thread:$0]  (!%p6577_p11), %s6690_s16, 256, %s6693_s5, %s7595_s21, %s6286_s23, %s6286_s23, %s6287_s27  }
  0xf0   : > { %s6288_s17 = smov [#allocation3]   ;;  %s6289_s20 = smov [#allocation8]  }
  0xf1   : > { %s470_s10 = sshll.u32 %s6288_s17, 4  ;;  %s502_s29 = sshll.u32 %s6289_s20, 4  ;;  %s471_s10 = int_to_ptr.vmem [resolvable:$true] %s470_s10  ;;  %s503_s29 = int_to_ptr.vmem [resolvable:$true] %s502_s29 }
  0xf2   : > { %s7635_s0 = sld [smem:[#allocation45_spill]]  ;;  %p7636_p3 = scmp.ne.s32.totalorder %s7619_s28, 0 }
  0xf8   : > { %s5934_s4 = scalar_lea.hbm %s7635_s0, 128 }
  0xf9   : > { %p5935_p4 = scmp.ne.s32.totalorder %s7635_s0, %s5934_s4  ;;  %p5941_p5 = scmp.lt.u32.totalorder %s5934_s4, %s7635_s0 }
  0xfb   : > { %p5937_p7 = pnand %p5935_p4, %p7636_p3 }
  0xfd   : > { %p5938_p10 = pneg %p5937_p7 }
  0xff   : > { %p5943_p2 = pnand %p5941_p5, %p5938_p10 }
 0x101   : > { %5946 = shalt.err (!%p5943_p2)
}
 0x102   : > { %s5947_s16 = scalar_lea.vmem %s471_s10, 128  ;;  %p5955_p0 = scmp.lt.s32.totalorder %s471_s10, %s471_s10 }
 0x103   : > { %p5948_p9 = scmp.ne.s32.totalorder %s471_s10, %s5947_s16  ;;  %p5956_p6 = scmp.lt.s32.totalorder %s5947_s16, %s5947_s16 }
 0x105   : > { %p5950_p12 = pnand %p5948_p9, %p7636_p3  ;;  %p5957_p1 = por %p5956_p6, %p5955_p0 }
 0x107   : > { %p5951_p8 = pneg %p5950_p12 }
 0x109   : > { %p5958_p11 = pnand %p5957_p1, %p5951_p8 }
 0x10b   : > { %5961 = shalt.err (!%p5958_p11)
}
 0x10c   : > { %p7637_p4 = scmp.ne.s32.totalorder %s7617_s30, 0  ;;  %s5962_s5 = scalar_lea.hbm %s7550_s2, 256 }
 0x10d   : > { %p5963_p7 = scmp.ne.s32.totalorder %s7550_s2, %s5962_s5  ;;  %p5969_p5 = scmp.lt.u32.totalorder %s5962_s5, %s7550_s2 }
 0x10e   : > { %5396 = dma.hbm_to_vmem [thread:$0]  (!%p7637_p4), %s7635_s0, 128, %s471_s10, [#allocation4], %s7632_s6, %s7632_s6, %s7631_s3  }
 0x10f   : > { %p5965_p11 = pnand %p5963_p7, %p7636_p3 }
 0x111   : > { %p5966_p10 = pneg %p5965_p11 }
 0x113   : > { %p5971_p2 = pnand %p5969_p5, %p5966_p10 }
 0x115   : > { %5974 = shalt.err (!%p5971_p2)
}
 0x116   : > { %s5975_s4 = scalar_lea.vmem %s503_s29, 256  ;;  %p5983_p0 = scmp.lt.s32.totalorder %s503_s29, %s503_s29 }
 0x117   : > { %p5976_p9 = scmp.ne.s32.totalorder %s503_s29, %s5975_s4  ;;  %p5984_p6 = scmp.lt.s32.totalorder %s5975_s4, %s5975_s4 }
 0x119   : > { %p5978_p12 = pnand %p5976_p9, %p7636_p3  ;;  %p5985_p1 = por %p5984_p6, %p5983_p0 }
 0x11b   : > { %p5979_p8 = pneg %p5978_p12 }
 0x11d   : > { %p5986_p13 = pnand %p5985_p1, %p5979_p8 }
 0x11f   : > { %5989 = shalt.err (!%p5986_p13)
}
 0x120   : > { %5402 = dma.hbm_to_vmem [thread:$0]  (!%p7637_p4), %s7550_s2, 256, %s503_s29, [#allocation7], %s6286_s23, %s6286_s23, %s6287_s27  }
 0x121   : > { %s6290_s7 = smov [#allocation11]   ;;  %s6291_s1 = smov [#allocation26]  }
 0x122   : > { %s529_s9 = sshll.u32 %s6290_s7, 4  ;;  %s553_s15 = sshll.u32 %s6291_s1, 4  ;;  %s530_s9 = int_to_ptr.vmem [resolvable:$true] %s529_s9  ;;  %s554_s15 = int_to_ptr.vmem [resolvable:$true] %s553_s15 }
 0x123   : > { %s7638_s20 = sld [smem:[#allocation48_spill]] }
 0x129   : > { %s7639_s14 = smov %s7638_s20  ;;  %s5990_s19 = scalar_lea.hbm %s7638_s20, 64 }
 0x12a   : > { %p5991_p13 = scmp.ne.s32.totalorder %s7639_s14, %s5990_s19  ;;  %p5997_p10 = scmp.lt.u32.totalorder %s5990_s19, %s7639_s14 }
 0x12c   : > { %p5993_p7 = pnand %p5991_p13, %p7636_p3 }
 0x12e   : > { %p5994_p11 = pneg %p5993_p7 }
 0x130   : > { %p5999_p5 = pnand %p5997_p10, %p5994_p11 }
 0x132   : > { %6002 = shalt.err (!%p5999_p5)
}
 0x133   : > { %s6003_s23 = scalar_lea.vmem %s530_s9, 64  ;;  %p6011_p8 = scmp.lt.s32.totalorder %s530_s9, %s530_s9 }
 0x134   : > { %p6004_p2 = scmp.ne.s32.totalorder %s530_s9, %s6003_s23  ;;  %p6012_p0 = scmp.lt.s32.totalorder %s6003_s23, %s6003_s23 }
 0x136   : > { %p6006_p9 = pnand %p6004_p2, %p7636_p3  ;;  %p6013_p6 = por %p6012_p0, %p6011_p8 }
 0x138   : > { %p6007_p12 = pneg %p6006_p9 }
 0x13a   : > { %p6014_p1 = pnand %p6013_p6, %p6007_p12 }
 0x13c   : > { %6017 = shalt.err (!%p6014_p1)
}
 0x13d   : > { %5408 = dma.hbm_to_vmem [thread:$0]  (!%p7637_p4), %s7639_s14, 64, %s530_s9, [#allocation10]  }
 0x13e   : > { %s7640_s16 = sld [smem:[#allocation57_spill]] }
 0x144   : > { %s6018_s7 = scalar_lea.hbm %s7640_s16, 16 }
 0x145   : > { %p6019_p13 = scmp.ne.s32.totalorder %s7640_s16, %s6018_s7  ;;  %p6025_p10 = scmp.lt.u32.totalorder %s6018_s7, %s7640_s16 }
 0x147   : > { %p6021_p7 = pnand %p6019_p13, %p7636_p3 }
 0x149   : > { %p6022_p11 = pneg %p6021_p7 }
 0x14b   : > { %p6027_p5 = pnand %p6025_p10, %p6022_p11 }
 0x14d   : > { %6030 = shalt.err (!%p6027_p5)
}
 0x14e   : > { %s6031_s19 = scalar_lea.vmem %s554_s15, 16  ;;  %s6038_s9 = scalar_lea.vmem %s554_s15, 32 }
 0x14f   : > { %p6032_p2 = scmp.ne.s32.totalorder %s554_s15, %s6031_s19  ;;  %p6039_p8 = scmp.lt.s32.totalorder %s554_s15, %s554_s15 }
 0x150   : > { %p6040_p0 = scmp.lt.s32.totalorder %s6038_s9, %s6031_s19 }
 0x151   : > { %p6034_p9 = pnand %p6032_p2, %p7636_p3 }
 0x152   : > { %p6041_p6 = por %p6040_p0, %p6039_p8 }
 0x153   : > { %p6035_p12 = pneg %p6034_p9 }
 0x155   : > { %p6042_p1 = pnand %p6041_p6, %p6035_p12 }
 0x157   : > { %6045 = shalt.err (!%p6042_p1)
}
 0x158   : > { %5414 = dma.hbm_to_vmem [thread:$0]  (!%p7637_p4), %s7640_s16, 16, %s554_s15, [#allocation25]  }
 0x159   : > { %s7641_s28 = sld [smem:[#allocation50_spill]]  ;;  %s589_s0 = scalar_lea.vmem [#allocation14], %s6561_s12 }
 0x15a   : > { %s596_s29 = sshll.u32 %s589_s0, 4  ;;  %p7642_p13 = scmp.ne.s32.totalorder %s7630_s13, 0  ;;  %s6807_s29 = int_to_ptr.vmem [resolvable:$true] %s596_s29 }
 0x15f   : > { %s6804_s27 = scalar_lea.hbm %s7641_s28, %s6564_s18  ;;  %s6051_s1 = scalar_lea.hbm %s7641_s28, 512 }
 0x160   : > { %s6046_s30 = scalar_lea.hbm %s6804_s27, 256  ;;  %p6052_p4 = scmp.lt.u32.totalorder %s6804_s27, %s7641_s28 }
 0x161   : > { %p6047_p3 = scmp.ne.s32.totalorder %s6804_s27, %s6046_s30  ;;  %p6053_p10 = scmp.lt.u32.totalorder %s6051_s1, %s6046_s30 }
 0x162   : > { %p6055_p2 = scmp.lt.u32.totalorder %s6046_s30, %s6804_s27 }
 0x163   : > { %p6049_p7 = pnand %p6047_p3, %p7642_p13  ;;  %p6054_p5 = por %p6053_p10, %p6052_p4 }
 0x165   : > { %p6050_p11 = pneg %p6049_p7  ;;  %p6056_p9 = por %p6055_p2, %p6054_p5 }
 0x167   : > { %p6057_p12 = pnand %p6056_p9, %p6050_p11 }
 0x169   : > { %6060 = shalt.err (!%p6057_p12)
}
 0x16a   : > { %s6061_s20 = scalar_lea.vmem %s6807_s29, 256  ;;  %s6292_s19 = smov [#allocation14]  }
 0x16b   : > { %p6062_p8 = scmp.ne.s32.totalorder %s6807_s29, %s6061_s20  ;;  %s6066_s9 = sshll.u32 %s6292_s19, 4  ;;  %s6067_s9 = int_to_ptr.vmem [resolvable:$false] %s6066_s9 }
 0x16c   : > { %s6068_s4 = scalar_lea.vmem %s6067_s9, 512  ;;  %p6069_p1 = scmp.lt.s32.totalorder %s6807_s29, %s6067_s9 }
 0x16d   : > { %p6064_p0 = pnand %p6062_p8, %p7642_p13  ;;  %p6070_p3 = scmp.lt.s32.totalorder %s6068_s4, %s6061_s20 }
 0x16f   : > { %p6065_p6 = pneg %p6064_p0  ;;  %p6071_p7 = por %p6070_p3, %p6069_p1 }
 0x171   : > { %p6072_p4 = pnand %p6071_p7, %p6065_p6 }
 0x173   : > { %6075 = shalt.err (!%p6072_p4)
}
 0x174   : > { %p7643_p11 = scmp.ne.s32.totalorder %s7628_s8, 0  ;;  %s7644_s10 = scalar_lea.sflag [#allocation13], %s6552_s25 }
 0x175   : > { %s7645_s0 = sld [smem:[#allocation52_spill]]  ;;  %s631_s7 = scalar_lea.vmem [#allocation17], %s6561_s12 }
 0x176   : > { %5421 = dma.hbm_to_vmem [thread:$0]  (!%p7643_p11), %s6804_s27, 256, %s6807_s29, %s7644_s10, %s7632_s6, %s7632_s6, %s7631_s3  }
 0x177   : > { %s638_s15 = sshll.u32 %s631_s7, 4  ;;  %s4725_s1 = sshll.u32 %s6555_s26, 10  ;;  %s6842_s15 = int_to_ptr.vmem [resolvable:$true] %s638_s15 }
 0x17b   : > { %s6839_s30 = scalar_lea.hbm %s7645_s0, %s6564_s18  ;;  %s6081_s17 = scalar_lea.hbm %s7645_s0, 512 }
 0x17c   : > { %s6076_s5 = scalar_lea.hbm %s6839_s30, 256  ;;  %p6082_p9 = scmp.lt.u32.totalorder %s6839_s30, %s7645_s0 }
 0x17d   : > { %p6077_p10 = scmp.ne.s32.totalorder %s6839_s30, %s6076_s5  ;;  %p6083_p12 = scmp.lt.u32.totalorder %s6081_s17, %s6076_s5 }
 0x17e   : > { %p6085_p0 = scmp.lt.u32.totalorder %s6076_s5, %s6839_s30 }
 0x17f   : > { %p6079_p5 = pnand %p6077_p10, %p7642_p13  ;;  %p6084_p8 = por %p6083_p12, %p6082_p9 }
 0x181   : > { %p6080_p2 = pneg %p6079_p5  ;;  %p6086_p6 = por %p6085_p0, %p6084_p8 }
 0x183   : > { %p6087_p1 = pnand %p6086_p6, %p6080_p2 }
 0x185   : > { %6090 = shalt.err (!%p6087_p1)
}
 0x186   : > { %s6091_s9 = scalar_lea.vmem %s6842_s15, 256  ;;  %s6293_s4 = smov [#allocation17]  }
 0x187   : > { %p6092_p3 = scmp.ne.s32.totalorder %s6842_s15, %s6091_s9  ;;  %s6096_s10 = sshll.u32 %s6293_s4, 4  ;;  %s6097_s10 = int_to_ptr.vmem [resolvable:$false] %s6096_s10 }
 0x188   : > { %s6098_s23 = scalar_lea.vmem %s6097_s10, 512  ;;  %p6099_p10 = scmp.lt.s32.totalorder %s6842_s15, %s6097_s10 }
 0x189   : > { %p6094_p7 = pnand %p6092_p3, %p7642_p13  ;;  %p6100_p5 = scmp.lt.s32.totalorder %s6098_s23, %s6091_s9 }
 0x18b   : > { %p6095_p4 = pneg %p6094_p7  ;;  %p6101_p9 = por %p6100_p5, %p6099_p10 }
 0x18d   : > { %p6102_p12 = pnand %p6101_p9, %p6095_p4 }
 0x18f   : > { %6105 = shalt.err (!%p6102_p12)
}
 0x190   : > { %s7646_s21 = scalar_lea.sflag [#allocation16], %s6552_s25  ;;  %s4967_s7 = sshll.u32 %s6270_s22, 14 }
 0x191   : > { %5427 = dma.hbm_to_vmem [thread:$0]  (!%p7643_p11), %s6839_s30, 256, %s6842_s15, %s7646_s21, %s7632_s6, %s7632_s6, %s7631_s3  }
 0x192   : > { %s7647_s29 = sld [smem:[#allocation54_spill]]  ;;  %s673_s20 = scalar_lea.vmem [#allocation20], %s4725_s1 }
 0x193   : > { %s680_s19 = sshll.u32 %s673_s20, 4  ;;  %s6879_s19 = int_to_ptr.vmem [resolvable:$true] %s680_s19 }
 0x198   : > { %s6875_s17 = scalar_lea.hbm %s7647_s29, %s4967_s7  ;;  %s6111_s4 = scalar_lea.hbm %s7647_s29, 32768 }
 0x199   : > { %s6106_s9 = scalar_lea.hbm %s6875_s17, 16384  ;;  %p6112_p6 = scmp.lt.u32.totalorder %s6875_s17, %s7647_s29 }
 0x19a   : > { %p6107_p2 = scmp.ne.s32.totalorder %s6875_s17, %s6106_s9  ;;  %p6113_p1 = scmp.lt.u32.totalorder %s6111_s4, %s6106_s9 }
 0x19b   : > { %p6115_p7 = scmp.lt.u32.totalorder %s6106_s9, %s6875_s17 }
 0x19c   : > { %p6109_p8 = pnand %p6107_p2, %p7642_p13  ;;  %p6114_p3 = por %p6113_p1, %p6112_p6 }
 0x19e   : > { %p6110_p0 = pneg %p6109_p8  ;;  %p6116_p4 = por %p6115_p7, %p6114_p3 }
 0x1a0   : > { %p6117_p10 = pnand %p6116_p4, %p6110_p0 }
 0x1a2   : > { %6120 = shalt.err (!%p6117_p10)
}
 0x1a3   : > { %s6121_s26 = scalar_lea.vmem %s6879_s19, 16384  ;;  %s6294_s1 = smov [#allocation20]  }
 0x1a4   : > { %p6122_p5 = scmp.ne.s32.totalorder %s6879_s19, %s6121_s26  ;;  %s6126_s21 = sshll.u32 %s6294_s1, 4  ;;  %s6127_s21 = int_to_ptr.vmem [resolvable:$false] %s6126_s21 }
 0x1a5   : > { %s6128_s7 = scalar_lea.vmem %s6127_s21, 32768  ;;  %p6129_p2 = scmp.lt.s32.totalorder %s6879_s19, %s6127_s21 }
 0x1a6   : > { %p6124_p9 = pnand %p6122_p5, %p7642_p13  ;;  %p6130_p8 = scmp.lt.s32.totalorder %s6128_s7, %s6121_s26 }
 0x1a8   : > { %p6125_p12 = pneg %p6124_p9  ;;  %p6131_p6 = por %p6130_p8, %p6129_p2 }
 0x1aa   : > { %p6132_p1 = pnand %p6131_p6, %p6125_p12 }
 0x1ac   : > { %6135 = shalt.err (!%p6132_p1)
}
 0x1ad   : > { %s7648_s5 = scalar_lea.sflag [#allocation19], %s6552_s25  ;;  %s7649_s9 = sld [smem:[#allocation55_spill]] }
 0x1ae   : > { %5433 = dma.hbm_to_vmem [thread:$0]  (!%p7643_p11), %s6875_s17, 16384, %s6879_s19, %s7648_s5, %s7632_s6, %s7632_s6, %s7631_s3  }
 0x1af   : > { %s715_s15 = scalar_lea.vmem [#allocation23], %s6561_s12 }
 0x1b0   : > { %s723_s4 = sshll.u32 %s715_s15, 4  ;;  %s724_s4 = int_to_ptr.vmem [resolvable:$true] %s723_s4 }
 0x1b3   : > { %s6911_s30 = scalar_lea.hbm %s7649_s9, %s6564_s18  ;;  %s6141_s3 = scalar_lea.hbm %s7649_s9, 512 }
 0x1b4   : > { %s6136_s10 = scalar_lea.hbm %s6911_s30, 256  ;;  %p6142_p4 = scmp.lt.u32.totalorder %s6911_s30, %s7649_s9 }
 0x1b5   : > { %p6137_p0 = scmp.ne.s32.totalorder %s6911_s30, %s6136_s10  ;;  %p6143_p10 = scmp.lt.u32.totalorder %s6141_s3, %s6136_s10 }
 0x1b6   : > { %p6145_p9 = scmp.lt.u32.totalorder %s6136_s10, %s6911_s30 }
 0x1b7   : > { %p6139_p3 = pnand %p6137_p0, %p7642_p13  ;;  %p6144_p5 = por %p6143_p10, %p6142_p4 }
 0x1b9   : > { %p6140_p7 = pneg %p6139_p3  ;;  %p6146_p12 = por %p6145_p9, %p6144_p5 }
 0x1bb   : > { %p6147_p2 = pnand %p6146_p12, %p6140_p7 }
 0x1bd   : > { %6150 = shalt.err (!%p6147_p2)
}
 0x1be   : > { %s6151_s12 = scalar_lea.vmem %s724_s4, 256  ;;  %s6295_s18 = smov [#allocation23]  }
 0x1bf   : > { %p6152_p8 = scmp.ne.s32.totalorder %s724_s4, %s6151_s12  ;;  %s6156_s19 = sshll.u32 %s6295_s18, 4  ;;  %s6157_s19 = int_to_ptr.vmem [resolvable:$false] %s6156_s19 }
 0x1c0   : > { %s6158_s1 = scalar_lea.vmem %s6157_s19, 512  ;;  %p6159_p0 = scmp.lt.s32.totalorder %s724_s4, %s6157_s19 }
 0x1c1   : > { %p6154_p6 = pnand %p6152_p8, %p7642_p13  ;;  %p6160_p3 = scmp.lt.s32.totalorder %s6158_s1, %s6151_s12 }
 0x1c3   : > { %p6155_p1 = pneg %p6154_p6  ;;  %p6161_p11 = por %p6160_p3, %p6159_p0 }
 0x1c5   : > { %p6162_p4 = pnand %p6161_p11, %p6155_p1 }
 0x1c7   : > { %6165 = shalt.err (!%p6162_p4)
}
 0x1c8   : > { %p7650_p10 = scmp.ne.s32.totalorder %s7628_s8, 0  ;;  %s7651_s21 = scalar_lea.sflag [#allocation22], %s6552_s25 }
 0x1c9   : > { %s7652_s7 = sld [smem:[#allocation41_spill]] }
 0x1ca   : > { %5439 = dma.hbm_to_vmem [thread:$0]  (!%p7650_p10), %s6911_s30, 256, %s724_s4, %s7651_s21  }
 0x1cf   : > { %p7653_p7 = scmp.ne.s32.totalorder %s7652_s7, 0 }
 0x1d0   : > { %p7654_p13 = scmp.eq.s32.totalorder (!%p7653_p7), %s6422_s24, 0 }
 0x1d1   : > { %732 = sbr.rel (%p7653_p7) target bundleno = 5093 (0x13e5), region = 80 }
 0x1d8   : > { %6217 = dma.done.wait (%p7654_p13), [#allocation4], 128   ;;  %p7655_p5 = pmov %p7654_p13 }
 0x1da   : > { %6219 = vsyncadd (%p7655_p5), [#allocation4], 4294967168  ;;  %p7656_p9 = pmov %p7655_p5 }
 0x1db   : > { %p7657_p11 = pmov %p7655_p5 }
 0x1dc   : > { %6221 = dma.done.wait (%p7656_p9), [#allocation7], 384  }
 0x1dd   : > { %6223 = vsyncadd (%p7657_p11), [#allocation7], 4294966912  ;;  %p7658_p12 = pmov %p7655_p5 }
 0x1de   : > { %p7659_p2 = pmov %p7655_p5 }
 0x1df   : > { %6225 = dma.done.wait (%p7658_p12), [#allocation10], 192  }
 0x1e0   : > { %6227 = vsyncadd (%p7659_p2), [#allocation10], 4294967104  ;;  %s7660_s13 = sld [smem:[#allocation37_spill]]  ;;  %s7661_s25 = sld [smem:[#allocation43_spill]] }
 0x1e1   : > { %s754_s8 = sand.u32 1, %s6422_s24  }
 0x1e2   : > { %s755_s20 = scalar_lea.sflag [#allocation13], %s754_s8 }
 0x1e6   : > { %s756_s5 = sand.u32 1, %s7660_s13   ;;  %p7662_p8 = scmp.ne.s32.totalorder %s7661_s25, 0 }
 0x1e7   : > { %s6949_s27 = sshll.u32 %s756_s5, 4 }
 0x1e8   : > { %s758_s30 = scalar_lea.vmem [#allocation12], %s6949_s27 }
 0x1e9   : > { %6229 = dma.done.wait (%p7662_p8), %s755_s20, 512  }
 0x1ea   : > { %6231 = vsyncadd (%p7662_p8), %s755_s20, 4294966784  ;;  %s767_s15 = scalar_lea.vmem [#allocation14], %s6949_s27  ;;  %s773_s4 = scalar_lea.sflag [#allocation16], %s754_s8 }
 0x1eb   : > { %s776_s10 = scalar_lea.vmem [#allocation15], %s6949_s27 }
 0x1ec   : > { %6233 = dma.done.wait (%p7662_p8), %s773_s4, 512  }
 0x1ed   : > { %6235 = vsyncadd (%p7662_p8), %s773_s4, 4294966784  ;;  %s4744_s23 = sshll.u32 %s756_s5, 8  ;;  %s785_s26 = scalar_lea.vmem [#allocation17], %s6949_s27 }
 0x1ee   : > { %s791_s3 = scalar_lea.sflag [#allocation19], %s754_s8  ;;  %s6963_s6 = scalar_lea.vmem [#allocation18], %s4744_s23 }
 0x1ef   : > { %6237 = dma.done.wait (%p7662_p8), %s791_s3, 20480  }
 0x1f0   : > { %6239 = vsyncadd (%p7662_p8), %s791_s3, 4294946816  ;;  %s4745_s17 = sshll.u32 %s756_s5, 10  ;;  %s809_s18 = scalar_lea.sflag [#allocation22], %s754_s8 }
 0x1f1   : > { %s6969_s12 = scalar_lea.vmem [#allocation20], %s4745_s17  ;;  %s812_s19 = scalar_lea.vmem [#allocation21], %s6949_s27 }
 0x1f2   : > { %6241 = dma.done.wait (%p7662_p8), %s809_s18, 512  }
 0x1f3   : > { %6243 = vsyncadd (%p7662_p8), %s809_s18, 4294966784  ;;  %s821_s1 = scalar_lea.vmem [#allocation23], %s6949_s27  ;;  %p7663_p6 = pmov %p7659_p2 }
 0x1f4   : > { %p7664_p1 = pmov %p7659_p2 }
 0x1f5   : > { %6245 = dma.done.wait (%p7663_p6), [#allocation25], 272  }
 0x1f6   : > { %6247 = vsyncadd (%p7664_p1), [#allocation25], 4294967024  ;;  %v6981_v0 = vld [vmem:[%s812_s19] sm:$0xff]  ;;  %v6983_v1 = vld [vmem:[%s812_s19 + $0x8] ss:$0 sm:$0xff]  ;;  %s7665_s21 = sld [smem:[#allocation39_spill]] }
 0x1f7   : > { %v6985_v2 = vld [vmem:[%s821_s1] sm:$0xff]  ;;  %v6987_v3 = vld [vmem:[%s821_s1 + $0x8] sm:$0xff] }
 0x1fc   : > { %p4750_p0 = scmp.ne.s32.totalorder %s7665_s21, 0 }
 0x1fd   : > { %v925_v4 = vld [vmem:[#allocation11] sm:$0xf] (!%p4750_p0)  ;;  %vm935_vm0 = vcmask (!%p4750_p0), 1043456   ;;  %v6296_v5 = vmov (!%p4750_p0), 0.0   ;;  %v5532_v7 = vld [vmem:[#allocation9] sm:$0xff] (!%p4750_p0)   ;;  %vm6297_vm1 = vmmov (!%p4750_p0), 0  }
 0x1fe   : > { %918 = sbr.rel (%p4750_p0) target bundleno = 734 (0x2de), region = 144  ;;  %5197 = vmatprep.subr.bf16.mxu0 (!%p4750_p0), %v6296_v5  ;;  %v937_v6 = vsel (!%p4750_p0), %vm935_vm0, %v925_v4, 0  ;;  %5203 = vmatprep.subr.bf16.mxu1 (!%p4750_p0), %v6296_v5  ;;  %v5533_v8 = vld [vmem:[#allocation6] sm:$0xff] (!%p4750_p0)   ;;  %vm931_vm2 = vcmask (!%p4750_p0), 64512   ;;  %v5534_v9 = vld [vmem:[#allocation3] sm:$0xff] (!%p4750_p0)   ;;  %vm991_vm3 = vcmask (!%p4750_p0), 130048  }
 0x1ff   : > { %5198 = vmatpush3.bf16.msra.mxu0 (!%p4750_p0), %v937_v6  ;;  %5199 = vmatprep.mubr.msk.bf16.mxu0 (!%p4750_p0), %vm6297_vm1, %v6296_v5  ;;  %v1036_v13 = vld [vmem:[#allocation8] sm:$0xff] (!%p4750_p0)  ;;  %vm1040_vm4 = vcmask (!%p4750_p0), 261120   ;;  %v1037_v19 = vld [vmem:[#allocation8 + $0x8] sm:$0xff] (!%p4750_p0) }
 0x200   : > { %5204 = vmatpush3.bf16.msra.mxu1 (!%p4750_p0), %v5532_v7  ;;  %5205 = vmatprep.mubr.msk.bf16.mxu1 (!%p4750_p0), %vm6297_vm1, %v6296_v5 }
 0x202   : > { %5200 = vmatmul.mubr.msk.bf16.vlgmr.msra.gmra.mrb[0].mxu0 (!%p4750_p0), %vm931_vm2, %v5533_v8 }
 0x203   : > { %5206 = vmatmul.mubr.msk.bf16.vlgmr.msra.gmra.mrb[0].mxu1 (!%p4750_p0), %vm991_vm3, %v5534_v9 }
 0x2d5   : > { %v973_v10 = vpop.f32.mrb[0].mxu0 }
 0x2d6   : > { %v5201_v11 = vpop.f32.mrb[1].mxu0  ;;  %v1029_v12 = vpop.f32.mrb[0].mxu1 }
 0x2d7   : > { %v1030_v14 = vadd.f32 %v1029_v12, %v973_v10  ;;  %v976_v15 = vpop.f32.mrb[2].mxu0  ;;  %v5207_v16 = vpop.f32.mrb[1].mxu1 }
 0x2d8   : > { %v5202_v17 = vpop.f32.mrb[3].mxu0  ;;  %v1032_v18 = vpop.f32.mrb[2].mxu1 }
 0x2d9   : > { %v1038_v20 = vadd.f32 %v1036_v13, %v1030_v14  ;;  %v1033_v21 = vadd.f32 %v1032_v18, %v976_v15  ;;  %v5208_v22 = vpop.f32.mrb[3].mxu1 }
 0x2db   : > { %1041 = vst.msk [vmem:[#allocation2] sm:$0xff] %vm1040_vm4, %v1038_v20  ;;  %v1039_v23 = vadd.f32 %v1037_v19, %v1033_v21 }
 0x2dd   : > { %1042 = vst.msk [vmem:[#allocation2 + $0x8] sm:$0xff] %vm1040_vm4, %v1039_v23 }
 0x2de PF: > { %v5550_v24 = vld [vmem:[%s767_s15] sm:$0xff]   ;;  %v6298_v25 = vmov 0.0   ;;  %v5551_v26 = vld [vmem:[%s767_s15 + $0x8] sm:$0xff]   ;;  %vm6299_vm5 = vmmov 0   ;;  %vm1066_vm6 = vcmask 261120   ;;  %v1050_v34 = vlaneseq  ;;  %s6300_s7 = smov 120  }
 0x2df   : > { %5217 = vmatprep.subr.bf16.mxu1 %v6298_v25  ;;  %5209 = vmatprep.subr.bf16.mxu0 %v6298_v25  ;;  %v5552_v27 = vld [vmem:[%s758_s30] sm:$0xff]   ;;  %v5553_v30 = vld [vmem:[%s758_s30 + $0x8] sm:$0xff]   ;;  %vm1239_vm7 = vcmask 64512   ;;  %vm1361_vm8 = vcmask 1043456   ;;  %s6301_s13 = smov 112   ;;  %s6302_s25 = smov 104  }
 0x2e0   : > { %5218 = vmatpush3.bf16.msra.mxu1 %v5550_v24  ;;  %5221 = vmatprep.mubr.msk.bf16.mxu1 %vm6299_vm5, %v6298_v25  ;;  %v5554_v32 = vld [vmem:[%s776_s10] sm:$0xff]   ;;  %v5555_v33 = vld [vmem:[%s776_s10 + $0x8] sm:$0xff]   ;;  %v7023_v35 = vshrl.u32 %v1050_v34, 7  ;;  %s6303_s8 = smov 8   ;;  %s6304_s5 = smov 16   ;;  %vm2149_vm9 = vcmask 130048  }
 0x2e1   : > { %5219 = vmatprep.subr.bf16.mxu1 %v6298_v25  ;;  %5213 = vmatprep.mubr.msk.bf16.mxu0 %vm6299_vm5, %v6298_v25  ;;  %s6305_s20 = smov 24   ;;  %vm2152_vm10 = vcmask 195584   ;;  %s7666_s27 = sld [smem:[#allocation39_spill]] }
 0x2e2   : > { %v1043_v28 = vld [vmem:[#allocation2] sm:$0xff]  ;;  %5210 = vmatpush3.bf16.msra.mxu0 %v5552_v27  ;;  %v7026_v36 = vsub.s32 1, %v7023_v35  ;;  %v7031_v38 = vsub.s32 0, %v7023_v35  ;;  %v7060_v62 = vsub.s32 2, %v7023_v35 }
 0x2e3   : > { %5211 = vmatprep.subr.bf16.mxu0 %v6298_v25 }
 0x2e4   : > { %v1044_v29 = vld [vmem:[#allocation2 + $0x8] sm:$0xff]  ;;  %5220 = vmatpush3.bf16.msra.mxu1 %v5551_v26  ;;  %v1118_v37 = vrot.slane %v6981_v0, %v7026_v36  ;;  %v1053_v42 = vrot.slane %v6981_v0, %v7031_v38  ;;  %v1179_v63 = vrot.slane %v6981_v0, %v7060_v62 }
 0x2e5   : > { %v1045_v31 = vpack.c.bf16 %v1044_v29, %v1043_v28  ;;  %5233 = vmatprep.subr.bf16.mxu1 %v6298_v25 }
 0x2e6   : > { %5212 = vmatpush3.bf16.msra.mxu0 %v5553_v30 }
 0x2e7   : > { %5222 = vmatmul.mubr.msk.bf16.vlgmr.msra.gmra.mrb[0].mxu1 %vm1066_vm6, %v1045_v31  ;;  %5225 = vmatprep.subr.bf16.mxu0 %v6298_v25  ;;  %p4953_p3 = scmp.ne.s32.totalorder %s7666_s27, 1 }
 0x2e8   : > { %5235 = vmatprep.mubr.msk.bf16.mxu1 %vm6299_vm5, %v6298_v25  ;;  %vm6308_vm11 = vmmov (!%p4953_p3), 0  }
 0x2e9   : > { %5214 = vmatmul.mubr.msk.bf16.vlgmr.msra.gmra.mrb[0].mxu0 %vm1066_vm6, %v1045_v31 }
 0x2ea   : > { %5226 = vmatpush3.bf16.msra.mxu0 %v5554_v32  ;;  %5229 = vmatprep.mubr.msk.bf16.mxu0 %vm6299_vm5, %v6298_v25 }
 0x2eb   : > { %5227 = vmatprep.subr.bf16.mxu0 %v6298_v25 }
 0x2ee   : > { %5228 = vmatpush3.bf16.msra.mxu0 %v5555_v33 }
 0x2ef   : > { %5239 = vmatprep.subr.bf16.mxu0 %v6298_v25 }
 0x2f1   : > { %5230 = vmatmul.mubr.msk.bf16.vlgmr.msra.gmra.mrb[4].mxu0 %vm1066_vm6, %v1045_v31 }
 0x2f2   : > { %5241 = vmatprep.mubr.msk.bf16.mxu0 %vm6299_vm5, %v6298_v25 }
 0x3ba   : > { %v1165_v39 = vpop.f32.mrb[0].mxu1 }
 0x3bb   : > { %v1166_v40 = vadd.f32 %v1165_v39, %v1118_v37  ;;  %v5223_v41 = vpop.f32.mrb[1].mxu1 }
 0x3bc   : > { %v1168_v43 = vpop.f32.mrb[2].mxu1  ;;  %v1104_v44 = vpop.f32.mrb[0].mxu0 }
 0x3bd   : > { %v7035_v45 = vpack.c.bf16 %v1166_v40, %v1166_v40  ;;  %v1169_v46 = vadd.f32 %v1168_v43, %v1118_v37  ;;  %v5224_v47 = vpop.f32.mrb[3].mxu1  ;;  %v5215_v48 = vpop.f32.mrb[1].mxu0  ;;  %v1105_v51 = vadd.f32 %v1104_v44, %v1053_v42 }
 0x3be   : > { %v1107_v49 = vpop.f32.mrb[2].mxu0 }
 0x3bf   : > { %v7037_v50 = vpack.c.bf16 %v1169_v46, %v1169_v46  ;;  %v1244_v52 = vsel %vm1239_vm7, %v7035_v45, 0  ;;  %v5216_v53 = vpop.f32.mrb[3].mxu0  ;;  %v7046_v55 = vpack.c.bf16 %v1105_v51, %v1105_v51  ;;  %v1108_v56 = vadd.f32 %v1107_v49, %v1053_v42 }
 0x3c0   : > { %5234 = vmatpush3.bf16.xpose.msra.mxu1 %v1244_v52 }
 0x3c1   : > { %1507 = vrot.lane.b32.xlu1 %v7037_v50, %s6300_s7  ;;  %v1290_v54 = vsel %vm1239_vm7, %v7037_v50, 0  ;;  %5245 = vmatprep.subr.bf16.mxu1 %v6298_v25  ;;  %v7049_v60 = vpack.c.bf16 %v1108_v56, %v1108_v56 }
 0x3c2   : > { %5240 = vmatpush3.bf16.xpose.msra.mxu0 %v1290_v54 }
 0x3c3   : > { %5251 = vmatprep.subr.bf16.mxu0 %v6298_v25 }
 0x3c4   : > { %v1226_v57 = vpop.f32.mrb[4].mxu0 }
 0x3c5   : > { %v5231_v58 = vpop.f32.mrb[5].mxu0  ;;  %v1227_v4 = vadd.f32 %v1226_v57, %v1179_v63 }
 0x3c6   : > { %v1229_v59 = vpop.f32.mrb[6].mxu0 }
 0x3c7   : > { %5236 = vmatmul.mubr.msk.bf16.vlgmr.msra.gmra.mrb[4].mxu1 %vm1239_vm7, %v7046_v55  ;;  %v5232_v61 = vpop.f32.mrb[7].mxu0  ;;  %v1230_v5 = vadd.f32 %v1229_v59, %v1179_v63  ;;  %v7064_v6 = vpack.c.bf16 %v1227_v4, %v1227_v4 }
 0x3c8   : > { %5247 = vmatprep.mubr.msk.bf16.mxu1 %vm6299_vm5, %v6298_v25 }
 0x3c9   : > { %5242 = vmatmul.mubr.msk.bf16.vlgmr.msra.gmra.mrb[8].mxu0 %vm1239_vm7, %v7049_v60  ;;  %v7066_v7 = vpack.c.bf16 %v1230_v5, %v1230_v5  ;;  %v1363_v8 = vsel %vm1361_vm8, %v7064_v6, 0 }
 0x3ca   : > { %5253 = vmatprep.mubr.msk.bf16.mxu0 %vm6299_vm5, %v6298_v25  ;;  %5246 = vmatpush3.bf16.msra.mxu1 %v1363_v8 }
 0x3cb   : > { %v1409_v9 = vsel %vm1361_vm8, %v7066_v7, 0  ;;  %5257 = vmatprep.subr.bf16.mxu1 %v6298_v25 }
 0x3cc   : > { %5252 = vmatpush3.bf16.msra.mxu0 %v1409_v9 }
 0x3cd   : > { %5263 = vmatprep.subr.bf16.mxu0 %v6298_v25 }
 0x433   : > { %v1508_v33 = vpop.permute.xlu1 %1507 }
 0x434   : > { %v1513_v48 = vsel %vm1239_vm7, %v1508_v33, 0 }
 0x49a   : > { %v1280_v10 = vpop.f32.mrb[4].mxu1 }
 0x49b   : > { %v1332_v11 = vmul.f32 0.35355338, %v1280_v10  ;;  %v5237_v12 = vpop.f32.mrb[5].mxu1 }
 0x49c   : > { %v1283_v13 = vpop.f32.mrb[6].mxu1  ;;  %v1326_v14 = vpop.f32.mrb[8].mxu0 }
 0x49d   : > { %v1333_v15 = vmul.f32 0.35355338, %v1326_v14  ;;  %v5238_v16 = vpop.f32.mrb[7].mxu1  ;;  %v5243_v17 = vpop.f32.mrb[9].mxu0  ;;  %v1334_v18 = vsel %vm1239_vm7, %v1332_v11, -inf }
 0x49e   : > { %1335 = vmax.xlane.f32.xlu0 %v1334_v18  ;;  %v1329_v19 = vpop.f32.mrb[10].mxu0 }
 0x49f   : > { %v5244_v20 = vpop.f32.mrb[11].mxu0  ;;  %v1337_v21 = vsel %vm1239_vm7, %v1333_v15, -inf }
 0x4a2   : > { %1338 = vmax.xlane.f32.xlu0 %v1337_v21 }
 0x4b8   : > { %1455 = vrot.lane.b32.xlu0 %v7035_v45, %s6300_s7 }
 0x52b   : > { %v1336_v22 = vpop.xlane.xlu0 %1335 }
 0x52c   : > { %v1340_v23 = vsub.f32 %v1332_v11, %v1336_v22 }
 0x52e   : > { %v1342_v24 = vmul.f32 1.442695, %v1340_v23 }
 0x52f   : > { %v1339_v26 = vpop.xlane.xlu0 %1338 }
 0x530   : > { %5686 = vpow2.f32 %v1342_v24  ;;  %v1341_v27 = vsub.f32 %v1333_v15, %v1339_v26 }
 0x532   : > { %v1344_v28 = vmul.f32 1.442695, %v1341_v27 }
 0x533   : > { %v1456_v41 = vpop.permute.xlu0 %1455 }
 0x534   : > { %5688 = vpow2.f32 %v1344_v28  ;;  %v1461_v44 = vsel %vm1239_vm7, %v1456_v41, 0 }
 0x53a   : > { %v5687_v29 = vpop.eup %5686 }
 0x53b   : > { %v1346_v30 = vsel %vm1239_vm7, %v5687_v29, 0.0 }
 0x53c   : > { %1347 = vadd.xlane.f32.xlu1 %v1346_v30 }
 0x53e   : > { %v5689_v31 = vpop.eup %5688 }
 0x53f   : > { %v1349_v32 = vsel %vm1239_vm7, %v5689_v31, 0.0 }
 0x540   : > { %1350 = vadd.xlane.f32.xlu1 %v1349_v32 }
 0x551   : > { %1452 = vrot.lane.b32.xlu1 %v7046_v55, %s6300_s7 }
 0x555   : > { %1504 = vrot.lane.b32.xlu1 %v7049_v60, %s6300_s7 }
 0x5c9   : > { %v1348_v34 = vpop.xlane.xlu1 %1347 }
 0x5ca   : > { %5690 = vrcp.f32 %v1348_v34 }
 0x5cd   : > { %v1351_v37 = vpop.xlane.xlu1 %1350 }
 0x5ce   : > { %5692 = vrcp.f32 %v1351_v37 }
 0x5d1   : > { %v1453_v49 = vpop.permute.xlu1 %1452 }
 0x5d4   : > { %v5691_v39 = vpop.eup %5690 }
 0x5d5   : > { %v1353_v40 = vmul.f32 %v5691_v39, %v5687_v29  ;;  %v1505_v51 = vpop.permute.xlu1 %1504 }
 0x5d7   : > { %v1356_v42 = vpack.c.bf16 %v1353_v40, %v1353_v40 }
 0x5d8   : > { %v5693_v43 = vpop.eup %5692 }
 0x5d9   : > { %v1355_v46 = vmul.f32 %v5693_v43, %v5689_v31  ;;  %5248 = vmatmul.mubr.msk.bf16.vlgmr.msra.gmra.mrb[8].mxu1 %vm1239_vm7, %v1356_v42 }
 0x5da   : > { %5258 = vmatpush3.bf16.xpose.msra.mxu1 %v1461_v44  ;;  %5259 = vmatprep.mubr.msk.bf16.mxu1 %vm6299_vm5, %v6298_v25 }
 0x5db   : > { %v1357_v47 = vpack.c.bf16 %v1355_v46, %v1355_v46  ;;  %5269 = vmatprep.subr.bf16.mxu1 %v6298_v25 }
 0x5dd   : > { %5254 = vmatmul.mubr.msk.bf16.vlgmr.msra.gmra.mrb[12].mxu0 %vm1239_vm7, %v1357_v47 }
 0x5de   : > { %5264 = vmatpush3.bf16.xpose.msra.mxu0 %v1513_v48  ;;  %5265 = vmatprep.mubr.msk.bf16.mxu0 %vm6299_vm5, %v6298_v25 }
 0x5df   : > { %5275 = vmatprep.subr.bf16.mxu0 %v6298_v25 }
 0x5e1   : > { %5260 = vmatmul.mubr.msk.bf16.vlgmr.msra.gmra.mrb[12].mxu1 %vm1239_vm7, %v1453_v49 }
 0x5e2   : > { %5271 = vmatprep.mubr.msk.bf16.mxu1 %vm6299_vm5, %v6298_v25 }
 0x5e5   : > { %5266 = vmatmul.mubr.msk.bf16.vlgmr.msra.gmra.mrb[16].mxu0 %vm1239_vm7, %v1505_v51 }
 0x5e6   : > { %5277 = vmatprep.mubr.msk.bf16.mxu0 %vm6299_vm5, %v6298_v25 }
 0x6ac   : > { %v7100_v52 = vpop.f32.mrb[8].mxu1 }
 0x6ad   : > { %v5249_v53 = vpop.f32.mrb[9].mxu1 }
 0x6ae   : > { %v1402_v54 = vpop.f32.mrb[10].mxu1 }
 0x6af   : > { %v5250_v56 = vpop.f32.mrb[11].mxu1 }
 0x6b0   : > { %v7102_v57 = vpop.f32.mrb[12].mxu0 }
 0x6b1   : > { %v5255_v58 = vpop.f32.mrb[13].mxu0 }
 0x6b2   : > { %v1448_v59 = vpop.f32.mrb[14].mxu0 }
 0x6b3   : > { %v5256_v61 = vpop.f32.mrb[15].mxu0 }
 0x6b4   : > { %v1497_v63 = vpop.f32.mrb[12].mxu1 }
 0x6b5   : > { %v1555_v4 = vmul.f32 0.35355338, %v1497_v63  ;;  %v5261_v5 = vpop.f32.mrb[13].mxu1 }
 0x6b6   : > { %v1500_v8 = vpop.f32.mrb[14].mxu1 }
 0x6b7   : > { %v5262_v9 = vpop.f32.mrb[15].mxu1  ;;  %v1557_v10 = vsel %vm1239_vm7, %v1555_v4, -inf }
 0x6b8   : > { %1558 = vmax.xlane.f32.xlu0 %v1557_v10  ;;  %v1549_v11 = vpop.f32.mrb[16].mxu0 }
 0x6b9   : > { %v1556_v12 = vmul.f32 0.35355338, %v1549_v11  ;;  %v5267_v13 = vpop.f32.mrb[17].mxu0 }
 0x6ba   : > { %v1552_v14 = vpop.f32.mrb[18].mxu0 }
 0x6bb   : > { %v5268_v15 = vpop.f32.mrb[19].mxu0  ;;  %v1560_v16 = vsel %vm1239_vm7, %v1556_v12, -inf }
 0x6bc   : > { %1561 = vmax.xlane.f32.xlu1 %v1560_v16 }
 0x6cd   : > { %1631 = vrot.lane.b32.xlu1 %v7066_v7, %s6300_s7 }
 0x6d1   : > { %1681 = vrot.lane.b32.xlu1 %v7035_v45, %s6301_s13 }
 0x6d5   : > { %1731 = vrot.lane.b32.xlu1 %v7037_v50, %s6301_s13 }
 0x6d9   : > { %1729 = vrot.lane.b32.xlu1 %v7049_v60, %s6301_s13 }
 0x745   : > { %v1559_v17 = vpop.xlane.xlu0 %1558 }
 0x746   : > { %v1563_v18 = vsub.f32 %v1555_v4, %v1559_v17 }
 0x748   : > { %v1565_v19 = vmul.f32 1.442695, %v1563_v18 }
 0x749   : > { %v1562_v20 = vpop.xlane.xlu1 %1561 }
 0x74a   : > { %5694 = vpow2.f32 %v1565_v19  ;;  %v1564_v21 = vsub.f32 %v1556_v12, %v1562_v20 }
 0x74c   : > { %v1567_v22 = vmul.f32 1.442695, %v1564_v21 }
 0x74d   : > { %v1632_v23 = vpop.permute.xlu1 %1631 }
 0x74e   : > { %5696 = vpow2.f32 %v1567_v22  ;;  %v1637_v24 = vsel %vm1361_vm8, %v1632_v23, 0 }
 0x74f   : > { %5276 = vmatpush3.bf16.msra.mxu0 %v1637_v24 }
 0x750   : > { %5287 = vmatprep.subr.bf16.mxu0 %v6298_v25 }
 0x751   : > { %v1682_v37 = vpop.permute.xlu1 %1681 }
 0x752   : > { %v1687_v44 = vsel %vm1239_vm7, %v1682_v37, 0 }
 0x754   : > { %v5695_v26 = vpop.eup %5694 }
 0x755   : > { %v1569_v27 = vsel %vm1239_vm7, %v5695_v26, 0.0  ;;  %v1732_v43 = vpop.permute.xlu1 %1731 }
 0x756   : > { %1570 = vadd.xlane.f32.xlu0 %v1569_v27  ;;  %v1737_v47 = vsel %vm1239_vm7, %v1732_v43, 0 }
 0x758   : > { %v5697_v28 = vpop.eup %5696 }
 0x759   : > { %v1572_v29 = vsel %vm1239_vm7, %v5697_v28, 0.0  ;;  %v1730_v49 = vpop.permute.xlu1 %1729 }
 0x75a   : > { %1573 = vadd.xlane.f32.xlu0 %v1572_v29 }
 0x770   : > { %1582 = vrot.lane.b32.xlu0 %v7064_v6, %s6300_s7 }
 0x774   : > { %1679 = vrot.lane.b32.xlu0 %v7046_v55, %s6301_s13 }
 0x7e3   : > { %v1571_v30 = vpop.xlane.xlu0 %1570 }
 0x7e4   : > { %5698 = vrcp.f32 %v1571_v30 }
 0x7e7   : > { %v1574_v31 = vpop.xlane.xlu0 %1573 }
 0x7e8   : > { %5700 = vrcp.f32 %v1574_v31 }
 0x7eb   : > { %v1583_v32 = vpop.permute.xlu0 %1582 }
 0x7ec   : > { %v1588_v33 = vsel %vm1361_vm8, %v1583_v32, 0 }
 0x7ed   : > { %5270 = vmatpush3.bf16.msra.mxu1 %v1588_v33 }
 0x7ee   : > { %v5699_v34 = vpop.eup %5698  ;;  %5281 = vmatprep.subr.bf16.mxu1 %v6298_v25 }
 0x7ef   : > { %v1576_v39 = vmul.f32 %v5699_v34, %v5695_v26  ;;  %v1680_v48 = vpop.permute.xlu0 %1679 }
 0x7f1   : > { %v1579_v40 = vpack.c.bf16 %v1576_v39, %v1576_v39 }
 0x7f2   : > { %v5701_v41 = vpop.eup %5700 }
 0x7f3   : > { %v1578_v42 = vmul.f32 %v5701_v41, %v5697_v28  ;;  %5272 = vmatmul.mubr.msk.bf16.vlgmr.msra.gmra.mrb[16].mxu1 %vm1239_vm7, %v1579_v40 }
 0x7f4   : > { %5283 = vmatprep.mubr.msk.bf16.mxu1 %vm6299_vm5, %v6298_v25 }
 0x7f5   : > { %v1580_v46 = vpack.c.bf16 %v1578_v42, %v1578_v42 }
 0x7f6   : > { %5282 = vmatpush3.bf16.xpose.msra.mxu1 %v1687_v44 }
 0x7f7   : > { %5278 = vmatmul.mubr.msk.bf16.vlgmr.msra.gmra.mrb[20].mxu0 %vm1239_vm7, %v1580_v46  ;;  %5293 = vmatprep.subr.bf16.mxu1 %v6298_v25 }
 0x7f8   : > { %5288 = vmatpush3.bf16.xpose.msra.mxu0 %v1737_v47  ;;  %5289 = vmatprep.mubr.msk.bf16.mxu0 %vm6299_vm5, %v6298_v25 }
 0x7f9   : > { %5299 = vmatprep.subr.bf16.mxu0 %v6298_v25 }
 0x7fd   : > { %5284 = vmatmul.mubr.msk.bf16.vlgmr.msra.gmra.mrb[20].mxu1 %vm1239_vm7, %v1680_v48 }
 0x7fe   : > { %5295 = vmatprep.mubr.msk.bf16.mxu1 %vm6299_vm5, %v6298_v25 }
 0x7ff   : > { %5290 = vmatmul.mubr.msk.bf16.vlgmr.msra.gmra.mrb[24].mxu0 %vm1239_vm7, %v1730_v49 }
 0x800   : > { %5301 = vmatprep.mubr.msk.bf16.mxu0 %vm6299_vm5, %v6298_v25 }
 0x8c6   : > { %v7140_v51 = vpop.f32.mrb[16].mxu1 }
 0x8c7   : > { %v5273_v53 = vpop.f32.mrb[17].mxu1 }
 0x8c8   : > { %v1627_v54 = vpop.f32.mrb[18].mxu1 }
 0x8c9   : > { %v5274_v56 = vpop.f32.mrb[19].mxu1 }
 0x8ca   : > { %v7142_v58 = vpop.f32.mrb[20].mxu0 }
 0x8cb   : > { %v5535_v59 = vpack.i.bf16 %v7142_v58, %v7140_v51  ;;  %v5279_v61 = vpop.f32.mrb[21].mxu0 }
 0x8cc   : > { %v1676_v63 = vpop.f32.mrb[22].mxu0 }
 0x8cd   : > { %v5280_v4 = vpop.f32.mrb[23].mxu0 }
 0x8d0   : > { %v1723_v5 = vpop.f32.mrb[20].mxu1 }
 0x8d1   : > { %v1779_v8 = vmul.f32 0.35355338, %v1723_v5  ;;  %v5285_v9 = vpop.f32.mrb[21].mxu1 }
 0x8d2   : > { %v1726_v10 = vpop.f32.mrb[22].mxu1  ;;  %v1773_v11 = vpop.f32.mrb[24].mxu0 }
 0x8d3   : > { %v1780_v12 = vmul.f32 0.35355338, %v1773_v11  ;;  %v5286_v13 = vpop.f32.mrb[23].mxu1  ;;  %v5291_v14 = vpop.f32.mrb[25].mxu0  ;;  %v1781_v15 = vsel %vm1239_vm7, %v1779_v8, -inf }
 0x8d4   : > { %1782 = vmax.xlane.f32.xlu0 %v1781_v15  ;;  %v1776_v16 = vpop.f32.mrb[26].mxu0 }
 0x8d5   : > { %v5292_v17 = vpop.f32.mrb[27].mxu0  ;;  %v1784_v18 = vsel %vm1239_vm7, %v1780_v12, -inf }
 0x8d6   : > { %1785 = vmax.xlane.f32.xlu1 %v1784_v18 }
 0x8e7   : > { %1853 = vrot.lane.b32.xlu1 %v7066_v7, %s6301_s13 }
 0x8eb   : > { %1903 = vrot.lane.b32.xlu1 %v7035_v45, %s6302_s25 }
 0x8ef   : > { %1953 = vrot.lane.b32.xlu1 %v7037_v50, %s6302_s25 }
 0x8f3   : > { %1951 = vrot.lane.b32.xlu1 %v7049_v60, %s6302_s25 }
 0x961   : > { %v1783_v19 = vpop.xlane.xlu0 %1782 }
 0x962   : > { %v1787_v20 = vsub.f32 %v1779_v8, %v1783_v19 }
 0x963   : > { %v1786_v21 = vpop.xlane.xlu1 %1785 }
 0x964   : > { %v1789_v22 = vmul.f32 1.442695, %v1787_v20  ;;  %v1788_v23 = vsub.f32 %v1780_v12, %v1786_v21 }
 0x966   : > { %5702 = vpow2.f32 %v1789_v22  ;;  %v1791_v24 = vmul.f32 1.442695, %v1788_v23 }
 0x967   : > { %v1854_v26 = vpop.permute.xlu1 %1853 }
 0x968   : > { %5704 = vpow2.f32 %v1791_v24  ;;  %v1859_v27 = vsel %vm1361_vm8, %v1854_v26, 0 }
 0x969   : > { %5300 = vmatpush3.bf16.msra.mxu0 %v1859_v27 }
 0x96a   : > { %5311 = vmatprep.subr.bf16.mxu0 %v6298_v25 }
 0x96b   : > { %v1904_v34 = vpop.permute.xlu1 %1903 }
 0x96f   : > { %v1954_v42 = vpop.permute.xlu1 %1953 }
 0x970   : > { %v5703_v45 = vpop.eup %5702  ;;  %v1959_v44 = vsel %vm1239_vm7, %v1954_v42, 0 }
 0x971   : > { %v1793_v50 = vsel %vm1239_vm7, %v5703_v45, 0.0 }
 0x972   : > { %v5705_v28 = vpop.eup %5704  ;;  %1794 = vadd.xlane.f32.xlu0 %v1793_v50 }
 0x973   : > { %v1796_v60 = vsel %vm1239_vm7, %v5705_v28, 0.0  ;;  %v1952_v47 = vpop.permute.xlu1 %1951 }
 0x976   : > { %1797 = vadd.xlane.f32.xlu0 %v1796_v60 }
 0x98c   : > { %1805 = vrot.lane.b32.xlu0 %v7064_v6, %s6301_s13 }
 0x990   : > { %1901 = vrot.lane.b32.xlu0 %v7046_v55, %s6302_s25  ;;  %v1909_v55 = vsel %vm1239_vm7, %v1904_v34, 0 }
 0x9ff   : > { %v1795_v29 = vpop.xlane.xlu0 %1794 }
 0xa00   : > { %5706 = vrcp.f32 %v1795_v29 }
 0xa03   : > { %v1798_v30 = vpop.xlane.xlu0 %1797 }
 0xa04   : > { %5708 = vrcp.f32 %v1798_v30 }
 0xa07   : > { %v1806_v31 = vpop.permute.xlu0 %1805 }
 0xa08   : > { %v1811_v32 = vsel %vm1361_vm8, %v1806_v31, 0 }
 0xa09   : > { %5294 = vmatpush3.bf16.msra.mxu1 %v1811_v32 }
 0xa0a   : > { %v5707_v33 = vpop.eup %5706  ;;  %5305 = vmatprep.subr.bf16.mxu1 %v6298_v25 }
 0xa0b   : > { %v1800_v37 = vmul.f32 %v5707_v33, %v5703_v45  ;;  %v1902_v46 = vpop.permute.xlu0 %1901 }
 0xa0d   : > { %v1803_v39 = vpack.c.bf16 %v1800_v37, %v1800_v37  ;;  %v5556_v37 = vld [vmem:[%s785_s26] sm:$0xff]  }
 0xa0e   : > { %v5709_v40 = vpop.eup %5708 }
 0xa0f   : > { %v1802_v41 = vmul.f32 %v5709_v40, %v5705_v28  ;;  %5296 = vmatmul.mubr.msk.bf16.vlgmr.msra.gmra.mrb[24].mxu1 %vm1239_vm7, %v1803_v39  ;;  %v5557_v39 = vld [vmem:[%s785_s26 + $0x8] sm:$0xff]  }
 0xa10   : > { %5307 = vmatprep.mubr.msk.bf16.mxu1 %vm6299_vm5, %v6298_v25 }
 0xa11   : > { %v1804_v43 = vpack.c.bf16 %v1802_v41, %v1802_v41 }
 0xa12   : > { %5306 = vmatpush3.bf16.xpose.msra.mxu1 %v1909_v55 }
 0xa13   : > { %5302 = vmatmul.mubr.msk.bf16.vlgmr.msra.gmra.mrb[28].mxu0 %vm1239_vm7, %v1804_v43  ;;  %5317 = vmatprep.subr.bf16.mxu1 %v6298_v25 }
 0xa14   : > { %5312 = vmatpush3.bf16.xpose.msra.mxu0 %v1959_v44  ;;  %5313 = vmatprep.mubr.msk.bf16.mxu0 %vm6299_vm5, %v6298_v25 }
 0xa15   : > { %5323 = vmatprep.subr.bf16.mxu0 %v6298_v25 }
 0xa19   : > { %5308 = vmatmul.mubr.msk.bf16.vlgmr.msra.gmra.mrb[28].mxu1 %vm1239_vm7, %v1902_v46 }
 0xa1a   : > { %5319 = vmatprep.mubr.msk.bf16.mxu1 %vm6299_vm5, %v6298_v25 }
 0xa1b   : > { %5314 = vmatmul.mubr.msk.bf16.vlgmr.msra.gmra.mrb[32].mxu0 %vm1239_vm7, %v1952_v47 }
 0xa1c   : > { %5325 = vmatprep.mubr.msk.bf16.mxu0 %vm6299_vm5, %v6298_v25 }
 0xae2   : > { %v1847_v48 = vpop.f32.mrb[24].mxu1 }
 0xae3   : > { %v5297_v49 = vpop.f32.mrb[25].mxu1 }
 0xae4   : > { %v1850_v53 = vpop.f32.mrb[26].mxu1 }
 0xae5   : > { %v5298_v54 = vpop.f32.mrb[27].mxu1 }
 0xae6   : > { %v1895_v56 = vpop.f32.mrb[28].mxu0 }
 0xae7   : > { %v5540_v61 = vpack.i.bf16 %v1895_v56, %v1847_v48  ;;  %v5303_v63 = vpop.f32.mrb[29].mxu0 }
 0xae8   : > { %v1898_v4 = vpop.f32.mrb[30].mxu0 }
 0xae9   : > { %v5304_v5 = vpop.f32.mrb[31].mxu0 }
 0xaec   : > { %v1945_v8 = vpop.f32.mrb[28].mxu1 }
 0xaed   : > { %v2001_v9 = vmul.f32 0.35355338, %v1945_v8  ;;  %v5309_v10 = vpop.f32.mrb[29].mxu1 }
 0xaee   : > { %v1948_v11 = vpop.f32.mrb[30].mxu1  ;;  %v1995_v12 = vpop.f32.mrb[32].mxu0 }
 0xaef   : > { %v2002_v13 = vmul.f32 0.35355338, %v1995_v12  ;;  %v5310_v14 = vpop.f32.mrb[31].mxu1  ;;  %v5315_v15 = vpop.f32.mrb[33].mxu0  ;;  %v2003_v16 = vsel %vm1239_vm7, %v2001_v9, -inf }
 0xaf0   : > { %2004 = vmax.xlane.f32.xlu0 %v2003_v16  ;;  %v1998_v17 = vpop.f32.mrb[34].mxu0  ;;  %v7212_v15 = vsub.s32 3, %v7023_v35 }
 0xaf1   : > { %v5316_v18 = vpop.f32.mrb[35].mxu0  ;;  %v2006_v19 = vsel %vm1239_vm7, %v2002_v13, -inf }
 0xaf2   : > { %2007 = vmax.xlane.f32.xlu1 %v2006_v19  ;;  %v2163_v16 = vrot.slane %v6981_v0, %v7212_v15 }
 0xb03   : > { %2075 = vrot.lane.b32.xlu1 %v7066_v7, %s6302_s25 }
 0xb07   : > { %5536 = vrot.lane.b32.xlu1 %v5535_v59, %s6303_s8 }
 0xb0b   : > { %5541 = vrot.lane.b32.xlu1 %v5540_v61, %s6304_s5 }
 0xb7d   : > { %v2005_v20 = vpop.xlane.xlu0 %2004 }
 0xb7e   : > { %v2009_v21 = vsub.f32 %v2001_v9, %v2005_v20 }
 0xb7f   : > { %v2008_v22 = vpop.xlane.xlu1 %2007 }
 0xb80   : > { %v2011_v23 = vmul.f32 1.442695, %v2009_v21  ;;  %v2010_v24 = vsub.f32 %v2002_v13, %v2008_v22  ;;  %v5726_v21 = vld [vmem:[#allocation2] sm:$0xff] }
 0xb82   : > { %5710 = vpow2.f32 %v2011_v23  ;;  %v2013_v26 = vmul.f32 1.442695, %v2010_v24  ;;  %v5727_v24 = vld [vmem:[#allocation2 + $0x8] sm:$0xff] }
 0xb83   : > { %v2076_v27 = vpop.permute.xlu1 %2075 }
 0xb84   : > { %5712 = vpow2.f32 %v2013_v26  ;;  %v2081_v45 = vsel %vm1361_vm8, %v2076_v27, 0 }
 0xb85   : > { %5324 = vmatpush3.bf16.msra.mxu0 %v2081_v45 }
 0xb87   : > { %v5537_v49 = vpop.permute.xlu1 %5536 }
 0xb88   : > { %v5539_v54 = vunpack.i.h.bf16 %v5537_v49  ;;  %v5538_v56 = vunpack.i.l.bf16 %v5537_v49  ;;  %v2264_v49 = vld [vmem:[%s6963_s6 + $0x10] sm:$0xff] }
 0xb8a   : > { %v2148_v4 = vsel %vm1239_vm7, %v7102_v57, %v5539_v54  ;;  %v2147_v5 = vsel %vm1239_vm7, %v7100_v52, %v5538_v56  ;;  %v2265_v54 = vld [vmem:[%s6963_s6 + $0x18] sm:$0xff]  ;;  %v6306_v56 = vmov 0  }
 0xb8b   : > { %v5542_v53 = vpop.permute.xlu1 %5541 }
 0xb8c   : > { %v5711_v7 = vpop.eup %5710  ;;  %v5544_v61 = vunpack.i.h.bf16 %v5542_v53 }
 0xb8d   : > { %v2015_v50 = vsel %vm1239_vm7, %v5711_v7, 0.0 }
 0xb8e   : > { %v5713_v28 = vpop.eup %5712  ;;  %2016 = vadd.xlane.f32.xlu0 %v2015_v50  ;;  %v2151_v11 = vsel %vm2149_vm9, %v2148_v4, %v5544_v61 }
 0xb8f   : > { %v2018_v51 = vsel %vm1239_vm7, %v5713_v28, 0.0 }
 0xb92   : > { %2019 = vadd.xlane.f32.xlu0 %v2018_v51 }
 0xba8   : > { %2027 = vrot.lane.b32.xlu0 %v7064_v6, %s6302_s25 }
 0xc1b   : > { %v2017_v58 = vpop.xlane.xlu0 %2016 }
 0xc1c   : > { %5714 = vrcp.f32 %v2017_v58 }
 0xc1f   : > { %v2020_v59 = vpop.xlane.xlu0 %2019 }
 0xc20   : > { %5716 = vrcp.f32 %v2020_v59 }
 0xc23   : > { %v2028_v60 = vpop.permute.xlu0 %2027 }
 0xc24   : > { %v2033_v29 = vsel %vm1361_vm8, %v2028_v60, 0 }
 0xc25   : > { %5318 = vmatpush3.bf16.msra.mxu1 %v2033_v29 }
 0xc26   : > { %v5715_v30 = vpop.eup %5714  ;;  %5329 = vmatprep.subr.bf16.mxu1 %v6298_v25 }
 0xc27   : > { %v2022_v31 = vmul.f32 %v5715_v30, %v5711_v7 }
 0xc29   : > { %v2025_v32 = vpack.c.bf16 %v2022_v31, %v2022_v31  ;;  %v2262_v31 = vld [vmem:[%s6963_s6] sm:$0xff] }
 0xc2a   : > { %v5717_v33 = vpop.eup %5716 }
 0xc2b   : > { %v2024_v34 = vmul.f32 %v5717_v33, %v5713_v28  ;;  %5320 = vmatmul.mubr.msk.bf16.vlgmr.msra.gmra.mrb[32].mxu1 %vm1239_vm7, %v2025_v32  ;;  %v2270_v32 = vld [vmem:[%s6963_s6 + $0x40] sm:$0xff]  ;;  %v2263_v33 = vld [vmem:[%s6963_s6 + $0x8] sm:$0xff] }
 0xc2c   : > { %5333 = vmatprep.mubr.msk.bf16.mxu1 %vm6299_vm5, %v6298_v25  ;;  %5330 = vmatpush3.bf16.msra.mxu1 %v5556_v37  ;;  %v4784_v37 = vcombine.low %v2262_v31, %v2270_v32 }
 0xc2d   : > { %v2026_v6 = vpack.c.bf16 %v2024_v34, %v2024_v34  ;;  %5331 = vmatprep.subr.bf16.mxu1 %v6298_v25  ;;  %v5543_v25 = vunpack.i.l.bf16 %v5542_v53  ;;  %v4785_v34 = vcombine.high %v2262_v31, %v2270_v32  ;;  %v2272_v53 = vld [vmem:[%s6963_s6 + $0x50] sm:$0xff] }
 0xc2e   : > { %v4789_v61 = vcombine.high %v2264_v49, %v2272_v53 }
 0xc2f   : > { %5326 = vmatmul.mubr.msk.bf16.vlgmr.msra.gmra.mrb[36].mxu0 %vm1239_vm7, %v2026_v6  ;;  %v2150_v10 = vsel %vm2149_vm9, %v2147_v5, %v5543_v25  ;;  %v2271_v6 = vld [vmem:[%s6963_s6 + $0x48] sm:$0xff]  ;;  %2539 = vmatprep.subr.bf16.mxu0 %v4785_v34  ;;  %v2273_v25 = vld [vmem:[%s6963_s6 + $0x58] sm:$0xff]  ;;  %v2282_v34 = vld [vmem:[%s6963_s6 + $0xa0] sm:$0xff] }
 0xc30   : > { %5332 = vmatpush3.bf16.msra.mxu1 %v5557_v39  ;;  %v4786_v39 = vcombine.low %v2263_v33, %v2271_v6  ;;  %2540 = vmatpush1.bf16.msra.mxu0 %v4784_v37  ;;  %v4790_v4 = vcombine.low %v2265_v54, %v2273_v25  ;;  %v4791_v5 = vcombine.high %v2265_v54, %v2273_v25  ;;  %v2283_v37 = vld [vmem:[%s6963_s6 + $0xa8] sm:$0xff]  ;;  %v2292_v25 = vld [vmem:[%s6963_s6 + $0xf0] sm:$0xff] }
 0xc31   : > { %2571 = vmatprep.mubr.bf16.mxu0 %v6306_v56 }
 0xcfe   : > { %v2069_v40 = vpop.f32.mrb[32].mxu1 }
 0xcff   : > { %v5321_v41 = vpop.f32.mrb[33].mxu1 }
 0xd00   : > { %v2072_v42 = vpop.f32.mrb[34].mxu1  ;;  %v2278_v41 = vld [vmem:[%s6963_s6 + $0x80] sm:$0xff] }
 0xd01   : > { %v5322_v55 = vpop.f32.mrb[35].mxu1  ;;  %v2286_v42 = vld [vmem:[%s6963_s6 + $0xc0] sm:$0xff] }
 0xd02   : > { %v2117_v43 = vpop.f32.mrb[36].mxu0  ;;  %v2279_v55 = vld [vmem:[%s6963_s6 + $0x88] sm:$0xff] }
 0xd03   : > { %v5545_v44 = vpack.i.bf16 %v2117_v43, %v2069_v40  ;;  %v5327_v46 = vpop.f32.mrb[37].mxu0  ;;  %v4787_v40 = vcombine.high %v2263_v33, %v2271_v6  ;;  %v4801_v43 = vcombine.high %v2278_v41, %v2286_v42  ;;  %v2290_v6 = vld [vmem:[%s6963_s6 + $0xe0] sm:$0xff] }
 0xd04   : > { %v2120_v47 = vpop.f32.mrb[38].mxu0  ;;  %v4800_v46 = vcombine.low %v2278_v41, %v2286_v42  ;;  %v4809_v42 = vcombine.high %v2282_v34, %v2290_v6 }
 0xd05   : > { %5546 = vrot.lane.b32.xlu0 %v5545_v44, %s6305_s20  ;;  %v5328_v48 = vpop.f32.mrb[39].mxu0  ;;  %2582 = vmatprep.subr.bf16.mxu1 %v4787_v40  ;;  %v2287_v44 = vld [vmem:[%s6963_s6 + $0xc8] sm:$0xff] }
 0xd06   : > { %v4802_v47 = vcombine.low %v2279_v55, %v2287_v44  ;;  %v4803_v48 = vcombine.high %v2279_v55, %v2287_v44  ;;  %2541 = vmatprep.subr.bf16.mxu0 %v4801_v43  ;;  %v2268_v43 = vld [vmem:[%s6963_s6 + $0x30] sm:$0xff] }
 0xd07   : > { %2542 = vmatpush1.bf16.msra.mxu0 %v4800_v46  ;;  %v2276_v44 = vld [vmem:[%s6963_s6 + $0x70] sm:$0xff]  ;;  %v2269_v46 = vld [vmem:[%s6963_s6 + $0x38] sm:$0xff] }
 0xd08   : > { %2625 = vmatprep.subr.bf16.mxu0 %v4789_v61  ;;  %v2284_v61 = vld [vmem:[%s6963_s6 + $0xb0] sm:$0xff] }
 0xd77   : > { %v5547_v63 = vpop.permute.xlu0 %5546 }
 0xd78   : > { %v5549_v8 = vunpack.i.h.bf16 %v5547_v63  ;;  %v5548_v9 = vunpack.i.l.bf16 %v5547_v63  ;;  %v4788_v63 = vcombine.low %v2264_v49, %v2272_v53  ;;  %v4797_v53 = vcombine.high %v2268_v43, %v2276_v44 }
 0xd7a   : > { %v2154_v12 = vsel %vm2152_vm10, %v2151_v11, %v5549_v8  ;;  %v2153_v13 = vsel %vm2152_vm10, %v2150_v10, %v5548_v9 }
 0xd7b   : > { %v2155_v14 = vpack.c.bf16 %v2154_v12, %v2153_v13 }
 0xd7d   : > { %5334 = vmatmul.mubr.msk.bf16.vlgmr.msra.gmra.mrb[36].mxu1 %vm1066_vm6, %v2155_v14  ;;  %v7235_v14 = vsub.s32 5, %v7023_v35 }
 0xd7e   : > { %2583 = vmatpush1.bf16.msra.mxu1 %v4786_v39  ;;  %2614 = vmatprep.mubr.bf16.mxu1 %v6306_v56  ;;  %v2291_v39 = vld [vmem:[%s6963_s6 + $0xe8] sm:$0xff] }
 0xd7f   : > { %2584 = vmatprep.subr.bf16.mxu1 %v4803_v48  ;;  %v4811_v55 = vcombine.high %v2283_v37, %v2291_v39  ;;  %v4808_v48 = vcombine.low %v2282_v34, %v2290_v6  ;;  %v4810_v49 = vcombine.low %v2283_v37, %v2291_v39  ;;  %v5583_v34 = vld [vmem:[%s6969_s12 + $0xf0] sm:$0xff]   ;;  %v5586_v39 = vld [vmem:[%s6969_s12 + $0x78] sm:$0xff]  }
 0xd80   : > { %v5584_v6 = vld [vmem:[%s6969_s12 + $0x30] sm:$0xff]  }
 0xd81   : > { %v5585_v37 = vld [vmem:[%s6969_s12 + $0xb0] sm:$0xff]  }
 0xd82   : > { %2585 = vmatpush1.bf16.msra.mxu1 %v4802_v47  ;;  %v2277_v47 = vld [vmem:[%s6963_s6 + $0x78] sm:$0xff] }
 0xd83   : > { %2668 = vmatprep.subr.bf16.mxu1 %v4791_v5  ;;  %v4799_v54 = vcombine.high %v2269_v46, %v2277_v47  ;;  %v4796_v5 = vcombine.low %v2268_v43, %v2276_v44  ;;  %v5591_v43 = vld [vmem:[%s6969_s12 + $0x1c0] sm:$0xff]   ;;  %v2299_v44 = vrot.slane %v6985_v2, %v7031_v38 }
 0xe50   : > { %v2213_v17 = vpop.f32.mrb[36].mxu1 }
 0xe51   : > { %v2214_v57 = vadd.f32 %v2213_v17, %v2163_v16  ;;  %v5335_v18 = vpop.f32.mrb[37].mxu1  ;;  %v2252_v17 = vrot.slane %v6981_v0, %v7235_v14 }
 0xe52   : > { %v2216_v19 = vpop.f32.mrb[38].mxu1 }
 0xe53   : > { %v2217_v52 = vadd.f32 %v2216_v19, %v2163_v16  ;;  %v5336_v20 = vpop.f32.mrb[39].mxu1  ;;  %v2220_v22 = vadd.f32 %v5726_v21, %v2214_v57  ;;  %v7240_v57 = vsub.s32 6, %v7023_v35 }
 0xe55   : > { %v2222_v23 = vsel %vm1066_vm6, %v2220_v22, 0.0  ;;  %v2221_v26 = vadd.f32 %v5727_v24, %v2217_v52  ;;  %v2258_v52 = vrot.slane %v6981_v0, %v7240_v57  ;;  %v2288_v24 = vld [vmem:[%s6963_s6 + $0xd0] sm:$0xff] }
 0xe56   : > { %2223 = vadd.xlane.f32.xlu1 %v2222_v23  ;;  %v2280_v23 = vld [vmem:[%s6963_s6 + $0x90] sm:$0xff] }
 0xe57   : > { %v2225_v27 = vsel %vm1066_vm6, %v2221_v26, 0.0 }
 0xe58   : > { %2226 = vadd.xlane.f32.xlu0 %v2225_v27  ;;  %v2289_v27 = vld [vmem:[%s6963_s6 + $0xd8] sm:$0xff] }
 0xee3   : > { %v2224_v45 = vpop.xlane.xlu1 %2223 }
 0xee4   : > { %v2229_v7 = vmul.f32 0.03125, %v2224_v45 }
 0xee5   : > { %v2227_v50 = vpop.xlane.xlu0 %2226 }
 0xee6   : > { %v2231_v28 = vsub.f32 %v2220_v22, %v2229_v7  ;;  %v2230_v51 = vmul.f32 0.03125, %v2227_v50 }
 0xee8   : > { %v2232_v58 = vsub.f32 %v2221_v26, %v2230_v51  ;;  %v2233_v59 = vmul.f32 %v2231_v28, %v2231_v28  ;;  %v2281_v26 = vld [vmem:[%s6963_s6 + $0x98] sm:$0xff] }
 0xee9   : > { %v4807_v51 = vcombine.high %v2281_v26, %v2289_v27  ;;  %v4806_v31 = vcombine.low %v2281_v26, %v2289_v27  ;;  %v5570_v26 = vld [vmem:[%s6969_s12 + $0x58] sm:$0xff]  }
 0xeea   : > { %v2235_v60 = vsel %vm1066_vm6, %v2233_v59, 0.0  ;;  %v2234_v29 = vmul.f32 %v2232_v58, %v2232_v58  ;;  %v2266_v59 = vld [vmem:[%s6963_s6 + $0x20] sm:$0xff]  ;;  %v5571_v27 = vld [vmem:[%s6969_s12 + $0xd8] sm:$0xff]  }
 0xeeb   : > { %2236 = vadd.xlane.f32.xlu0 %v2235_v60  ;;  %v2274_v60 = vld [vmem:[%s6963_s6 + $0x60] sm:$0xff] }
 0xeec   : > { %v2238_v30 = vsel %vm1066_vm6, %v2234_v29, 0.0  ;;  %v2275_v29 = vld [vmem:[%s6963_s6 + $0x68] sm:$0xff]  ;;  %v4793_v32 = vcombine.high %v2266_v59, %v2274_v60  ;;  %v4792_v40 = vcombine.low %v2266_v59, %v2274_v60  ;;  %v5575_v59 = vld [vmem:[%s6969_s12 + $0xe0] sm:$0xff]  }
 0xeed   : > { %v5576_v60 = vld [vmem:[%s6969_s12 + $0x20] sm:$0xff]  }
 0xeef   : > { %2239 = vadd.xlane.f32.xlu0 %v2238_v30  ;;  %v4804_v30 = vcombine.low %v2280_v23, %v2288_v24 }
 0xf78   : > { %v2237_v8 = vpop.xlane.xlu0 %2236 }
 0xf79   : > { %v2241_v9 = vmul.f32 0.03125, %v2237_v8  ;;  %v4798_v8 = vcombine.low %v2269_v46, %v2277_v47  ;;  %v2307_v46 = vrot.slane %v6985_v2, %v7060_v62  ;;  %v2303_v47 = vrot.slane %v6985_v2, %v7026_v36 }
 0xf7b   : > { %v2243_v10 = vadd.f32 1e-05, %v2241_v9  ;;  %v4813_v9 = vcombine.high %v2284_v61, %v2292_v25 }
 0xf7c   : > { %v2240_v11 = vpop.xlane.xlu0 %2239 }
 0xf7d   : > { %5718 = vrsqrt.f32 %v2243_v10  ;;  %v2242_v12 = vmul.f32 0.03125, %v2240_v11  ;;  %v4812_v11 = vcombine.low %v2284_v61, %v2292_v25  ;;  %v7340_v61 = vsub.s32 7, %v7023_v35 }
 0xf7f   : > { %v2244_v13 = vadd.f32 1e-05, %v2242_v12 }
 0xf81   : > { %5720 = vrsqrt.f32 %v2244_v13  ;;  %v5558_v13 = vld [vmem:[%s6969_s12 + $0x40] sm:$0xff]  }
 0xf87   : > { %v5719_v16 = vpop.eup %5718 }
 0xf88   : > { %v2247_v18 = vmul.f32 %v5719_v16, %v2231_v28  ;;  %v4805_v28 = vcombine.high %v2280_v23, %v2288_v24  ;;  %v5559_v16 = vld [vmem:[%s6969_s12 + $0xc0] sm:$0xff]   ;;  %v5568_v23 = vld [vmem:[%s6969_s12 + $0x10] sm:$0xff]  }
 0xf89   : > { %v5569_v24 = vld [vmem:[%s6969_s12 + $0x90] sm:$0xff]  }
 0xf8a   : > { %v2253_v20 = vmul.f32 %v2252_v17, %v2247_v18  ;;  %v5561_v18 = vld [vmem:[%s6969_s12 + $0x80] sm:$0xff]  }
 0xf8b   : > { %v5721_v19 = vpop.eup %5720 }
 0xf8c   : > { %v2248_v21 = vmul.f32 %v5721_v19, %v2232_v58  ;;  %v7248_v45 = vadd.f32 %v2258_v52, %v2253_v20  ;;  %v2267_v58 = vld [vmem:[%s6963_s6 + $0x28] sm:$0xff] }
 0xf8d   : > { %v4795_v33 = vcombine.high %v2267_v58, %v2275_v29  ;;  %v4794_v41 = vcombine.low %v2267_v58, %v2275_v29  ;;  %v5562_v19 = vld [vmem:[%s6969_s12 + $0x48] sm:$0xff]   ;;  %v5577_v58 = vld [vmem:[%s6969_s12 + $0xa0] sm:$0xff]  }
 0xf8e   : > { %v2254_v22 = vmul.f32 %v2252_v17, %v2248_v21  ;;  %v5560_v17 = vld [vmem:[%s6969_s12] sm:$0xff]   ;;  %v5565_v20 = vld [vmem:[%s6969_s12 + $0x88] sm:$0xff]   ;;  %v5566_v21 = vld [vmem:[%s6969_s12 + $0x50] sm:$0xff]  }
 0xf8f   : > { %v5578_v29 = vld [vmem:[%s6969_s12 + $0x68] sm:$0xff]  }
 0xf90   : > { %v7250_v7 = vadd.f32 %v2258_v52, %v2254_v22  ;;  %v5563_v52 = vld [vmem:[%s6969_s12 + $0xc8] sm:$0xff]   ;;  %v5567_v22 = vld [vmem:[%s6969_s12 + $0xd0] sm:$0xff]  }
 0xf92   : > { %v7254_v50 = vpack.c.bf16 %v7250_v7, %v7248_v45 }
 0xf94   : > { %4816 = vmatmul.mubr.msk.bf16.vlgmr.msra.gmra.mrb[40].mxu0 %vm1066_vm6, %v7254_v50  ;;  %4817 = vmatmul.mubr.msk.bf16.vlgmr.msra.gmra.mrb[40].mxu1 %vm1066_vm6, %v7254_v50 }
 0xf95   : > { %2626 = vmatpush1.bf16.msra.mxu0 %v4788_v63  ;;  %2669 = vmatpush1.bf16.msra.mxu1 %v4790_v4  ;;  %v2285_v63 = vld [vmem:[%s6963_s6 + $0xb8] sm:$0xff] }
 0xf96   : > { %2627 = vmatprep.subr.bf16.mxu0 %v4805_v28  ;;  %2670 = vmatprep.subr.bf16.mxu1 %v4807_v51  ;;  %v2293_v4 = vld [vmem:[%s6963_s6 + $0xf8] sm:$0xff]  ;;  %v5574_v51 = vld [vmem:[%s6969_s12 + $0x60] sm:$0xff]  }
 0xf97   : > { %2657 = vmatprep.mubr.bf16.mxu0 %v6306_v56  ;;  %2700 = vmatprep.mubr.bf16.mxu1 %v6306_v56  ;;  %v4815_v10 = vcombine.high %v2285_v63, %v2293_v4  ;;  %v4814_v12 = vcombine.low %v2285_v63, %v2293_v4  ;;  %v5573_v28 = vld [vmem:[%s6969_s12 + $0x98] sm:$0xff]  }
 0xf99   : > { %2628 = vmatpush1.bf16.msra.mxu0 %v4804_v30  ;;  %2671 = vmatpush1.bf16.msra.mxu1 %v4806_v31  ;;  %v5579_v30 = vld [vmem:[%s6969_s12 + $0xe8] sm:$0xff]  }
 0xf9a   : > { %2711 = vmatprep.subr.bf16.mxu0 %v4793_v32  ;;  %2754 = vmatprep.subr.bf16.mxu1 %v4795_v33  ;;  %v5580_v31 = vld [vmem:[%s6969_s12 + $0x28] sm:$0xff]   ;;  %v5582_v33 = vld [vmem:[%s6969_s12 + $0x70] sm:$0xff]  }
 0xf9b   : > { %v5581_v32 = vld [vmem:[%s6969_s12 + $0xa8] sm:$0xff]  }
 0xf9c   : > { %4818 = vmatmul.mubr.msk.bf16.vlgmr.msra.gmra.mrb[44].mxu0 %vm1066_vm6, %v7254_v50  ;;  %4819 = vmatmul.mubr.msk.bf16.vlgmr.msra.gmra.mrb[44].mxu1 %vm1066_vm6, %v7254_v50 }
 0xf9d   : > { %2712 = vmatpush1.bf16.msra.mxu0 %v4792_v40  ;;  %2755 = vmatpush1.bf16.msra.mxu1 %v4794_v41  ;;  %v5587_v40 = vld [vmem:[%s6969_s12 + $0xf8] sm:$0xff]  }
 0xf9e   : > { %2713 = vmatprep.subr.bf16.mxu0 %v4809_v42  ;;  %2756 = vmatprep.subr.bf16.mxu1 %v4811_v55  ;;  %v5588_v41 = vld [vmem:[%s6969_s12 + $0x38] sm:$0xff]   ;;  %v5590_v55 = vld [vmem:[%s6969_s12 + $0x140] sm:$0xff]  }
 0xf9f   : > { %2743 = vmatprep.mubr.bf16.mxu0 %v6306_v56  ;;  %2786 = vmatprep.mubr.bf16.mxu1 %v6306_v56  ;;  %v5589_v42 = vld [vmem:[%s6969_s12 + $0xb8] sm:$0xff]  }
 0xfa1   : > { %2714 = vmatpush1.bf16.msra.mxu0 %v4808_v48  ;;  %2757 = vmatpush1.bf16.msra.mxu1 %v4810_v49  ;;  %v2311_v48 = vrot.slane %v6985_v2, %v7212_v15  ;;  %v7337_v49 = vsub.s32 4, %v7023_v35 }
 0xfa2   : > { %2797 = vmatprep.subr.bf16.mxu0 %v4797_v53  ;;  %2840 = vmatprep.subr.bf16.mxu1 %v4799_v54 }
 0xfa4   : > { %4820 = vmatmul.mubr.msk.bf16.vlgmr.msra.gmra.mrb[48].mxu0 %vm1066_vm6, %v7254_v50  ;;  %4821 = vmatmul.mubr.msk.bf16.vlgmr.msra.gmra.mrb[48].mxu1 %vm1066_vm6, %v7254_v50 }
 0xfa5   : > { %2798 = vmatpush1.bf16.msra.mxu0 %v4796_v5  ;;  %2841 = vmatpush1.bf16.msra.mxu1 %v4798_v8 }
 0xfa6   : > { %2799 = vmatprep.subr.bf16.mxu0 %v4813_v9  ;;  %2842 = vmatprep.subr.bf16.mxu1 %v4815_v10 }
 0xfa7   : > { %2829 = vmatprep.mubr.bf16.mxu0 %v6306_v56  ;;  %2872 = vmatprep.mubr.bf16.mxu1 %v6306_v56  ;;  %v5564_v56 = vld [vmem:[%s6969_s12 + $0x8] sm:$0xff]  }
 0xfa9   : > { %2800 = vmatpush1.bf16.msra.mxu0 %v4812_v11  ;;  %2843 = vmatpush1.bf16.msra.mxu1 %v4814_v12 }
 0xfaa   : > { %5018 = vmatprep.subr.bf16.mxu0 %v5558_v13  ;;  %5040 = vmatprep.subr.bf16.mxu1 %v5559_v16 }
 0xfac   : > { %4822 = vmatmul.mubr.msk.bf16.vlgmr.msra.gmra.mrb[52].mxu0 %vm1066_vm6, %v7254_v50  ;;  %4823 = vmatmul.mubr.msk.bf16.vlgmr.msra.gmra.mrb[52].mxu1 %vm1066_vm6, %v7254_v50  ;;  %v5572_v50 = vld [vmem:[%s6969_s12 + $0x18] sm:$0xff]  }
 0xfad   : > { %5019 = vmatpush3.bf16.msra.mxu0 %v5560_v17  ;;  %5041 = vmatpush3.bf16.msra.mxu1 %v5561_v18  ;;  %v2315_v18 = vrot.slane %v6985_v2, %v7337_v49 }
 0xfae   : > { %5020 = vmatprep.subr.bf16.mxu0 %v5562_v19  ;;  %5042 = vmatprep.subr.bf16.mxu1 %v5563_v52  ;;  %v2323_v19 = vrot.slane %v6985_v2, %v7240_v57 }
 0xfb1   : > { %5021 = vmatpush3.bf16.msra.mxu0 %v5564_v56  ;;  %5043 = vmatpush3.bf16.msra.mxu1 %v5565_v20  ;;  %v2319_v56 = vrot.slane %v6985_v2, %v7235_v14  ;;  %v2327_v20 = vrot.slane %v6985_v2, %v7340_v61 }
 0xfb2   : > { %5022 = vmatprep.subr.bf16.mxu0 %v5566_v21  ;;  %5044 = vmatprep.subr.bf16.mxu1 %v5567_v22 }
 0xfb5   : > { %5023 = vmatpush3.bf16.msra.mxu0 %v5568_v23  ;;  %5045 = vmatpush3.bf16.msra.mxu1 %v5569_v24 }
 0xfb6   : > { %5024 = vmatprep.subr.bf16.mxu0 %v5570_v26  ;;  %5046 = vmatprep.subr.bf16.mxu1 %v5571_v27 }
 0xfb9   : > { %5025 = vmatpush3.bf16.msra.mxu0 %v5572_v50  ;;  %5047 = vmatpush3.bf16.msra.mxu1 %v5573_v28 }
 0xfba   : > { %5026 = vmatprep.subr.bf16.mxu0 %v5574_v51  ;;  %5048 = vmatprep.subr.bf16.mxu1 %v5575_v59 }
 0xfbd   : > { %5027 = vmatpush3.bf16.msra.mxu0 %v5576_v60  ;;  %5049 = vmatpush3.bf16.msra.mxu1 %v5577_v58 }
 0xfbe   : > { %5028 = vmatprep.subr.bf16.mxu0 %v5578_v29  ;;  %5050 = vmatprep.subr.bf16.mxu1 %v5579_v30 }
 0xfc1   : > { %5029 = vmatpush3.bf16.msra.mxu0 %v5580_v31  ;;  %5051 = vmatpush3.bf16.msra.mxu1 %v5581_v32  ;;  %v5592_v31 = vld [vmem:[%s6969_s12 + $0x100] sm:$0xff]  }
 0xfc2   : > { %5030 = vmatprep.subr.bf16.mxu0 %v5582_v33  ;;  %5052 = vmatprep.subr.bf16.mxu1 %v5583_v34  ;;  %v5593_v32 = vld [vmem:[%s6969_s12 + $0x180] sm:$0xff]  }
 0xfc5   : > { %5031 = vmatpush3.bf16.msra.mxu0 %v5584_v6  ;;  %5053 = vmatpush3.bf16.msra.mxu1 %v5585_v37  ;;  %v5594_v37 = vld [vmem:[%s6969_s12 + $0x148] sm:$0xff]  }
 0xfc6   : > { %5032 = vmatprep.subr.bf16.mxu0 %v5586_v39  ;;  %5054 = vmatprep.subr.bf16.mxu1 %v5587_v40  ;;  %v5595_v39 = vld [vmem:[%s6969_s12 + $0x1c8] sm:$0xff]   ;;  %v2331_v40 = vrot.slane %v6987_v3, %v7031_v38  ;;  %v2335_v38 = vrot.slane %v6987_v3, %v7026_v36 }
 0xfc9   : > { %5033 = vmatpush3.bf16.msra.mxu0 %v5588_v41  ;;  %5055 = vmatpush3.bf16.msra.mxu1 %v5589_v42 }
 0xfca   : > { %5062 = vmatprep.subr.bf16.mxu0 %v5590_v55  ;;  %5084 = vmatprep.subr.bf16.mxu1 %v5591_v43 }
0x1067   : > { %v2573_v53 = vpop.f32.mrb[40].mxu0  ;;  %v2616_v54 = vpop.f32.mrb[40].mxu1 }
0x1068   : > { %v2574_v25 = vadd.f32 %v2573_v53, %v2299_v44  ;;  %v2617_v63 = vadd.f32 %v2616_v54, %v2307_v46  ;;  %v2575_v4 = vpop.f32.mrb[41].mxu0  ;;  %v2618_v5 = vpop.f32.mrb[41].mxu1 }
0x1069   : > { %v2576_v8 = vadd.f32 %v2575_v4, %v2303_v47  ;;  %v2619_v9 = vadd.f32 %v2618_v5, %v2311_v48  ;;  %v2577_v10 = vpop.f32.mrb[42].mxu0  ;;  %v2620_v11 = vpop.f32.mrb[42].mxu1  ;;  %v5597_v4 = vld [vmem:[%s6969_s12 + $0x188] sm:$0xff]  }
0x106a   : > { %v2578_v12 = vadd.f32 %v2577_v10, %v2299_v44  ;;  %v2621_v13 = vadd.f32 %v2620_v11, %v2307_v46  ;;  %v2579_v16 = vpop.f32.mrb[43].mxu0  ;;  %v2622_v17 = vpop.f32.mrb[43].mxu1  ;;  %v2883_v21 = vmax.f32 %v2574_v25, 0.0  ;;  %v2885_v22 = vmax.f32 %v2617_v63, 0.0  ;;  %v5596_v63 = vld [vmem:[%s6969_s12 + $0x108] sm:$0xff]   ;;  %v5598_v11 = vld [vmem:[%s6969_s12 + $0x150] sm:$0xff]  }
0x106b   : > { %v2580_v35 = vadd.f32 %v2579_v16, %v2303_v47  ;;  %v2623_v52 = vadd.f32 %v2622_v17, %v2311_v48  ;;  %v2884_v26 = vmax.f32 %v2576_v8, 0.0  ;;  %v2886_v27 = vmax.f32 %v2619_v9, 0.0 }
0x106c   : > { %v2899_v23 = vmax.f32 %v2578_v12, 0.0  ;;  %v2901_v24 = vmax.f32 %v2621_v13, 0.0  ;;  %v2339_v44 = vrot.slane %v6987_v3, %v7060_v62  ;;  %v2343_v62 = vrot.slane %v6987_v3, %v7212_v15  ;;  %v5599_v12 = vld [vmem:[%s6969_s12 + $0x1d0] sm:$0xff]  }
0x106d   : > { %v2900_v50 = vmax.f32 %v2580_v35, 0.0  ;;  %v2902_v28 = vmax.f32 %v2623_v52, 0.0 }
0x106e   : > { %v2915_v51 = vpack.c.bf16 %v2899_v23, %v2883_v21  ;;  %v2917_v59 = vpack.c.bf16 %v2901_v24, %v2885_v22  ;;  %v5601_v21 = vld [vmem:[%s6969_s12 + $0x190] sm:$0xff]  }
0x106f   : > { %v2916_v60 = vpack.c.bf16 %v2900_v50, %v2884_v26  ;;  %v2918_v58 = vpack.c.bf16 %v2902_v28, %v2886_v27  ;;  %v2659_v29 = vpop.f32.mrb[44].mxu0  ;;  %v2702_v30 = vpop.f32.mrb[44].mxu1  ;;  %v5602_v27 = vld [vmem:[%s6969_s12 + $0x158] sm:$0xff]  }
0x1070   : > { %v2660_v2 = vadd.f32 %v2659_v29, %v2315_v18  ;;  %v2703_v33 = vadd.f32 %v2702_v30, %v2323_v19  ;;  %v2661_v34 = vpop.f32.mrb[45].mxu0  ;;  %v2704_v6 = vpop.f32.mrb[45].mxu1  ;;  %v5603_v50 = vld [vmem:[%s6969_s12 + $0x1d8] sm:$0xff]  }
0x1071   : > { %v2662_v41 = vadd.f32 %v2661_v34, %v2319_v56  ;;  %v2705_v42 = vadd.f32 %v2704_v6, %v2327_v20  ;;  %v2663_v55 = vpop.f32.mrb[46].mxu0  ;;  %v2706_v43 = vpop.f32.mrb[46].mxu1  ;;  %3991 = vmatprep.mubr.bf16.mxu0 %v2916_v60  ;;  %4032 = vmatprep.mubr.bf16.mxu1 %v2918_v58  ;;  %v2347_v58 = vrot.slane %v6987_v3, %v7337_v49 }
0x1072   : > { %v2664_v46 = vadd.f32 %v2663_v55, %v2315_v18  ;;  %v2707_v47 = vadd.f32 %v2706_v43, %v2323_v19  ;;  %v2665_v48 = vpop.f32.mrb[47].mxu0  ;;  %v2708_v53 = vpop.f32.mrb[47].mxu1  ;;  %3992 = vmatmul.mubr.bf16.vlgmr.msra.gmra.mrb[56].mxu0 %v2915_v51  ;;  %4033 = vmatmul.mubr.bf16.vlgmr.msra.gmra.mrb[56].mxu1 %v2917_v59  ;;  %v2887_v5 = vmax.f32 %v2660_v2, 0.0  ;;  %v2889_v8 = vmax.f32 %v2703_v33, 0.0 }
0x1073   : > { %v2666_v54 = vadd.f32 %v2665_v48, %v2319_v56  ;;  %v2709_v25 = vadd.f32 %v2708_v53, %v2327_v20  ;;  %5063 = vmatpush3.bf16.msra.mxu0 %v5592_v31  ;;  %5085 = vmatpush3.bf16.msra.mxu1 %v5593_v32  ;;  %v2888_v36 = vmax.f32 %v2662_v41, 0.0  ;;  %v2890_v13 = vmax.f32 %v2705_v42, 0.0  ;;  %v5600_v20 = vld [vmem:[%s6969_s12 + $0x110] sm:$0xff]  }
0x1074   : > { %v2903_v9 = vmax.f32 %v2664_v46, 0.0  ;;  %v2905_v10 = vmax.f32 %v2707_v47, 0.0  ;;  %5064 = vmatprep.subr.bf16.mxu0 %v5594_v37  ;;  %5086 = vmatprep.subr.bf16.mxu1 %v5595_v39  ;;  %v2355_v2 = vrot.slane %v6987_v3, %v7240_v57  ;;  %v2351_v33 = vrot.slane %v6987_v3, %v7235_v14  ;;  %v5604_v37 = vld [vmem:[%s6969_s12 + $0x118] sm:$0xff]   ;;  %v5606_v57 = vld [vmem:[%s6969_s12 + $0x160] sm:$0xff]  }
0x1075   : > { %v2904_v16 = vmax.f32 %v2666_v54, 0.0  ;;  %v2906_v17 = vmax.f32 %v2709_v25, 0.0  ;;  %v5605_v39 = vld [vmem:[%s6969_s12 + $0x198] sm:$0xff]  }
0x1076   : > { %v7366_v18 = vpack.c.bf16 %v2903_v9, %v2887_v5  ;;  %v7368_v19 = vpack.c.bf16 %v2905_v10, %v2889_v8 }
0x1077   : > { %v2920_v15 = vpack.c.bf16 %v2904_v16, %v2888_v36  ;;  %v2922_v35 = vpack.c.bf16 %v2906_v17, %v2890_v13  ;;  %5065 = vmatpush3.bf16.msra.mxu0 %v5596_v63  ;;  %5087 = vmatpush3.bf16.msra.mxu1 %v5597_v4  ;;  %v2745_v52 = vpop.f32.mrb[48].mxu0  ;;  %v2788_v56 = vpop.f32.mrb[48].mxu1  ;;  %v5608_v4 = vld [vmem:[%s6969_s12 + $0x120] sm:$0xff]  }
0x1078   : > { %v2746_v22 = vadd.f32 %v2745_v52, %v2331_v40  ;;  %v2789_v23 = vadd.f32 %v2788_v56, %v2339_v44  ;;  %v2747_v24 = vpop.f32.mrb[49].mxu0  ;;  %v2790_v26 = vpop.f32.mrb[49].mxu1  ;;  %5066 = vmatprep.subr.bf16.mxu0 %v5598_v11  ;;  %5088 = vmatprep.subr.bf16.mxu1 %v5599_v12  ;;  %v5610_v11 = vld [vmem:[%s6969_s12 + $0x168] sm:$0xff]  }
0x1079   : > { %v2748_v28 = vadd.f32 %v2747_v24, %v2335_v38  ;;  %v2791_v51 = vadd.f32 %v2790_v26, %v2343_v62  ;;  %v2749_v59 = vpop.f32.mrb[50].mxu0  ;;  %v2792_v60 = vpop.f32.mrb[50].mxu1  ;;  %4073 = vmatprep.mubr.bf16.mxu0 %v2920_v15  ;;  %4114 = vmatprep.mubr.bf16.mxu1 %v2922_v35  ;;  %v5611_v12 = vld [vmem:[%s6969_s12 + $0x1e8] sm:$0xff]  }
0x107a   : > { %v2750_v29 = vadd.f32 %v2749_v59, %v2331_v40  ;;  %v2793_v30 = vadd.f32 %v2792_v60, %v2339_v44  ;;  %v2751_v31 = vpop.f32.mrb[51].mxu0  ;;  %v2794_v32 = vpop.f32.mrb[51].mxu1  ;;  %v2359_v40 = vrot.slane %v6987_v3, %v7340_v61  ;;  %v2891_v41 = vmax.f32 %v2746_v22, 0.0  ;;  %v5607_v44 = vld [vmem:[%s6969_s12 + $0x1e0] sm:$0xff]   ;;  %v5612_v22 = vld [vmem:[%s6969_s12 + $0x128] sm:$0xff]  }
0x107b   : > { %v2752_v34 = vadd.f32 %v2751_v31, %v2335_v38  ;;  %v2795_v6 = vadd.f32 %v2794_v32, %v2343_v62  ;;  %5067 = vmatpush3.bf16.msra.mxu0 %v5600_v20  ;;  %5089 = vmatpush3.bf16.msra.mxu1 %v5601_v21  ;;  %v2893_v42 = vmax.f32 %v2789_v23, 0.0  ;;  %v2892_v14 = vmax.f32 %v2748_v28, 0.0  ;;  %v5609_v62 = vld [vmem:[%s6969_s12 + $0x1a0] sm:$0xff]   ;;  %v5613_v23 = vld [vmem:[%s6969_s12 + $0x1a8] sm:$0xff]   ;;  %v5614_v28 = vld [vmem:[%s6969_s12 + $0x170] sm:$0xff]  }
0x107c   : > { %v2907_v55 = vmax.f32 %v2750_v29, 0.0  ;;  %v2909_v43 = vmax.f32 %v2793_v30, 0.0  ;;  %5068 = vmatprep.subr.bf16.mxu0 %v5602_v27  ;;  %5090 = vmatprep.subr.bf16.mxu1 %v5603_v50  ;;  %v2894_v46 = vmax.f32 %v2791_v51, 0.0  ;;  %v5615_v51 = vld [vmem:[%s6969_s12 + $0x1f0] sm:$0xff]  }
0x107d   : > { %v2908_v47 = vmax.f32 %v2752_v34, 0.0  ;;  %v2910_v48 = vmax.f32 %v2795_v6, 0.0  ;;  %v5617_v34 = vld [vmem:[%s6969_s12 + $0x1b0] sm:$0xff]   ;;  %v5618_v6 = vld [vmem:[%s6969_s12 + $0x178] sm:$0xff]  }
0x107e   : > { %v7386_v53 = vpack.c.bf16 %v2907_v55, %v2891_v41  ;;  %v7388_v38 = vpack.c.bf16 %v2909_v43, %v2893_v42  ;;  %v5622_v41 = vld [vmem:[%s6969_s12 + $0x240] sm:$0xff]  }
0x107f   : > { %v7390_v3 = vpack.c.bf16 %v2908_v47, %v2892_v14  ;;  %v7392_v54 = vpack.c.bf16 %v2910_v48, %v2894_v46  ;;  %5069 = vmatpush3.bf16.msra.mxu0 %v5604_v37  ;;  %5091 = vmatpush3.bf16.msra.mxu1 %v5605_v39  ;;  %v2831_v25 = vpop.f32.mrb[52].mxu0  ;;  %v2874_v63 = vpop.f32.mrb[52].mxu1  ;;  %v5619_v37 = vld [vmem:[%s6969_s12 + $0x1f8] sm:$0xff]   ;;  %v5623_v42 = vld [vmem:[%s6969_s12 + $0x2c0] sm:$0xff]   ;;  %v5628_v14 = vld [vmem:[%s6969_s12 + $0x208] sm:$0xff]  }
0x1080   : > { %v2832_v5 = vadd.f32 %v2831_v25, %v2347_v58  ;;  %v2875_v8 = vadd.f32 %v2874_v63, %v2355_v2  ;;  %v2833_v9 = vpop.f32.mrb[53].mxu0  ;;  %v2876_v10 = vpop.f32.mrb[53].mxu1  ;;  %5070 = vmatprep.subr.bf16.mxu0 %v5606_v57  ;;  %5092 = vmatprep.subr.bf16.mxu1 %v5607_v44  ;;  %v5620_v39 = vld [vmem:[%s6969_s12 + $0x138] sm:$0xff]   ;;  %v5624_v55 = vld [vmem:[%s6969_s12 + $0x200] sm:$0xff]   ;;  %v5626_v57 = vld [vmem:[%s6969_s12 + $0x248] sm:$0xff]  }
0x1081   : > { %v2834_v36 = vadd.f32 %v2833_v9, %v2351_v33  ;;  %v2877_v13 = vadd.f32 %v2876_v10, %v2359_v40  ;;  %v2835_v16 = vpop.f32.mrb[54].mxu0  ;;  %v2878_v17 = vpop.f32.mrb[54].mxu1  ;;  %v5625_v43 = vld [vmem:[%s6969_s12 + $0x280] sm:$0xff]   ;;  %v5627_v44 = vld [vmem:[%s6969_s12 + $0x2c8] sm:$0xff]   ;;  %v5630_v47 = vld [vmem:[%s6969_s12 + $0x250] sm:$0xff]  }
0x1082   : > { %v2836_v15 = vadd.f32 %v2835_v16, %v2347_v58  ;;  %v2879_v35 = vadd.f32 %v2878_v17, %v2355_v2  ;;  %v2837_v52 = vpop.f32.mrb[55].mxu0  ;;  %v2880_v56 = vpop.f32.mrb[55].mxu1  ;;  %v2895_v24 = vmax.f32 %v2832_v5, 0.0  ;;  %v2897_v26 = vmax.f32 %v2875_v8, 0.0  ;;  %v5629_v46 = vld [vmem:[%s6969_s12 + $0x288] sm:$0xff]   ;;  %v5633_v48 = vld [vmem:[%s6969_s12 + $0x290] sm:$0xff]  }
0x1083   : > { %v2838_v20 = vadd.f32 %v2837_v52, %v2351_v33  ;;  %v2881_v21 = vadd.f32 %v2880_v56, %v2359_v40  ;;  %5071 = vmatpush3.bf16.msra.mxu0 %v5608_v4  ;;  %5093 = vmatpush3.bf16.msra.mxu1 %v5609_v62  ;;  %v2896_v59 = vmax.f32 %v2834_v36, 0.0  ;;  %v2898_v60 = vmax.f32 %v2877_v13, 0.0  ;;  %v5616_v33 = vld [vmem:[%s6969_s12 + $0x130] sm:$0xff]   ;;  %v5621_v40 = vld [vmem:[%s6969_s12 + $0x1b8] sm:$0xff]   ;;  %v5638_v4 = vld [vmem:[%s6969_s12 + $0x260] sm:$0xff]  }
0x1084   : > { %v2911_v27 = vmax.f32 %v2836_v15, 0.0  ;;  %v2913_v50 = vmax.f32 %v2879_v35, 0.0  ;;  %5072 = vmatprep.subr.bf16.mxu0 %v5610_v11  ;;  %5094 = vmatprep.subr.bf16.mxu1 %v5611_v12  ;;  %v5635_v25 = vld [vmem:[%s6969_s12 + $0x2d8] sm:$0xff]   ;;  %v5639_v62 = vld [vmem:[%s6969_s12 + $0x2e0] sm:$0xff]   ;;  %v5642_v9 = vld [vmem:[%s6969_s12 + $0x268] sm:$0xff]  }
0x1085   : > { %v2912_v58 = vmax.f32 %v2838_v20, 0.0  ;;  %v2914_v29 = vmax.f32 %v2881_v21, 0.0  ;;  %v5637_v63 = vld [vmem:[%s6969_s12 + $0x298] sm:$0xff]   ;;  %v5640_v5 = vld [vmem:[%s6969_s12 + $0x220] sm:$0xff]   ;;  %v5643_v10 = vld [vmem:[%s6969_s12 + $0x2e8] sm:$0xff]  }
0x1086   : > { %v7402_v30 = vpack.c.bf16 %v2911_v27, %v2895_v24  ;;  %v7404_v31 = vpack.c.bf16 %v2913_v50, %v2897_v26  ;;  %v5641_v8 = vld [vmem:[%s6969_s12 + $0x2a0] sm:$0xff]   ;;  %v5644_v11 = vld [vmem:[%s6969_s12 + $0x228] sm:$0xff]   ;;  %v5646_v36 = vld [vmem:[%s6969_s12 + $0x270] sm:$0xff]  }
0x1087   : > { %v7406_v32 = vpack.c.bf16 %v2912_v58, %v2896_v59  ;;  %v7408_v2 = vpack.c.bf16 %v2914_v29, %v2898_v60  ;;  %5073 = vmatpush3.bf16.msra.mxu0 %v5612_v22  ;;  %5095 = vmatpush3.bf16.msra.mxu1 %v5613_v23  ;;  %v5645_v12 = vld [vmem:[%s6969_s12 + $0x2a8] sm:$0xff]   ;;  %v5647_v13 = vld [vmem:[%s6969_s12 + $0x2f0] sm:$0xff]   ;;  %v5650_v15 = vld [vmem:[%s6969_s12 + $0x278] sm:$0xff]  }
0x1088   : > { %5074 = vmatprep.subr.bf16.mxu0 %v5614_v28  ;;  %5096 = vmatprep.subr.bf16.mxu1 %v5615_v51  ;;  %v5648_v16 = vld [vmem:[%s6969_s12 + $0x230] sm:$0xff]   ;;  %v5651_v35 = vld [vmem:[%s6969_s12 + $0x2f8] sm:$0xff]   ;;  %v5654_v20 = vld [vmem:[%s6969_s12 + $0x340] sm:$0xff]  }
0x1089   : > { %v5649_v17 = vld [vmem:[%s6969_s12 + $0x2b0] sm:$0xff]   ;;  %v5652_v52 = vld [vmem:[%s6969_s12 + $0x238] sm:$0xff]   ;;  %v5655_v21 = vld [vmem:[%s6969_s12 + $0x3c0] sm:$0xff]  }
0x108a   : > { %v5653_v56 = vld [vmem:[%s6969_s12 + $0x2b8] sm:$0xff]   ;;  %v5656_v22 = vld [vmem:[%s6969_s12 + $0x300] sm:$0xff]   ;;  %v5658_v24 = vld [vmem:[%s6969_s12 + $0x348] sm:$0xff]  }
0x108b   : > { %5075 = vmatpush3.bf16.msra.mxu0 %v5616_v33  ;;  %5097 = vmatpush3.bf16.msra.mxu1 %v5617_v34  ;;  %v5657_v23 = vld [vmem:[%s6969_s12 + $0x380] sm:$0xff]   ;;  %v5659_v26 = vld [vmem:[%s6969_s12 + $0x3c8] sm:$0xff]   ;;  %v5662_v28 = vld [vmem:[%s6969_s12 + $0x350] sm:$0xff]  }
0x108c   : > { %5076 = vmatprep.subr.bf16.mxu0 %v5618_v6  ;;  %5098 = vmatprep.subr.bf16.mxu1 %v5619_v37  ;;  %v5660_v27 = vld [vmem:[%s6969_s12 + $0x308] sm:$0xff]   ;;  %v5665_v51 = vld [vmem:[%s6969_s12 + $0x390] sm:$0xff]   ;;  %v5666_v59 = vld [vmem:[%s6969_s12 + $0x358] sm:$0xff]  }
0x108d   : > { %v5661_v50 = vld [vmem:[%s6969_s12 + $0x388] sm:$0xff]   ;;  %v5667_v60 = vld [vmem:[%s6969_s12 + $0x3d8] sm:$0xff]   ;;  %v5672_v33 = vld [vmem:[%s6969_s12 + $0x320] sm:$0xff]  }
0x108e   : > { %v5668_v58 = vld [vmem:[%s6969_s12 + $0x318] sm:$0xff]   ;;  %v5673_v34 = vld [vmem:[%s6969_s12 + $0x3a0] sm:$0xff]   ;;  %v5674_v6 = vld [vmem:[%s6969_s12 + $0x368] sm:$0xff]  }
0x108f   : > { %5077 = vmatpush3.bf16.msra.mxu0 %v5620_v39  ;;  %5099 = vmatpush3.bf16.msra.mxu1 %v5621_v40  ;;  %v5669_v29 = vld [vmem:[%s6969_s12 + $0x398] sm:$0xff]   ;;  %v5675_v37 = vld [vmem:[%s6969_s12 + $0x3e8] sm:$0xff]  }
0x1090   : > { %5106 = vmatprep.subr.bf16.mxu0 %v5622_v41  ;;  %5128 = vmatprep.subr.bf16.mxu1 %v5623_v42  ;;  %v5676_v39 = vld [vmem:[%s6969_s12 + $0x328] sm:$0xff]   ;;  %v5678_v41 = vld [vmem:[%s6969_s12 + $0x370] sm:$0xff]  }
0x1091   : > { %v5677_v40 = vld [vmem:[%s6969_s12 + $0x3a8] sm:$0xff]   ;;  %v5679_v42 = vld [vmem:[%s6969_s12 + $0x3f0] sm:$0xff]  }
0x1092   : > { %4074 = vmatmul.mubr.bf16.vlgmr.msra.gmra.mrb[60].mxu0 %v7366_v18  ;;  %4115 = vmatmul.mubr.bf16.vlgmr.msra.gmra.mrb[60].mxu1 %v7368_v19  ;;  %v5631_v18 = vld [vmem:[%s6969_s12 + $0x2d0] sm:$0xff]  }
0x1093   : > { %5107 = vmatpush3.bf16.msra.mxu0 %v5624_v55  ;;  %4155 = vmatprep.mubr.bf16.mxu0 %v7390_v3  ;;  %v5632_v19 = vld [vmem:[%s6969_s12 + $0x210] sm:$0xff]   ;;  %v5634_v3 = vld [vmem:[%s6969_s12 + $0x258] sm:$0xff]  }
0x1094   : > { %5129 = vmatpush3.bf16.msra.mxu1 %v5625_v43  ;;  %4196 = vmatprep.mubr.bf16.mxu1 %v7392_v54  ;;  %v5636_v54 = vld [vmem:[%s6969_s12 + $0x218] sm:$0xff]   ;;  %v5680_v55 = vld [vmem:[%s6969_s12 + $0x330] sm:$0xff]  }
0x1095   : > { %5108 = vmatprep.subr.bf16.mxu0 %v5626_v57  ;;  %5130 = vmatprep.subr.bf16.mxu1 %v5627_v44  ;;  %v5681_v43 = vld [vmem:[%s6969_s12 + $0x3b0] sm:$0xff]   ;;  %v5682_v57 = vld [vmem:[%s6969_s12 + $0x378] sm:$0xff]  }
0x1096   : > { %v5683_v44 = vld [vmem:[%s6969_s12 + $0x3f8] sm:$0xff]  }
0x1097   : > { %5109 = vmatpush3.bf16.msra.mxu0 %v5628_v14  ;;  %v5684_v14 = vld [vmem:[%s6969_s12 + $0x338] sm:$0xff]  }
0x1098   : > { %5131 = vmatpush3.bf16.msra.mxu1 %v5629_v46  ;;  %5110 = vmatprep.subr.bf16.mxu0 %v5630_v47  ;;  %v5685_v46 = vld [vmem:[%s6969_s12 + $0x3b8] sm:$0xff]  }
0x1099   : > { %5132 = vmatprep.subr.bf16.mxu1 %v5631_v18 }
0x109b   : > { %5111 = vmatpush3.bf16.msra.mxu0 %v5632_v19  ;;  %v3190_v19 = vrot.slane %v6981_v0, %v7337_v49 }
0x109c   : > { %5133 = vmatpush3.bf16.msra.mxu1 %v5633_v48  ;;  %5112 = vmatprep.subr.bf16.mxu0 %v5634_v3 }
0x109d   : > { %5134 = vmatprep.subr.bf16.mxu1 %v5635_v25 }
0x109f   : > { %5113 = vmatpush3.bf16.msra.mxu0 %v5636_v54 }
0x10a0   : > { %5135 = vmatpush3.bf16.msra.mxu1 %v5637_v63  ;;  %5114 = vmatprep.subr.bf16.mxu0 %v5638_v4 }
0x10a1   : > { %5136 = vmatprep.subr.bf16.mxu1 %v5639_v62 }
0x10a3   : > { %5115 = vmatpush3.bf16.msra.mxu0 %v5640_v5 }
0x10a4   : > { %5137 = vmatpush3.bf16.msra.mxu1 %v5641_v8  ;;  %5116 = vmatprep.subr.bf16.mxu0 %v5642_v9 }
0x10a5   : > { %5138 = vmatprep.subr.bf16.mxu1 %v5643_v10 }
0x10a7   : > { %5117 = vmatpush3.bf16.msra.mxu0 %v5644_v11 }
0x10a8   : > { %5139 = vmatpush3.bf16.msra.mxu1 %v5645_v12  ;;  %5118 = vmatprep.subr.bf16.mxu0 %v5646_v36 }
0x10a9   : > { %5140 = vmatprep.subr.bf16.mxu1 %v5647_v13 }
0x10ab   : > { %5119 = vmatpush3.bf16.msra.mxu0 %v5648_v16 }
0x10ac   : > { %5141 = vmatpush3.bf16.msra.mxu1 %v5649_v17  ;;  %5120 = vmatprep.subr.bf16.mxu0 %v5650_v15 }
0x10ad   : > { %5142 = vmatprep.subr.bf16.mxu1 %v5651_v35 }
0x10af   : > { %5121 = vmatpush3.bf16.msra.mxu0 %v5652_v52 }
0x10b0   : > { %5143 = vmatpush3.bf16.msra.mxu1 %v5653_v56  ;;  %5150 = vmatprep.subr.bf16.mxu0 %v5654_v20 }
0x10b1   : > { %5172 = vmatprep.subr.bf16.mxu1 %v5655_v21 }
0x10b2   : > { %4156 = vmatmul.mubr.bf16.vlgmr.msra.gmra.mrb[64].mxu0 %v7386_v53  ;;  %v5663_v53 = vld [vmem:[%s6969_s12 + $0x3d0] sm:$0xff]  }
0x10b3   : > { %4197 = vmatmul.mubr.bf16.vlgmr.msra.gmra.mrb[64].mxu1 %v7388_v38  ;;  %5151 = vmatpush3.bf16.msra.mxu0 %v5656_v22  ;;  %v5664_v38 = vld [vmem:[%s6969_s12 + $0x310] sm:$0xff]  }
0x10b4   : > { %4237 = vmatprep.mubr.bf16.mxu0 %v7406_v32  ;;  %5173 = vmatpush3.bf16.msra.mxu1 %v5657_v23  ;;  %v5670_v32 = vld [vmem:[%s6969_s12 + $0x360] sm:$0xff]  }
0x10b5   : > { %4278 = vmatprep.mubr.bf16.mxu1 %v7408_v2  ;;  %5152 = vmatprep.subr.bf16.mxu0 %v5658_v24  ;;  %v5671_v2 = vld [vmem:[%s6969_s12 + $0x3e0] sm:$0xff]  }
0x10b6   : > { %5174 = vmatprep.subr.bf16.mxu1 %v5659_v26 }
0x10b7   : > { %5153 = vmatpush3.bf16.msra.mxu0 %v5660_v27 }
0x10b8   : > { %5175 = vmatpush3.bf16.msra.mxu1 %v5661_v50  ;;  %5154 = vmatprep.subr.bf16.mxu0 %v5662_v28 }
0x10b9   : > { %5176 = vmatprep.subr.bf16.mxu1 %v5663_v53 }
0x10bb   : > { %5155 = vmatpush3.bf16.msra.mxu0 %v5664_v38 }
0x10bc   : > { %5177 = vmatpush3.bf16.msra.mxu1 %v5665_v51  ;;  %5156 = vmatprep.subr.bf16.mxu0 %v5666_v59 }
0x10bd   : > { %5178 = vmatprep.subr.bf16.mxu1 %v5667_v60 }
0x10bf   : > { %5157 = vmatpush3.bf16.msra.mxu0 %v5668_v58 }
0x10c0   : > { %5179 = vmatpush3.bf16.msra.mxu1 %v5669_v29  ;;  %5158 = vmatprep.subr.bf16.mxu0 %v5670_v32 }
0x10c1   : > { %5180 = vmatprep.subr.bf16.mxu1 %v5671_v2 }
0x10c3   : > { %5159 = vmatpush3.bf16.msra.mxu0 %v5672_v33 }
0x10c4   : > { %5181 = vmatpush3.bf16.msra.mxu1 %v5673_v34  ;;  %5160 = vmatprep.subr.bf16.mxu0 %v5674_v6 }
0x10c5   : > { %5182 = vmatprep.subr.bf16.mxu1 %v5675_v37 }
0x10c7   : > { %5161 = vmatpush3.bf16.msra.mxu0 %v5676_v39 }
0x10c8   : > { %5183 = vmatpush3.bf16.msra.mxu1 %v5677_v40  ;;  %5162 = vmatprep.subr.bf16.mxu0 %v5678_v41 }
0x10c9   : > { %5184 = vmatprep.subr.bf16.mxu1 %v5679_v42 }
0x10cb   : > { %5163 = vmatpush3.bf16.msra.mxu0 %v5680_v55 }
0x10cc   : > { %5185 = vmatpush3.bf16.msra.mxu1 %v5681_v43  ;;  %5164 = vmatprep.subr.bf16.mxu0 %v5682_v57 }
0x10cd   : > { %5186 = vmatprep.subr.bf16.mxu1 %v5683_v44 }
0x10cf   : > { %5165 = vmatpush3.bf16.msra.mxu0 %v5684_v14 }
0x10d0   : > { %5187 = vmatpush3.bf16.msra.mxu1 %v5685_v46 }
0x10d2   : > { %4238 = vmatmul.mubr.bf16.vlgmr.msra.gmra.mrb[68].mxu0 %v7402_v30 }
0x10d3   : > { %4279 = vmatmul.mubr.bf16.vlgmr.msra.gmra.mrb[68].mxu1 %v7404_v31 }
0x1145   : > { %v5034_v47 = vpop.f32.mrb[56].mxu0  ;;  %v5056_v18 = vpop.f32.mrb[56].mxu1 }
0x1146   : > { %v5035_v48 = vpop.f32.mrb[57].mxu0  ;;  %v5057_v3 = vpop.f32.mrb[57].mxu1 }
0x1147   : > { %v5036_v25 = vadd.f32 %v5035_v48, %v5034_v47  ;;  %v5058_v54 = vadd.f32 %v5057_v3, %v5056_v18  ;;  %v5037_v63 = vpop.f32.mrb[58].mxu0  ;;  %v5059_v4 = vpop.f32.mrb[58].mxu1 }
0x1148   : > { %v5038_v62 = vpop.f32.mrb[59].mxu0  ;;  %v5060_v5 = vpop.f32.mrb[59].mxu1 }
0x1149   : > { %v3994_v8 = vadd.f32 %v5036_v25, %v3190_v19  ;;  %v5039_v9 = vadd.f32 %v5038_v62, %v5037_v63  ;;  %v5061_v10 = vadd.f32 %v5060_v5, %v5059_v4 }
0x114b   : > { %v4035_v11 = vadd.f32 %v5058_v54, %v3994_v8  ;;  %v3997_v30 = vadd.f32 %v5039_v9, %v3190_v19 }
0x114d   : > { %v4038_v12 = vadd.f32 %v5061_v10, %v3997_v30 }
0x1165   : > { %v5078_v31 = vpop.f32.mrb[60].mxu0  ;;  %v5100_v36 = vpop.f32.mrb[60].mxu1 }
0x1166   : > { %v5079_v13 = vpop.f32.mrb[61].mxu0  ;;  %v5101_v16 = vpop.f32.mrb[61].mxu1 }
0x1167   : > { %v5080_v17 = vadd.f32 %v5079_v13, %v5078_v31  ;;  %v5102_v49 = vadd.f32 %v5101_v16, %v5100_v36  ;;  %v5081_v15 = vpop.f32.mrb[62].mxu0  ;;  %v5103_v35 = vpop.f32.mrb[62].mxu1 }
0x1168   : > { %v5082_v52 = vpop.f32.mrb[63].mxu0  ;;  %v5104_v56 = vpop.f32.mrb[63].mxu1 }
0x1169   : > { %v4076_v20 = vadd.f32 %v5080_v17, %v4035_v11  ;;  %v5083_v21 = vadd.f32 %v5082_v52, %v5081_v15  ;;  %v5105_v22 = vadd.f32 %v5104_v56, %v5103_v35  ;;  %v4318_v35 = vrot.slane %v6981_v0, %v7340_v61  ;;  %v5729_v0 = vld [vmem:[#allocation24 + $0x8] sm:$0xff] (!%p4953_p3)  }
0x116b   : > { %v4117_v23 = vadd.f32 %v5102_v49, %v4076_v20  ;;  %v4079_v24 = vadd.f32 %v5083_v21, %v4038_v12 }
0x116d   : > { %v4120_v26 = vadd.f32 %v5105_v22, %v4079_v24 }
0x1185   : > { %v5122_v27 = vpop.f32.mrb[64].mxu0 }
0x1186   : > { %v5144_v50 = vpop.f32.mrb[64].mxu1  ;;  %v5123_v28 = vpop.f32.mrb[65].mxu0 }
0x1187   : > { %v5124_v53 = vadd.f32 %v5123_v28, %v5122_v27  ;;  %v5145_v38 = vpop.f32.mrb[65].mxu1  ;;  %v5125_v51 = vpop.f32.mrb[66].mxu0  ;;  %v5728_v27 = vld [vmem:[#allocation24] sm:$0xff] (!%p4953_p3)   ;;  %v4954_v28 = vld [vmem:[#allocation26] ss:$0 sm:$0xff] (!%p4953_p3) }
0x1188   : > { %v5146_v59 = vadd.f32 %v5145_v38, %v5144_v50  ;;  %v5147_v60 = vpop.f32.mrb[66].mxu1  ;;  %v5126_v58 = vpop.f32.mrb[67].mxu0  ;;  %v6307_v50 = vmov (!%p4953_p3), 0.0  }
0x1189   : > { %v4158_v29 = vadd.f32 %v5124_v53, %v4117_v23  ;;  %v5127_v32 = vadd.f32 %v5126_v58, %v5125_v51  ;;  %v5148_v2 = vpop.f32.mrb[67].mxu1  ;;  %5337 = vmatprep.subr.bf16.mxu0 (!%p4953_p3), %v6307_v50  ;;  %5341 = vmatprep.mubr.msk.bf16.mxu0 (!%p4953_p3), %vm6308_vm11, %v6307_v50 }
0x118a   : > { %v5149_v33 = vadd.f32 %v5148_v2, %v5147_v60  ;;  %5338 = vmatpush3.bf16.msra.mxu0 (!%p4953_p3), %v5728_v27 }
0x118b   : > { %v4199_v34 = vadd.f32 %v5146_v59, %v4158_v29  ;;  %v4161_v6 = vadd.f32 %v5127_v32, %v4120_v26  ;;  %5339 = vmatprep.subr.bf16.mxu0 (!%p4953_p3), %v6307_v50 }
0x118d   : > { %v4202_v37 = vadd.f32 %v5149_v33, %v4161_v6 }
0x118e   : > { %5340 = vmatpush3.bf16.msra.mxu0 (!%p4953_p3), %v5729_v0 }
0x11a5   : > { %v5166_v39 = vpop.f32.mrb[68].mxu0 }
0x11a6   : > { %v5188_v40 = vpop.f32.mrb[68].mxu1  ;;  %v5167_v41 = vpop.f32.mrb[69].mxu0 }
0x11a7   : > { %v5168_v42 = vadd.f32 %v5167_v41, %v5166_v39  ;;  %v5189_v55 = vpop.f32.mrb[69].mxu1  ;;  %v5169_v43 = vpop.f32.mrb[70].mxu0 }
0x11a8   : > { %v5190_v57 = vadd.f32 %v5189_v55, %v5188_v40  ;;  %v5191_v44 = vpop.f32.mrb[70].mxu1  ;;  %v5170_v14 = vpop.f32.mrb[71].mxu0 }
0x11a9   : > { %v4240_v46 = vadd.f32 %v5168_v42, %v4199_v34  ;;  %v5171_v47 = vadd.f32 %v5170_v14, %v5169_v43  ;;  %v5192_v18 = vpop.f32.mrb[71].mxu1 }
0x11aa   : > { %v5193_v19 = vadd.f32 %v5192_v18, %v5191_v44 }
0x11ab   : > { %v4281_v48 = vadd.f32 %v5190_v57, %v4240_v46  ;;  %v4243_v3 = vadd.f32 %v5171_v47, %v4202_v37 }
0x11ad   : > { %v4284_v25 = vadd.f32 %v5193_v19, %v4243_v3  ;;  %v4287_v54 = vadd.f32 %v4281_v48, %v7248_v45 }
0x11af   : > { %v4289_v63 = vsel %vm1066_vm6, %v4287_v54, 0.0  ;;  %v4288_v4 = vadd.f32 %v4284_v25, %v7250_v7 }
0x11b0   : > { %4290 = vadd.xlane.f32.xlu1 %v4289_v63 }
0x11b1   : > { %v4292_v62 = vsel %vm1066_vm6, %v4288_v4, 0.0 }
0x11b2   : > { %4293 = vadd.xlane.f32.xlu0 %v4292_v62 }
0x123d   : > { %v4291_v5 = vpop.xlane.xlu1 %4290 }
0x123e   : > { %v4295_v8 = vmul.f32 0.03125, %v4291_v5 }
0x123f   : > { %v4294_v9 = vpop.xlane.xlu0 %4293 }
0x1240   : > { %v4297_v10 = vsub.f32 %v4287_v54, %v4295_v8  ;;  %v4296_v11 = vmul.f32 0.03125, %v4294_v9 }
0x1242   : > { %v4298_v30 = vsub.f32 %v4288_v4, %v4296_v11  ;;  %v4299_v12 = vmul.f32 %v4297_v10, %v4297_v10 }
0x1244   : > { %v4301_v31 = vsel %vm1066_vm6, %v4299_v12, 0.0  ;;  %v4300_v36 = vmul.f32 %v4298_v30, %v4298_v30 }
0x1245   : > { %4302 = vadd.xlane.f32.xlu1 %v4301_v31 }
0x1246   : > { %v4304_v45 = vsel %vm1066_vm6, %v4300_v36, 0.0 }
0x1247   : > { %4305 = vadd.xlane.f32.xlu0 %v4304_v45 }
0x12d2   : > { %v4303_v13 = vpop.xlane.xlu1 %4302 }
0x12d3   : > { %v4307_v7 = vmul.f32 0.03125, %v4303_v13 }
0x12d4   : > { %v4306_v16 = vpop.xlane.xlu0 %4305 }
0x12d5   : > { %v4309_v17 = vadd.f32 1e-05, %v4307_v7  ;;  %v4308_v49 = vmul.f32 0.03125, %v4306_v16 }
0x12d7   : > { %5722 = vrsqrt.f32 %v4309_v17  ;;  %v4310_v15 = vadd.f32 1e-05, %v4308_v49 }
0x12d9   : > { %5724 = vrsqrt.f32 %v4310_v15 }
0x12e1   : > { %v5723_v52 = vpop.eup %5722 }
0x12e2   : > { %v4313_v56 = vmul.f32 %v5723_v52, %v4297_v10 }
0x12e3   : > { %v5725_v20 = vpop.eup %5724 }
0x12e4   : > { %v4319_v21 = vmul.f32 %v4318_v35, %v4313_v56  ;;  %v4314_v22 = vmul.f32 %v5725_v20, %v4298_v30  ;;  %4332 = sbr.rel (%p4953_p3) target bundleno = 5061 (0x13c5), region = 148 }
0x12e6   : > { %v4325_v23 = vadd.f32 %v6983_v1, %v4319_v21  ;;  %v4320_v24 = vmul.f32 %v4318_v35, %v4314_v22 }
0x12e8   : > { %4327 = vst.msk [vmem:[#allocation2] sm:$0xff] %vm1066_vm6, %v4325_v23  ;;  %v4326_v26 = vadd.f32 %v6983_v1, %v4320_v24 }
0x12ea   : > { %4328 = vst.msk [vmem:[#allocation2 + $0x8] sm:$0xff] %vm1066_vm6, %v4326_v26  ;;  %v4333_v61 = vpack.c.bf16 (!%p4953_p3), %v4326_v26, %v4325_v23 }
0x12ec   : > { %5342 = vmatmul.mubr.msk.bf16.vlgmr.msra.gmra.mrb[0].mxu0 %vm1066_vm6, %v4333_v61 }
0x13bf   : > { %v4394_v53 = vpop.f32.mrb[0].mxu0 }
0x13c0   : > { %v4395_v1 = vadd.f32 %v4954_v28, %v4394_v53  ;;  %v5343_v38 = vpop.f32.mrb[1].mxu0 }
0x13c1   : > { %v4397_v51 = vpop.f32.mrb[2].mxu0 }
0x13c2   : > { %4401 = vst [vmem:[#allocation27] sm:$0xff] %v4395_v1  ;;  %v4398_v59 = vadd.f32 %v4954_v28, %v4397_v51  ;;  %v5344_v60 = vpop.f32.mrb[3].mxu0 }
0x13c4   : > { %4402 = vst [vmem:[#allocation27 + $0x8] sm:$0xff] %v4398_v59 }
0x13c5 PF: > { %p5455_p4 = scmp.eq.s32.totalorder %s6422_s24, 1  ;;  %s6309_s30 = smov [#allocation27]  }
0x13c6   : > { %s4412_s15 = sshll.u32 %s6309_s30, 4  ;;  %s4413_s15 = int_to_ptr.vmem [resolvable:$true] %s4412_s15 }
0x13c7   : > { %s6166_s4 = scalar_lea.vmem %s4413_s15, 256  ;;  %p6173_p5 = scmp.lt.s32.totalorder %s4413_s15, %s4413_s15 }
0x13c8   : > { %p6167_p10 = scmp.ne.s32.totalorder %s4413_s15, %s6166_s4  ;;  %p6174_p9 = scmp.lt.s32.totalorder %s6166_s4, %s6166_s4 }
0x13ca   : > { %p6168_p7 = pnand %p6167_p10, %p5455_p4  ;;  %p6175_p11 = por %p6174_p9, %p6173_p5 }
0x13cc   : > { %p6169_p13 = pneg %p6168_p7 }
0x13ce   : > { %p6176_p12 = pnand %p6175_p11, %p6169_p13 }
0x13d0   : > { %6179 = shalt.err (!%p6176_p12)
}
0x13d1   : > { %s7667_s26 = sld [smem:[#allocation58_spill]] }
0x13d7   : > { %s6180_s3 = scalar_lea.hbm %s7667_s26, 256 }
0x13d8   : > { %p6181_p2 = scmp.ne.s32.totalorder %s7667_s26, %s6180_s3  ;;  %p6186_p1 = scmp.lt.u32.totalorder %s6180_s3, %s7667_s26 }
0x13da   : > { %p6182_p8 = pnand %p6181_p2, %p5455_p4 }
0x13dc   : > { %p6183_p6 = pneg %p6182_p8 }
0x13de   : > { %p6188_p0 = pnand %p6186_p1, %p6183_p6 }
0x13e0   : > { %6191 = shalt.err (!%p6188_p0)
}
0x13e1   : > { %s6310_s19 = smov 128  }
0x13e2   : > { %5390 = dma.vmem_to_hbm [thread:$0]  (%p5455_p4), %s4413_s15, 256, %s7667_s26, [#allocation5], %s6310_s19, %s6310_s19, %s6303_s8  }
0x13e3   : > { %6249 = dma.done.wait (%p5455_p4), [#allocation5], 256  }
0x13e4   : > { %6251 = vsyncadd (%p5455_p4), [#allocation5], 4294967040 }
0x13e5 PF: > { %s7668_s7 = sld [smem:[#allocation40_spill]]  ;;  %s7669_s18 = sld [smem:[#allocation37_spill]] }
0x13e6   : > { %s7670_s19 = sld [smem:[#allocation38_spill]]  ;;  %s7671_s20 = sld [smem:[#allocation44_spill]] }
0x13e7   : > { %s7672_s13 = sld [smem:[#allocation42_spill]]  ;;  %s7673_s21 = smov %s6270_s22 }
0x13eb   : > { %s42_s23 = sadd.s32 1, %s7668_s7  }
0x13ec   : > { %p39_p3 = scmp.ge.s32.totalorder %s42_s23, 4  }
0x13ed   : > { %s7674_s22 = smov %s7672_s13 }
0x13ee   :  { %41 = sbr.rel (!%p39_p3) target bundleno = 30 (0x1e), region = 241 }
0x13f5   :  { %4428 = vsyncpa [#allocation4], 1 }
0x13f6   :  { %4430 = vsyncpa [#allocation4 + $0x1], 1 }
0x13f7   :  { %4431 = vsyncpa [#allocation7], 1 }
0x13f8   :  { %4432 = vsyncpa [#allocation10], 1 }
0x13f9   :  { %4433 = vsyncpa [#allocation13], 1 }
0x13fa   :  { %4435 = vsyncpa [#allocation13 + $0x1], 1 }
0x13fb   :  { %4436 = vsyncpa [#allocation16], 1 }
0x13fc   :  { %4438 = vsyncpa [#allocation16 + $0x1], 1 }
0x13fd   :  { %4439 = vsyncpa [#allocation19], 1 }
0x13fe   :  { %4441 = vsyncpa [#allocation19 + $0x1], 1 }
0x13ff   :  { %4442 = vsyncpa [#allocation22], 1 }
0x1400   :  { %4444 = vsyncpa [#allocation22 + $0x1], 1 }
0x1401   :  { %4445 = vsyncpa [#allocation25], 1 }
0x1402   :  { %4446 = vsyncpa [#allocation5], 1 }
0x1403   :  { %4448 = vsyncpa [#allocation5 + $0x1], 1 }

</bundles_post_ra>
